<compile_context>
chip_gen: v7x
topology: tpu7x:2x2x1
jax: 0.10.0
libtpu: 0.0.40
codegen_flags: <defaults>
</compile_context>

<pallas_src>
import functools

import jax
import jax.numpy as jnp
from jax import lax
from jax.experimental import pallas as pl
from jax.experimental.pallas import tpu as pltpu


# ----------------------------------------------------------------------------
# Fused decoder kernel factory.
# ----------------------------------------------------------------------------
def _make_decoder_kernel(n_res_block, H, W):
    def kernel(*refs):
        x_ref, mt_ref, mb_ref, ml_ref, mr_ref, w0_ref, b0_ref = refs[:7]
        res_refs = refs[7:7 + 4 * n_res_block]
        ct1_w_ref, ct1_b_ref, ct2_w_ref, ct2_b_ref, o_ref = refs[7 + 4 * n_res_block:]

        # (1, HW) f32 border masks: valid-row/col indicators for +-1 shifts.
        m_top, m_bot = mt_ref[...], mb_ref[...]
        m_left, m_right = ml_ref[...], mr_ref[...]

        def shift(x2, dh, dw):
            """x2: (C, H*W).  Returns x shifted by (dh, dw) with zero padding."""
            s = dh * W + dw
            xs = x2 if s == 0 else jnp.roll(x2, -s, axis=1)
            m = None
            if dh < 0:
                m = m_top
            elif dh > 0:
                m = m_bot
            if dw < 0:
                m = m_left if m is None else m * m_left
            elif dw > 0:
                m = m_right if m is None else m * m_right
            return xs if m is None else xs * m      # (1,HW) mask broadcasts over C

        def shifted_getter(x2):
            cache = {}
            def get(dh, dw):
                key = (dh, dw)
                if key not in cache:
                    cache[key] = shift(x2, dh, dw)
                return cache[key]
            return get

        def conv3x3(x2, w_ref, b_ref):
            """9 per-tap matmuls accumulated in f32.  w_ref: (9, Cout, Cin)."""
            g = shifted_getter(x2)
            acc = None
            for kh in range(3):
                for kw in range(3):
                    t = jnp.dot(w_ref[kh * 3 + kw], g(kh - 1, kw - 1),
                                preferred_element_type=jnp.float32)
                    acc = t if acc is None else acc + t
            return acc + b_ref[...]

        x2 = x_ref[0]                                           # (Cin, HW)

        # Conv2d(in_channel, channel, 3, padding=1)
        h = conv3x3(x2, w0_ref, b0_ref)                         # (channel, HW)

        # ResBlocks: h += Conv1x1(ReLU(Conv3x3(ReLU(h))))
        for i in range(n_res_block):
            w1_ref, b1_ref, w2_ref, b2_ref = res_refs[4 * i: 4 * i + 4]
            t = conv3x3(jnp.maximum(h, 0.0), w1_ref, b1_ref)    # (nrc, HW)
            t = jnp.dot(w2_ref[...], jnp.maximum(t, 0.0),
                        preferred_element_type=jnp.float32) + b2_ref[...]
            h = h + t

        h = jnp.maximum(h, 0.0)

        # ConvTranspose2d #1 (k4, s2, p1) -> 4 phase planes u[py,px] on the (H,W)
        # grid (u[py*2+px][c, m*W+n] == y1[c, 2m+py, 2n+px]), followed by ReLU.
        gh = shifted_getter(h)
        u = []
        for py in range(2):
            for px in range(2):
                p = py * 2 + px
                acc = None
                for dy in range(2):
                    for dx in range(2):
                        t = jnp.dot(ct1_w_ref[p * 4 + dy * 2 + dx],
                                    gh(py + dy - 1, px + dx - 1),
                                    preferred_element_type=jnp.float32)
                        acc = t if acc is None else acc + t
                u.append(jnp.maximum(acc + ct1_b_ref[...], 0.0))  # (channel//2, HW)

        # ConvTranspose2d #2 composed directly onto the ct1 phase planes:
        # final[o, 4m+2ry+qy, 4n+2rx+qx] = b2[o]
        #   + sum_{ey,ex} W2[qy,qx,ey,ex] @ u[(ry+qy+ey-1)%2, (rx+qx+ex-1)%2]
        #                                   shifted by ((ry+qy+ey-1)//2, (rx+qx+ex-1)//2)
        # -> 16 mod-4 output phase planes, no in-kernel pixel shuffle.
        gu = [shifted_getter(up) for up in u]
        b2v = ct2_b_ref[...]
        for ry in range(2):
            for qy in range(2):
                for rx in range(2):
                    for qx in range(2):
                        acc = None
                        for ey in range(2):
                            for ex in range(2):
                                ty = ry + qy + ey - 1
                                tx = rx + qx + ex - 1
                                wm = ct2_w_ref[(qy * 2 + qx) * 4 + ey * 2 + ex]
                                xs = gu[(ty % 2) * 2 + (tx % 2)](ty // 2, tx // 2)
                                t = jnp.dot(wm, xs,
                                            preferred_element_type=jnp.float32)
                                acc = t if acc is None else acc + t
                        p16 = (2 * ry + qy) * 4 + (2 * rx + qx)
                        o_ref[0, p16] = (acc + b2v).astype(o_ref.dtype)

    return kernel


# ----------------------------------------------------------------------------
# Wrapper: weight preparation + pallas_call + XLA epilogue (pixel shuffle).
# ----------------------------------------------------------------------------
@functools.partial(jax.jit, static_argnames=("n_res_block",))
def decoder_forward(x_nchw, params, *, n_res_block):
    N, Cin, H, W = x_nchw.shape
    HW = H * W
    channel = params["conv0_b"].shape[0]
    c_half = params["ct1_b"].shape[0]
    out_ch = params["ct2_b"].shape[0]

    # NCHW is already channel-major: just flatten spatial -> lane-dense (Cin, HW).
    x2 = x_nchw.reshape(N, Cin, HW).astype(jnp.float32)

    # Border masks (1, HW) f32 for +-1 spatial shifts (built once, outside kernel).
    rows = jnp.arange(H, dtype=jnp.int32)
    cols = jnp.arange(W, dtype=jnp.int32)
    def _mk(row_mask, col_mask):
        m = row_mask[:, None] & col_mask[None, :]
        return m.astype(jnp.float32).reshape(1, HW)
    ones_r, ones_c = rows >= 0, cols >= 0
    m_top = _mk(rows >= 1, ones_c)
    m_bot = _mk(rows <= H - 2, ones_c)
    m_left = _mk(ones_r, cols >= 1)
    m_right = _mk(ones_r, cols <= W - 2)

    def conv_w(w):                      # HWIO (3,3,ci,co) -> (9, co, ci)
        co, ci = w.shape[3], w.shape[2]
        return jnp.transpose(w, (0, 1, 3, 2)).reshape(9, co, ci).astype(jnp.float32)

    def convT_w(w_t):                   # torch (ci, co, 4, 4) -> (16, co, ci)
        ci, co = w_t.shape[0], w_t.shape[1]
        # flipped kernel in HWIO of the equivalent dilated forward conv
        w_flip = jnp.transpose(w_t[:, :, ::-1, ::-1], (2, 3, 0, 1))   # [a=py+2dy, b=px+2dx, ci, co]
        w_r = w_flip.reshape(2, 2, 2, 2, ci, co)                      # [dy, py, dx, px, ci, co]
        w_p = jnp.transpose(w_r, (1, 3, 0, 2, 5, 4))                  # [py, px, dy, dx, co, ci]
        return w_p.reshape(16, co, ci).astype(jnp.float32)

    w_args = [conv_w(params["conv0_w"]),
              params["conv0_b"].reshape(channel, 1).astype(jnp.float32)]
    for i in range(n_res_block):
        nrc = params[f"res{i}_b1"].shape[0]
        w_args += [conv_w(params[f"res{i}_w1"]),
                   params[f"res{i}_b1"].reshape(nrc, 1).astype(jnp.float32),
                   jnp.transpose(params[f"res{i}_w2"][0, 0], (1, 0)).astype(jnp.float32),
                   params[f"res{i}_b2"].reshape(channel, 1).astype(jnp.float32)]
    w_args += [convT_w(params["ct1_w"]),
               params["ct1_b"].reshape(c_half, 1).astype(jnp.float32),
               convT_w(params["ct2_w"]),
               params["ct2_b"].reshape(out_ch, 1).astype(jnp.float32)]

    inputs = [x2, m_top, m_bot, m_left, m_right] + w_args

    in_specs = [pl.BlockSpec((1, Cin, HW), lambda n: (n, 0, 0))]
    for a in inputs[1:]:
        # full-array block, constant block index -> loaded once, never re-fetched
        in_specs.append(pl.BlockSpec(a.shape, (lambda n, nd=a.ndim: (0,) * nd)))

    out = pl.pallas_call(
        _make_decoder_kernel(n_res_block, H, W),
        out_shape=jax.ShapeDtypeStruct((N, 16, out_ch, HW), jnp.float32),
        grid=(N,),
        in_specs=in_specs,
        out_specs=pl.BlockSpec((1, 16, out_ch, HW), lambda n: (n, 0, 0, 0)),
        compiler_params=pltpu.CompilerParams(
            dimension_semantics=("parallel",)),   # batch -> v7x's 2 TensorCores
    )(*inputs)

    # XLA epilogue: mod-4 depth-to-space of the 16 phase planes + NCHW assembly.
    y = out.reshape(N, 4, 4, out_ch, H, W)            # (n, Py, Px, c, m, n_)
    y = jnp.transpose(y, (0, 3, 4, 1, 5, 2))          # (n, c, m, Py, n_, Px)
    return y.reshape(N, out_ch, 4 * H, 4 * W)


# ----------------------------------------------------------------------------
# Parameter init (independent keys for every tensor).
# ----------------------------------------------------------------------------
def init_decoder_params(key, in_channel, out_channel, channel, n_res_block,
                        n_res_channel):
    def nrm(k, shape):
        return jax.random.normal(k, shape, jnp.float32) * 0.1

    keys = jax.random.split(key, 6 + 4 * n_res_block)
    ki = iter(keys)
    p = {
        "conv0_w": nrm(next(ki), (3, 3, in_channel, channel)),   # HWIO
        "conv0_b": nrm(next(ki), (channel,)),
    }
    for i in range(n_res_block):
        p[f"res{i}_w1"] = nrm(next(ki), (3, 3, channel, n_res_channel))
        p[f"res{i}_b1"] = nrm(next(ki), (n_res_channel,))
        p[f"res{i}_w2"] = nrm(next(ki), (1, 1, n_res_channel, channel))
        p[f"res{i}_b2"] = nrm(next(ki), (channel,))
    # ConvTranspose2d weights kept in PyTorch layout [Cin, Cout, KH, KW]
    p["ct1_w"] = nrm(next(ki), (channel, channel // 2, 4, 4))
    p["ct1_b"] = nrm(next(ki), (channel // 2,))
    p["ct2_w"] = nrm(next(ki), (channel // 2, out_channel, 4, 4))
    p["ct2_b"] = nrm(next(ki), (out_channel,))
    return p


# ----------------------------------------------------------------------------
# Pure-JAX reference (lax convs) for correctness check.
# ----------------------------------------------------------------------------
def _conv_ref(x, w, b, padding):
    out = lax.conv_general_dilated(
        x, w, (1, 1), [(padding, padding)] * 2,
        dimension_numbers=("NHWC", "HWIO", "NHWC"))
    return out + b


def _convT_ref(x, w_t, b, stride, padding):
    K = w_t.shape[-1]
    w_conv = jnp.transpose(w_t[:, :, ::-1, ::-1], (2, 3, 0, 1))
    out = lax.conv_general_dilated(
        x, w_conv, (1, 1), [(K - 1 - padding, K - 1 - padding)] * 2,
        lhs_dilation=(stride, stride),
        dimension_numbers=("NHWC", "HWIO", "NHWC"))
    return out + b


def decoder_ref(x_nchw, p, n_res_block):
    x = jnp.transpose(x_nchw, (0, 2, 3, 1))
    h = _conv_ref(x, p["conv0_w"], p["conv0_b"], 1)
    for i in range(n_res_block):
        t = _conv_ref(jax.nn.relu(h), p[f"res{i}_w1"], p[f"res{i}_b1"], 1)
        t = _conv_ref(jax.nn.relu(t), p[f"res{i}_w2"], p[f"res{i}_b2"], 0)
        h = h + t
    h = jax.nn.relu(h)
    h = _convT_ref(h, p["ct1_w"], p["ct1_b"], 2, 1)
    h = jax.nn.relu(h)
    h = _convT_ref(h, p["ct2_w"], p["ct2_b"], 2, 1)
    return jnp.transpose(h, (0, 3, 1, 2))


if __name__ == "__main__":
    # Decoder(in_channel=4, out_channel=3, channel=32, n_res_block=2,
    #         n_res_channel=8, stride=4)
    in_channel, out_channel, channel = 4, 3, 32
    n_res_block, n_res_channel = 2, 8

    key = jax.random.PRNGKey(0)
    kx, kp = jax.random.split(key)
    x = jax.random.normal(kx, (2, in_channel, 16, 16), jnp.float32)  # NCHW input
    params = init_decoder_params(kp, in_channel, out_channel, channel,
                                 n_res_block, n_res_channel)

    out = decoder_forward(x, params, n_res_block=n_res_block)
    out = jax.block_until_ready(out)
    assert out.shape == (2, out_channel, 64, 64), out.shape

    ref = decoder_ref(x, params, n_res_block)
    assert jnp.allclose(out, ref, atol=1e-3, rtol=1e-3), float(
        jnp.max(jnp.abs(out - ref)))

    print("KERNEL_OK")
</pallas_src>

<mosaic_0001>
module attributes {stable_mosaic.version = 11 : i64} {
  func.func @kernel(%arg0: i32, %arg1: memref<1x4x256xf32, #tpu.memory_space<vmem>>, %arg2: memref<1x256xf32, #tpu.memory_space<vmem>>, %arg3: memref<1x256xf32, #tpu.memory_space<vmem>>, %arg4: memref<1x256xf32, #tpu.memory_space<vmem>>, %arg5: memref<1x256xf32, #tpu.memory_space<vmem>>, %arg6: memref<9x32x4xf32, #tpu.memory_space<vmem>>, %arg7: memref<32x1xf32, #tpu.memory_space<vmem>>, %arg8: memref<9x8x32xf32, #tpu.memory_space<vmem>>, %arg9: memref<8x1xf32, #tpu.memory_space<vmem>>, %arg10: memref<32x8xf32, #tpu.memory_space<vmem>>, %arg11: memref<32x1xf32, #tpu.memory_space<vmem>>, %arg12: memref<9x8x32xf32, #tpu.memory_space<vmem>>, %arg13: memref<8x1xf32, #tpu.memory_space<vmem>>, %arg14: memref<32x8xf32, #tpu.memory_space<vmem>>, %arg15: memref<32x1xf32, #tpu.memory_space<vmem>>, %arg16: memref<16x16x32xf32, #tpu.memory_space<vmem>>, %arg17: memref<16x1xf32, #tpu.memory_space<vmem>>, %arg18: memref<16x3x16xf32, #tpu.memory_space<vmem>>, %arg19: memref<3x1xf32, #tpu.memory_space<vmem>>, %arg20: memref<1x16x3x256xf32, #tpu.memory_space<vmem>>) attributes {dimension_semantics = [#tpu.dimension_semantics<parallel>], iteration_bounds = array<i64: 2>, scalar_prefetch = 0 : i64, scratch_operands = 0 : i64, tpu.core_type = #tpu.core_type<tc>, window_params = [{transform_indices = @transform_0, window_bounds = array<i64: 1, 4, 256>}, {pipeline_mode = #tpu.pipeline_mode<synchronous>, transform_indices = @transform_1, window_bounds = array<i64: 1, 256>}, {pipeline_mode = #tpu.pipeline_mode<synchronous>, transform_indices = @transform_2, window_bounds = array<i64: 1, 256>}, {pipeline_mode = #tpu.pipeline_mode<synchronous>, transform_indices = @transform_3, window_bounds = array<i64: 1, 256>}, {pipeline_mode = #tpu.pipeline_mode<synchronous>, transform_indices = @transform_4, window_bounds = array<i64: 1, 256>}, {pipeline_mode = #tpu.pipeline_mode<synchronous>, transform_indices = @transform_5, window_bounds = array<i64: 9, 32, 4>}, {pipeline_mode = #tpu.pipeline_mode<synchronous>, transform_indices = @transform_6, window_bounds = array<i64: 32, 1>}, {pipeline_mode = #tpu.pipeline_mode<synchronous>, transform_indices = @transform_7, window_bounds = array<i64: 9, 8, 32>}, {pipeline_mode = #tpu.pipeline_mode<synchronous>, transform_indices = @transform_8, window_bounds = array<i64: 8, 1>}, {pipeline_mode = #tpu.pipeline_mode<synchronous>, transform_indices = @transform_9, window_bounds = array<i64: 32, 8>}, {pipeline_mode = #tpu.pipeline_mode<synchronous>, transform_indices = @transform_10, window_bounds = array<i64: 32, 1>}, {pipeline_mode = #tpu.pipeline_mode<synchronous>, transform_indices = @transform_11, window_bounds = array<i64: 9, 8, 32>}, {pipeline_mode = #tpu.pipeline_mode<synchronous>, transform_indices = @transform_12, window_bounds = array<i64: 8, 1>}, {pipeline_mode = #tpu.pipeline_mode<synchronous>, transform_indices = @transform_13, window_bounds = array<i64: 32, 8>}, {pipeline_mode = #tpu.pipeline_mode<synchronous>, transform_indices = @transform_14, window_bounds = array<i64: 32, 1>}, {pipeline_mode = #tpu.pipeline_mode<synchronous>, transform_indices = @transform_15, window_bounds = array<i64: 16, 16, 32>}, {pipeline_mode = #tpu.pipeline_mode<synchronous>, transform_indices = @transform_16, window_bounds = array<i64: 16, 1>}, {pipeline_mode = #tpu.pipeline_mode<synchronous>, transform_indices = @transform_17, window_bounds = array<i64: 16, 3, 16>}, {pipeline_mode = #tpu.pipeline_mode<synchronous>, transform_indices = @transform_18, window_bounds = array<i64: 3, 1>}, {transform_indices = @transform_19, window_bounds = array<i64: 1, 16, 3, 256>}]} {
    %c0 = arith.constant 0 : index
    %c0_0 = arith.constant 0 : index
    %0 = vector.load %arg2[%c0, %c0_0] : memref<1x256xf32, #tpu.memory_space<vmem>>, vector<1x256xf32>
    %c0_1 = arith.constant 0 : index
    %c0_2 = arith.constant 0 : index
    %1 = vector.load %arg3[%c0_1, %c0_2] : memref<1x256xf32, #tpu.memory_space<vmem>>, vector<1x256xf32>
    %c0_3 = arith.constant 0 : index
    %c0_4 = arith.constant 0 : index
    %2 = vector.load %arg4[%c0_3, %c0_4] : memref<1x256xf32, #tpu.memory_space<vmem>>, vector<1x256xf32>
    %c0_5 = arith.constant 0 : index
    %c0_6 = arith.constant 0 : index
    %3 = vector.load %arg5[%c0_5, %c0_6] : memref<1x256xf32, #tpu.memory_space<vmem>>, vector<1x256xf32>
    %c0_7 = arith.constant 0 : index
    %c0_8 = arith.constant 0 : index
    %c0_9 = arith.constant 0 : index
    %4 = vector.load %arg1[%c0_7, %c0_8, %c0_9] : memref<1x4x256xf32, #tpu.memory_space<vmem>>, vector<1x4x256xf32>
    %5 = vector.shape_cast %4 : vector<1x4x256xf32> to vector<4x256xf32>
    %c0_10 = arith.constant 0 : index
    %c0_11 = arith.constant 0 : index
    %c0_12 = arith.constant 0 : index
    %6 = vector.load %arg6[%c0_10, %c0_11, %c0_12] : memref<9x32x4xf32, #tpu.memory_space<vmem>>, vector<1x32x4xf32>
    %7 = vector.shape_cast %6 : vector<1x32x4xf32> to vector<32x4xf32>
    %8 = vector.extract_strided_slice %5 {offsets = [0, 239], sizes = [4, 17], strides = [1, 1]} : vector<4x256xf32> to vector<4x17xf32>
    %9 = vector.extract_strided_slice %5 {offsets = [0, 0], sizes = [4, 239], strides = [1, 1]} : vector<4x256xf32> to vector<4x239xf32>
    %10 = tpu.concatenate %8, %9 in 1 : vector<4x17xf32>, vector<4x239xf32> -> vector<4x256xf32>
    %11 = arith.mulf %0, %2 : vector<1x256xf32>
    %12 = vector.broadcast %11 : vector<1x256xf32> to vector<4x256xf32>
    %13 = arith.mulf %10, %12 : vector<4x256xf32>
    %cst = arith.constant dense<0.000000e+00> : vector<32x256xf32>
    %14 = tpu.matmul %7, %13, %cst {dimension_numbers = #tpu.dot_dimension_numbers<[1], [0], [0], [1], [0, 0, 1, 1], [], []>} : vector<32x4xf32>, vector<4x256xf32>, vector<32x256xf32> -> vector<32x256xf32>
    %c1 = arith.constant 1 : index
    %c0_13 = arith.constant 0 : index
    %c0_14 = arith.constant 0 : index
    %15 = vector.load %arg6[%c1, %c0_13, %c0_14] : memref<9x32x4xf32, #tpu.memory_space<vmem>>, vector<1x32x4xf32>
    %16 = vector.shape_cast %15 : vector<1x32x4xf32> to vector<32x4xf32>
    %17 = vector.extract_strided_slice %5 {offsets = [0, 240], sizes = [4, 16], strides = [1, 1]} : vector<4x256xf32> to vector<4x16xf32>
    %18 = vector.extract_strided_slice %5 {offsets = [0, 0], sizes = [4, 240], strides = [1, 1]} : vector<4x256xf32> to vector<4x240xf32>
    %19 = tpu.concatenate %17, %18 in 1 : vector<4x16xf32>, vector<4x240xf32> -> vector<4x256xf32>
    %20 = vector.broadcast %0 : vector<1x256xf32> to vector<4x256xf32>
    %21 = arith.mulf %19, %20 : vector<4x256xf32>
    %cst_15 = arith.constant dense<0.000000e+00> : vector<32x256xf32>
    %22 = tpu.matmul %16, %21, %cst_15 {dimension_numbers = #tpu.dot_dimension_numbers<[1], [0], [0], [1], [0, 0, 1, 1], [], []>} : vector<32x4xf32>, vector<4x256xf32>, vector<32x256xf32> -> vector<32x256xf32>
    %23 = arith.addf %14, %22 : vector<32x256xf32>
    %c2 = arith.constant 2 : index
    %c0_16 = arith.constant 0 : index
    %c0_17 = arith.constant 0 : index
    %24 = vector.load %arg6[%c2, %c0_16, %c0_17] : memref<9x32x4xf32, #tpu.memory_space<vmem>>, vector<1x32x4xf32>
    %25 = vector.shape_cast %24 : vector<1x32x4xf32> to vector<32x4xf32>
    %26 = vector.extract_strided_slice %5 {offsets = [0, 241], sizes = [4, 15], strides = [1, 1]} : vector<4x256xf32> to vector<4x15xf32>
    %27 = vector.extract_strided_slice %5 {offsets = [0, 0], sizes = [4, 241], strides = [1, 1]} : vector<4x256xf32> to vector<4x241xf32>
    %28 = tpu.concatenate %26, %27 in 1 : vector<4x15xf32>, vector<4x241xf32> -> vector<4x256xf32>
    %29 = arith.mulf %0, %3 : vector<1x256xf32>
    %30 = vector.broadcast %29 : vector<1x256xf32> to vector<4x256xf32>
    %31 = arith.mulf %28, %30 : vector<4x256xf32>
    %cst_18 = arith.constant dense<0.000000e+00> : vector<32x256xf32>
    %32 = tpu.matmul %25, %31, %cst_18 {dimension_numbers = #tpu.dot_dimension_numbers<[1], [0], [0], [1], [0, 0, 1, 1], [], []>} : vector<32x4xf32>, vector<4x256xf32>, vector<32x256xf32> -> vector<32x256xf32>
    %33 = arith.addf %23, %32 : vector<32x256xf32>
    %c3 = arith.constant 3 : index
    %c0_19 = arith.constant 0 : index
    %c0_20 = arith.constant 0 : index
    %34 = vector.load %arg6[%c3, %c0_19, %c0_20] : memref<9x32x4xf32, #tpu.memory_space<vmem>>, vector<1x32x4xf32>
    %35 = vector.shape_cast %34 : vector<1x32x4xf32> to vector<32x4xf32>
    %36 = vector.extract_strided_slice %5 {offsets = [0, 255], sizes = [4, 1], strides = [1, 1]} : vector<4x256xf32> to vector<4x1xf32>
    %37 = vector.extract_strided_slice %5 {offsets = [0, 0], sizes = [4, 255], strides = [1, 1]} : vector<4x256xf32> to vector<4x255xf32>
    %38 = tpu.concatenate %36, %37 in 1 : vector<4x1xf32>, vector<4x255xf32> -> vector<4x256xf32>
    %39 = vector.broadcast %2 : vector<1x256xf32> to vector<4x256xf32>
    %40 = arith.mulf %38, %39 : vector<4x256xf32>
    %cst_21 = arith.constant dense<0.000000e+00> : vector<32x256xf32>
    %41 = tpu.matmul %35, %40, %cst_21 {dimension_numbers = #tpu.dot_dimension_numbers<[1], [0], [0], [1], [0, 0, 1, 1], [], []>} : vector<32x4xf32>, vector<4x256xf32>, vector<32x256xf32> -> vector<32x256xf32>
    %42 = arith.addf %33, %41 : vector<32x256xf32>
    %c4 = arith.constant 4 : index
    %c0_22 = arith.constant 0 : index
    %c0_23 = arith.constant 0 : index
    %43 = vector.load %arg6[%c4, %c0_22, %c0_23] : memref<9x32x4xf32, #tpu.memory_space<vmem>>, vector<1x32x4xf32>
    %44 = vector.shape_cast %43 : vector<1x32x4xf32> to vector<32x4xf32>
    %cst_24 = arith.constant dense<0.000000e+00> : vector<32x256xf32>
    %45 = tpu.matmul %44, %5, %cst_24 {dimension_numbers = #tpu.dot_dimension_numbers<[1], [0], [0], [1], [0, 0, 1, 1], [], []>} : vector<32x4xf32>, vector<4x256xf32>, vector<32x256xf32> -> vector<32x256xf32>
    %46 = arith.addf %42, %45 : vector<32x256xf32>
    %c5 = arith.constant 5 : index
    %c0_25 = arith.constant 0 : index
    %c0_26 = arith.constant 0 : index
    %47 = vector.load %arg6[%c5, %c0_25, %c0_26] : memref<9x32x4xf32, #tpu.memory_space<vmem>>, vector<1x32x4xf32>
    %48 = vector.shape_cast %47 : vector<1x32x4xf32> to vector<32x4xf32>
    %49 = vector.extract_strided_slice %5 {offsets = [0, 1], sizes = [4, 255], strides = [1, 1]} : vector<4x256xf32> to vector<4x255xf32>
    %50 = vector.extract_strided_slice %5 {offsets = [0, 0], sizes = [4, 1], strides = [1, 1]} : vector<4x256xf32> to vector<4x1xf32>
    %51 = tpu.concatenate %49, %50 in 1 : vector<4x255xf32>, vector<4x1xf32> -> vector<4x256xf32>
    %52 = vector.broadcast %3 : vector<1x256xf32> to vector<4x256xf32>
    %53 = arith.mulf %51, %52 : vector<4x256xf32>
    %cst_27 = arith.constant dense<0.000000e+00> : vector<32x256xf32>
    %54 = tpu.matmul %48, %53, %cst_27 {dimension_numbers = #tpu.dot_dimension_numbers<[1], [0], [0], [1], [0, 0, 1, 1], [], []>} : vector<32x4xf32>, vector<4x256xf32>, vector<32x256xf32> -> vector<32x256xf32>
    %55 = arith.addf %46, %54 : vector<32x256xf32>
    %c6 = arith.constant 6 : index
    %c0_28 = arith.constant 0 : index
    %c0_29 = arith.constant 0 : index
    %56 = vector.load %arg6[%c6, %c0_28, %c0_29] : memref<9x32x4xf32, #tpu.memory_space<vmem>>, vector<1x32x4xf32>
    %57 = vector.shape_cast %56 : vector<1x32x4xf32> to vector<32x4xf32>
    %58 = vector.extract_strided_slice %5 {offsets = [0, 15], sizes = [4, 241], strides = [1, 1]} : vector<4x256xf32> to vector<4x241xf32>
    %59 = vector.extract_strided_slice %5 {offsets = [0, 0], sizes = [4, 15], strides = [1, 1]} : vector<4x256xf32> to vector<4x15xf32>
    %60 = tpu.concatenate %58, %59 in 1 : vector<4x241xf32>, vector<4x15xf32> -> vector<4x256xf32>
    %61 = arith.mulf %1, %2 : vector<1x256xf32>
    %62 = vector.broadcast %61 : vector<1x256xf32> to vector<4x256xf32>
    %63 = arith.mulf %60, %62 : vector<4x256xf32>
    %cst_30 = arith.constant dense<0.000000e+00> : vector<32x256xf32>
    %64 = tpu.matmul %57, %63, %cst_30 {dimension_numbers = #tpu.dot_dimension_numbers<[1], [0], [0], [1], [0, 0, 1, 1], [], []>} : vector<32x4xf32>, vector<4x256xf32>, vector<32x256xf32> -> vector<32x256xf32>
    %65 = arith.addf %55, %64 : vector<32x256xf32>
    %c7 = arith.constant 7 : index
    %c0_31 = arith.constant 0 : index
    %c0_32 = arith.constant 0 : index
    %66 = vector.load %arg6[%c7, %c0_31, %c0_32] : memref<9x32x4xf32, #tpu.memory_space<vmem>>, vector<1x32x4xf32>
    %67 = vector.shape_cast %66 : vector<1x32x4xf32> to vector<32x4xf32>
    %68 = vector.extract_strided_slice %5 {offsets = [0, 16], sizes = [4, 240], strides = [1, 1]} : vector<4x256xf32> to vector<4x240xf32>
    %69 = vector.extract_strided_slice %5 {offsets = [0, 0], sizes = [4, 16], strides = [1, 1]} : vector<4x256xf32> to vector<4x16xf32>
    %70 = tpu.concatenate %68, %69 in 1 : vector<4x240xf32>, vector<4x16xf32> -> vector<4x256xf32>
    %71 = vector.broadcast %1 : vector<1x256xf32> to vector<4x256xf32>
    %72 = arith.mulf %70, %71 : vector<4x256xf32>
    %cst_33 = arith.constant dense<0.000000e+00> : vector<32x256xf32>
    %73 = tpu.matmul %67, %72, %cst_33 {dimension_numbers = #tpu.dot_dimension_numbers<[1], [0], [0], [1], [0, 0, 1, 1], [], []>} : vector<32x4xf32>, vector<4x256xf32>, vector<32x256xf32> -> vector<32x256xf32>
    %74 = arith.addf %65, %73 : vector<32x256xf32>
    %c8 = arith.constant 8 : index
    %c0_34 = arith.constant 0 : index
    %c0_35 = arith.constant 0 : index
    %75 = vector.load %arg6[%c8, %c0_34, %c0_35] : memref<9x32x4xf32, #tpu.memory_space<vmem>>, vector<1x32x4xf32>
    %76 = vector.shape_cast %75 : vector<1x32x4xf32> to vector<32x4xf32>
    %77 = vector.extract_strided_slice %5 {offsets = [0, 17], sizes = [4, 239], strides = [1, 1]} : vector<4x256xf32> to vector<4x239xf32>
    %78 = vector.extract_strided_slice %5 {offsets = [0, 0], sizes = [4, 17], strides = [1, 1]} : vector<4x256xf32> to vector<4x17xf32>
    %79 = tpu.concatenate %77, %78 in 1 : vector<4x239xf32>, vector<4x17xf32> -> vector<4x256xf32>
    %80 = arith.mulf %1, %3 : vector<1x256xf32>
    %81 = vector.broadcast %80 : vector<1x256xf32> to vector<4x256xf32>
    %82 = arith.mulf %79, %81 : vector<4x256xf32>
    %cst_36 = arith.constant dense<0.000000e+00> : vector<32x256xf32>
    %83 = tpu.matmul %76, %82, %cst_36 {dimension_numbers = #tpu.dot_dimension_numbers<[1], [0], [0], [1], [0, 0, 1, 1], [], []>} : vector<32x4xf32>, vector<4x256xf32>, vector<32x256xf32> -> vector<32x256xf32>
    %84 = arith.addf %74, %83 : vector<32x256xf32>
    %c0_37 = arith.constant 0 : index
    %c0_38 = arith.constant 0 : index
    %85 = vector.load %arg7[%c0_37, %c0_38] : memref<32x1xf32, #tpu.memory_space<vmem>>, vector<32x1xf32>
    %86 = vector.broadcast %85 : vector<32x1xf32> to vector<32x256xf32>
    %87 = arith.addf %84, %86 : vector<32x256xf32>
    %cst_39 = arith.constant 0.000000e+00 : f32
    %88 = vector.broadcast %cst_39 : f32 to vector<32x256xf32>
    %89 = arith.maximumf %87, %88 : vector<32x256xf32>
    %c0_40 = arith.constant 0 : index
    %c0_41 = arith.constant 0 : index
    %c0_42 = arith.constant 0 : index
    %90 = vector.load %arg8[%c0_40, %c0_41, %c0_42] : memref<9x8x32xf32, #tpu.memory_space<vmem>>, vector<1x8x32xf32>
    %91 = vector.shape_cast %90 : vector<1x8x32xf32> to vector<8x32xf32>
    %92 = vector.extract_strided_slice %89 {offsets = [0, 239], sizes = [32, 17], strides = [1, 1]} : vector<32x256xf32> to vector<32x17xf32>
    %93 = vector.extract_strided_slice %89 {offsets = [0, 0], sizes = [32, 239], strides = [1, 1]} : vector<32x256xf32> to vector<32x239xf32>
    %94 = tpu.concatenate %92, %93 in 1 : vector<32x17xf32>, vector<32x239xf32> -> vector<32x256xf32>
    %95 = arith.mulf %0, %2 : vector<1x256xf32>
    %96 = vector.broadcast %95 : vector<1x256xf32> to vector<32x256xf32>
    %97 = arith.mulf %94, %96 : vector<32x256xf32>
    %cst_43 = arith.constant dense<0.000000e+00> : vector<8x256xf32>
    %98 = tpu.matmul %91, %97, %cst_43 {dimension_numbers = #tpu.dot_dimension_numbers<[1], [0], [0], [1], [0, 0, 1, 1], [], []>} : vector<8x32xf32>, vector<32x256xf32>, vector<8x256xf32> -> vector<8x256xf32>
    %c1_44 = arith.constant 1 : index
    %c0_45 = arith.constant 0 : index
    %c0_46 = arith.constant 0 : index
    %99 = vector.load %arg8[%c1_44, %c0_45, %c0_46] : memref<9x8x32xf32, #tpu.memory_space<vmem>>, vector<1x8x32xf32>
    %100 = vector.shape_cast %99 : vector<1x8x32xf32> to vector<8x32xf32>
    %101 = vector.extract_strided_slice %89 {offsets = [0, 240], sizes = [32, 16], strides = [1, 1]} : vector<32x256xf32> to vector<32x16xf32>
    %102 = vector.extract_strided_slice %89 {offsets = [0, 0], sizes = [32, 240], strides = [1, 1]} : vector<32x256xf32> to vector<32x240xf32>
    %103 = tpu.concatenate %101, %102 in 1 : vector<32x16xf32>, vector<32x240xf32> -> vector<32x256xf32>
    %104 = vector.broadcast %0 : vector<1x256xf32> to vector<32x256xf32>
    %105 = arith.mulf %103, %104 : vector<32x256xf32>
    %cst_47 = arith.constant dense<0.000000e+00> : vector<8x256xf32>
    %106 = tpu.matmul %100, %105, %cst_47 {dimension_numbers = #tpu.dot_dimension_numbers<[1], [0], [0], [1], [0, 0, 1, 1], [], []>} : vector<8x32xf32>, vector<32x256xf32>, vector<8x256xf32> -> vector<8x256xf32>
    %107 = arith.addf %98, %106 : vector<8x256xf32>
    %c2_48 = arith.constant 2 : index
    %c0_49 = arith.constant 0 : index
    %c0_50 = arith.constant 0 : index
    %108 = vector.load %arg8[%c2_48, %c0_49, %c0_50] : memref<9x8x32xf32, #tpu.memory_space<vmem>>, vector<1x8x32xf32>
    %109 = vector.shape_cast %108 : vector<1x8x32xf32> to vector<8x32xf32>
    %110 = vector.extract_strided_slice %89 {offsets = [0, 241], sizes = [32, 15], strides = [1, 1]} : vector<32x256xf32> to vector<32x15xf32>
    %111 = vector.extract_strided_slice %89 {offsets = [0, 0], sizes = [32, 241], strides = [1, 1]} : vector<32x256xf32> to vector<32x241xf32>
    %112 = tpu.concatenate %110, %111 in 1 : vector<32x15xf32>, vector<32x241xf32> -> vector<32x256xf32>
    %113 = arith.mulf %0, %3 : vector<1x256xf32>
    %114 = vector.broadcast %113 : vector<1x256xf32> to vector<32x256xf32>
    %115 = arith.mulf %112, %114 : vector<32x256xf32>
    %cst_51 = arith.constant dense<0.000000e+00> : vector<8x256xf32>
    %116 = tpu.matmul %109, %115, %cst_51 {dimension_numbers = #tpu.dot_dimension_numbers<[1], [0], [0], [1], [0, 0, 1, 1], [], []>} : vector<8x32xf32>, vector<32x256xf32>, vector<8x256xf32> -> vector<8x256xf32>
    %117 = arith.addf %107, %116 : vector<8x256xf32>
    %c3_52 = arith.constant 3 : index
    %c0_53 = arith.constant 0 : index
    %c0_54 = arith.constant 0 : index
    %118 = vector.load %arg8[%c3_52, %c0_53, %c0_54] : memref<9x8x32xf32, #tpu.memory_space<vmem>>, vector<1x8x32xf32>
    %119 = vector.shape_cast %118 : vector<1x8x32xf32> to vector<8x32xf32>
    %120 = vector.extract_strided_slice %89 {offsets = [0, 255], sizes = [32, 1], strides = [1, 1]} : vector<32x256xf32> to vector<32x1xf32>
    %121 = vector.extract_strided_slice %89 {offsets = [0, 0], sizes = [32, 255], strides = [1, 1]} : vector<32x256xf32> to vector<32x255xf32>
    %122 = tpu.concatenate %120, %121 in 1 : vector<32x1xf32>, vector<32x255xf32> -> vector<32x256xf32>
    %123 = vector.broadcast %2 : vector<1x256xf32> to vector<32x256xf32>
    %124 = arith.mulf %122, %123 : vector<32x256xf32>
    %cst_55 = arith.constant dense<0.000000e+00> : vector<8x256xf32>
    %125 = tpu.matmul %119, %124, %cst_55 {dimension_numbers = #tpu.dot_dimension_numbers<[1], [0], [0], [1], [0, 0, 1, 1], [], []>} : vector<8x32xf32>, vector<32x256xf32>, vector<8x256xf32> -> vector<8x256xf32>
    %126 = arith.addf %117, %125 : vector<8x256xf32>
    %c4_56 = arith.constant 4 : index
    %c0_57 = arith.constant 0 : index
    %c0_58 = arith.constant 0 : index
    %127 = vector.load %arg8[%c4_56, %c0_57, %c0_58] : memref<9x8x32xf32, #tpu.memory_space<vmem>>, vector<1x8x32xf32>
    %128 = vector.shape_cast %127 : vector<1x8x32xf32> to vector<8x32xf32>
    %cst_59 = arith.constant dense<0.000000e+00> : vector<8x256xf32>
    %129 = tpu.matmul %128, %89, %cst_59 {dimension_numbers = #tpu.dot_dimension_numbers<[1], [0], [0], [1], [0, 0, 1, 1], [], []>} : vector<8x32xf32>, vector<32x256xf32>, vector<8x256xf32> -> vector<8x256xf32>
    %130 = arith.addf %126, %129 : vector<8x256xf32>
    %c5_60 = arith.constant 5 : index
    %c0_61 = arith.constant 0 : index
    %c0_62 = arith.constant 0 : index
    %131 = vector.load %arg8[%c5_60, %c0_61, %c0_62] : memref<9x8x32xf32, #tpu.memory_space<vmem>>, vector<1x8x32xf32>
    %132 = vector.shape_cast %131 : vector<1x8x32xf32> to vector<8x32xf32>
    %133 = vector.extract_strided_slice %89 {offsets = [0, 1], sizes = [32, 255], strides = [1, 1]} : vector<32x256xf32> to vector<32x255xf32>
    %134 = vector.extract_strided_slice %89 {offsets = [0, 0], sizes = [32, 1], strides = [1, 1]} : vector<32x256xf32> to vector<32x1xf32>
    %135 = tpu.concatenate %133, %134 in 1 : vector<32x255xf32>, vector<32x1xf32> -> vector<32x256xf32>
    %136 = vector.broadcast %3 : vector<1x256xf32> to vector<32x256xf32>
    %137 = arith.mulf %135, %136 : vector<32x256xf32>
    %cst_63 = arith.constant dense<0.000000e+00> : vector<8x256xf32>
    %138 = tpu.matmul %132, %137, %cst_63 {dimension_numbers = #tpu.dot_dimension_numbers<[1], [0], [0], [1], [0, 0, 1, 1], [], []>} : vector<8x32xf32>, vector<32x256xf32>, vector<8x256xf32> -> vector<8x256xf32>
    %139 = arith.addf %130, %138 : vector<8x256xf32>
    %c6_64 = arith.constant 6 : index
    %c0_65 = arith.constant 0 : index
    %c0_66 = arith.constant 0 : index
    %140 = vector.load %arg8[%c6_64, %c0_65, %c0_66] : memref<9x8x32xf32, #tpu.memory_space<vmem>>, vector<1x8x32xf32>
    %141 = vector.shape_cast %140 : vector<1x8x32xf32> to vector<8x32xf32>
    %142 = vector.extract_strided_slice %89 {offsets = [0, 15], sizes = [32, 241], strides = [1, 1]} : vector<32x256xf32> to vector<32x241xf32>
    %143 = vector.extract_strided_slice %89 {offsets = [0, 0], sizes = [32, 15], strides = [1, 1]} : vector<32x256xf32> to vector<32x15xf32>
    %144 = tpu.concatenate %142, %143 in 1 : vector<32x241xf32>, vector<32x15xf32> -> vector<32x256xf32>
    %145 = arith.mulf %1, %2 : vector<1x256xf32>
    %146 = vector.broadcast %145 : vector<1x256xf32> to vector<32x256xf32>
    %147 = arith.mulf %144, %146 : vector<32x256xf32>
    %cst_67 = arith.constant dense<0.000000e+00> : vector<8x256xf32>
    %148 = tpu.matmul %141, %147, %cst_67 {dimension_numbers = #tpu.dot_dimension_numbers<[1], [0], [0], [1], [0, 0, 1, 1], [], []>} : vector<8x32xf32>, vector<32x256xf32>, vector<8x256xf32> -> vector<8x256xf32>
    %149 = arith.addf %139, %148 : vector<8x256xf32>
    %c7_68 = arith.constant 7 : index
    %c0_69 = arith.constant 0 : index
    %c0_70 = arith.constant 0 : index
    %150 = vector.load %arg8[%c7_68, %c0_69, %c0_70] : memref<9x8x32xf32, #tpu.memory_space<vmem>>, vector<1x8x32xf32>
    %151 = vector.shape_cast %150 : vector<1x8x32xf32> to vector<8x32xf32>
    %152 = vector.extract_strided_slice %89 {offsets = [0, 16], sizes = [32, 240], strides = [1, 1]} : vector<32x256xf32> to vector<32x240xf32>
    %153 = vector.extract_strided_slice %89 {offsets = [0, 0], sizes = [32, 16], strides = [1, 1]} : vector<32x256xf32> to vector<32x16xf32>
    %154 = tpu.concatenate %152, %153 in 1 : vector<32x240xf32>, vector<32x16xf32> -> vector<32x256xf32>
    %155 = vector.broadcast %1 : vector<1x256xf32> to vector<32x256xf32>
    %156 = arith.mulf %154, %155 : vector<32x256xf32>
    %cst_71 = arith.constant dense<0.000000e+00> : vector<8x256xf32>
    %157 = tpu.matmul %151, %156, %cst_71 {dimension_numbers = #tpu.dot_dimension_numbers<[1], [0], [0], [1], [0, 0, 1, 1], [], []>} : vector<8x32xf32>, vector<32x256xf32>, vector<8x256xf32> -> vector<8x256xf32>
    %158 = arith.addf %149, %157 : vector<8x256xf32>
    %c8_72 = arith.constant 8 : index
    %c0_73 = arith.constant 0 : index
    %c0_74 = arith.constant 0 : index
    %159 = vector.load %arg8[%c8_72, %c0_73, %c0_74] : memref<9x8x32xf32, #tpu.memory_space<vmem>>, vector<1x8x32xf32>
    %160 = vector.shape_cast %159 : vector<1x8x32xf32> to vector<8x32xf32>
    %161 = vector.extract_strided_slice %89 {offsets = [0, 17], sizes = [32, 239], strides = [1, 1]} : vector<32x256xf32> to vector<32x239xf32>
    %162 = vector.extract_strided_slice %89 {offsets = [0, 0], sizes = [32, 17], strides = [1, 1]} : vector<32x256xf32> to vector<32x17xf32>
    %163 = tpu.concatenate %161, %162 in 1 : vector<32x239xf32>, vector<32x17xf32> -> vector<32x256xf32>
    %164 = arith.mulf %1, %3 : vector<1x256xf32>
    %165 = vector.broadcast %164 : vector<1x256xf32> to vector<32x256xf32>
    %166 = arith.mulf %163, %165 : vector<32x256xf32>
    %cst_75 = arith.constant dense<0.000000e+00> : vector<8x256xf32>
    %167 = tpu.matmul %160, %166, %cst_75 {dimension_numbers = #tpu.dot_dimension_numbers<[1], [0], [0], [1], [0, 0, 1, 1], [], []>} : vector<8x32xf32>, vector<32x256xf32>, vector<8x256xf32> -> vector<8x256xf32>
    %168 = arith.addf %158, %167 : vector<8x256xf32>
    %c0_76 = arith.constant 0 : index
    %c0_77 = arith.constant 0 : index
    %169 = vector.load %arg9[%c0_76, %c0_77] : memref<8x1xf32, #tpu.memory_space<vmem>>, vector<8x1xf32>
    %170 = vector.broadcast %169 : vector<8x1xf32> to vector<8x256xf32>
    %171 = arith.addf %168, %170 : vector<8x256xf32>
    %c0_78 = arith.constant 0 : index
    %c0_79 = arith.constant 0 : index
    %172 = vector.load %arg10[%c0_78, %c0_79] : memref<32x8xf32, #tpu.memory_space<vmem>>, vector<32x8xf32>
    %cst_80 = arith.constant 0.000000e+00 : f32
    %173 = vector.broadcast %cst_80 : f32 to vector<8x256xf32>
    %174 = arith.maximumf %171, %173 : vector<8x256xf32>
    %cst_81 = arith.constant dense<0.000000e+00> : vector<32x256xf32>
    %175 = tpu.matmul %172, %174, %cst_81 {dimension_numbers = #tpu.dot_dimension_numbers<[1], [0], [0], [1], [0, 0, 1, 1], [], []>} : vector<32x8xf32>, vector<8x256xf32>, vector<32x256xf32> -> vector<32x256xf32>
    %c0_82 = arith.constant 0 : index
    %c0_83 = arith.constant 0 : index
    %176 = vector.load %arg11[%c0_82, %c0_83] : memref<32x1xf32, #tpu.memory_space<vmem>>, vector<32x1xf32>
    %177 = vector.broadcast %176 : vector<32x1xf32> to vector<32x256xf32>
    %178 = arith.addf %175, %177 : vector<32x256xf32>
    %179 = arith.addf %87, %178 : vector<32x256xf32>
    %cst_84 = arith.constant 0.000000e+00 : f32
    %180 = vector.broadcast %cst_84 : f32 to vector<32x256xf32>
    %181 = arith.maximumf %179, %180 : vector<32x256xf32>
    %c0_85 = arith.constant 0 : index
    %c0_86 = arith.constant 0 : index
    %c0_87 = arith.constant 0 : index
    %182 = vector.load %arg12[%c0_85, %c0_86, %c0_87] : memref<9x8x32xf32, #tpu.memory_space<vmem>>, vector<1x8x32xf32>
    %183 = vector.shape_cast %182 : vector<1x8x32xf32> to vector<8x32xf32>
    %184 = vector.extract_strided_slice %181 {offsets = [0, 239], sizes = [32, 17], strides = [1, 1]} : vector<32x256xf32> to vector<32x17xf32>
    %185 = vector.extract_strided_slice %181 {offsets = [0, 0], sizes = [32, 239], strides = [1, 1]} : vector<32x256xf32> to vector<32x239xf32>
    %186 = tpu.concatenate %184, %185 in 1 : vector<32x17xf32>, vector<32x239xf32> -> vector<32x256xf32>
    %187 = arith.mulf %0, %2 : vector<1x256xf32>
    %188 = vector.broadcast %187 : vector<1x256xf32> to vector<32x256xf32>
    %189 = arith.mulf %186, %188 : vector<32x256xf32>
    %cst_88 = arith.constant dense<0.000000e+00> : vector<8x256xf32>
    %190 = tpu.matmul %183, %189, %cst_88 {dimension_numbers = #tpu.dot_dimension_numbers<[1], [0], [0], [1], [0, 0, 1, 1], [], []>} : vector<8x32xf32>, vector<32x256xf32>, vector<8x256xf32> -> vector<8x256xf32>
    %c1_89 = arith.constant 1 : index
    %c0_90 = arith.constant 0 : index
    %c0_91 = arith.constant 0 : index
    %191 = vector.load %arg12[%c1_89, %c0_90, %c0_91] : memref<9x8x32xf32, #tpu.memory_space<vmem>>, vector<1x8x32xf32>
    %192 = vector.shape_cast %191 : vector<1x8x32xf32> to vector<8x32xf32>
    %193 = vector.extract_strided_slice %181 {offsets = [0, 240], sizes = [32, 16], strides = [1, 1]} : vector<32x256xf32> to vector<32x16xf32>
    %194 = vector.extract_strided_slice %181 {offsets = [0, 0], sizes = [32, 240], strides = [1, 1]} : vector<32x256xf32> to vector<32x240xf32>
    %195 = tpu.concatenate %193, %194 in 1 : vector<32x16xf32>, vector<32x240xf32> -> vector<32x256xf32>
    %196 = vector.broadcast %0 : vector<1x256xf32> to vector<32x256xf32>
    %197 = arith.mulf %195, %196 : vector<32x256xf32>
    %cst_92 = arith.constant dense<0.000000e+00> : vector<8x256xf32>
    %198 = tpu.matmul %192, %197, %cst_92 {dimension_numbers = #tpu.dot_dimension_numbers<[1], [0], [0], [1], [0, 0, 1, 1], [], []>} : vector<8x32xf32>, vector<32x256xf32>, vector<8x256xf32> -> vector<8x256xf32>
    %199 = arith.addf %190, %198 : vector<8x256xf32>
    %c2_93 = arith.constant 2 : index
    %c0_94 = arith.constant 0 : index
    %c0_95 = arith.constant 0 : index
    %200 = vector.load %arg12[%c2_93, %c0_94, %c0_95] : memref<9x8x32xf32, #tpu.memory_space<vmem>>, vector<1x8x32xf32>
    %201 = vector.shape_cast %200 : vector<1x8x32xf32> to vector<8x32xf32>
    %202 = vector.extract_strided_slice %181 {offsets = [0, 241], sizes = [32, 15], strides = [1, 1]} : vector<32x256xf32> to vector<32x15xf32>
    %203 = vector.extract_strided_slice %181 {offsets = [0, 0], sizes = [32, 241], strides = [1, 1]} : vector<32x256xf32> to vector<32x241xf32>
    %204 = tpu.concatenate %202, %203 in 1 : vector<32x15xf32>, vector<32x241xf32> -> vector<32x256xf32>
    %205 = arith.mulf %0, %3 : vector<1x256xf32>
    %206 = vector.broadcast %205 : vector<1x256xf32> to vector<32x256xf32>
    %207 = arith.mulf %204, %206 : vector<32x256xf32>
    %cst_96 = arith.constant dense<0.000000e+00> : vector<8x256xf32>
    %208 = tpu.matmul %201, %207, %cst_96 {dimension_numbers = #tpu.dot_dimension_numbers<[1], [0], [0], [1], [0, 0, 1, 1], [], []>} : vector<8x32xf32>, vector<32x256xf32>, vector<8x256xf32> -> vector<8x256xf32>
    %209 = arith.addf %199, %208 : vector<8x256xf32>
    %c3_97 = arith.constant 3 : index
    %c0_98 = arith.constant 0 : index
    %c0_99 = arith.constant 0 : index
    %210 = vector.load %arg12[%c3_97, %c0_98, %c0_99] : memref<9x8x32xf32, #tpu.memory_space<vmem>>, vector<1x8x32xf32>
    %211 = vector.shape_cast %210 : vector<1x8x32xf32> to vector<8x32xf32>
    %212 = vector.extract_strided_slice %181 {offsets = [0, 255], sizes = [32, 1], strides = [1, 1]} : vector<32x256xf32> to vector<32x1xf32>
    %213 = vector.extract_strided_slice %181 {offsets = [0, 0], sizes = [32, 255], strides = [1, 1]} : vector<32x256xf32> to vector<32x255xf32>
    %214 = tpu.concatenate %212, %213 in 1 : vector<32x1xf32>, vector<32x255xf32> -> vector<32x256xf32>
    %215 = vector.broadcast %2 : vector<1x256xf32> to vector<32x256xf32>
    %216 = arith.mulf %214, %215 : vector<32x256xf32>
    %cst_100 = arith.constant dense<0.000000e+00> : vector<8x256xf32>
    %217 = tpu.matmul %211, %216, %cst_100 {dimension_numbers = #tpu.dot_dimension_numbers<[1], [0], [0], [1], [0, 0, 1, 1], [], []>} : vector<8x32xf32>, vector<32x256xf32>, vector<8x256xf32> -> vector<8x256xf32>
    %218 = arith.addf %209, %217 : vector<8x256xf32>
    %c4_101 = arith.constant 4 : index
    %c0_102 = arith.constant 0 : index
    %c0_103 = arith.constant 0 : index
    %219 = vector.load %arg12[%c4_101, %c0_102, %c0_103] : memref<9x8x32xf32, #tpu.memory_space<vmem>>, vector<1x8x32xf32>
    %220 = vector.shape_cast %219 : vector<1x8x32xf32> to vector<8x32xf32>
    %cst_104 = arith.constant dense<0.000000e+00> : vector<8x256xf32>
    %221 = tpu.matmul %220, %181, %cst_104 {dimension_numbers = #tpu.dot_dimension_numbers<[1], [0], [0], [1], [0, 0, 1, 1], [], []>} : vector<8x32xf32>, vector<32x256xf32>, vector<8x256xf32> -> vector<8x256xf32>
    %222 = arith.addf %218, %221 : vector<8x256xf32>
    %c5_105 = arith.constant 5 : index
    %c0_106 = arith.constant 0 : index
    %c0_107 = arith.constant 0 : index
    %223 = vector.load %arg12[%c5_105, %c0_106, %c0_107] : memref<9x8x32xf32, #tpu.memory_space<vmem>>, vector<1x8x32xf32>
    %224 = vector.shape_cast %223 : vector<1x8x32xf32> to vector<8x32xf32>
    %225 = vector.extract_strided_slice %181 {offsets = [0, 1], sizes = [32, 255], strides = [1, 1]} : vector<32x256xf32> to vector<32x255xf32>
    %226 = vector.extract_strided_slice %181 {offsets = [0, 0], sizes = [32, 1], strides = [1, 1]} : vector<32x256xf32> to vector<32x1xf32>
    %227 = tpu.concatenate %225, %226 in 1 : vector<32x255xf32>, vector<32x1xf32> -> vector<32x256xf32>
    %228 = vector.broadcast %3 : vector<1x256xf32> to vector<32x256xf32>
    %229 = arith.mulf %227, %228 : vector<32x256xf32>
    %cst_108 = arith.constant dense<0.000000e+00> : vector<8x256xf32>
    %230 = tpu.matmul %224, %229, %cst_108 {dimension_numbers = #tpu.dot_dimension_numbers<[1], [0], [0], [1], [0, 0, 1, 1], [], []>} : vector<8x32xf32>, vector<32x256xf32>, vector<8x256xf32> -> vector<8x256xf32>
    %231 = arith.addf %222, %230 : vector<8x256xf32>
    %c6_109 = arith.constant 6 : index
    %c0_110 = arith.constant 0 : index
    %c0_111 = arith.constant 0 : index
    %232 = vector.load %arg12[%c6_109, %c0_110, %c0_111] : memref<9x8x32xf32, #tpu.memory_space<vmem>>, vector<1x8x32xf32>
    %233 = vector.shape_cast %232 : vector<1x8x32xf32> to vector<8x32xf32>
    %234 = vector.extract_strided_slice %181 {offsets = [0, 15], sizes = [32, 241], strides = [1, 1]} : vector<32x256xf32> to vector<32x241xf32>
    %235 = vector.extract_strided_slice %181 {offsets = [0, 0], sizes = [32, 15], strides = [1, 1]} : vector<32x256xf32> to vector<32x15xf32>
    %236 = tpu.concatenate %234, %235 in 1 : vector<32x241xf32>, vector<32x15xf32> -> vector<32x256xf32>
    %237 = arith.mulf %1, %2 : vector<1x256xf32>
    %238 = vector.broadcast %237 : vector<1x256xf32> to vector<32x256xf32>
    %239 = arith.mulf %236, %238 : vector<32x256xf32>
    %cst_112 = arith.constant dense<0.000000e+00> : vector<8x256xf32>
    %240 = tpu.matmul %233, %239, %cst_112 {dimension_numbers = #tpu.dot_dimension_numbers<[1], [0], [0], [1], [0, 0, 1, 1], [], []>} : vector<8x32xf32>, vector<32x256xf32>, vector<8x256xf32> -> vector<8x256xf32>
    %241 = arith.addf %231, %240 : vector<8x256xf32>
    %c7_113 = arith.constant 7 : index
    %c0_114 = arith.constant 0 : index
    %c0_115 = arith.constant 0 : index
    %242 = vector.load %arg12[%c7_113, %c0_114, %c0_115] : memref<9x8x32xf32, #tpu.memory_space<vmem>>, vector<1x8x32xf32>
    %243 = vector.shape_cast %242 : vector<1x8x32xf32> to vector<8x32xf32>
    %244 = vector.extract_strided_slice %181 {offsets = [0, 16], sizes = [32, 240], strides = [1, 1]} : vector<32x256xf32> to vector<32x240xf32>
    %245 = vector.extract_strided_slice %181 {offsets = [0, 0], sizes = [32, 16], strides = [1, 1]} : vector<32x256xf32> to vector<32x16xf32>
    %246 = tpu.concatenate %244, %245 in 1 : vector<32x240xf32>, vector<32x16xf32> -> vector<32x256xf32>
    %247 = vector.broadcast %1 : vector<1x256xf32> to vector<32x256xf32>
    %248 = arith.mulf %246, %247 : vector<32x256xf32>
    %cst_116 = arith.constant dense<0.000000e+00> : vector<8x256xf32>
    %249 = tpu.matmul %243, %248, %cst_116 {dimension_numbers = #tpu.dot_dimension_numbers<[1], [0], [0], [1], [0, 0, 1, 1], [], []>} : vector<8x32xf32>, vector<32x256xf32>, vector<8x256xf32> -> vector<8x256xf32>
    %250 = arith.addf %241, %249 : vector<8x256xf32>
    %c8_117 = arith.constant 8 : index
    %c0_118 = arith.constant 0 : index
    %c0_119 = arith.constant 0 : index
    %251 = vector.load %arg12[%c8_117, %c0_118, %c0_119] : memref<9x8x32xf32, #tpu.memory_space<vmem>>, vector<1x8x32xf32>
    %252 = vector.shape_cast %251 : vector<1x8x32xf32> to vector<8x32xf32>
    %253 = vector.extract_strided_slice %181 {offsets = [0, 17], sizes = [32, 239], strides = [1, 1]} : vector<32x256xf32> to vector<32x239xf32>
    %254 = vector.extract_strided_slice %181 {offsets = [0, 0], sizes = [32, 17], strides = [1, 1]} : vector<32x256xf32> to vector<32x17xf32>
    %255 = tpu.concatenate %253, %254 in 1 : vector<32x239xf32>, vector<32x17xf32> -> vector<32x256xf32>
    %256 = arith.mulf %1, %3 : vector<1x256xf32>
    %257 = vector.broadcast %256 : vector<1x256xf32> to vector<32x256xf32>
    %258 = arith.mulf %255, %257 : vector<32x256xf32>
    %cst_120 = arith.constant dense<0.000000e+00> : vector<8x256xf32>
    %259 = tpu.matmul %252, %258, %cst_120 {dimension_numbers = #tpu.dot_dimension_numbers<[1], [0], [0], [1], [0, 0, 1, 1], [], []>} : vector<8x32xf32>, vector<32x256xf32>, vector<8x256xf32> -> vector<8x256xf32>
    %260 = arith.addf %250, %259 : vector<8x256xf32>
    %c0_121 = arith.constant 0 : index
    %c0_122 = arith.constant 0 : index
    %261 = vector.load %arg13[%c0_121, %c0_122] : memref<8x1xf32, #tpu.memory_space<vmem>>, vector<8x1xf32>
    %262 = vector.broadcast %261 : vector<8x1xf32> to vector<8x256xf32>
    %263 = arith.addf %260, %262 : vector<8x256xf32>
    %c0_123 = arith.constant 0 : index
    %c0_124 = arith.constant 0 : index
    %264 = vector.load %arg14[%c0_123, %c0_124] : memref<32x8xf32, #tpu.memory_space<vmem>>, vector<32x8xf32>
    %cst_125 = arith.constant 0.000000e+00 : f32
    %265 = vector.broadcast %cst_125 : f32 to vector<8x256xf32>
    %266 = arith.maximumf %263, %265 : vector<8x256xf32>
    %cst_126 = arith.constant dense<0.000000e+00> : vector<32x256xf32>
    %267 = tpu.matmul %264, %266, %cst_126 {dimension_numbers = #tpu.dot_dimension_numbers<[1], [0], [0], [1], [0, 0, 1, 1], [], []>} : vector<32x8xf32>, vector<8x256xf32>, vector<32x256xf32> -> vector<32x256xf32>
    %c0_127 = arith.constant 0 : index
    %c0_128 = arith.constant 0 : index
    %268 = vector.load %arg15[%c0_127, %c0_128] : memref<32x1xf32, #tpu.memory_space<vmem>>, vector<32x1xf32>
    %269 = vector.broadcast %268 : vector<32x1xf32> to vector<32x256xf32>
    %270 = arith.addf %267, %269 : vector<32x256xf32>
    %271 = arith.addf %179, %270 : vector<32x256xf32>
    %cst_129 = arith.constant 0.000000e+00 : f32
    %272 = vector.broadcast %cst_129 : f32 to vector<32x256xf32>
    %273 = arith.maximumf %271, %272 : vector<32x256xf32>
    %c0_130 = arith.constant 0 : index
    %c0_131 = arith.constant 0 : index
    %c0_132 = arith.constant 0 : index
    %274 = vector.load %arg16[%c0_130, %c0_131, %c0_132] : memref<16x16x32xf32, #tpu.memory_space<vmem>>, vector<1x16x32xf32>
    %275 = vector.shape_cast %274 : vector<1x16x32xf32> to vector<16x32xf32>
    %276 = vector.extract_strided_slice %273 {offsets = [0, 239], sizes = [32, 17], strides = [1, 1]} : vector<32x256xf32> to vector<32x17xf32>
    %277 = vector.extract_strided_slice %273 {offsets = [0, 0], sizes = [32, 239], strides = [1, 1]} : vector<32x256xf32> to vector<32x239xf32>
    %278 = tpu.concatenate %276, %277 in 1 : vector<32x17xf32>, vector<32x239xf32> -> vector<32x256xf32>
    %279 = arith.mulf %0, %2 : vector<1x256xf32>
    %280 = vector.broadcast %279 : vector<1x256xf32> to vector<32x256xf32>
    %281 = arith.mulf %278, %280 : vector<32x256xf32>
    %cst_133 = arith.constant dense<0.000000e+00> : vector<16x256xf32>
    %282 = tpu.matmul %275, %281, %cst_133 {dimension_numbers = #tpu.dot_dimension_numbers<[1], [0], [0], [1], [0, 0, 1, 1], [], []>} : vector<16x32xf32>, vector<32x256xf32>, vector<16x256xf32> -> vector<16x256xf32>
    %c1_134 = arith.constant 1 : index
    %c0_135 = arith.constant 0 : index
    %c0_136 = arith.constant 0 : index
    %283 = vector.load %arg16[%c1_134, %c0_135, %c0_136] : memref<16x16x32xf32, #tpu.memory_space<vmem>>, vector<1x16x32xf32>
    %284 = vector.shape_cast %283 : vector<1x16x32xf32> to vector<16x32xf32>
    %285 = vector.extract_strided_slice %273 {offsets = [0, 240], sizes = [32, 16], strides = [1, 1]} : vector<32x256xf32> to vector<32x16xf32>
    %286 = vector.extract_strided_slice %273 {offsets = [0, 0], sizes = [32, 240], strides = [1, 1]} : vector<32x256xf32> to vector<32x240xf32>
    %287 = tpu.concatenate %285, %286 in 1 : vector<32x16xf32>, vector<32x240xf32> -> vector<32x256xf32>
    %288 = vector.broadcast %0 : vector<1x256xf32> to vector<32x256xf32>
    %289 = arith.mulf %287, %288 : vector<32x256xf32>
    %cst_137 = arith.constant dense<0.000000e+00> : vector<16x256xf32>
    %290 = tpu.matmul %284, %289, %cst_137 {dimension_numbers = #tpu.dot_dimension_numbers<[1], [0], [0], [1], [0, 0, 1, 1], [], []>} : vector<16x32xf32>, vector<32x256xf32>, vector<16x256xf32> -> vector<16x256xf32>
    %291 = arith.addf %282, %290 : vector<16x256xf32>
    %c2_138 = arith.constant 2 : index
    %c0_139 = arith.constant 0 : index
    %c0_140 = arith.constant 0 : index
    %292 = vector.load %arg16[%c2_138, %c0_139, %c0_140] : memref<16x16x32xf32, #tpu.memory_space<vmem>>, vector<1x16x32xf32>
    %293 = vector.shape_cast %292 : vector<1x16x32xf32> to vector<16x32xf32>
    %294 = vector.extract_strided_slice %273 {offsets = [0, 255], sizes = [32, 1], strides = [1, 1]} : vector<32x256xf32> to vector<32x1xf32>
    %295 = vector.extract_strided_slice %273 {offsets = [0, 0], sizes = [32, 255], strides = [1, 1]} : vector<32x256xf32> to vector<32x255xf32>
    %296 = tpu.concatenate %294, %295 in 1 : vector<32x1xf32>, vector<32x255xf32> -> vector<32x256xf32>
    %297 = vector.broadcast %2 : vector<1x256xf32> to vector<32x256xf32>
    %298 = arith.mulf %296, %297 : vector<32x256xf32>
    %cst_141 = arith.constant dense<0.000000e+00> : vector<16x256xf32>
    %299 = tpu.matmul %293, %298, %cst_141 {dimension_numbers = #tpu.dot_dimension_numbers<[1], [0], [0], [1], [0, 0, 1, 1], [], []>} : vector<16x32xf32>, vector<32x256xf32>, vector<16x256xf32> -> vector<16x256xf32>
    %300 = arith.addf %291, %299 : vector<16x256xf32>
    %c3_142 = arith.constant 3 : index
    %c0_143 = arith.constant 0 : index
    %c0_144 = arith.constant 0 : index
    %301 = vector.load %arg16[%c3_142, %c0_143, %c0_144] : memref<16x16x32xf32, #tpu.memory_space<vmem>>, vector<1x16x32xf32>
    %302 = vector.shape_cast %301 : vector<1x16x32xf32> to vector<16x32xf32>
    %cst_145 = arith.constant dense<0.000000e+00> : vector<16x256xf32>
    %303 = tpu.matmul %302, %273, %cst_145 {dimension_numbers = #tpu.dot_dimension_numbers<[1], [0], [0], [1], [0, 0, 1, 1], [], []>} : vector<16x32xf32>, vector<32x256xf32>, vector<16x256xf32> -> vector<16x256xf32>
    %304 = arith.addf %300, %303 : vector<16x256xf32>
    %c0_146 = arith.constant 0 : index
    %c0_147 = arith.constant 0 : index
    %305 = vector.load %arg17[%c0_146, %c0_147] : memref<16x1xf32, #tpu.memory_space<vmem>>, vector<16x1xf32>
    %306 = vector.broadcast %305 : vector<16x1xf32> to vector<16x256xf32>
    %307 = arith.addf %304, %306 : vector<16x256xf32>
    %cst_148 = arith.constant 0.000000e+00 : f32
    %308 = vector.broadcast %cst_148 : f32 to vector<16x256xf32>
    %309 = arith.maximumf %307, %308 : vector<16x256xf32>
    %c4_149 = arith.constant 4 : index
    %c0_150 = arith.constant 0 : index
    %c0_151 = arith.constant 0 : index
    %310 = vector.load %arg16[%c4_149, %c0_150, %c0_151] : memref<16x16x32xf32, #tpu.memory_space<vmem>>, vector<1x16x32xf32>
    %311 = vector.shape_cast %310 : vector<1x16x32xf32> to vector<16x32xf32>
    %cst_152 = arith.constant dense<0.000000e+00> : vector<16x256xf32>
    %312 = tpu.matmul %311, %289, %cst_152 {dimension_numbers = #tpu.dot_dimension_numbers<[1], [0], [0], [1], [0, 0, 1, 1], [], []>} : vector<16x32xf32>, vector<32x256xf32>, vector<16x256xf32> -> vector<16x256xf32>
    %c5_153 = arith.constant 5 : index
    %c0_154 = arith.constant 0 : index
    %c0_155 = arith.constant 0 : index
    %313 = vector.load %arg16[%c5_153, %c0_154, %c0_155] : memref<16x16x32xf32, #tpu.memory_space<vmem>>, vector<1x16x32xf32>
    %314 = vector.shape_cast %313 : vector<1x16x32xf32> to vector<16x32xf32>
    %315 = vector.extract_strided_slice %273 {offsets = [0, 241], sizes = [32, 15], strides = [1, 1]} : vector<32x256xf32> to vector<32x15xf32>
    %316 = vector.extract_strided_slice %273 {offsets = [0, 0], sizes = [32, 241], strides = [1, 1]} : vector<32x256xf32> to vector<32x241xf32>
    %317 = tpu.concatenate %315, %316 in 1 : vector<32x15xf32>, vector<32x241xf32> -> vector<32x256xf32>
    %318 = arith.mulf %0, %3 : vector<1x256xf32>
    %319 = vector.broadcast %318 : vector<1x256xf32> to vector<32x256xf32>
    %320 = arith.mulf %317, %319 : vector<32x256xf32>
    %cst_156 = arith.constant dense<0.000000e+00> : vector<16x256xf32>
    %321 = tpu.matmul %314, %320, %cst_156 {dimension_numbers = #tpu.dot_dimension_numbers<[1], [0], [0], [1], [0, 0, 1, 1], [], []>} : vector<16x32xf32>, vector<32x256xf32>, vector<16x256xf32> -> vector<16x256xf32>
    %322 = arith.addf %312, %321 : vector<16x256xf32>
    %c6_157 = arith.constant 6 : index
    %c0_158 = arith.constant 0 : index
    %c0_159 = arith.constant 0 : index
    %323 = vector.load %arg16[%c6_157, %c0_158, %c0_159] : memref<16x16x32xf32, #tpu.memory_space<vmem>>, vector<1x16x32xf32>
    %324 = vector.shape_cast %323 : vector<1x16x32xf32> to vector<16x32xf32>
    %cst_160 = arith.constant dense<0.000000e+00> : vector<16x256xf32>
    %325 = tpu.matmul %324, %273, %cst_160 {dimension_numbers = #tpu.dot_dimension_numbers<[1], [0], [0], [1], [0, 0, 1, 1], [], []>} : vector<16x32xf32>, vector<32x256xf32>, vector<16x256xf32> -> vector<16x256xf32>
    %326 = arith.addf %322, %325 : vector<16x256xf32>
    %c7_161 = arith.constant 7 : index
    %c0_162 = arith.constant 0 : index
    %c0_163 = arith.constant 0 : index
    %327 = vector.load %arg16[%c7_161, %c0_162, %c0_163] : memref<16x16x32xf32, #tpu.memory_space<vmem>>, vector<1x16x32xf32>
    %328 = vector.shape_cast %327 : vector<1x16x32xf32> to vector<16x32xf32>
    %329 = vector.extract_strided_slice %273 {offsets = [0, 1], sizes = [32, 255], strides = [1, 1]} : vector<32x256xf32> to vector<32x255xf32>
    %330 = vector.extract_strided_slice %273 {offsets = [0, 0], sizes = [32, 1], strides = [1, 1]} : vector<32x256xf32> to vector<32x1xf32>
    %331 = tpu.concatenate %329, %330 in 1 : vector<32x255xf32>, vector<32x1xf32> -> vector<32x256xf32>
    %332 = vector.broadcast %3 : vector<1x256xf32> to vector<32x256xf32>
    %333 = arith.mulf %331, %332 : vector<32x256xf32>
    %cst_164 = arith.constant dense<0.000000e+00> : vector<16x256xf32>
    %334 = tpu.matmul %328, %333, %cst_164 {dimension_numbers = #tpu.dot_dimension_numbers<[1], [0], [0], [1], [0, 0, 1, 1], [], []>} : vector<16x32xf32>, vector<32x256xf32>, vector<16x256xf32> -> vector<16x256xf32>
    %335 = arith.addf %326, %334 : vector<16x256xf32>
    %c0_165 = arith.constant 0 : index
    %c0_166 = arith.constant 0 : index
    %336 = vector.load %arg17[%c0_165, %c0_166] : memref<16x1xf32, #tpu.memory_space<vmem>>, vector<16x1xf32>
    %337 = vector.broadcast %336 : vector<16x1xf32> to vector<16x256xf32>
    %338 = arith.addf %335, %337 : vector<16x256xf32>
    %cst_167 = arith.constant 0.000000e+00 : f32
    %339 = vector.broadcast %cst_167 : f32 to vector<16x256xf32>
    %340 = arith.maximumf %338, %339 : vector<16x256xf32>
    %c8_168 = arith.constant 8 : index
    %c0_169 = arith.constant 0 : index
    %c0_170 = arith.constant 0 : index
    %341 = vector.load %arg16[%c8_168, %c0_169, %c0_170] : memref<16x16x32xf32, #tpu.memory_space<vmem>>, vector<1x16x32xf32>
    %342 = vector.shape_cast %341 : vector<1x16x32xf32> to vector<16x32xf32>
    %cst_171 = arith.constant dense<0.000000e+00> : vector<16x256xf32>
    %343 = tpu.matmul %342, %298, %cst_171 {dimension_numbers = #tpu.dot_dimension_numbers<[1], [0], [0], [1], [0, 0, 1, 1], [], []>} : vector<16x32xf32>, vector<32x256xf32>, vector<16x256xf32> -> vector<16x256xf32>
    %c9 = arith.constant 9 : index
    %c0_172 = arith.constant 0 : index
    %c0_173 = arith.constant 0 : index
    %344 = vector.load %arg16[%c9, %c0_172, %c0_173] : memref<16x16x32xf32, #tpu.memory_space<vmem>>, vector<1x16x32xf32>
    %345 = vector.shape_cast %344 : vector<1x16x32xf32> to vector<16x32xf32>
    %cst_174 = arith.constant dense<0.000000e+00> : vector<16x256xf32>
    %346 = tpu.matmul %345, %273, %cst_174 {dimension_numbers = #tpu.dot_dimension_numbers<[1], [0], [0], [1], [0, 0, 1, 1], [], []>} : vector<16x32xf32>, vector<32x256xf32>, vector<16x256xf32> -> vector<16x256xf32>
    %347 = arith.addf %343, %346 : vector<16x256xf32>
    %c10 = arith.constant 10 : index
    %c0_175 = arith.constant 0 : index
    %c0_176 = arith.constant 0 : index
    %348 = vector.load %arg16[%c10, %c0_175, %c0_176] : memref<16x16x32xf32, #tpu.memory_space<vmem>>, vector<1x16x32xf32>
    %349 = vector.shape_cast %348 : vector<1x16x32xf32> to vector<16x32xf32>
    %350 = vector.extract_strided_slice %273 {offsets = [0, 15], sizes = [32, 241], strides = [1, 1]} : vector<32x256xf32> to vector<32x241xf32>
    %351 = vector.extract_strided_slice %273 {offsets = [0, 0], sizes = [32, 15], strides = [1, 1]} : vector<32x256xf32> to vector<32x15xf32>
    %352 = tpu.concatenate %350, %351 in 1 : vector<32x241xf32>, vector<32x15xf32> -> vector<32x256xf32>
    %353 = arith.mulf %1, %2 : vector<1x256xf32>
    %354 = vector.broadcast %353 : vector<1x256xf32> to vector<32x256xf32>
    %355 = arith.mulf %352, %354 : vector<32x256xf32>
    %cst_177 = arith.constant dense<0.000000e+00> : vector<16x256xf32>
    %356 = tpu.matmul %349, %355, %cst_177 {dimension_numbers = #tpu.dot_dimension_numbers<[1], [0], [0], [1], [0, 0, 1, 1], [], []>} : vector<16x32xf32>, vector<32x256xf32>, vector<16x256xf32> -> vector<16x256xf32>
    %357 = arith.addf %347, %356 : vector<16x256xf32>
    %c11 = arith.constant 11 : index
    %c0_178 = arith.constant 0 : index
    %c0_179 = arith.constant 0 : index
    %358 = vector.load %arg16[%c11, %c0_178, %c0_179] : memref<16x16x32xf32, #tpu.memory_space<vmem>>, vector<1x16x32xf32>
    %359 = vector.shape_cast %358 : vector<1x16x32xf32> to vector<16x32xf32>
    %360 = vector.extract_strided_slice %273 {offsets = [0, 16], sizes = [32, 240], strides = [1, 1]} : vector<32x256xf32> to vector<32x240xf32>
    %361 = vector.extract_strided_slice %273 {offsets = [0, 0], sizes = [32, 16], strides = [1, 1]} : vector<32x256xf32> to vector<32x16xf32>
    %362 = tpu.concatenate %360, %361 in 1 : vector<32x240xf32>, vector<32x16xf32> -> vector<32x256xf32>
    %363 = vector.broadcast %1 : vector<1x256xf32> to vector<32x256xf32>
    %364 = arith.mulf %362, %363 : vector<32x256xf32>
    %cst_180 = arith.constant dense<0.000000e+00> : vector<16x256xf32>
    %365 = tpu.matmul %359, %364, %cst_180 {dimension_numbers = #tpu.dot_dimension_numbers<[1], [0], [0], [1], [0, 0, 1, 1], [], []>} : vector<16x32xf32>, vector<32x256xf32>, vector<16x256xf32> -> vector<16x256xf32>
    %366 = arith.addf %357, %365 : vector<16x256xf32>
    %c0_181 = arith.constant 0 : index
    %c0_182 = arith.constant 0 : index
    %367 = vector.load %arg17[%c0_181, %c0_182] : memref<16x1xf32, #tpu.memory_space<vmem>>, vector<16x1xf32>
    %368 = vector.broadcast %367 : vector<16x1xf32> to vector<16x256xf32>
    %369 = arith.addf %366, %368 : vector<16x256xf32>
    %cst_183 = arith.constant 0.000000e+00 : f32
    %370 = vector.broadcast %cst_183 : f32 to vector<16x256xf32>
    %371 = arith.maximumf %369, %370 : vector<16x256xf32>
    %c12 = arith.constant 12 : index
    %c0_184 = arith.constant 0 : index
    %c0_185 = arith.constant 0 : index
    %372 = vector.load %arg16[%c12, %c0_184, %c0_185] : memref<16x16x32xf32, #tpu.memory_space<vmem>>, vector<1x16x32xf32>
    %373 = vector.shape_cast %372 : vector<1x16x32xf32> to vector<16x32xf32>
    %cst_186 = arith.constant dense<0.000000e+00> : vector<16x256xf32>
    %374 = tpu.matmul %373, %273, %cst_186 {dimension_numbers = #tpu.dot_dimension_numbers<[1], [0], [0], [1], [0, 0, 1, 1], [], []>} : vector<16x32xf32>, vector<32x256xf32>, vector<16x256xf32> -> vector<16x256xf32>
    %c13 = arith.constant 13 : index
    %c0_187 = arith.constant 0 : index
    %c0_188 = arith.constant 0 : index
    %375 = vector.load %arg16[%c13, %c0_187, %c0_188] : memref<16x16x32xf32, #tpu.memory_space<vmem>>, vector<1x16x32xf32>
    %376 = vector.shape_cast %375 : vector<1x16x32xf32> to vector<16x32xf32>
    %cst_189 = arith.constant dense<0.000000e+00> : vector<16x256xf32>
    %377 = tpu.matmul %376, %333, %cst_189 {dimension_numbers = #tpu.dot_dimension_numbers<[1], [0], [0], [1], [0, 0, 1, 1], [], []>} : vector<16x32xf32>, vector<32x256xf32>, vector<16x256xf32> -> vector<16x256xf32>
    %378 = arith.addf %374, %377 : vector<16x256xf32>
    %c14 = arith.constant 14 : index
    %c0_190 = arith.constant 0 : index
    %c0_191 = arith.constant 0 : index
    %379 = vector.load %arg16[%c14, %c0_190, %c0_191] : memref<16x16x32xf32, #tpu.memory_space<vmem>>, vector<1x16x32xf32>
    %380 = vector.shape_cast %379 : vector<1x16x32xf32> to vector<16x32xf32>
    %cst_192 = arith.constant dense<0.000000e+00> : vector<16x256xf32>
    %381 = tpu.matmul %380, %364, %cst_192 {dimension_numbers = #tpu.dot_dimension_numbers<[1], [0], [0], [1], [0, 0, 1, 1], [], []>} : vector<16x32xf32>, vector<32x256xf32>, vector<16x256xf32> -> vector<16x256xf32>
    %382 = arith.addf %378, %381 : vector<16x256xf32>
    %c15 = arith.constant 15 : index
    %c0_193 = arith.constant 0 : index
    %c0_194 = arith.constant 0 : index
    %383 = vector.load %arg16[%c15, %c0_193, %c0_194] : memref<16x16x32xf32, #tpu.memory_space<vmem>>, vector<1x16x32xf32>
    %384 = vector.shape_cast %383 : vector<1x16x32xf32> to vector<16x32xf32>
    %385 = vector.extract_strided_slice %273 {offsets = [0, 17], sizes = [32, 239], strides = [1, 1]} : vector<32x256xf32> to vector<32x239xf32>
    %386 = vector.extract_strided_slice %273 {offsets = [0, 0], sizes = [32, 17], strides = [1, 1]} : vector<32x256xf32> to vector<32x17xf32>
    %387 = tpu.concatenate %385, %386 in 1 : vector<32x239xf32>, vector<32x17xf32> -> vector<32x256xf32>
    %388 = arith.mulf %1, %3 : vector<1x256xf32>
    %389 = vector.broadcast %388 : vector<1x256xf32> to vector<32x256xf32>
    %390 = arith.mulf %387, %389 : vector<32x256xf32>
    %cst_195 = arith.constant dense<0.000000e+00> : vector<16x256xf32>
    %391 = tpu.matmul %384, %390, %cst_195 {dimension_numbers = #tpu.dot_dimension_numbers<[1], [0], [0], [1], [0, 0, 1, 1], [], []>} : vector<16x32xf32>, vector<32x256xf32>, vector<16x256xf32> -> vector<16x256xf32>
    %392 = arith.addf %382, %391 : vector<16x256xf32>
    %c0_196 = arith.constant 0 : index
    %c0_197 = arith.constant 0 : index
    %393 = vector.load %arg17[%c0_196, %c0_197] : memref<16x1xf32, #tpu.memory_space<vmem>>, vector<16x1xf32>
    %394 = vector.broadcast %393 : vector<16x1xf32> to vector<16x256xf32>
    %395 = arith.addf %392, %394 : vector<16x256xf32>
    %cst_198 = arith.constant 0.000000e+00 : f32
    %396 = vector.broadcast %cst_198 : f32 to vector<16x256xf32>
    %397 = arith.maximumf %395, %396 : vector<16x256xf32>
    %c0_199 = arith.constant 0 : index
    %c0_200 = arith.constant 0 : index
    %398 = vector.load %arg19[%c0_199, %c0_200] : memref<3x1xf32, #tpu.memory_space<vmem>>, vector<3x1xf32>
    %c0_201 = arith.constant 0 : index
    %c0_202 = arith.constant 0 : index
    %c0_203 = arith.constant 0 : index
    %399 = vector.load %arg18[%c0_201, %c0_202, %c0_203] : memref<16x3x16xf32, #tpu.memory_space<vmem>>, vector<1x3x16xf32>
    %400 = vector.shape_cast %399 : vector<1x3x16xf32> to vector<3x16xf32>
    %401 = vector.extract_strided_slice %397 {offsets = [0, 239], sizes = [16, 17], strides = [1, 1]} : vector<16x256xf32> to vector<16x17xf32>
    %402 = vector.extract_strided_slice %397 {offsets = [0, 0], sizes = [16, 239], strides = [1, 1]} : vector<16x256xf32> to vector<16x239xf32>
    %403 = tpu.concatenate %401, %402 in 1 : vector<16x17xf32>, vector<16x239xf32> -> vector<16x256xf32>
    %404 = arith.mulf %0, %2 : vector<1x256xf32>
    %405 = vector.broadcast %404 : vector<1x256xf32> to vector<16x256xf32>
    %406 = arith.mulf %403, %405 : vector<16x256xf32>
    %cst_204 = arith.constant dense<0.000000e+00> : vector<3x256xf32>
    %407 = tpu.matmul %400, %406, %cst_204 {dimension_numbers = #tpu.dot_dimension_numbers<[1], [0], [0], [1], [0, 0, 1, 1], [], []>} : vector<3x16xf32>, vector<16x256xf32>, vector<3x256xf32> -> vector<3x256xf32>
    %c1_205 = arith.constant 1 : index
    %c0_206 = arith.constant 0 : index
    %c0_207 = arith.constant 0 : index
    %408 = vector.load %arg18[%c1_205, %c0_206, %c0_207] : memref<16x3x16xf32, #tpu.memory_space<vmem>>, vector<1x3x16xf32>
    %409 = vector.shape_cast %408 : vector<1x3x16xf32> to vector<3x16xf32>
    %410 = vector.extract_strided_slice %371 {offsets = [0, 240], sizes = [16, 16], strides = [1, 1]} : vector<16x256xf32> to vector<16x16xf32>
    %411 = vector.extract_strided_slice %371 {offsets = [0, 0], sizes = [16, 240], strides = [1, 1]} : vector<16x256xf32> to vector<16x240xf32>
    %412 = tpu.concatenate %410, %411 in 1 : vector<16x16xf32>, vector<16x240xf32> -> vector<16x256xf32>
    %413 = vector.broadcast %0 : vector<1x256xf32> to vector<16x256xf32>
    %414 = arith.mulf %412, %413 : vector<16x256xf32>
    %cst_208 = arith.constant dense<0.000000e+00> : vector<3x256xf32>
    %415 = tpu.matmul %409, %414, %cst_208 {dimension_numbers = #tpu.dot_dimension_numbers<[1], [0], [0], [1], [0, 0, 1, 1], [], []>} : vector<3x16xf32>, vector<16x256xf32>, vector<3x256xf32> -> vector<3x256xf32>
    %416 = arith.addf %407, %415 : vector<3x256xf32>
    %c2_209 = arith.constant 2 : index
    %c0_210 = arith.constant 0 : index
    %c0_211 = arith.constant 0 : index
    %417 = vector.load %arg18[%c2_209, %c0_210, %c0_211] : memref<16x3x16xf32, #tpu.memory_space<vmem>>, vector<1x3x16xf32>
    %418 = vector.shape_cast %417 : vector<1x3x16xf32> to vector<3x16xf32>
    %419 = vector.extract_strided_slice %340 {offsets = [0, 255], sizes = [16, 1], strides = [1, 1]} : vector<16x256xf32> to vector<16x1xf32>
    %420 = vector.extract_strided_slice %340 {offsets = [0, 0], sizes = [16, 255], strides = [1, 1]} : vector<16x256xf32> to vector<16x255xf32>
    %421 = tpu.concatenate %419, %420 in 1 : vector<16x1xf32>, vector<16x255xf32> -> vector<16x256xf32>
    %422 = vector.broadcast %2 : vector<1x256xf32> to vector<16x256xf32>
    %423 = arith.mulf %421, %422 : vector<16x256xf32>
    %cst_212 = arith.constant dense<0.000000e+00> : vector<3x256xf32>
    %424 = tpu.matmul %418, %423, %cst_212 {dimension_numbers = #tpu.dot_dimension_numbers<[1], [0], [0], [1], [0, 0, 1, 1], [], []>} : vector<3x16xf32>, vector<16x256xf32>, vector<3x256xf32> -> vector<3x256xf32>
    %425 = arith.addf %416, %424 : vector<3x256xf32>
    %c3_213 = arith.constant 3 : index
    %c0_214 = arith.constant 0 : index
    %c0_215 = arith.constant 0 : index
    %426 = vector.load %arg18[%c3_213, %c0_214, %c0_215] : memref<16x3x16xf32, #tpu.memory_space<vmem>>, vector<1x3x16xf32>
    %427 = vector.shape_cast %426 : vector<1x3x16xf32> to vector<3x16xf32>
    %cst_216 = arith.constant dense<0.000000e+00> : vector<3x256xf32>
    %428 = tpu.matmul %427, %309, %cst_216 {dimension_numbers = #tpu.dot_dimension_numbers<[1], [0], [0], [1], [0, 0, 1, 1], [], []>} : vector<3x16xf32>, vector<16x256xf32>, vector<3x256xf32> -> vector<3x256xf32>
    %429 = arith.addf %425, %428 : vector<3x256xf32>
    %430 = vector.broadcast %398 : vector<3x1xf32> to vector<3x256xf32>
    %431 = arith.addf %429, %430 : vector<3x256xf32>
    %c0_217 = arith.constant 0 : index
    %c0_218 = arith.constant 0 : index
    %c0_219 = arith.constant 0 : index
    %c0_220 = arith.constant 0 : index
    %432 = vector.load %arg20[%c0_217, %c0_218, %c0_219, %c0_220] : memref<1x16x3x256xf32, #tpu.memory_space<vmem>>, vector<1x1x3x256xf32>
    %433 = vector.shape_cast %432 : vector<1x1x3x256xf32> to vector<3x256xf32>
    %434 = vector.shape_cast %431 : vector<3x256xf32> to vector<1x1x3x256xf32>
    tpu.vector_store %arg20[%c0_217, %c0_218, %c0_219, %c0_220], %434 {strides = array<i32>} : memref<1x16x3x256xf32, #tpu.memory_space<vmem>>, vector<1x1x3x256xf32>,
    %c4_221 = arith.constant 4 : index
    %c0_222 = arith.constant 0 : index
    %c0_223 = arith.constant 0 : index
    %435 = vector.load %arg18[%c4_221, %c0_222, %c0_223] : memref<16x3x16xf32, #tpu.memory_space<vmem>>, vector<1x3x16xf32>
    %436 = vector.shape_cast %435 : vector<1x3x16xf32> to vector<3x16xf32>
    %cst_224 = arith.constant dense<0.000000e+00> : vector<3x256xf32>
    %437 = tpu.matmul %436, %414, %cst_224 {dimension_numbers = #tpu.dot_dimension_numbers<[1], [0], [0], [1], [0, 0, 1, 1], [], []>} : vector<3x16xf32>, vector<16x256xf32>, vector<3x256xf32> -> vector<3x256xf32>
    %c5_225 = arith.constant 5 : index
    %c0_226 = arith.constant 0 : index
    %c0_227 = arith.constant 0 : index
    %438 = vector.load %arg18[%c5_225, %c0_226, %c0_227] : memref<16x3x16xf32, #tpu.memory_space<vmem>>, vector<1x3x16xf32>
    %439 = vector.shape_cast %438 : vector<1x3x16xf32> to vector<3x16xf32>
    %440 = vector.extract_strided_slice %397 {offsets = [0, 240], sizes = [16, 16], strides = [1, 1]} : vector<16x256xf32> to vector<16x16xf32>
    %441 = vector.extract_strided_slice %397 {offsets = [0, 0], sizes = [16, 240], strides = [1, 1]} : vector<16x256xf32> to vector<16x240xf32>
    %442 = tpu.concatenate %440, %441 in 1 : vector<16x16xf32>, vector<16x240xf32> -> vector<16x256xf32>
    %443 = vector.broadcast %0 : vector<1x256xf32> to vector<16x256xf32>
    %444 = arith.mulf %442, %443 : vector<16x256xf32>
    %cst_228 = arith.constant dense<0.000000e+00> : vector<3x256xf32>
    %445 = tpu.matmul %439, %444, %cst_228 {dimension_numbers = #tpu.dot_dimension_numbers<[1], [0], [0], [1], [0, 0, 1, 1], [], []>} : vector<3x16xf32>, vector<16x256xf32>, vector<3x256xf32> -> vector<3x256xf32>
    %446 = arith.addf %437, %445 : vector<3x256xf32>
    %c6_229 = arith.constant 6 : index
    %c0_230 = arith.constant 0 : index
    %c0_231 = arith.constant 0 : index
    %447 = vector.load %arg18[%c6_229, %c0_230, %c0_231] : memref<16x3x16xf32, #tpu.memory_space<vmem>>, vector<1x3x16xf32>
    %448 = vector.shape_cast %447 : vector<1x3x16xf32> to vector<3x16xf32>
    %cst_232 = arith.constant dense<0.000000e+00> : vector<3x256xf32>
    %449 = tpu.matmul %448, %309, %cst_232 {dimension_numbers = #tpu.dot_dimension_numbers<[1], [0], [0], [1], [0, 0, 1, 1], [], []>} : vector<3x16xf32>, vector<16x256xf32>, vector<3x256xf32> -> vector<3x256xf32>
    %450 = arith.addf %446, %449 : vector<3x256xf32>
    %c7_233 = arith.constant 7 : index
    %c0_234 = arith.constant 0 : index
    %c0_235 = arith.constant 0 : index
    %451 = vector.load %arg18[%c7_233, %c0_234, %c0_235] : memref<16x3x16xf32, #tpu.memory_space<vmem>>, vector<1x3x16xf32>
    %452 = vector.shape_cast %451 : vector<1x3x16xf32> to vector<3x16xf32>
    %cst_236 = arith.constant dense<0.000000e+00> : vector<3x256xf32>
    %453 = tpu.matmul %452, %340, %cst_236 {dimension_numbers = #tpu.dot_dimension_numbers<[1], [0], [0], [1], [0, 0, 1, 1], [], []>} : vector<3x16xf32>, vector<16x256xf32>, vector<3x256xf32> -> vector<3x256xf32>
    %454 = arith.addf %450, %453 : vector<3x256xf32>
    %455 = vector.broadcast %398 : vector<3x1xf32> to vector<3x256xf32>
    %456 = arith.addf %454, %455 : vector<3x256xf32>
    %c0_237 = arith.constant 0 : index
    %c1_238 = arith.constant 1 : index
    %c0_239 = arith.constant 0 : index
    %c0_240 = arith.constant 0 : index
    %457 = vector.load %arg20[%c0_237, %c1_238, %c0_239, %c0_240] : memref<1x16x3x256xf32, #tpu.memory_space<vmem>>, vector<1x1x3x256xf32>
    %458 = vector.shape_cast %457 : vector<1x1x3x256xf32> to vector<3x256xf32>
    %459 = vector.shape_cast %456 : vector<3x256xf32> to vector<1x1x3x256xf32>
    tpu.vector_store %arg20[%c0_237, %c1_238, %c0_239, %c0_240], %459 {strides = array<i32>} : memref<1x16x3x256xf32, #tpu.memory_space<vmem>>, vector<1x1x3x256xf32>,
    %c0_241 = arith.constant 0 : index
    %c0_242 = arith.constant 0 : index
    %c0_243 = arith.constant 0 : index
    %460 = vector.load %arg18[%c0_241, %c0_242, %c0_243] : memref<16x3x16xf32, #tpu.memory_space<vmem>>, vector<1x3x16xf32>
    %461 = vector.shape_cast %460 : vector<1x3x16xf32> to vector<3x16xf32>
    %cst_244 = arith.constant dense<0.000000e+00> : vector<3x256xf32>
    %462 = tpu.matmul %461, %414, %cst_244 {dimension_numbers = #tpu.dot_dimension_numbers<[1], [0], [0], [1], [0, 0, 1, 1], [], []>} : vector<3x16xf32>, vector<16x256xf32>, vector<3x256xf32> -> vector<3x256xf32>
    %c1_245 = arith.constant 1 : index
    %c0_246 = arith.constant 0 : index
    %c0_247 = arith.constant 0 : index
    %463 = vector.load %arg18[%c1_245, %c0_246, %c0_247] : memref<16x3x16xf32, #tpu.memory_space<vmem>>, vector<1x3x16xf32>
    %464 = vector.shape_cast %463 : vector<1x3x16xf32> to vector<3x16xf32>
    %cst_248 = arith.constant dense<0.000000e+00> : vector<3x256xf32>
    %465 = tpu.matmul %464, %444, %cst_248 {dimension_numbers = #tpu.dot_dimension_numbers<[1], [0], [0], [1], [0, 0, 1, 1], [], []>} : vector<3x16xf32>, vector<16x256xf32>, vector<3x256xf32> -> vector<3x256xf32>
    %466 = arith.addf %462, %465 : vector<3x256xf32>
    %c2_249 = arith.constant 2 : index
    %c0_250 = arith.constant 0 : index
    %c0_251 = arith.constant 0 : index
    %467 = vector.load %arg18[%c2_249, %c0_250, %c0_251] : memref<16x3x16xf32, #tpu.memory_space<vmem>>, vector<1x3x16xf32>
    %468 = vector.shape_cast %467 : vector<1x3x16xf32> to vector<3x16xf32>
    %cst_252 = arith.constant dense<0.000000e+00> : vector<3x256xf32>
    %469 = tpu.matmul %468, %309, %cst_252 {dimension_numbers = #tpu.dot_dimension_numbers<[1], [0], [0], [1], [0, 0, 1, 1], [], []>} : vector<3x16xf32>, vector<16x256xf32>, vector<3x256xf32> -> vector<3x256xf32>
    %470 = arith.addf %466, %469 : vector<3x256xf32>
    %c3_253 = arith.constant 3 : index
    %c0_254 = arith.constant 0 : index
    %c0_255 = arith.constant 0 : index
    %471 = vector.load %arg18[%c3_253, %c0_254, %c0_255] : memref<16x3x16xf32, #tpu.memory_space<vmem>>, vector<1x3x16xf32>
    %472 = vector.shape_cast %471 : vector<1x3x16xf32> to vector<3x16xf32>
    %cst_256 = arith.constant dense<0.000000e+00> : vector<3x256xf32>
    %473 = tpu.matmul %472, %340, %cst_256 {dimension_numbers = #tpu.dot_dimension_numbers<[1], [0], [0], [1], [0, 0, 1, 1], [], []>} : vector<3x16xf32>, vector<16x256xf32>, vector<3x256xf32> -> vector<3x256xf32>
    %474 = arith.addf %470, %473 : vector<3x256xf32>
    %475 = vector.broadcast %398 : vector<3x1xf32> to vector<3x256xf32>
    %476 = arith.addf %474, %475 : vector<3x256xf32>
    %c0_257 = arith.constant 0 : index
    %c2_258 = arith.constant 2 : index
    %c0_259 = arith.constant 0 : index
    %c0_260 = arith.constant 0 : index
    %477 = vector.load %arg20[%c0_257, %c2_258, %c0_259, %c0_260] : memref<1x16x3x256xf32, #tpu.memory_space<vmem>>, vector<1x1x3x256xf32>
    %478 = vector.shape_cast %477 : vector<1x1x3x256xf32> to vector<3x256xf32>
    %479 = vector.shape_cast %476 : vector<3x256xf32> to vector<1x1x3x256xf32>
    tpu.vector_store %arg20[%c0_257, %c2_258, %c0_259, %c0_260], %479 {strides = array<i32>} : memref<1x16x3x256xf32, #tpu.memory_space<vmem>>, vector<1x1x3x256xf32>,
    %c4_261 = arith.constant 4 : index
    %c0_262 = arith.constant 0 : index
    %c0_263 = arith.constant 0 : index
    %480 = vector.load %arg18[%c4_261, %c0_262, %c0_263] : memref<16x3x16xf32, #tpu.memory_space<vmem>>, vector<1x3x16xf32>
    %481 = vector.shape_cast %480 : vector<1x3x16xf32> to vector<3x16xf32>
    %cst_264 = arith.constant dense<0.000000e+00> : vector<3x256xf32>
    %482 = tpu.matmul %481, %444, %cst_264 {dimension_numbers = #tpu.dot_dimension_numbers<[1], [0], [0], [1], [0, 0, 1, 1], [], []>} : vector<3x16xf32>, vector<16x256xf32>, vector<3x256xf32> -> vector<3x256xf32>
    %c5_265 = arith.constant 5 : index
    %c0_266 = arith.constant 0 : index
    %c0_267 = arith.constant 0 : index
    %483 = vector.load %arg18[%c5_265, %c0_266, %c0_267] : memref<16x3x16xf32, #tpu.memory_space<vmem>>, vector<1x3x16xf32>
    %484 = vector.shape_cast %483 : vector<1x3x16xf32> to vector<3x16xf32>
    %485 = vector.extract_strided_slice %371 {offsets = [0, 241], sizes = [16, 15], strides = [1, 1]} : vector<16x256xf32> to vector<16x15xf32>
    %486 = vector.extract_strided_slice %371 {offsets = [0, 0], sizes = [16, 241], strides = [1, 1]} : vector<16x256xf32> to vector<16x241xf32>
    %487 = tpu.concatenate %485, %486 in 1 : vector<16x15xf32>, vector<16x241xf32> -> vector<16x256xf32>
    %488 = arith.mulf %0, %3 : vector<1x256xf32>
    %489 = vector.broadcast %488 : vector<1x256xf32> to vector<16x256xf32>
    %490 = arith.mulf %487, %489 : vector<16x256xf32>
    %cst_268 = arith.constant dense<0.000000e+00> : vector<3x256xf32>
    %491 = tpu.matmul %484, %490, %cst_268 {dimension_numbers = #tpu.dot_dimension_numbers<[1], [0], [0], [1], [0, 0, 1, 1], [], []>} : vector<3x16xf32>, vector<16x256xf32>, vector<3x256xf32> -> vector<3x256xf32>
    %492 = arith.addf %482, %491 : vector<3x256xf32>
    %c6_269 = arith.constant 6 : index
    %c0_270 = arith.constant 0 : index
    %c0_271 = arith.constant 0 : index
    %493 = vector.load %arg18[%c6_269, %c0_270, %c0_271] : memref<16x3x16xf32, #tpu.memory_space<vmem>>, vector<1x3x16xf32>
    %494 = vector.shape_cast %493 : vector<1x3x16xf32> to vector<3x16xf32>
    %cst_272 = arith.constant dense<0.000000e+00> : vector<3x256xf32>
    %495 = tpu.matmul %494, %340, %cst_272 {dimension_numbers = #tpu.dot_dimension_numbers<[1], [0], [0], [1], [0, 0, 1, 1], [], []>} : vector<3x16xf32>, vector<16x256xf32>, vector<3x256xf32> -> vector<3x256xf32>
    %496 = arith.addf %492, %495 : vector<3x256xf32>
    %c7_273 = arith.constant 7 : index
    %c0_274 = arith.constant 0 : index
    %c0_275 = arith.constant 0 : index
    %497 = vector.load %arg18[%c7_273, %c0_274, %c0_275] : memref<16x3x16xf32, #tpu.memory_space<vmem>>, vector<1x3x16xf32>
    %498 = vector.shape_cast %497 : vector<1x3x16xf32> to vector<3x16xf32>
    %499 = vector.extract_strided_slice %309 {offsets = [0, 1], sizes = [16, 255], strides = [1, 1]} : vector<16x256xf32> to vector<16x255xf32>
    %500 = vector.extract_strided_slice %309 {offsets = [0, 0], sizes = [16, 1], strides = [1, 1]} : vector<16x256xf32> to vector<16x1xf32>
    %501 = tpu.concatenate %499, %500 in 1 : vector<16x255xf32>, vector<16x1xf32> -> vector<16x256xf32>
    %502 = vector.broadcast %3 : vector<1x256xf32> to vector<16x256xf32>
    %503 = arith.mulf %501, %502 : vector<16x256xf32>
    %cst_276 = arith.constant dense<0.000000e+00> : vector<3x256xf32>
    %504 = tpu.matmul %498, %503, %cst_276 {dimension_numbers = #tpu.dot_dimension_numbers<[1], [0], [0], [1], [0, 0, 1, 1], [], []>} : vector<3x16xf32>, vector<16x256xf32>, vector<3x256xf32> -> vector<3x256xf32>
    %505 = arith.addf %496, %504 : vector<3x256xf32>
    %506 = vector.broadcast %398 : vector<3x1xf32> to vector<3x256xf32>
    %507 = arith.addf %505, %506 : vector<3x256xf32>
    %c0_277 = arith.constant 0 : index
    %c3_278 = arith.constant 3 : index
    %c0_279 = arith.constant 0 : index
    %c0_280 = arith.constant 0 : index
    %508 = vector.load %arg20[%c0_277, %c3_278, %c0_279, %c0_280] : memref<1x16x3x256xf32, #tpu.memory_space<vmem>>, vector<1x1x3x256xf32>
    %509 = vector.shape_cast %508 : vector<1x1x3x256xf32> to vector<3x256xf32>
    %510 = vector.shape_cast %507 : vector<3x256xf32> to vector<1x1x3x256xf32>
    tpu.vector_store %arg20[%c0_277, %c3_278, %c0_279, %c0_280], %510 {strides = array<i32>} : memref<1x16x3x256xf32, #tpu.memory_space<vmem>>, vector<1x1x3x256xf32>,
    %c8_281 = arith.constant 8 : index
    %c0_282 = arith.constant 0 : index
    %c0_283 = arith.constant 0 : index
    %511 = vector.load %arg18[%c8_281, %c0_282, %c0_283] : memref<16x3x16xf32, #tpu.memory_space<vmem>>, vector<1x3x16xf32>
    %512 = vector.shape_cast %511 : vector<1x3x16xf32> to vector<3x16xf32>
    %cst_284 = arith.constant dense<0.000000e+00> : vector<3x256xf32>
    %513 = tpu.matmul %512, %423, %cst_284 {dimension_numbers = #tpu.dot_dimension_numbers<[1], [0], [0], [1], [0, 0, 1, 1], [], []>} : vector<3x16xf32>, vector<16x256xf32>, vector<3x256xf32> -> vector<3x256xf32>
    %c9_285 = arith.constant 9 : index
    %c0_286 = arith.constant 0 : index
    %c0_287 = arith.constant 0 : index
    %514 = vector.load %arg18[%c9_285, %c0_286, %c0_287] : memref<16x3x16xf32, #tpu.memory_space<vmem>>, vector<1x3x16xf32>
    %515 = vector.shape_cast %514 : vector<1x3x16xf32> to vector<3x16xf32>
    %cst_288 = arith.constant dense<0.000000e+00> : vector<3x256xf32>
    %516 = tpu.matmul %515, %309, %cst_288 {dimension_numbers = #tpu.dot_dimension_numbers<[1], [0], [0], [1], [0, 0, 1, 1], [], []>} : vector<3x16xf32>, vector<16x256xf32>, vector<3x256xf32> -> vector<3x256xf32>
    %517 = arith.addf %513, %516 : vector<3x256xf32>
    %c10_289 = arith.constant 10 : index
    %c0_290 = arith.constant 0 : index
    %c0_291 = arith.constant 0 : index
    %518 = vector.load %arg18[%c10_289, %c0_290, %c0_291] : memref<16x3x16xf32, #tpu.memory_space<vmem>>, vector<1x3x16xf32>
    %519 = vector.shape_cast %518 : vector<1x3x16xf32> to vector<3x16xf32>
    %520 = vector.extract_strided_slice %397 {offsets = [0, 255], sizes = [16, 1], strides = [1, 1]} : vector<16x256xf32> to vector<16x1xf32>
    %521 = vector.extract_strided_slice %397 {offsets = [0, 0], sizes = [16, 255], strides = [1, 1]} : vector<16x256xf32> to vector<16x255xf32>
    %522 = tpu.concatenate %520, %521 in 1 : vector<16x1xf32>, vector<16x255xf32> -> vector<16x256xf32>
    %523 = vector.broadcast %2 : vector<1x256xf32> to vector<16x256xf32>
    %524 = arith.mulf %522, %523 : vector<16x256xf32>
    %cst_292 = arith.constant dense<0.000000e+00> : vector<3x256xf32>
    %525 = tpu.matmul %519, %524, %cst_292 {dimension_numbers = #tpu.dot_dimension_numbers<[1], [0], [0], [1], [0, 0, 1, 1], [], []>} : vector<3x16xf32>, vector<16x256xf32>, vector<3x256xf32> -> vector<3x256xf32>
    %526 = arith.addf %517, %525 : vector<3x256xf32>
    %c11_293 = arith.constant 11 : index
    %c0_294 = arith.constant 0 : index
    %c0_295 = arith.constant 0 : index
    %527 = vector.load %arg18[%c11_293, %c0_294, %c0_295] : memref<16x3x16xf32, #tpu.memory_space<vmem>>, vector<1x3x16xf32>
    %528 = vector.shape_cast %527 : vector<1x3x16xf32> to vector<3x16xf32>
    %cst_296 = arith.constant dense<0.000000e+00> : vector<3x256xf32>
    %529 = tpu.matmul %528, %371, %cst_296 {dimension_numbers = #tpu.dot_dimension_numbers<[1], [0], [0], [1], [0, 0, 1, 1], [], []>} : vector<3x16xf32>, vector<16x256xf32>, vector<3x256xf32> -> vector<3x256xf32>
    %530 = arith.addf %526, %529 : vector<3x256xf32>
    %531 = vector.broadcast %398 : vector<3x1xf32> to vector<3x256xf32>
    %532 = arith.addf %530, %531 : vector<3x256xf32>
    %c0_297 = arith.constant 0 : index
    %c4_298 = arith.constant 4 : index
    %c0_299 = arith.constant 0 : index
    %c0_300 = arith.constant 0 : index
    %533 = vector.load %arg20[%c0_297, %c4_298, %c0_299, %c0_300] : memref<1x16x3x256xf32, #tpu.memory_space<vmem>>, vector<1x1x3x256xf32>
    %534 = vector.shape_cast %533 : vector<1x1x3x256xf32> to vector<3x256xf32>
    %535 = vector.shape_cast %532 : vector<3x256xf32> to vector<1x1x3x256xf32>
    tpu.vector_store %arg20[%c0_297, %c4_298, %c0_299, %c0_300], %535 {strides = array<i32>} : memref<1x16x3x256xf32, #tpu.memory_space<vmem>>, vector<1x1x3x256xf32>,
    %c12_301 = arith.constant 12 : index
    %c0_302 = arith.constant 0 : index
    %c0_303 = arith.constant 0 : index
    %536 = vector.load %arg18[%c12_301, %c0_302, %c0_303] : memref<16x3x16xf32, #tpu.memory_space<vmem>>, vector<1x3x16xf32>
    %537 = vector.shape_cast %536 : vector<1x3x16xf32> to vector<3x16xf32>
    %cst_304 = arith.constant dense<0.000000e+00> : vector<3x256xf32>
    %538 = tpu.matmul %537, %309, %cst_304 {dimension_numbers = #tpu.dot_dimension_numbers<[1], [0], [0], [1], [0, 0, 1, 1], [], []>} : vector<3x16xf32>, vector<16x256xf32>, vector<3x256xf32> -> vector<3x256xf32>
    %c13_305 = arith.constant 13 : index
    %c0_306 = arith.constant 0 : index
    %c0_307 = arith.constant 0 : index
    %539 = vector.load %arg18[%c13_305, %c0_306, %c0_307] : memref<16x3x16xf32, #tpu.memory_space<vmem>>, vector<1x3x16xf32>
    %540 = vector.shape_cast %539 : vector<1x3x16xf32> to vector<3x16xf32>
    %cst_308 = arith.constant dense<0.000000e+00> : vector<3x256xf32>
    %541 = tpu.matmul %540, %340, %cst_308 {dimension_numbers = #tpu.dot_dimension_numbers<[1], [0], [0], [1], [0, 0, 1, 1], [], []>} : vector<3x16xf32>, vector<16x256xf32>, vector<3x256xf32> -> vector<3x256xf32>
    %542 = arith.addf %538, %541 : vector<3x256xf32>
    %c14_309 = arith.constant 14 : index
    %c0_310 = arith.constant 0 : index
    %c0_311 = arith.constant 0 : index
    %543 = vector.load %arg18[%c14_309, %c0_310, %c0_311] : memref<16x3x16xf32, #tpu.memory_space<vmem>>, vector<1x3x16xf32>
    %544 = vector.shape_cast %543 : vector<1x3x16xf32> to vector<3x16xf32>
    %cst_312 = arith.constant dense<0.000000e+00> : vector<3x256xf32>
    %545 = tpu.matmul %544, %371, %cst_312 {dimension_numbers = #tpu.dot_dimension_numbers<[1], [0], [0], [1], [0, 0, 1, 1], [], []>} : vector<3x16xf32>, vector<16x256xf32>, vector<3x256xf32> -> vector<3x256xf32>
    %546 = arith.addf %542, %545 : vector<3x256xf32>
    %c15_313 = arith.constant 15 : index
    %c0_314 = arith.constant 0 : index
    %c0_315 = arith.constant 0 : index
    %547 = vector.load %arg18[%c15_313, %c0_314, %c0_315] : memref<16x3x16xf32, #tpu.memory_space<vmem>>, vector<1x3x16xf32>
    %548 = vector.shape_cast %547 : vector<1x3x16xf32> to vector<3x16xf32>
    %cst_316 = arith.constant dense<0.000000e+00> : vector<3x256xf32>
    %549 = tpu.matmul %548, %397, %cst_316 {dimension_numbers = #tpu.dot_dimension_numbers<[1], [0], [0], [1], [0, 0, 1, 1], [], []>} : vector<3x16xf32>, vector<16x256xf32>, vector<3x256xf32> -> vector<3x256xf32>
    %550 = arith.addf %546, %549 : vector<3x256xf32>
    %551 = vector.broadcast %398 : vector<3x1xf32> to vector<3x256xf32>
    %552 = arith.addf %550, %551 : vector<3x256xf32>
    %c0_317 = arith.constant 0 : index
    %c5_318 = arith.constant 5 : index
    %c0_319 = arith.constant 0 : index
    %c0_320 = arith.constant 0 : index
    %553 = vector.load %arg20[%c0_317, %c5_318, %c0_319, %c0_320] : memref<1x16x3x256xf32, #tpu.memory_space<vmem>>, vector<1x1x3x256xf32>
    %554 = vector.shape_cast %553 : vector<1x1x3x256xf32> to vector<3x256xf32>
    %555 = vector.shape_cast %552 : vector<3x256xf32> to vector<1x1x3x256xf32>
    tpu.vector_store %arg20[%c0_317, %c5_318, %c0_319, %c0_320], %555 {strides = array<i32>} : memref<1x16x3x256xf32, #tpu.memory_space<vmem>>, vector<1x1x3x256xf32>,
    %c8_321 = arith.constant 8 : index
    %c0_322 = arith.constant 0 : index
    %c0_323 = arith.constant 0 : index
    %556 = vector.load %arg18[%c8_321, %c0_322, %c0_323] : memref<16x3x16xf32, #tpu.memory_space<vmem>>, vector<1x3x16xf32>
    %557 = vector.shape_cast %556 : vector<1x3x16xf32> to vector<3x16xf32>
    %cst_324 = arith.constant dense<0.000000e+00> : vector<3x256xf32>
    %558 = tpu.matmul %557, %309, %cst_324 {dimension_numbers = #tpu.dot_dimension_numbers<[1], [0], [0], [1], [0, 0, 1, 1], [], []>} : vector<3x16xf32>, vector<16x256xf32>, vector<3x256xf32> -> vector<3x256xf32>
    %c9_325 = arith.constant 9 : index
    %c0_326 = arith.constant 0 : index
    %c0_327 = arith.constant 0 : index
    %559 = vector.load %arg18[%c9_325, %c0_326, %c0_327] : memref<16x3x16xf32, #tpu.memory_space<vmem>>, vector<1x3x16xf32>
    %560 = vector.shape_cast %559 : vector<1x3x16xf32> to vector<3x16xf32>
    %cst_328 = arith.constant dense<0.000000e+00> : vector<3x256xf32>
    %561 = tpu.matmul %560, %340, %cst_328 {dimension_numbers = #tpu.dot_dimension_numbers<[1], [0], [0], [1], [0, 0, 1, 1], [], []>} : vector<3x16xf32>, vector<16x256xf32>, vector<3x256xf32> -> vector<3x256xf32>
    %562 = arith.addf %558, %561 : vector<3x256xf32>
    %c10_329 = arith.constant 10 : index
    %c0_330 = arith.constant 0 : index
    %c0_331 = arith.constant 0 : index
    %563 = vector.load %arg18[%c10_329, %c0_330, %c0_331] : memref<16x3x16xf32, #tpu.memory_space<vmem>>, vector<1x3x16xf32>
    %564 = vector.shape_cast %563 : vector<1x3x16xf32> to vector<3x16xf32>
    %cst_332 = arith.constant dense<0.000000e+00> : vector<3x256xf32>
    %565 = tpu.matmul %564, %371, %cst_332 {dimension_numbers = #tpu.dot_dimension_numbers<[1], [0], [0], [1], [0, 0, 1, 1], [], []>} : vector<3x16xf32>, vector<16x256xf32>, vector<3x256xf32> -> vector<3x256xf32>
    %566 = arith.addf %562, %565 : vector<3x256xf32>
    %c11_333 = arith.constant 11 : index
    %c0_334 = arith.constant 0 : index
    %c0_335 = arith.constant 0 : index
    %567 = vector.load %arg18[%c11_333, %c0_334, %c0_335] : memref<16x3x16xf32, #tpu.memory_space<vmem>>, vector<1x3x16xf32>
    %568 = vector.shape_cast %567 : vector<1x3x16xf32> to vector<3x16xf32>
    %cst_336 = arith.constant dense<0.000000e+00> : vector<3x256xf32>
    %569 = tpu.matmul %568, %397, %cst_336 {dimension_numbers = #tpu.dot_dimension_numbers<[1], [0], [0], [1], [0, 0, 1, 1], [], []>} : vector<3x16xf32>, vector<16x256xf32>, vector<3x256xf32> -> vector<3x256xf32>
    %570 = arith.addf %566, %569 : vector<3x256xf32>
    %571 = vector.broadcast %398 : vector<3x1xf32> to vector<3x256xf32>
    %572 = arith.addf %570, %571 : vector<3x256xf32>
    %c0_337 = arith.constant 0 : index
    %c6_338 = arith.constant 6 : index
    %c0_339 = arith.constant 0 : index
    %c0_340 = arith.constant 0 : index
    %573 = vector.load %arg20[%c0_337, %c6_338, %c0_339, %c0_340] : memref<1x16x3x256xf32, #tpu.memory_space<vmem>>, vector<1x1x3x256xf32>
    %574 = vector.shape_cast %573 : vector<1x1x3x256xf32> to vector<3x256xf32>
    %575 = vector.shape_cast %572 : vector<3x256xf32> to vector<1x1x3x256xf32>
    tpu.vector_store %arg20[%c0_337, %c6_338, %c0_339, %c0_340], %575 {strides = array<i32>} : memref<1x16x3x256xf32, #tpu.memory_space<vmem>>, vector<1x1x3x256xf32>,
    %c12_341 = arith.constant 12 : index
    %c0_342 = arith.constant 0 : index
    %c0_343 = arith.constant 0 : index
    %576 = vector.load %arg18[%c12_341, %c0_342, %c0_343] : memref<16x3x16xf32, #tpu.memory_space<vmem>>, vector<1x3x16xf32>
    %577 = vector.shape_cast %576 : vector<1x3x16xf32> to vector<3x16xf32>
    %cst_344 = arith.constant dense<0.000000e+00> : vector<3x256xf32>
    %578 = tpu.matmul %577, %340, %cst_344 {dimension_numbers = #tpu.dot_dimension_numbers<[1], [0], [0], [1], [0, 0, 1, 1], [], []>} : vector<3x16xf32>, vector<16x256xf32>, vector<3x256xf32> -> vector<3x256xf32>
    %c13_345 = arith.constant 13 : index
    %c0_346 = arith.constant 0 : index
    %c0_347 = arith.constant 0 : index
    %579 = vector.load %arg18[%c13_345, %c0_346, %c0_347] : memref<16x3x16xf32, #tpu.memory_space<vmem>>, vector<1x3x16xf32>
    %580 = vector.shape_cast %579 : vector<1x3x16xf32> to vector<3x16xf32>
    %cst_348 = arith.constant dense<0.000000e+00> : vector<3x256xf32>
    %581 = tpu.matmul %580, %503, %cst_348 {dimension_numbers = #tpu.dot_dimension_numbers<[1], [0], [0], [1], [0, 0, 1, 1], [], []>} : vector<3x16xf32>, vector<16x256xf32>, vector<3x256xf32> -> vector<3x256xf32>
    %582 = arith.addf %578, %581 : vector<3x256xf32>
    %c14_349 = arith.constant 14 : index
    %c0_350 = arith.constant 0 : index
    %c0_351 = arith.constant 0 : index
    %583 = vector.load %arg18[%c14_349, %c0_350, %c0_351] : memref<16x3x16xf32, #tpu.memory_space<vmem>>, vector<1x3x16xf32>
    %584 = vector.shape_cast %583 : vector<1x3x16xf32> to vector<3x16xf32>
    %cst_352 = arith.constant dense<0.000000e+00> : vector<3x256xf32>
    %585 = tpu.matmul %584, %397, %cst_352 {dimension_numbers = #tpu.dot_dimension_numbers<[1], [0], [0], [1], [0, 0, 1, 1], [], []>} : vector<3x16xf32>, vector<16x256xf32>, vector<3x256xf32> -> vector<3x256xf32>
    %586 = arith.addf %582, %585 : vector<3x256xf32>
    %c15_353 = arith.constant 15 : index
    %c0_354 = arith.constant 0 : index
    %c0_355 = arith.constant 0 : index
    %587 = vector.load %arg18[%c15_353, %c0_354, %c0_355] : memref<16x3x16xf32, #tpu.memory_space<vmem>>, vector<1x3x16xf32>
    %588 = vector.shape_cast %587 : vector<1x3x16xf32> to vector<3x16xf32>
    %589 = vector.extract_strided_slice %371 {offsets = [0, 1], sizes = [16, 255], strides = [1, 1]} : vector<16x256xf32> to vector<16x255xf32>
    %590 = vector.extract_strided_slice %371 {offsets = [0, 0], sizes = [16, 1], strides = [1, 1]} : vector<16x256xf32> to vector<16x1xf32>
    %591 = tpu.concatenate %589, %590 in 1 : vector<16x255xf32>, vector<16x1xf32> -> vector<16x256xf32>
    %592 = vector.broadcast %3 : vector<1x256xf32> to vector<16x256xf32>
    %593 = arith.mulf %591, %592 : vector<16x256xf32>
    %cst_356 = arith.constant dense<0.000000e+00> : vector<3x256xf32>
    %594 = tpu.matmul %588, %593, %cst_356 {dimension_numbers = #tpu.dot_dimension_numbers<[1], [0], [0], [1], [0, 0, 1, 1], [], []>} : vector<3x16xf32>, vector<16x256xf32>, vector<3x256xf32> -> vector<3x256xf32>
    %595 = arith.addf %586, %594 : vector<3x256xf32>
    %596 = vector.broadcast %398 : vector<3x1xf32> to vector<3x256xf32>
    %597 = arith.addf %595, %596 : vector<3x256xf32>
    %c0_357 = arith.constant 0 : index
    %c7_358 = arith.constant 7 : index
    %c0_359 = arith.constant 0 : index
    %c0_360 = arith.constant 0 : index
    %598 = vector.load %arg20[%c0_357, %c7_358, %c0_359, %c0_360] : memref<1x16x3x256xf32, #tpu.memory_space<vmem>>, vector<1x1x3x256xf32>
    %599 = vector.shape_cast %598 : vector<1x1x3x256xf32> to vector<3x256xf32>
    %600 = vector.shape_cast %597 : vector<3x256xf32> to vector<1x1x3x256xf32>
    tpu.vector_store %arg20[%c0_357, %c7_358, %c0_359, %c0_360], %600 {strides = array<i32>} : memref<1x16x3x256xf32, #tpu.memory_space<vmem>>, vector<1x1x3x256xf32>,
    %c0_361 = arith.constant 0 : index
    %c0_362 = arith.constant 0 : index
    %c0_363 = arith.constant 0 : index
    %601 = vector.load %arg18[%c0_361, %c0_362, %c0_363] : memref<16x3x16xf32, #tpu.memory_space<vmem>>, vector<1x3x16xf32>
    %602 = vector.shape_cast %601 : vector<1x3x16xf32> to vector<3x16xf32>
    %cst_364 = arith.constant dense<0.000000e+00> : vector<3x256xf32>
    %603 = tpu.matmul %602, %423, %cst_364 {dimension_numbers = #tpu.dot_dimension_numbers<[1], [0], [0], [1], [0, 0, 1, 1], [], []>} : vector<3x16xf32>, vector<16x256xf32>, vector<3x256xf32> -> vector<3x256xf32>
    %c1_365 = arith.constant 1 : index
    %c0_366 = arith.constant 0 : index
    %c0_367 = arith.constant 0 : index
    %604 = vector.load %arg18[%c1_365, %c0_366, %c0_367] : memref<16x3x16xf32, #tpu.memory_space<vmem>>, vector<1x3x16xf32>
    %605 = vector.shape_cast %604 : vector<1x3x16xf32> to vector<3x16xf32>
    %cst_368 = arith.constant dense<0.000000e+00> : vector<3x256xf32>
    %606 = tpu.matmul %605, %309, %cst_368 {dimension_numbers = #tpu.dot_dimension_numbers<[1], [0], [0], [1], [0, 0, 1, 1], [], []>} : vector<3x16xf32>, vector<16x256xf32>, vector<3x256xf32> -> vector<3x256xf32>
    %607 = arith.addf %603, %606 : vector<3x256xf32>
    %c2_369 = arith.constant 2 : index
    %c0_370 = arith.constant 0 : index
    %c0_371 = arith.constant 0 : index
    %608 = vector.load %arg18[%c2_369, %c0_370, %c0_371] : memref<16x3x16xf32, #tpu.memory_space<vmem>>, vector<1x3x16xf32>
    %609 = vector.shape_cast %608 : vector<1x3x16xf32> to vector<3x16xf32>
    %cst_372 = arith.constant dense<0.000000e+00> : vector<3x256xf32>
    %610 = tpu.matmul %609, %524, %cst_372 {dimension_numbers = #tpu.dot_dimension_numbers<[1], [0], [0], [1], [0, 0, 1, 1], [], []>} : vector<3x16xf32>, vector<16x256xf32>, vector<3x256xf32> -> vector<3x256xf32>
    %611 = arith.addf %607, %610 : vector<3x256xf32>
    %c3_373 = arith.constant 3 : index
    %c0_374 = arith.constant 0 : index
    %c0_375 = arith.constant 0 : index
    %612 = vector.load %arg18[%c3_373, %c0_374, %c0_375] : memref<16x3x16xf32, #tpu.memory_space<vmem>>, vector<1x3x16xf32>
    %613 = vector.shape_cast %612 : vector<1x3x16xf32> to vector<3x16xf32>
    %cst_376 = arith.constant dense<0.000000e+00> : vector<3x256xf32>
    %614 = tpu.matmul %613, %371, %cst_376 {dimension_numbers = #tpu.dot_dimension_numbers<[1], [0], [0], [1], [0, 0, 1, 1], [], []>} : vector<3x16xf32>, vector<16x256xf32>, vector<3x256xf32> -> vector<3x256xf32>
    %615 = arith.addf %611, %614 : vector<3x256xf32>
    %616 = vector.broadcast %398 : vector<3x1xf32> to vector<3x256xf32>
    %617 = arith.addf %615, %616 : vector<3x256xf32>
    %c0_377 = arith.constant 0 : index
    %c8_378 = arith.constant 8 : index
    %c0_379 = arith.constant 0 : index
    %c0_380 = arith.constant 0 : index
    %618 = vector.load %arg20[%c0_377, %c8_378, %c0_379, %c0_380] : memref<1x16x3x256xf32, #tpu.memory_space<vmem>>, vector<1x1x3x256xf32>
    %619 = vector.shape_cast %618 : vector<1x1x3x256xf32> to vector<3x256xf32>
    %620 = vector.shape_cast %617 : vector<3x256xf32> to vector<1x1x3x256xf32>
    tpu.vector_store %arg20[%c0_377, %c8_378, %c0_379, %c0_380], %620 {strides = array<i32>} : memref<1x16x3x256xf32, #tpu.memory_space<vmem>>, vector<1x1x3x256xf32>,
    %c4_381 = arith.constant 4 : index
    %c0_382 = arith.constant 0 : index
    %c0_383 = arith.constant 0 : index
    %621 = vector.load %arg18[%c4_381, %c0_382, %c0_383] : memref<16x3x16xf32, #tpu.memory_space<vmem>>, vector<1x3x16xf32>
    %622 = vector.shape_cast %621 : vector<1x3x16xf32> to vector<3x16xf32>
    %cst_384 = arith.constant dense<0.000000e+00> : vector<3x256xf32>
    %623 = tpu.matmul %622, %309, %cst_384 {dimension_numbers = #tpu.dot_dimension_numbers<[1], [0], [0], [1], [0, 0, 1, 1], [], []>} : vector<3x16xf32>, vector<16x256xf32>, vector<3x256xf32> -> vector<3x256xf32>
    %c5_385 = arith.constant 5 : index
    %c0_386 = arith.constant 0 : index
    %c0_387 = arith.constant 0 : index
    %624 = vector.load %arg18[%c5_385, %c0_386, %c0_387] : memref<16x3x16xf32, #tpu.memory_space<vmem>>, vector<1x3x16xf32>
    %625 = vector.shape_cast %624 : vector<1x3x16xf32> to vector<3x16xf32>
    %cst_388 = arith.constant dense<0.000000e+00> : vector<3x256xf32>
    %626 = tpu.matmul %625, %340, %cst_388 {dimension_numbers = #tpu.dot_dimension_numbers<[1], [0], [0], [1], [0, 0, 1, 1], [], []>} : vector<3x16xf32>, vector<16x256xf32>, vector<3x256xf32> -> vector<3x256xf32>
    %627 = arith.addf %623, %626 : vector<3x256xf32>
    %c6_389 = arith.constant 6 : index
    %c0_390 = arith.constant 0 : index
    %c0_391 = arith.constant 0 : index
    %628 = vector.load %arg18[%c6_389, %c0_390, %c0_391] : memref<16x3x16xf32, #tpu.memory_space<vmem>>, vector<1x3x16xf32>
    %629 = vector.shape_cast %628 : vector<1x3x16xf32> to vector<3x16xf32>
    %cst_392 = arith.constant dense<0.000000e+00> : vector<3x256xf32>
    %630 = tpu.matmul %629, %371, %cst_392 {dimension_numbers = #tpu.dot_dimension_numbers<[1], [0], [0], [1], [0, 0, 1, 1], [], []>} : vector<3x16xf32>, vector<16x256xf32>, vector<3x256xf32> -> vector<3x256xf32>
    %631 = arith.addf %627, %630 : vector<3x256xf32>
    %c7_393 = arith.constant 7 : index
    %c0_394 = arith.constant 0 : index
    %c0_395 = arith.constant 0 : index
    %632 = vector.load %arg18[%c7_393, %c0_394, %c0_395] : memref<16x3x16xf32, #tpu.memory_space<vmem>>, vector<1x3x16xf32>
    %633 = vector.shape_cast %632 : vector<1x3x16xf32> to vector<3x16xf32>
    %cst_396 = arith.constant dense<0.000000e+00> : vector<3x256xf32>
    %634 = tpu.matmul %633, %397, %cst_396 {dimension_numbers = #tpu.dot_dimension_numbers<[1], [0], [0], [1], [0, 0, 1, 1], [], []>} : vector<3x16xf32>, vector<16x256xf32>, vector<3x256xf32> -> vector<3x256xf32>
    %635 = arith.addf %631, %634 : vector<3x256xf32>
    %636 = vector.broadcast %398 : vector<3x1xf32> to vector<3x256xf32>
    %637 = arith.addf %635, %636 : vector<3x256xf32>
    %c0_397 = arith.constant 0 : index
    %c9_398 = arith.constant 9 : index
    %c0_399 = arith.constant 0 : index
    %c0_400 = arith.constant 0 : index
    %638 = vector.load %arg20[%c0_397, %c9_398, %c0_399, %c0_400] : memref<1x16x3x256xf32, #tpu.memory_space<vmem>>, vector<1x1x3x256xf32>
    %639 = vector.shape_cast %638 : vector<1x1x3x256xf32> to vector<3x256xf32>
    %640 = vector.shape_cast %637 : vector<3x256xf32> to vector<1x1x3x256xf32>
    tpu.vector_store %arg20[%c0_397, %c9_398, %c0_399, %c0_400], %640 {strides = array<i32>} : memref<1x16x3x256xf32, #tpu.memory_space<vmem>>, vector<1x1x3x256xf32>,
    %c0_401 = arith.constant 0 : index
    %c0_402 = arith.constant 0 : index
    %c0_403 = arith.constant 0 : index
    %641 = vector.load %arg18[%c0_401, %c0_402, %c0_403] : memref<16x3x16xf32, #tpu.memory_space<vmem>>, vector<1x3x16xf32>
    %642 = vector.shape_cast %641 : vector<1x3x16xf32> to vector<3x16xf32>
    %cst_404 = arith.constant dense<0.000000e+00> : vector<3x256xf32>
    %643 = tpu.matmul %642, %309, %cst_404 {dimension_numbers = #tpu.dot_dimension_numbers<[1], [0], [0], [1], [0, 0, 1, 1], [], []>} : vector<3x16xf32>, vector<16x256xf32>, vector<3x256xf32> -> vector<3x256xf32>
    %c1_405 = arith.constant 1 : index
    %c0_406 = arith.constant 0 : index
    %c0_407 = arith.constant 0 : index
    %644 = vector.load %arg18[%c1_405, %c0_406, %c0_407] : memref<16x3x16xf32, #tpu.memory_space<vmem>>, vector<1x3x16xf32>
    %645 = vector.shape_cast %644 : vector<1x3x16xf32> to vector<3x16xf32>
    %cst_408 = arith.constant dense<0.000000e+00> : vector<3x256xf32>
    %646 = tpu.matmul %645, %340, %cst_408 {dimension_numbers = #tpu.dot_dimension_numbers<[1], [0], [0], [1], [0, 0, 1, 1], [], []>} : vector<3x16xf32>, vector<16x256xf32>, vector<3x256xf32> -> vector<3x256xf32>
    %647 = arith.addf %643, %646 : vector<3x256xf32>
    %c2_409 = arith.constant 2 : index
    %c0_410 = arith.constant 0 : index
    %c0_411 = arith.constant 0 : index
    %648 = vector.load %arg18[%c2_409, %c0_410, %c0_411] : memref<16x3x16xf32, #tpu.memory_space<vmem>>, vector<1x3x16xf32>
    %649 = vector.shape_cast %648 : vector<1x3x16xf32> to vector<3x16xf32>
    %cst_412 = arith.constant dense<0.000000e+00> : vector<3x256xf32>
    %650 = tpu.matmul %649, %371, %cst_412 {dimension_numbers = #tpu.dot_dimension_numbers<[1], [0], [0], [1], [0, 0, 1, 1], [], []>} : vector<3x16xf32>, vector<16x256xf32>, vector<3x256xf32> -> vector<3x256xf32>
    %651 = arith.addf %647, %650 : vector<3x256xf32>
    %c3_413 = arith.constant 3 : index
    %c0_414 = arith.constant 0 : index
    %c0_415 = arith.constant 0 : index
    %652 = vector.load %arg18[%c3_413, %c0_414, %c0_415] : memref<16x3x16xf32, #tpu.memory_space<vmem>>, vector<1x3x16xf32>
    %653 = vector.shape_cast %652 : vector<1x3x16xf32> to vector<3x16xf32>
    %cst_416 = arith.constant dense<0.000000e+00> : vector<3x256xf32>
    %654 = tpu.matmul %653, %397, %cst_416 {dimension_numbers = #tpu.dot_dimension_numbers<[1], [0], [0], [1], [0, 0, 1, 1], [], []>} : vector<3x16xf32>, vector<16x256xf32>, vector<3x256xf32> -> vector<3x256xf32>
    %655 = arith.addf %651, %654 : vector<3x256xf32>
    %656 = vector.broadcast %398 : vector<3x1xf32> to vector<3x256xf32>
    %657 = arith.addf %655, %656 : vector<3x256xf32>
    %c0_417 = arith.constant 0 : index
    %c10_418 = arith.constant 10 : index
    %c0_419 = arith.constant 0 : index
    %c0_420 = arith.constant 0 : index
    %658 = vector.load %arg20[%c0_417, %c10_418, %c0_419, %c0_420] : memref<1x16x3x256xf32, #tpu.memory_space<vmem>>, vector<1x1x3x256xf32>
    %659 = vector.shape_cast %658 : vector<1x1x3x256xf32> to vector<3x256xf32>
    %660 = vector.shape_cast %657 : vector<3x256xf32> to vector<1x1x3x256xf32>
    tpu.vector_store %arg20[%c0_417, %c10_418, %c0_419, %c0_420], %660 {strides = array<i32>} : memref<1x16x3x256xf32, #tpu.memory_space<vmem>>, vector<1x1x3x256xf32>,
    %c4_421 = arith.constant 4 : index
    %c0_422 = arith.constant 0 : index
    %c0_423 = arith.constant 0 : index
    %661 = vector.load %arg18[%c4_421, %c0_422, %c0_423] : memref<16x3x16xf32, #tpu.memory_space<vmem>>, vector<1x3x16xf32>
    %662 = vector.shape_cast %661 : vector<1x3x16xf32> to vector<3x16xf32>
    %cst_424 = arith.constant dense<0.000000e+00> : vector<3x256xf32>
    %663 = tpu.matmul %662, %340, %cst_424 {dimension_numbers = #tpu.dot_dimension_numbers<[1], [0], [0], [1], [0, 0, 1, 1], [], []>} : vector<3x16xf32>, vector<16x256xf32>, vector<3x256xf32> -> vector<3x256xf32>
    %c5_425 = arith.constant 5 : index
    %c0_426 = arith.constant 0 : index
    %c0_427 = arith.constant 0 : index
    %664 = vector.load %arg18[%c5_425, %c0_426, %c0_427] : memref<16x3x16xf32, #tpu.memory_space<vmem>>, vector<1x3x16xf32>
    %665 = vector.shape_cast %664 : vector<1x3x16xf32> to vector<3x16xf32>
    %cst_428 = arith.constant dense<0.000000e+00> : vector<3x256xf32>
    %666 = tpu.matmul %665, %503, %cst_428 {dimension_numbers = #tpu.dot_dimension_numbers<[1], [0], [0], [1], [0, 0, 1, 1], [], []>} : vector<3x16xf32>, vector<16x256xf32>, vector<3x256xf32> -> vector<3x256xf32>
    %667 = arith.addf %663, %666 : vector<3x256xf32>
    %c6_429 = arith.constant 6 : index
    %c0_430 = arith.constant 0 : index
    %c0_431 = arith.constant 0 : index
    %668 = vector.load %arg18[%c6_429, %c0_430, %c0_431] : memref<16x3x16xf32, #tpu.memory_space<vmem>>, vector<1x3x16xf32>
    %669 = vector.shape_cast %668 : vector<1x3x16xf32> to vector<3x16xf32>
    %cst_432 = arith.constant dense<0.000000e+00> : vector<3x256xf32>
    %670 = tpu.matmul %669, %397, %cst_432 {dimension_numbers = #tpu.dot_dimension_numbers<[1], [0], [0], [1], [0, 0, 1, 1], [], []>} : vector<3x16xf32>, vector<16x256xf32>, vector<3x256xf32> -> vector<3x256xf32>
    %671 = arith.addf %667, %670 : vector<3x256xf32>
    %c7_433 = arith.constant 7 : index
    %c0_434 = arith.constant 0 : index
    %c0_435 = arith.constant 0 : index
    %672 = vector.load %arg18[%c7_433, %c0_434, %c0_435] : memref<16x3x16xf32, #tpu.memory_space<vmem>>, vector<1x3x16xf32>
    %673 = vector.shape_cast %672 : vector<1x3x16xf32> to vector<3x16xf32>
    %cst_436 = arith.constant dense<0.000000e+00> : vector<3x256xf32>
    %674 = tpu.matmul %673, %593, %cst_436 {dimension_numbers = #tpu.dot_dimension_numbers<[1], [0], [0], [1], [0, 0, 1, 1], [], []>} : vector<3x16xf32>, vector<16x256xf32>, vector<3x256xf32> -> vector<3x256xf32>
    %675 = arith.addf %671, %674 : vector<3x256xf32>
    %676 = vector.broadcast %398 : vector<3x1xf32> to vector<3x256xf32>
    %677 = arith.addf %675, %676 : vector<3x256xf32>
    %c0_437 = arith.constant 0 : index
    %c11_438 = arith.constant 11 : index
    %c0_439 = arith.constant 0 : index
    %c0_440 = arith.constant 0 : index
    %678 = vector.load %arg20[%c0_437, %c11_438, %c0_439, %c0_440] : memref<1x16x3x256xf32, #tpu.memory_space<vmem>>, vector<1x1x3x256xf32>
    %679 = vector.shape_cast %678 : vector<1x1x3x256xf32> to vector<3x256xf32>
    %680 = vector.shape_cast %677 : vector<3x256xf32> to vector<1x1x3x256xf32>
    tpu.vector_store %arg20[%c0_437, %c11_438, %c0_439, %c0_440], %680 {strides = array<i32>} : memref<1x16x3x256xf32, #tpu.memory_space<vmem>>, vector<1x1x3x256xf32>,
    %c8_441 = arith.constant 8 : index
    %c0_442 = arith.constant 0 : index
    %c0_443 = arith.constant 0 : index
    %681 = vector.load %arg18[%c8_441, %c0_442, %c0_443] : memref<16x3x16xf32, #tpu.memory_space<vmem>>, vector<1x3x16xf32>
    %682 = vector.shape_cast %681 : vector<1x3x16xf32> to vector<3x16xf32>
    %cst_444 = arith.constant dense<0.000000e+00> : vector<3x256xf32>
    %683 = tpu.matmul %682, %524, %cst_444 {dimension_numbers = #tpu.dot_dimension_numbers<[1], [0], [0], [1], [0, 0, 1, 1], [], []>} : vector<3x16xf32>, vector<16x256xf32>, vector<3x256xf32> -> vector<3x256xf32>
    %c9_445 = arith.constant 9 : index
    %c0_446 = arith.constant 0 : index
    %c0_447 = arith.constant 0 : index
    %684 = vector.load %arg18[%c9_445, %c0_446, %c0_447] : memref<16x3x16xf32, #tpu.memory_space<vmem>>, vector<1x3x16xf32>
    %685 = vector.shape_cast %684 : vector<1x3x16xf32> to vector<3x16xf32>
    %cst_448 = arith.constant dense<0.000000e+00> : vector<3x256xf32>
    %686 = tpu.matmul %685, %371, %cst_448 {dimension_numbers = #tpu.dot_dimension_numbers<[1], [0], [0], [1], [0, 0, 1, 1], [], []>} : vector<3x16xf32>, vector<16x256xf32>, vector<3x256xf32> -> vector<3x256xf32>
    %687 = arith.addf %683, %686 : vector<3x256xf32>
    %c10_449 = arith.constant 10 : index
    %c0_450 = arith.constant 0 : index
    %c0_451 = arith.constant 0 : index
    %688 = vector.load %arg18[%c10_449, %c0_450, %c0_451] : memref<16x3x16xf32, #tpu.memory_space<vmem>>, vector<1x3x16xf32>
    %689 = vector.shape_cast %688 : vector<1x3x16xf32> to vector<3x16xf32>
    %690 = vector.extract_strided_slice %340 {offsets = [0, 15], sizes = [16, 241], strides = [1, 1]} : vector<16x256xf32> to vector<16x241xf32>
    %691 = vector.extract_strided_slice %340 {offsets = [0, 0], sizes = [16, 15], strides = [1, 1]} : vector<16x256xf32> to vector<16x15xf32>
    %692 = tpu.concatenate %690, %691 in 1 : vector<16x241xf32>, vector<16x15xf32> -> vector<16x256xf32>
    %693 = arith.mulf %1, %2 : vector<1x256xf32>
    %694 = vector.broadcast %693 : vector<1x256xf32> to vector<16x256xf32>
    %695 = arith.mulf %692, %694 : vector<16x256xf32>
    %cst_452 = arith.constant dense<0.000000e+00> : vector<3x256xf32>
    %696 = tpu.matmul %689, %695, %cst_452 {dimension_numbers = #tpu.dot_dimension_numbers<[1], [0], [0], [1], [0, 0, 1, 1], [], []>} : vector<3x16xf32>, vector<16x256xf32>, vector<3x256xf32> -> vector<3x256xf32>
    %697 = arith.addf %687, %696 : vector<3x256xf32>
    %c11_453 = arith.constant 11 : index
    %c0_454 = arith.constant 0 : index
    %c0_455 = arith.constant 0 : index
    %698 = vector.load %arg18[%c11_453, %c0_454, %c0_455] : memref<16x3x16xf32, #tpu.memory_space<vmem>>, vector<1x3x16xf32>
    %699 = vector.shape_cast %698 : vector<1x3x16xf32> to vector<3x16xf32>
    %700 = vector.extract_strided_slice %309 {offsets = [0, 16], sizes = [16, 240], strides = [1, 1]} : vector<16x256xf32> to vector<16x240xf32>
    %701 = vector.extract_strided_slice %309 {offsets = [0, 0], sizes = [16, 16], strides = [1, 1]} : vector<16x256xf32> to vector<16x16xf32>
    %702 = tpu.concatenate %700, %701 in 1 : vector<16x240xf32>, vector<16x16xf32> -> vector<16x256xf32>
    %703 = vector.broadcast %1 : vector<1x256xf32> to vector<16x256xf32>
    %704 = arith.mulf %702, %703 : vector<16x256xf32>
    %cst_456 = arith.constant dense<0.000000e+00> : vector<3x256xf32>
    %705 = tpu.matmul %699, %704, %cst_456 {dimension_numbers = #tpu.dot_dimension_numbers<[1], [0], [0], [1], [0, 0, 1, 1], [], []>} : vector<3x16xf32>, vector<16x256xf32>, vector<3x256xf32> -> vector<3x256xf32>
    %706 = arith.addf %697, %705 : vector<3x256xf32>
    %707 = vector.broadcast %398 : vector<3x1xf32> to vector<3x256xf32>
    %708 = arith.addf %706, %707 : vector<3x256xf32>
    %c0_457 = arith.constant 0 : index
    %c12_458 = arith.constant 12 : index
    %c0_459 = arith.constant 0 : index
    %c0_460 = arith.constant 0 : index
    %709 = vector.load %arg20[%c0_457, %c12_458, %c0_459, %c0_460] : memref<1x16x3x256xf32, #tpu.memory_space<vmem>>, vector<1x1x3x256xf32>
    %710 = vector.shape_cast %709 : vector<1x1x3x256xf32> to vector<3x256xf32>
    %711 = vector.shape_cast %708 : vector<3x256xf32> to vector<1x1x3x256xf32>
    tpu.vector_store %arg20[%c0_457, %c12_458, %c0_459, %c0_460], %711 {strides = array<i32>} : memref<1x16x3x256xf32, #tpu.memory_space<vmem>>, vector<1x1x3x256xf32>,
    %c12_461 = arith.constant 12 : index
    %c0_462 = arith.constant 0 : index
    %c0_463 = arith.constant 0 : index
    %712 = vector.load %arg18[%c12_461, %c0_462, %c0_463] : memref<16x3x16xf32, #tpu.memory_space<vmem>>, vector<1x3x16xf32>
    %713 = vector.shape_cast %712 : vector<1x3x16xf32> to vector<3x16xf32>
    %cst_464 = arith.constant dense<0.000000e+00> : vector<3x256xf32>
    %714 = tpu.matmul %713, %371, %cst_464 {dimension_numbers = #tpu.dot_dimension_numbers<[1], [0], [0], [1], [0, 0, 1, 1], [], []>} : vector<3x16xf32>, vector<16x256xf32>, vector<3x256xf32> -> vector<3x256xf32>
    %c13_465 = arith.constant 13 : index
    %c0_466 = arith.constant 0 : index
    %c0_467 = arith.constant 0 : index
    %715 = vector.load %arg18[%c13_465, %c0_466, %c0_467] : memref<16x3x16xf32, #tpu.memory_space<vmem>>, vector<1x3x16xf32>
    %716 = vector.shape_cast %715 : vector<1x3x16xf32> to vector<3x16xf32>
    %cst_468 = arith.constant dense<0.000000e+00> : vector<3x256xf32>
    %717 = tpu.matmul %716, %397, %cst_468 {dimension_numbers = #tpu.dot_dimension_numbers<[1], [0], [0], [1], [0, 0, 1, 1], [], []>} : vector<3x16xf32>, vector<16x256xf32>, vector<3x256xf32> -> vector<3x256xf32>
    %718 = arith.addf %714, %717 : vector<3x256xf32>
    %c14_469 = arith.constant 14 : index
    %c0_470 = arith.constant 0 : index
    %c0_471 = arith.constant 0 : index
    %719 = vector.load %arg18[%c14_469, %c0_470, %c0_471] : memref<16x3x16xf32, #tpu.memory_space<vmem>>, vector<1x3x16xf32>
    %720 = vector.shape_cast %719 : vector<1x3x16xf32> to vector<3x16xf32>
    %cst_472 = arith.constant dense<0.000000e+00> : vector<3x256xf32>
    %721 = tpu.matmul %720, %704, %cst_472 {dimension_numbers = #tpu.dot_dimension_numbers<[1], [0], [0], [1], [0, 0, 1, 1], [], []>} : vector<3x16xf32>, vector<16x256xf32>, vector<3x256xf32> -> vector<3x256xf32>
    %722 = arith.addf %718, %721 : vector<3x256xf32>
    %c15_473 = arith.constant 15 : index
    %c0_474 = arith.constant 0 : index
    %c0_475 = arith.constant 0 : index
    %723 = vector.load %arg18[%c15_473, %c0_474, %c0_475] : memref<16x3x16xf32, #tpu.memory_space<vmem>>, vector<1x3x16xf32>
    %724 = vector.shape_cast %723 : vector<1x3x16xf32> to vector<3x16xf32>
    %725 = vector.extract_strided_slice %340 {offsets = [0, 16], sizes = [16, 240], strides = [1, 1]} : vector<16x256xf32> to vector<16x240xf32>
    %726 = vector.extract_strided_slice %340 {offsets = [0, 0], sizes = [16, 16], strides = [1, 1]} : vector<16x256xf32> to vector<16x16xf32>
    %727 = tpu.concatenate %725, %726 in 1 : vector<16x240xf32>, vector<16x16xf32> -> vector<16x256xf32>
    %728 = vector.broadcast %1 : vector<1x256xf32> to vector<16x256xf32>
    %729 = arith.mulf %727, %728 : vector<16x256xf32>
    %cst_476 = arith.constant dense<0.000000e+00> : vector<3x256xf32>
    %730 = tpu.matmul %724, %729, %cst_476 {dimension_numbers = #tpu.dot_dimension_numbers<[1], [0], [0], [1], [0, 0, 1, 1], [], []>} : vector<3x16xf32>, vector<16x256xf32>, vector<3x256xf32> -> vector<3x256xf32>
    %731 = arith.addf %722, %730 : vector<3x256xf32>
    %732 = vector.broadcast %398 : vector<3x1xf32> to vector<3x256xf32>
    %733 = arith.addf %731, %732 : vector<3x256xf32>
    %c0_477 = arith.constant 0 : index
    %c13_478 = arith.constant 13 : index
    %c0_479 = arith.constant 0 : index
    %c0_480 = arith.constant 0 : index
    %734 = vector.load %arg20[%c0_477, %c13_478, %c0_479, %c0_480] : memref<1x16x3x256xf32, #tpu.memory_space<vmem>>, vector<1x1x3x256xf32>
    %735 = vector.shape_cast %734 : vector<1x1x3x256xf32> to vector<3x256xf32>
    %736 = vector.shape_cast %733 : vector<3x256xf32> to vector<1x1x3x256xf32>
    tpu.vector_store %arg20[%c0_477, %c13_478, %c0_479, %c0_480], %736 {strides = array<i32>} : memref<1x16x3x256xf32, #tpu.memory_space<vmem>>, vector<1x1x3x256xf32>,
    %c8_481 = arith.constant 8 : index
    %c0_482 = arith.constant 0 : index
    %c0_483 = arith.constant 0 : index
    %737 = vector.load %arg18[%c8_481, %c0_482, %c0_483] : memref<16x3x16xf32, #tpu.memory_space<vmem>>, vector<1x3x16xf32>
    %738 = vector.shape_cast %737 : vector<1x3x16xf32> to vector<3x16xf32>
    %cst_484 = arith.constant dense<0.000000e+00> : vector<3x256xf32>
    %739 = tpu.matmul %738, %371, %cst_484 {dimension_numbers = #tpu.dot_dimension_numbers<[1], [0], [0], [1], [0, 0, 1, 1], [], []>} : vector<3x16xf32>, vector<16x256xf32>, vector<3x256xf32> -> vector<3x256xf32>
    %c9_485 = arith.constant 9 : index
    %c0_486 = arith.constant 0 : index
    %c0_487 = arith.constant 0 : index
    %740 = vector.load %arg18[%c9_485, %c0_486, %c0_487] : memref<16x3x16xf32, #tpu.memory_space<vmem>>, vector<1x3x16xf32>
    %741 = vector.shape_cast %740 : vector<1x3x16xf32> to vector<3x16xf32>
    %cst_488 = arith.constant dense<0.000000e+00> : vector<3x256xf32>
    %742 = tpu.matmul %741, %397, %cst_488 {dimension_numbers = #tpu.dot_dimension_numbers<[1], [0], [0], [1], [0, 0, 1, 1], [], []>} : vector<3x16xf32>, vector<16x256xf32>, vector<3x256xf32> -> vector<3x256xf32>
    %743 = arith.addf %739, %742 : vector<3x256xf32>
    %c10_489 = arith.constant 10 : index
    %c0_490 = arith.constant 0 : index
    %c0_491 = arith.constant 0 : index
    %744 = vector.load %arg18[%c10_489, %c0_490, %c0_491] : memref<16x3x16xf32, #tpu.memory_space<vmem>>, vector<1x3x16xf32>
    %745 = vector.shape_cast %744 : vector<1x3x16xf32> to vector<3x16xf32>
    %cst_492 = arith.constant dense<0.000000e+00> : vector<3x256xf32>
    %746 = tpu.matmul %745, %704, %cst_492 {dimension_numbers = #tpu.dot_dimension_numbers<[1], [0], [0], [1], [0, 0, 1, 1], [], []>} : vector<3x16xf32>, vector<16x256xf32>, vector<3x256xf32> -> vector<3x256xf32>
    %747 = arith.addf %743, %746 : vector<3x256xf32>
    %c11_493 = arith.constant 11 : index
    %c0_494 = arith.constant 0 : index
    %c0_495 = arith.constant 0 : index
    %748 = vector.load %arg18[%c11_493, %c0_494, %c0_495] : memref<16x3x16xf32, #tpu.memory_space<vmem>>, vector<1x3x16xf32>
    %749 = vector.shape_cast %748 : vector<1x3x16xf32> to vector<3x16xf32>
    %cst_496 = arith.constant dense<0.000000e+00> : vector<3x256xf32>
    %750 = tpu.matmul %749, %729, %cst_496 {dimension_numbers = #tpu.dot_dimension_numbers<[1], [0], [0], [1], [0, 0, 1, 1], [], []>} : vector<3x16xf32>, vector<16x256xf32>, vector<3x256xf32> -> vector<3x256xf32>
    %751 = arith.addf %747, %750 : vector<3x256xf32>
    %752 = vector.broadcast %398 : vector<3x1xf32> to vector<3x256xf32>
    %753 = arith.addf %751, %752 : vector<3x256xf32>
    %c0_497 = arith.constant 0 : index
    %c14_498 = arith.constant 14 : index
    %c0_499 = arith.constant 0 : index
    %c0_500 = arith.constant 0 : index
    %754 = vector.load %arg20[%c0_497, %c14_498, %c0_499, %c0_500] : memref<1x16x3x256xf32, #tpu.memory_space<vmem>>, vector<1x1x3x256xf32>
    %755 = vector.shape_cast %754 : vector<1x1x3x256xf32> to vector<3x256xf32>
    %756 = vector.shape_cast %753 : vector<3x256xf32> to vector<1x1x3x256xf32>
    tpu.vector_store %arg20[%c0_497, %c14_498, %c0_499, %c0_500], %756 {strides = array<i32>} : memref<1x16x3x256xf32, #tpu.memory_space<vmem>>, vector<1x1x3x256xf32>,
    %c12_501 = arith.constant 12 : index
    %c0_502 = arith.constant 0 : index
    %c0_503 = arith.constant 0 : index
    %757 = vector.load %arg18[%c12_501, %c0_502, %c0_503] : memref<16x3x16xf32, #tpu.memory_space<vmem>>, vector<1x3x16xf32>
    %758 = vector.shape_cast %757 : vector<1x3x16xf32> to vector<3x16xf32>
    %cst_504 = arith.constant dense<0.000000e+00> : vector<3x256xf32>
    %759 = tpu.matmul %758, %397, %cst_504 {dimension_numbers = #tpu.dot_dimension_numbers<[1], [0], [0], [1], [0, 0, 1, 1], [], []>} : vector<3x16xf32>, vector<16x256xf32>, vector<3x256xf32> -> vector<3x256xf32>
    %c13_505 = arith.constant 13 : index
    %c0_506 = arith.constant 0 : index
    %c0_507 = arith.constant 0 : index
    %760 = vector.load %arg18[%c13_505, %c0_506, %c0_507] : memref<16x3x16xf32, #tpu.memory_space<vmem>>, vector<1x3x16xf32>
    %761 = vector.shape_cast %760 : vector<1x3x16xf32> to vector<3x16xf32>
    %cst_508 = arith.constant dense<0.000000e+00> : vector<3x256xf32>
    %762 = tpu.matmul %761, %593, %cst_508 {dimension_numbers = #tpu.dot_dimension_numbers<[1], [0], [0], [1], [0, 0, 1, 1], [], []>} : vector<3x16xf32>, vector<16x256xf32>, vector<3x256xf32> -> vector<3x256xf32>
    %763 = arith.addf %759, %762 : vector<3x256xf32>
    %c14_509 = arith.constant 14 : index
    %c0_510 = arith.constant 0 : index
    %c0_511 = arith.constant 0 : index
    %764 = vector.load %arg18[%c14_509, %c0_510, %c0_511] : memref<16x3x16xf32, #tpu.memory_space<vmem>>, vector<1x3x16xf32>
    %765 = vector.shape_cast %764 : vector<1x3x16xf32> to vector<3x16xf32>
    %cst_512 = arith.constant dense<0.000000e+00> : vector<3x256xf32>
    %766 = tpu.matmul %765, %729, %cst_512 {dimension_numbers = #tpu.dot_dimension_numbers<[1], [0], [0], [1], [0, 0, 1, 1], [], []>} : vector<3x16xf32>, vector<16x256xf32>, vector<3x256xf32> -> vector<3x256xf32>
    %767 = arith.addf %763, %766 : vector<3x256xf32>
    %c15_513 = arith.constant 15 : index
    %c0_514 = arith.constant 0 : index
    %c0_515 = arith.constant 0 : index
    %768 = vector.load %arg18[%c15_513, %c0_514, %c0_515] : memref<16x3x16xf32, #tpu.memory_space<vmem>>, vector<1x3x16xf32>
    %769 = vector.shape_cast %768 : vector<1x3x16xf32> to vector<3x16xf32>
    %770 = vector.extract_strided_slice %309 {offsets = [0, 17], sizes = [16, 239], strides = [1, 1]} : vector<16x256xf32> to vector<16x239xf32>
    %771 = vector.extract_strided_slice %309 {offsets = [0, 0], sizes = [16, 17], strides = [1, 1]} : vector<16x256xf32> to vector<16x17xf32>
    %772 = tpu.concatenate %770, %771 in 1 : vector<16x239xf32>, vector<16x17xf32> -> vector<16x256xf32>
    %773 = arith.mulf %1, %3 : vector<1x256xf32>
    %774 = vector.broadcast %773 : vector<1x256xf32> to vector<16x256xf32>
    %775 = arith.mulf %772, %774 : vector<16x256xf32>
    %cst_516 = arith.constant dense<0.000000e+00> : vector<3x256xf32>
    %776 = tpu.matmul %769, %775, %cst_516 {dimension_numbers = #tpu.dot_dimension_numbers<[1], [0], [0], [1], [0, 0, 1, 1], [], []>} : vector<3x16xf32>, vector<16x256xf32>, vector<3x256xf32> -> vector<3x256xf32>
    %777 = arith.addf %767, %776 : vector<3x256xf32>
    %778 = vector.broadcast %398 : vector<3x1xf32> to vector<3x256xf32>
    %779 = arith.addf %777, %778 : vector<3x256xf32>
    %c0_517 = arith.constant 0 : index
    %c15_518 = arith.constant 15 : index
    %c0_519 = arith.constant 0 : index
    %c0_520 = arith.constant 0 : index
    %780 = vector.load %arg20[%c0_517, %c15_518, %c0_519, %c0_520] : memref<1x16x3x256xf32, #tpu.memory_space<vmem>>, vector<1x1x3x256xf32>
    %781 = vector.shape_cast %780 : vector<1x1x3x256xf32> to vector<3x256xf32>
    %782 = vector.shape_cast %779 : vector<3x256xf32> to vector<1x1x3x256xf32>
    tpu.vector_store %arg20[%c0_517, %c15_518, %c0_519, %c0_520], %782 {strides = array<i32>} : memref<1x16x3x256xf32, #tpu.memory_space<vmem>>, vector<1x1x3x256xf32>,
    return
  }
  func.func @transform_0(%arg0: i32) -> (i32, i32, i32) {
    %c0_i32 = arith.constant 0 : i32
    %c0_i32_0 = arith.constant 0 : i32
    %c0_i32_1 = arith.constant 0 : i32
    return %arg0, %c0_i32, %c0_i32_0 : i32, i32, i32
  }
  func.func @transform_1(%arg0: i32) -> (i32, i32) {
    %c0_i32 = arith.constant 0 : i32
    %c0_i32_0 = arith.constant 0 : i32
    %c0_i32_1 = arith.constant 0 : i32
    return %c0_i32, %c0_i32_0 : i32, i32
  }
  func.func @transform_2(%arg0: i32) -> (i32, i32) {
    %c0_i32 = arith.constant 0 : i32
    %c0_i32_0 = arith.constant 0 : i32
    %c0_i32_1 = arith.constant 0 : i32
    return %c0_i32, %c0_i32_0 : i32, i32
  }
  func.func @transform_3(%arg0: i32) -> (i32, i32) {
    %c0_i32 = arith.constant 0 : i32
    %c0_i32_0 = arith.constant 0 : i32
    %c0_i32_1 = arith.constant 0 : i32
    return %c0_i32, %c0_i32_0 : i32, i32
  }
  func.func @transform_4(%arg0: i32) -> (i32, i32) {
    %c0_i32 = arith.constant 0 : i32
    %c0_i32_0 = arith.constant 0 : i32
    %c0_i32_1 = arith.constant 0 : i32
    return %c0_i32, %c0_i32_0 : i32, i32
  }
  func.func @transform_5(%arg0: i32) -> (i32, i32, i32) {
    %c0_i32 = arith.constant 0 : i32
    %c0_i32_0 = arith.constant 0 : i32
    %c0_i32_1 = arith.constant 0 : i32
    %c0_i32_2 = arith.constant 0 : i32
    return %c0_i32, %c0_i32_0, %c0_i32_1 : i32, i32, i32
  }
  func.func @transform_6(%arg0: i32) -> (i32, i32) {
    %c0_i32 = arith.constant 0 : i32
    %c0_i32_0 = arith.constant 0 : i32
    %c0_i32_1 = arith.constant 0 : i32
    return %c0_i32, %c0_i32_0 : i32, i32
  }
  func.func @transform_7(%arg0: i32) -> (i32, i32, i32) {
    %c0_i32 = arith.constant 0 : i32
    %c0_i32_0 = arith.constant 0 : i32
    %c0_i32_1 = arith.constant 0 : i32
    %c0_i32_2 = arith.constant 0 : i32
    return %c0_i32, %c0_i32_0, %c0_i32_1 : i32, i32, i32
  }
  func.func @transform_8(%arg0: i32) -> (i32, i32) {
    %c0_i32 = arith.constant 0 : i32
    %c0_i32_0 = arith.constant 0 : i32
    %c0_i32_1 = arith.constant 0 : i32
    return %c0_i32, %c0_i32_0 : i32, i32
  }
  func.func @transform_9(%arg0: i32) -> (i32, i32) {
    %c0_i32 = arith.constant 0 : i32
    %c0_i32_0 = arith.constant 0 : i32
    %c0_i32_1 = arith.constant 0 : i32
    return %c0_i32, %c0_i32_0 : i32, i32
  }
  func.func @transform_10(%arg0: i32) -> (i32, i32) {
    %c0_i32 = arith.constant 0 : i32
    %c0_i32_0 = arith.constant 0 : i32
    %c0_i32_1 = arith.constant 0 : i32
    return %c0_i32, %c0_i32_0 : i32, i32
  }
  func.func @transform_11(%arg0: i32) -> (i32, i32, i32) {
    %c0_i32 = arith.constant 0 : i32
    %c0_i32_0 = arith.constant 0 : i32
    %c0_i32_1 = arith.constant 0 : i32
    %c0_i32_2 = arith.constant 0 : i32
    return %c0_i32, %c0_i32_0, %c0_i32_1 : i32, i32, i32
  }
  func.func @transform_12(%arg0: i32) -> (i32, i32) {
    %c0_i32 = arith.constant 0 : i32
    %c0_i32_0 = arith.constant 0 : i32
    %c0_i32_1 = arith.constant 0 : i32
    return %c0_i32, %c0_i32_0 : i32, i32
  }
  func.func @transform_13(%arg0: i32) -> (i32, i32) {
    %c0_i32 = arith.constant 0 : i32
    %c0_i32_0 = arith.constant 0 : i32
    %c0_i32_1 = arith.constant 0 : i32
    return %c0_i32, %c0_i32_0 : i32, i32
  }
  func.func @transform_14(%arg0: i32) -> (i32, i32) {
    %c0_i32 = arith.constant 0 : i32
    %c0_i32_0 = arith.constant 0 : i32
    %c0_i32_1 = arith.constant 0 : i32
    return %c0_i32, %c0_i32_0 : i32, i32
  }
  func.func @transform_15(%arg0: i32) -> (i32, i32, i32) {
    %c0_i32 = arith.constant 0 : i32
    %c0_i32_0 = arith.constant 0 : i32
    %c0_i32_1 = arith.constant 0 : i32
    %c0_i32_2 = arith.constant 0 : i32
    return %c0_i32, %c0_i32_0, %c0_i32_1 : i32, i32, i32
  }
  func.func @transform_16(%arg0: i32) -> (i32, i32) {
    %c0_i32 = arith.constant 0 : i32
    %c0_i32_0 = arith.constant 0 : i32
    %c0_i32_1 = arith.constant 0 : i32
    return %c0_i32, %c0_i32_0 : i32, i32
  }
  func.func @transform_17(%arg0: i32) -> (i32, i32, i32) {
    %c0_i32 = arith.constant 0 : i32
    %c0_i32_0 = arith.constant 0 : i32
    %c0_i32_1 = arith.constant 0 : i32
    %c0_i32_2 = arith.constant 0 : i32
    return %c0_i32, %c0_i32_0, %c0_i32_1 : i32, i32, i32
  }
  func.func @transform_18(%arg0: i32) -> (i32, i32) {
    %c0_i32 = arith.constant 0 : i32
    %c0_i32_0 = arith.constant 0 : i32
    %c0_i32_1 = arith.constant 0 : i32
    return %c0_i32, %c0_i32_0 : i32, i32
  }
  func.func @transform_19(%arg0: i32) -> (i32, i32, i32, i32) {
    %c0_i32 = arith.constant 0 : i32
    %c0_i32_0 = arith.constant 0 : i32
    %c0_i32_1 = arith.constant 0 : i32
    %c0_i32_2 = arith.constant 0 : i32
    return %arg0, %c0_i32, %c0_i32_0, %c0_i32_1 : i32, i32, i32, i32
  }
}

</mosaic_0001>

<bundles_post_ra>
// kernel: decoder_forward.1
= control target key start
LH: loop header
LB: loop body
LE: loop exit
PB: predicated region body
PF: predicated region fallthrough
CT: control target
= control target key end

     0   :  { %s15601_s0 = inlined_call_operand.vmem [shape: f32[2,4,256], index: 0, kind: input, shape index: {}]   ;;  %s15602_s1 = inlined_call_operand.vmem [shape: f32[1,256], index: 1, kind: input, shape index: {}]   ;;  %s15603_s2 = inlined_call_operand.vmem [shape: f32[1,256], index: 2, kind: input, shape index: {}]   ;;  %s15604_s3 = inlined_call_operand.vmem [shape: f32[1,256], index: 3, kind: input, shape index: {}]   ;;  %s15605_s4 = inlined_call_operand.vmem [shape: f32[1,256], index: 4, kind: input, shape index: {}]   ;;  %s15606_s5 = inlined_call_operand.vmem [shape: f32[9,32,4], index: 5, kind: input, shape index: {}]   ;;  %s15607_s6 = inlined_call_operand.vmem [shape: f32[32,1], index: 6, kind: input, shape index: {}]   ;;  %s15608_s7 = inlined_call_operand.hbm [shape: f32[9,8,32], index: 7, kind: input, shape index: {}]   ;;  %s15609_s8 = inlined_call_operand.vmem [shape: f32[8,1], index: 8, kind: input, shape index: {}]   ;;  %s15610_s9 = inlined_call_operand.vmem [shape: f32[32,8], index: 9, kind: input, shape index: {}]   ;;  %s15611_s10 = inlined_call_operand.vmem [shape: f32[32,1], index: 10, kind: input, shape index: {}]   ;;  %s15612_s11 = inlined_call_operand.hbm [shape: f32[9,8,32], index: 11, kind: input, shape index: {}]   ;;  %s15613_s12 = inlined_call_operand.vmem [shape: f32[8,1], index: 12, kind: input, shape index: {}]   ;;  %s15614_s13 = inlined_call_operand.vmem [shape: f32[32,8], index: 13, kind: input, shape index: {}]   ;;  %s15615_s14 = inlined_call_operand.vmem [shape: f32[32,1], index: 14, kind: input, shape index: {}]   ;;  %s15616_s15 = inlined_call_operand.vmem [shape: f32[16,16,32], index: 15, kind: input, shape index: {}]   ;;  %s15617_s16 = inlined_call_operand.vmem [shape: f32[16,1], index: 16, kind: input, shape index: {}]   ;;  %s15618_s17 = inlined_call_operand.vmem [shape: f32[16,3,16], index: 17, kind: input, shape index: {}]   ;;  %s15619_s18 = inlined_call_operand.vmem [shape: f32[3,1], index: 18, kind: input, shape index: {}]   ;;  %s15620_s19 = inlined_call_operand.vmem [shape: f32[2,16,3,256], index: 19, kind: output, shape index: {}]  }
   0x1   :  { %15651 = sst [smem:[#allocation18_spill]] %s15601_s0 }
   0x2   :  { %15652 = sst [smem:[#allocation19_spill]] %s15602_s1 }
   0x3   :  { %15653 = sst [smem:[#allocation20_spill]] %s15603_s2 }
   0x4   :  { %15654 = sst [smem:[#allocation21_spill]] %s15604_s3 }
   0x5   :  { %15655 = sst [smem:[#allocation22_spill]] %s15620_s19 }
   0x6   :  { %24 = vsyncpa [#allocation3], 0 }
   0x7   :  { %25 = vsyncpa [#allocation5], 0  ;;  %s12865_s0 = smov 0  }
   0x8 LB: > { %15656 = sst [smem:[#allocation8_spill]] %s12749_s0  ;;  %s12871_s30 = sadd.s32 4294967295, %s12749_s0   ;;  %s12749_s0 = sphi %s12865_s0, %s31_s0  }
   0x9   : > { %p11539_p0 = scmp.ge.s32.totalorder %s12749_s0, 1  ;;  %p466_p1 = scmp.lt.s32.totalorder %s12749_s0, 3 }
   0xa   : > { %s12751_s20 = smov [#allocation2]   ;;  %p15621_p3 = scmp.eq.s32.totalorder %s12871_s30, 0 }
   0xb   : > { %s496_s21 = sshll.u32 %s12751_s20, 4  ;;  %p12875_p2 = pnand %p11539_p0, %p466_p1  ;;  %s497_s21 = int_to_ptr.vmem [resolvable:$true] %s496_s21 }
   0xc   : > { %s12752_s22 = smov [#allocation4]   ;;  %s12679_s3 = scalar_lea.hbm %s15608_s7, 1152 }
   0xd   : > { %s15657_s1 = scalar_select %p12875_p2, 1, 0 }
   0xe   : > { %p12643_p4 = pneg %p12875_p2  ;;  %s518_s2 = sshll.u32 %s12752_s22, 4  ;;  %s12888_s2 = int_to_ptr.vmem [resolvable:$true] %s518_s2 }
   0xf   : > { %p12680_p6 = scmp.ne.s32.totalorder %s15608_s7, %s12679_s3  ;;  %p12686_p10 = scmp.lt.u32.totalorder %s12679_s3, %s15608_s7 }
  0x10   : > { %p12884_p5 = pnand %p15621_p3, %p12643_p4 }
  0x12   : > { %p12681_p7 = pneg %p12884_p5 }
  0x14   : > { %p12682_p8 = pnand %p12681_p7, %p12680_p6 }
  0x16   : > { %p12683_p9 = pneg %p12682_p8 }
  0x18   : > { %p12688_p11 = pnand %p12686_p10, %p12683_p9 }
  0x1a   : > { %12691 = shalt.err (!%p12688_p11)
}
  0x1b   : > { %s12692_s20 = scalar_lea.vmem %s497_s21, 1152  ;;  %p12700_p1 = scmp.lt.s32.totalorder %s497_s21, %s497_s21 }
  0x1c   : > { %p12693_p12 = scmp.ne.s32.totalorder %s497_s21, %s12692_s20  ;;  %p12701_p4 = scmp.lt.s32.totalorder %s12692_s20, %s12692_s20 }
  0x1e   : > { %p12695_p13 = pnand %p12693_p12, %p12681_p7  ;;  %p12702_p3 = por %p12701_p4, %p12700_p1 }
  0x20   : > { %p12696_p0 = pneg %p12695_p13 }
  0x22   : > { %p12703_p2 = pnand %p12702_p3, %p12696_p0 }
  0x24   : > { %12706 = shalt.err (!%p12703_p2)
}
  0x25   : > { %s12753_s22 = smov 128   ;;  %s12754_s24 = smov 8  }
  0x26   : > { %12646 = dma.hbm_to_vmem [thread:$0]  (!%p12884_p5), %s15608_s7, 1152, %s497_s21, [#allocation3], %s12753_s22, %s12753_s22, %s12754_s24  }
  0x27   : > { %s12707_s28 = scalar_lea.hbm %s15612_s11, 1152 }
  0x28   : > { %p12708_p6 = scmp.ne.s32.totalorder %s15612_s11, %s12707_s28  ;;  %p12714_p8 = scmp.lt.u32.totalorder %s12707_s28, %s15612_s11 }
  0x2a   : > { %p12710_p2 = pnand %p12708_p6, %p12681_p7 }
  0x2c   : > { %p12711_p3 = pneg %p12710_p2 }
  0x2e   : > { %p12716_p9 = pnand %p12714_p8, %p12711_p3 }
  0x30   : > { %12719 = shalt.err (!%p12716_p9)
}
  0x31   : > { %s12720_s21 = scalar_lea.vmem %s12888_s2, 1152  ;;  %p12728_p13 = scmp.lt.s32.totalorder %s12888_s2, %s12888_s2 }
  0x32   : > { %p12721_p10 = scmp.ne.s32.totalorder %s12888_s2, %s12720_s21  ;;  %p12729_p0 = scmp.lt.s32.totalorder %s12720_s21, %s12720_s21 }
  0x34   : > { %p12723_p11 = pnand %p12721_p10, %p12681_p7  ;;  %p12730_p1 = por %p12729_p0, %p12728_p13 }
  0x36   : > { %p12724_p12 = pneg %p12723_p11 }
  0x38   : > { %p12731_p4 = pnand %p12730_p1, %p12724_p12 }
  0x3a   : > { %12734 = shalt.err (!%p12731_p4)
}
  0x3b   : > { %12649 = dma.hbm_to_vmem [thread:$0]  (!%p12884_p5), %s15612_s11, 1152, %s12888_s2, [#allocation5], %s12753_s22, %s12753_s22, %s12754_s24  }
  0x3c   : > { %p15659_p6 = scmp.ne.s32.totalorder %s15657_s1, 0 }
  0x3e   : > { %563 = sbr.rel (%p15659_p6) target bundleno = 2969 (0xb99), region = 96 }
  0x45   : > { %p15660_p2 = scmp.eq.s32.totalorder %s12871_s30, 0 }
  0x47   : > { %12740 = dma.done.wait (%p15660_p2), [#allocation3], 1152   ;;  %p15661_p7 = pmov %p15660_p2 }
  0x48   : > { %p15662_p3 = pmov %p15660_p2 }
  0x49   : > { %12742 = vsyncadd (%p15661_p7), [#allocation3], 4294966144 }
  0x4a   : > { %12744 = dma.done.wait (%p15662_p3), [#allocation5], 1152   ;;  %p15663_p8 = pmov %p15660_p2 }
  0x4b   : > { %p623_p9 = scmp.lt.s32.totalorder %s12871_s30, 1  ;;  %s15664_s22 = sld [smem:[#allocation18_spill]]  ;;  %v15628_v0 = vmov 0.0   ;;  %v656_v3 = vlaneseq  ;;  %v13011_v10 = vld [vmem:[%s15605_s4] sm:$0x3]  ;;  %vm678_vm0 = vcmask 130048  }
  0x4c   : > { %12746 = vsyncadd (%p15663_p8), [#allocation5], 4294966144  ;;  %780 = vmatprep.mubr.f32.mxu0 %v15628_v0  ;;  %2098 = vmatprep.mubr.f32.mxu1 %v15628_v0  ;;  %s12756_s25 = smov 16   ;;  %s12757_s3 = smov 17   ;;  %vm649_vm1 = vcmask 138240   ;;  %vm709_vm2 = vcmask 1043456  }
  0x4d   : > { %s15710_s30 = smov (!%p623_p9, %s12871_s30), 1  ;;  %s12758_s26 = smov 15   ;;  %v657_v4 = vshrl.u32 %v656_v3, 7  ;;  %vm922_vm3 = vcmask 121856   ;;  %v11550_v28 = vld [vmem:[%s15606_s5 + $0x20] sm:$0xff]  ;;  %vm696_vm4 = vcmask 31744  }
  0x4e   : > { %s11865_s1 = sshll.u32 %s15710_s30, 3  ;;  %s15638_s27 = smov 1   ;;  %v11551_v34 = vld [vmem:[%s15606_s5 + $0x28] sm:$0xff]  ;;  %v11552_v35 = vld [vmem:[%s15606_s5 + $0x30] sm:$0xff]  ;;  %vm1066_vm5 = vcmask 7168   ;;  %v11553_v38 = vld [vmem:[%s15606_s5 + $0x38] sm:$0xff] }
  0x4f   : > { %s12760_s28 = smov 127   ;;  %s12761_s29 = smov 113   ;;  %v13003_v7 = vsub.s32 1, %v657_v4  ;;  %v13005_v8 = vsub.s32 0, %v657_v4  ;;  %v1891_v43 = vld [vmem:[%s15607_s6] sm:$0xff]  ;;  %v1892_v44 = vld [vmem:[%s15607_s6 + $0x8] sm:$0xff] }
  0x50   : > { %s15624_s20 = smov 112   ;;  %s15626_s21 = smov 111   ;;  %v638_v45 = vld [vmem:[%s15606_s5] sm:$0xff]  ;;  %v12764_v47 = vmov 0   ;;  %v1894_v49 = vld [vmem:[%s15607_s6 + $0x18] sm:$0xff]  ;;  %v1893_v50 = vld [vmem:[%s15607_s6 + $0x10] sm:$0xff] }
  0x51   : > { %s627_s24 = scalar_lea.vmem %s15664_s22, %s11865_s1  ;;  %s15665_s1 = sld [smem:[#allocation21_spill]]  ;;  %12676 = vset.pattern.permute.xlu0 %v12764_v47  ;;  %12677 = vset.pattern.permute.xlu1 %v12764_v47  ;;  %v639_v51 = vld [vmem:[%s15606_s5 + $0x8] sm:$0xff]  ;;  %v640_v52 = vld [vmem:[%s15606_s5 + $0x10] sm:$0xff]  ;;  %v641_v54 = vld [vmem:[%s15606_s5 + $0x18] sm:$0xff]  ;;  %vm1326_vm6 = vcmask 1039360   ;;  %v13138_v63 = vrot.slane %v13011_v10, %v13003_v7  ;;  %vm1469_vm7 = vcmask 924672  }
  0x52   : > { %v12957_v1 = vld [vmem:[%s627_s24] sm:$0xff]  ;;  %s15666_s22 = sld [smem:[#allocation19_spill]]  ;;  %v11567_v58 = vld [vmem:[%s15606_s5 + $0x48] sm:$0xff]  ;;  %v11568_v59 = vld [vmem:[%s15606_s5 + $0x50] sm:$0xff]  ;;  %vm1613_vm8 = vcmask 916480   ;;  %vm1756_vm9 = vcmask 908288  }
  0x53   : > { %v12961_v2 = vcombine.high %v12957_v1, %v12957_v1  ;;  %v11566_v56 = vld [vmem:[%s15606_s5 + $0x40] sm:$0xff]  ;;  %v11569_v62 = vld [vmem:[%s15606_s5 + $0x58] sm:$0xff]  ;;  %vm2030_vm10 = vcmask 261120   ;;  %vm3027_vm11 = vcmask 64512   ;;  %s15707_s2 = sld [smem:[#allocation22_spill]] }
  0x54   : > { %v11576_v3 = vld [vmem:[%s15606_s5 + $0x60] sm:$0xff] }
  0x55   : > { %673 = vrot.lane.b32.xlu0 %v12961_v2, %s12756_s25  ;;  %644 = vrot.lane.b32.xlu1 %v12961_v2, %s12757_s3 }
  0x57   : > { %v12998_v5 = vld [vmem:[%s15665_s1] sm:$0x3]  ;;  %s15677_s1 = smov 112  }
  0x58   : > { %v633_v6 = vld [vmem:[%s15666_s22] sm:$0x3]  ;;  %v13067_v40 = vrot.slane %v12998_v5, %v13003_v7  ;;  %v13105_v53 = vrot.slane %v12998_v5, %v13005_v8  ;;  %s15667_s22 = sld [smem:[#allocation20_spill]] }
  0x59   : > { %676 = vrot.lane.b32.xlu0 %v12957_v1, %s12756_s25  ;;  %647 = vrot.lane.b32.xlu1 %v12957_v1, %s12757_s3  ;;  %v654_v9 = vmul.f32 %v12998_v5, %v633_v6  ;;  %v13014_v13 = vrot.slane %v633_v6, %v13003_v7  ;;  %v13017_v14 = vrot.slane %v633_v6, %v13005_v8 }
  0x5a   : > { %v927_v16 = vmul.f32 %v13011_v10, %v633_v6  ;;  %v11577_v6 = vld [vmem:[%s15606_s5 + $0x68] sm:$0xff] }
  0x5b   : > { %v13020_v15 = vrot.slane %v654_v9, %v13003_v7  ;;  %v13024_v17 = vrot.slane %v654_v9, %v13005_v8 }
  0x5c   : > { %v13034_v27 = vrot.slane %v927_v16, %v13003_v7  ;;  %v13063_v39 = vrot.slane %v927_v16, %v13005_v8 }
  0x5d   : > { %920 = vrot.lane.b32.xlu1 %v12957_v1, %s12758_s26  ;;  %917 = vrot.lane.b32.xlu0 %v12961_v2, %s12758_s26 }
  0x5e   : > { %v634_v9 = vld [vmem:[%s15667_s22] sm:$0x3] }
  0x61   : > { %1064 = vrot.lane.b32.xlu1 %v12957_v1, %s15638_s27  ;;  %1061 = vrot.lane.b32.xlu0 %v12961_v2, %s15638_s27 }
  0x65   : > { %1324 = vrot.lane.b32.xlu1 %v12961_v2, %s12760_s28  ;;  %1322 = vrot.lane.b32.xlu0 %v12957_v1, %s12760_s28 }
  0x69   : > { %1467 = vrot.lane.b32.xlu1 %v12961_v2, %s12761_s29  ;;  %1465 = vrot.lane.b32.xlu0 %v12957_v1, %s12761_s29 }
  0x6d   : > { %1611 = vrot.lane.b32.xlu1 %v12961_v2, %s15624_s20  ;;  %1609 = vrot.lane.b32.xlu0 %v12957_v1, %s15624_s20  ;;  %s11866_s20 = sshll.u32 %s15710_s30, 7 }
  0x6e   : > { %s15552_s23 = scalar_lea.vmem %s15707_s2, %s11866_s20 }
  0x71   : > { %1754 = vrot.lane.b32.xlu1 %v12961_v2, %s15626_s21  ;;  %1752 = vrot.lane.b32.xlu0 %v12957_v1, %s15626_s21 }
  0x75   : > { %1897 = vperm.xlu0 %12676, %v1891_v43   ;;  %1902 = vperm.xlu1 %12677, %v1892_v44  }
  0x79   : > { %1912 = vperm.xlu0 %12676, %v1894_v49   ;;  %1907 = vperm.xlu1 %12677, %v1893_v50   ;;  %v11606_v49 = vld [vmem:[%s15606_s5 + $0xc0] sm:$0xff] }
  0xc7   : > { %v674_v11 = vpop.permute.xlu0 %673  ;;  %v645_v12 = vpop.permute.xlu1 %644 }
  0xcb   : > { %v677_v18 = vpop.permute.xlu0 %676  ;;  %v648_v19 = vpop.permute.xlu1 %647 }
  0xcc   : > { %v682_v20 = vsel %vm678_vm0, %v674_v11, %v677_v18  ;;  %v679_v21 = vsel %vm678_vm0, %v677_v18, %v674_v11  ;;  %v650_v22 = vsel %vm649_vm1, %v648_v19, %v645_v12  ;;  %v653_v23 = vsel %vm649_vm1, %v645_v12, %v648_v19  ;;  %v11578_v11 = vld [vmem:[%s15606_s5 + $0x70] sm:$0xff]  ;;  %v11579_v19 = vld [vmem:[%s15606_s5 + $0x78] sm:$0xff] }
  0xcd   : > { %v695_v24 = vmul.f32 %v13014_v13, %v679_v21  ;;  %v694_v25 = vmul.f32 %v13017_v14, %v682_v20  ;;  %v667_v26 = vmul.f32 %v13020_v15, %v650_v22  ;;  %v666_v29 = vmul.f32 %v13024_v17, %v653_v23  ;;  %v11586_v22 = vld [vmem:[%s15606_s5 + $0x80] sm:$0xff] }
  0xce   : > { %v1475_v12 = vmul.f32 %v12998_v5, %v634_v9  ;;  %v13167_v18 = vrot.slane %v13011_v10, %v13005_v8 }
  0xcf   : > { %11554 = vmatprep.subr.msk.mxu0 %vm709_vm2, %v695_v24  ;;  %v921_v30 = vpop.permute.xlu1 %920  ;;  %v918_v31 = vpop.permute.xlu0 %917 }
  0xd0   : > { %11555 = vmatpush1.msk.msra.mxu0 %vm709_vm2, %v694_v25  ;;  %v923_v32 = vsel %vm922_vm3, %v921_v30, %v918_v31  ;;  %v926_v41 = vsel %vm922_vm3, %v918_v31, %v921_v30  ;;  %v13175_v21 = vrot.slane %v1475_v12, %v13003_v7  ;;  %v11587_v25 = vld [vmem:[%s15606_s5 + $0x88] sm:$0xff]  ;;  %v11589_v30 = vld [vmem:[%s15606_s5 + $0x98] sm:$0xff]  ;;  %v13203_v31 = vrot.slane %v1475_v12, %v13005_v8 }
  0xd1   : > { %11556 = vmatmul.mubr.msk.f32.vlgmr.msra.gmra.mrb[0].mxu0 %vm696_vm4, %v11550_v28  ;;  %11560 = vmatprep.subr.msk.mxu0 %vm709_vm2, %v667_v26  ;;  %v940_v33 = vmul.f32 %v13034_v27, %v923_v32  ;;  %v939_v46 = vmul.f32 %v13063_v39, %v926_v41  ;;  %v11588_v26 = vld [vmem:[%s15606_s5 + $0x90] sm:$0xff] }
  0xd2   : > { %786 = vmatprep.mubr.f32.mxu0 %v15628_v0  ;;  %11561 = vmatpush1.msk.msra.mxu0 %vm709_vm2, %v666_v29  ;;  %v11598_v41 = vld [vmem:[%s15606_s5 + $0xb0] sm:$0xff] }
  0xd3   : > { %11570 = vmatprep.subr.msk.mxu0 %vm709_vm2, %v940_v33  ;;  %v1065_v36 = vpop.permute.xlu1 %1064  ;;  %v1062_v37 = vpop.permute.xlu0 %1061  ;;  %v13207_v33 = vrot.slane %v634_v9, %v13003_v7 }
  0xd4   : > { %v1067_v42 = vsel %vm1066_vm5, %v1065_v36, %v1062_v37  ;;  %v1070_v55 = vsel %vm1066_vm5, %v1062_v37, %v1065_v36 }
  0xd5   : > { %11557 = vmatmul.mubr.msk.f32.gmra.mrb[2].mxu0 %vm696_vm4, %v11551_v34  ;;  %v1083_v48 = vmul.f32 %v13067_v40, %v1067_v42  ;;  %v1082_v57 = vmul.f32 %v13105_v53, %v1070_v55  ;;  %v1762_v42 = vmul.f32 %v13011_v10, %v634_v9 }
  0xd6   : > { %792 = vmatprep.mubr.f32.mxu0 %v15628_v0 }
  0xd7   : > { %v1325_v60 = vpop.permute.xlu1 %1324  ;;  %v1323_v61 = vpop.permute.xlu0 %1322  ;;  %v13268_v55 = vrot.slane %v1762_v42, %v13005_v8 }
  0xd8   : > { %v1327_v20 = vsel %vm1326_vm6, %v1323_v61, %v1325_v60 }
  0xd9   : > { %11558 = vmatmul.mubr.msk.f32.gmra.mrb[4].mxu0 %vm696_vm4, %v11552_v35  ;;  %v1343_v23 = vmul.f32 %v13167_v18, %v1327_v20  ;;  %v11596_v35 = vld [vmem:[%s15606_s5 + $0xa0] sm:$0xff]  ;;  %15668 = vst [vmem:[#allocation9_spill] sm:$0xff] %v13268_v55 }
  0xda   : > { %798 = vmatprep.mubr.f32.mxu0 %v15628_v0 }
  0xdb   : > { %v1468_v16 = vpop.permute.xlu1 %1467 }
  0xdd   : > { %11559 = vmatmul.mubr.msk.f32.gmra.mrb[6].mxu0 %vm696_vm4, %v11553_v38  ;;  %v11597_v38 = vld [vmem:[%s15606_s5 + $0xa8] sm:$0xff] }
  0xde   : > { %887 = vmatprep.mubr.f32.mxu0 %v15628_v0 }
  0xdf   : > { %v1612_v28 = vpop.permute.xlu1 %1611 }
  0xe1   : > { %11562 = vmatmul.mubr.msk.f32.vlgmr.msra.gmra.mrb[0].mxu0 %vm696_vm4, %v638_v45  ;;  %v13232_v45 = vrot.slane %v634_v9, %v13005_v8  ;;  %v11617_v8 = vld [vmem:[%s15606_s5 + $0xe8] sm:$0xff] }
  0xe2   : > { %893 = vmatprep.mubr.f32.mxu0 %v15628_v0  ;;  %11571 = vmatpush1.msk.msra.mxu0 %vm709_vm2, %v939_v46  ;;  %v11599_v46 = vld [vmem:[%s15606_s5 + $0xb8] sm:$0xff] }
  0xe3   : > { %11580 = vmatprep.subr.msk.mxu0 %vm709_vm2, %v1083_v48  ;;  %v1755_v43 = vpop.permute.xlu1 %1754  ;;  %v13240_v48 = vrot.slane %v1762_v42, %v13003_v7  ;;  %v11607_v7 = vld [vmem:[%s15606_s5 + $0xc8] sm:$0xff] }
  0xe5   : > { %11563 = vmatmul.mubr.msk.f32.gmra.mrb[2].mxu0 %vm696_vm4, %v639_v51 }
  0xe6   : > { %899 = vmatprep.mubr.f32.mxu0 %v15628_v0 }
  0xe9   : > { %11564 = vmatmul.mubr.msk.f32.gmra.mrb[4].mxu0 %vm696_vm4, %v640_v52  ;;  %v11608_v52 = vld [vmem:[%s15606_s5 + $0xd0] sm:$0xff] }
  0xea   : > { %905 = vmatprep.mubr.f32.mxu0 %v15628_v0 }
  0xed   : > { %11565 = vmatmul.mubr.msk.f32.gmra.mrb[6].mxu0 %vm696_vm4, %v641_v54  ;;  %v11609_v54 = vld [vmem:[%s15606_s5 + $0xd8] sm:$0xff] }
  0xee   : > { %1023 = vmatprep.mubr.f32.mxu0 %v15628_v0 }
  0xf1   : > { %11572 = vmatmul.mubr.msk.f32.vlgmr.msra.gmra.mrb[0].mxu0 %vm696_vm4, %v11566_v56 }
  0xf2   : > { %1029 = vmatprep.mubr.f32.mxu0 %v15628_v0  ;;  %11581 = vmatpush1.msk.msra.mxu0 %vm709_vm2, %v1082_v57  ;;  %v11616_v57 = vld [vmem:[%s15606_s5 + $0xe0] sm:$0xff] }
  0xf3   : > { %11590 = vmatprep.subr.msk.mxu0 %vm709_vm2, %v12961_v2  ;;  %v1331_v2 = vsel %vm1326_vm6, %v1325_v60, %v1323_v61  ;;  %v11619_v60 = vld [vmem:[%s15606_s5 + $0xf8] sm:$0xff]  ;;  %v11626_v61 = vld [vmem:[%s15606_s5 + $0x100] sm:$0xff] }
  0xf4   : > { %v1344_v4 = vmul.f32 %v13138_v63, %v1331_v2  ;;  %v11628_v2 = vld [vmem:[%s15606_s5 + $0x110] sm:$0xff] }
  0xf5   : > { %11573 = vmatmul.mubr.msk.f32.gmra.mrb[2].mxu0 %vm696_vm4, %v11567_v58 }
  0xf6   : > { %1035 = vmatprep.mubr.f32.mxu0 %v15628_v0 }
  0xf9   : > { %11574 = vmatmul.mubr.msk.f32.gmra.mrb[4].mxu0 %vm696_vm4, %v11568_v59  ;;  %v11618_v59 = vld [vmem:[%s15606_s5 + $0xf0] sm:$0xff] }
  0xfa   : > { %1041 = vmatprep.mubr.f32.mxu0 %v15628_v0 }
  0xfd   : > { %11575 = vmatmul.mubr.msk.f32.gmra.mrb[6].mxu0 %vm696_vm4, %v11569_v62  ;;  %v11627_v62 = vld [vmem:[%s15606_s5 + $0x108] sm:$0xff] }
  0xfe   : > { %1166 = vmatprep.mubr.f32.mxu0 %v15628_v0 }
 0x101   : > { %11582 = vmatmul.mubr.msk.f32.vlgmr.msra.gmra.mrb[0].mxu0 %vm696_vm4, %v11576_v3  ;;  %v11629_v3 = vld [vmem:[%s15606_s5 + $0x118] sm:$0xff] }
 0x102   : > { %1172 = vmatprep.mubr.f32.mxu0 %v15628_v0  ;;  %11591 = vmatpush1.msk.msra.mxu0 %vm709_vm2, %v12957_v1  ;;  %v1466_v1 = vpop.permute.xlu0 %1465 }
 0x103   : > { %11600 = vmatprep.subr.msk.mxu0 %vm709_vm2, %v1344_v4  ;;  %v1474_v5 = vsel %vm1469_vm7, %v1468_v16, %v1466_v1  ;;  %v1470_v32 = vsel %vm1469_vm7, %v1466_v1, %v1468_v16  ;;  %v1903_v1 = vpop.permute.xlu1 %1902 }
 0x104   : > { %v1488_v24 = vmul.f32 %v13175_v21, %v1474_v5  ;;  %v1487_v36 = vmul.f32 %v13203_v31, %v1470_v32 }
 0x105   : > { %11583 = vmatmul.mubr.msk.f32.gmra.mrb[2].mxu0 %vm696_vm4, %v11577_v6 }
 0x106   : > { %1178 = vmatprep.mubr.f32.mxu0 %v15628_v0  ;;  %v1610_v29 = vpop.permute.xlu0 %1609 }
 0x107   : > { %v1618_v34 = vsel %vm1613_vm8, %v1612_v28, %v1610_v29  ;;  %v1614_v47 = vsel %vm1613_vm8, %v1610_v29, %v1612_v28  ;;  %v1908_v32 = vpop.permute.xlu1 %1907 }
 0x108   : > { %v1631_v37 = vmul.f32 %v13207_v33, %v1618_v34  ;;  %v1630_v50 = vmul.f32 %v13232_v45, %v1614_v47 }
 0x109   : > { %11584 = vmatmul.mubr.msk.f32.gmra.mrb[4].mxu0 %vm696_vm4, %v11578_v11 }
 0x10a   : > { %1184 = vmatprep.mubr.f32.mxu0 %v15628_v0  ;;  %v1753_v44 = vpop.permute.xlu0 %1752 }
 0x10b   : > { %v1761_v10 = vsel %vm1756_vm9, %v1755_v43, %v1753_v44  ;;  %v1757_v56 = vsel %vm1756_vm9, %v1753_v44, %v1755_v43 }
 0x10c   : > { %v1775_v51 = vmul.f32 %v13240_v48, %v1761_v10  ;;  %v1774_v58 = vmul.f32 %v13268_v55, %v1757_v56 }
 0x10d   : > { %11585 = vmatmul.mubr.msk.f32.gmra.mrb[6].mxu0 %vm696_vm4, %v11579_v19 }
 0x10e   : > { %1284 = vmatprep.mubr.f32.mxu0 %v15628_v0  ;;  %v1898_v4 = vpop.permute.xlu0 %1897 }
 0x111   : > { %11592 = vmatmul.mubr.msk.f32.vlgmr.msra.gmra.mrb[0].mxu0 %vm696_vm4, %v11586_v22 }
 0x112   : > { %1290 = vmatprep.mubr.f32.mxu0 %v15628_v0  ;;  %11601 = vmatpush1.msk.msra.mxu0 %vm709_vm2, %v1343_v23 }
 0x113   : > { %11610 = vmatprep.subr.msk.mxu0 %vm709_vm2, %v1488_v24 }
 0x115   : > { %11593 = vmatmul.mubr.msk.f32.gmra.mrb[2].mxu0 %vm696_vm4, %v11587_v25 }
 0x116   : > { %1296 = vmatprep.mubr.f32.mxu0 %v15628_v0 }
 0x119   : > { %11594 = vmatmul.mubr.msk.f32.gmra.mrb[4].mxu0 %vm696_vm4, %v11588_v26 }
 0x11a   : > { %1302 = vmatprep.mubr.f32.mxu0 %v15628_v0 }
 0x11d   : > { %11595 = vmatmul.mubr.msk.f32.gmra.mrb[6].mxu0 %vm696_vm4, %v11589_v30 }
 0x11e   : > { %1427 = vmatprep.mubr.f32.mxu0 %v15628_v0 }
 0x121   : > { %11602 = vmatmul.mubr.msk.f32.vlgmr.msra.gmra.mrb[0].mxu0 %vm696_vm4, %v11596_v35 }
 0x122   : > { %1433 = vmatprep.mubr.f32.mxu0 %v15628_v0  ;;  %11611 = vmatpush1.msk.msra.mxu0 %vm709_vm2, %v1487_v36  ;;  %v1913_v36 = vpop.permute.xlu0 %1912 }
 0x123   : > { %11620 = vmatprep.subr.msk.mxu0 %vm709_vm2, %v1631_v37 }
 0x125   : > { %11603 = vmatmul.mubr.msk.f32.gmra.mrb[2].mxu0 %vm696_vm4, %v11597_v38 }
 0x126   : > { %1439 = vmatprep.mubr.f32.mxu0 %v15628_v0 }
 0x129   : > { %11604 = vmatmul.mubr.msk.f32.gmra.mrb[4].mxu0 %vm696_vm4, %v11598_v41 }
 0x12a   : > { %1445 = vmatprep.mubr.f32.mxu0 %v15628_v0 }
 0x12d   : > { %11605 = vmatmul.mubr.msk.f32.gmra.mrb[6].mxu0 %vm696_vm4, %v11599_v46 }
 0x12e   : > { %1571 = vmatprep.mubr.f32.mxu0 %v15628_v0 }
 0x131   : > { %11612 = vmatmul.mubr.msk.f32.vlgmr.msra.gmra.mrb[0].mxu0 %vm696_vm4, %v11606_v49 }
 0x132   : > { %1577 = vmatprep.mubr.f32.mxu0 %v15628_v0  ;;  %11621 = vmatpush1.msk.msra.mxu0 %vm709_vm2, %v1630_v50 }
 0x133   : > { %11630 = vmatprep.subr.msk.mxu0 %vm709_vm2, %v1775_v51 }
 0x135   : > { %11613 = vmatmul.mubr.msk.f32.gmra.mrb[2].mxu0 %vm696_vm4, %v11607_v7  ;;  %v2989_v7 = vld [vmem:[%s15609_s8] sm:$0xff] }
 0x136   : > { %1583 = vmatprep.mubr.f32.mxu0 %v15628_v0 }
 0x139   : > { %11614 = vmatmul.mubr.msk.f32.gmra.mrb[4].mxu0 %vm696_vm4, %v11608_v52 }
 0x13a   : > { %1589 = vmatprep.mubr.f32.mxu0 %v15628_v0 }
 0x13d   : > { %11615 = vmatmul.mubr.msk.f32.gmra.mrb[6].mxu0 %vm696_vm4, %v11609_v54  ;;  %v3003_v54 = vld [vmem:[%s15611_s10] sm:$0xff] }
 0x13e   : > { %1714 = vmatprep.mubr.f32.mxu0 %v15628_v0 }
 0x141   : > { %11622 = vmatmul.mubr.msk.f32.vlgmr.msra.gmra.mrb[0].mxu0 %vm696_vm4, %v11616_v57  ;;  %v3004_v57 = vld [vmem:[%s15611_s10 + $0x8] sm:$0xff] }
 0x142   : > { %1720 = vmatprep.mubr.f32.mxu0 %v15628_v0  ;;  %11631 = vmatpush1.msk.msra.mxu0 %vm709_vm2, %v1774_v58 }
 0x145   : > { %11623 = vmatmul.mubr.msk.f32.gmra.mrb[2].mxu0 %vm696_vm4, %v11617_v8  ;;  %v3005_v8 = vld [vmem:[%s15611_s10 + $0x10] sm:$0xff] }
 0x146   : > { %1726 = vmatprep.mubr.f32.mxu0 %v15628_v0 }
 0x149   : > { %11624 = vmatmul.mubr.msk.f32.gmra.mrb[4].mxu0 %vm696_vm4, %v11618_v59 }
 0x14a   : > { %1732 = vmatprep.mubr.f32.mxu0 %v15628_v0 }
 0x14d   : > { %11625 = vmatmul.mubr.msk.f32.gmra.mrb[6].mxu0 %vm696_vm4, %v11619_v60  ;;  %v3006_v60 = vld [vmem:[%s15611_s10 + $0x18] sm:$0xff] }
 0x14e   : > { %1858 = vmatprep.mubr.f32.mxu0 %v15628_v0 }
 0x151   : > { %11632 = vmatmul.mubr.msk.f32.vlgmr.msra.gmra.mrb[0].mxu0 %vm696_vm4, %v11626_v61 }
 0x152   : > { %1864 = vmatprep.mubr.f32.mxu0 %v15628_v0 }
 0x155   : > { %11633 = vmatmul.mubr.msk.f32.gmra.mrb[2].mxu0 %vm696_vm4, %v11627_v62 }
 0x156   : > { %1870 = vmatprep.mubr.f32.mxu0 %v15628_v0 }
 0x159   : > { %11634 = vmatmul.mubr.msk.f32.gmra.mrb[4].mxu0 %vm696_vm4, %v11628_v2 }
 0x15a   : > { %1876 = vmatprep.mubr.f32.mxu0 %v15628_v0 }
 0x15d   : > { %11635 = vmatmul.mubr.msk.f32.gmra.mrb[6].mxu0 %vm696_vm4, %v11629_v3 }
 0x15e   : > { %4316 = vmatprep.mubr.f32.mxu0 %v15628_v0 }
 0x224   : > { %v1860_v6 = vpop.f32.mrb[0].mxu0 }
 0x225   : > { %v13315_v9 = vadd.f32 %v1898_v4, %v1860_v6  ;;  %v1862_v11 = vpop.f32.mrb[1].mxu0 }
 0x226   : > { %v13317_v12 = vadd.f32 %v1898_v4, %v1862_v11 }
 0x227   : > { %15669 = vst [vmem:[#allocation10_spill] sm:$0xff] %v13315_v9  ;;  %v13320_v16 = vmax.f32 %v13315_v9, 0.0 }
 0x228   : > { %15670 = vst [vmem:[#allocation11_spill] sm:$0xff] %v13317_v12  ;;  %v13323_v19 = vmax.f32 %v13317_v12, 0.0  ;;  %v1866_v20 = vpop.f32.mrb[2].mxu0 }
 0x229   : > { %v13325_v5 = vadd.f32 %v1903_v1, %v1866_v20  ;;  %1998 = vrot.lane.b32.xlu1 %v13320_v16, %s12756_s25  ;;  %v1868_v22 = vpop.f32.mrb[3].mxu0 }
 0x22a   : > { %2505 = vrot.lane.b32.xlu0 %v13323_v19, %s12760_s28  ;;  %v13346_v29 = vadd.f32 %v1903_v1, %v1868_v22 }
 0x22b   : > { %15671 = vst [vmem:[#allocation12_spill] sm:$0xff] %v13325_v5  ;;  %v13332_v23 = vmax.f32 %v13325_v5, 0.0 }
 0x22c   : > { %v1872_v24 = vpop.f32.mrb[4].mxu0  ;;  %15672 = vst [vmem:[#allocation13_spill] sm:$0xff] %v13346_v29  ;;  %v13353_v30 = vmax.f32 %v13346_v29, 0.0 }
 0x22d   : > { %1952 = vrot.lane.b32.xlu1 %v13320_v16, %s12757_s3  ;;  %v1874_v25 = vpop.f32.mrb[5].mxu0  ;;  %v13371_v34 = vadd.f32 %v1908_v32, %v1872_v24 }
 0x22e   : > { %2000 = vrot.lane.b32.xlu0 %v13332_v23, %s12756_s25  ;;  %v13373_v35 = vadd.f32 %v1908_v32, %v1874_v25 }
 0x22f   : > { %15673 = vst [vmem:[#allocation14_spill] sm:$0xff] %v13371_v34  ;;  %v13380_v37 = vmax.f32 %v13371_v34, 0.0 }
 0x230   : > { %v1878_v26 = vpop.f32.mrb[6].mxu0  ;;  %15674 = vst [vmem:[#allocation15_spill] sm:$0xff] %v13373_v35  ;;  %v13383_v38 = vmax.f32 %v13373_v35, 0.0 }
 0x231   : > { %2193 = vrot.lane.b32.xlu1 %v13320_v16, %s12758_s26  ;;  %v1880_v28 = vpop.f32.mrb[7].mxu0  ;;  %v13385_v41 = vadd.f32 %v1913_v36, %v1878_v26 }
 0x232   : > { %1954 = vrot.lane.b32.xlu0 %v13332_v23, %s12757_s3  ;;  %v13406_v43 = vadd.f32 %v1913_v36, %v1880_v28 }
 0x233   : > { %15675 = vst [vmem:[#allocation16_spill] sm:$0xff] %v13385_v41  ;;  %v13392_v42 = vmax.f32 %v13385_v41, 0.0 }
 0x234   : > { %15676 = vst [vmem:[#allocation17_spill] sm:$0xff] %v13406_v43  ;;  %v13413_v44 = vmax.f32 %v13406_v43, 0.0 }
 0x235   : > { %2315 = vrot.lane.b32.xlu1 %v13320_v16, %s15638_s27 }
 0x236   : > { %2195 = vrot.lane.b32.xlu0 %v13332_v23, %s12758_s26 }
 0x239   : > { %2503 = vrot.lane.b32.xlu1 %v13320_v16, %s12760_s28 }
 0x23a   : > { %2317 = vrot.lane.b32.xlu0 %v13332_v23, %s15638_s27 }
 0x23d   : > { %1986 = vrot.lane.b32.xlu1 %v13323_v19, %s12756_s25 }
 0x23e   : > { %1988 = vrot.lane.b32.xlu0 %v13353_v30, %s12756_s25 }
 0x241   : > { %1936 = vrot.lane.b32.xlu1 %v13323_v19, %s12757_s3 }
 0x242   : > { %1938 = vrot.lane.b32.xlu0 %v13353_v30, %s12757_s3 }
 0x245   : > { %2181 = vrot.lane.b32.xlu1 %v13323_v19, %s12758_s26 }
 0x246   : > { %2183 = vrot.lane.b32.xlu0 %v13353_v30, %s12758_s26 }
 0x249   : > { %2303 = vrot.lane.b32.xlu1 %v13323_v19, %s15638_s27 }
 0x24a   : > { %2305 = vrot.lane.b32.xlu0 %v13353_v30, %s15638_s27 }
 0x24d   : > { %2507 = vrot.lane.b32.xlu1 %v13332_v23, %s12760_s28 }
 0x24e   : > { %2509 = vrot.lane.b32.xlu0 %v13353_v30, %s12760_s28 }
 0x251   : > { %2002 = vrot.lane.b32.xlu1 %v13380_v37, %s12756_s25 }
 0x252   : > { %2513 = vrot.lane.b32.xlu0 %v13383_v38, %s12760_s28 }
 0x255   : > { %1956 = vrot.lane.b32.xlu1 %v13380_v37, %s12757_s3 }
 0x256   : > { %2004 = vrot.lane.b32.xlu0 %v13392_v42, %s12756_s25 }
 0x259   : > { %2197 = vrot.lane.b32.xlu1 %v13380_v37, %s12758_s26 }
 0x25a   : > { %1958 = vrot.lane.b32.xlu0 %v13392_v42, %s12757_s3 }
 0x25d   : > { %2319 = vrot.lane.b32.xlu1 %v13380_v37, %s15638_s27 }
 0x25e   : > { %2199 = vrot.lane.b32.xlu0 %v13392_v42, %s12758_s26 }
 0x261   : > { %2511 = vrot.lane.b32.xlu1 %v13380_v37, %s12760_s28 }
 0x262   : > { %2321 = vrot.lane.b32.xlu0 %v13392_v42, %s15638_s27 }
 0x265   : > { %1990 = vrot.lane.b32.xlu1 %v13383_v38, %s12756_s25 }
 0x266   : > { %1992 = vrot.lane.b32.xlu0 %v13413_v44, %s12756_s25 }
 0x269   : > { %2625 = vrot.lane.b32.xlu1 %v13320_v16, %s12761_s29 }
 0x26a   : > { %2627 = vrot.lane.b32.xlu0 %v13323_v19, %s12761_s29 }
 0x26d   : > { %1940 = vrot.lane.b32.xlu1 %v13383_v38, %s12757_s3 }
 0x26e   : > { %1942 = vrot.lane.b32.xlu0 %v13413_v44, %s12757_s3 }
 0x271   : > { %2185 = vrot.lane.b32.xlu1 %v13383_v38, %s12758_s26 }
 0x272   : > { %2631 = vrot.lane.b32.xlu0 %v13353_v30, %s12761_s29 }
 0x275   : > { %2307 = vrot.lane.b32.xlu1 %v13383_v38, %s15638_s27 }
 0x276   : > { %2187 = vrot.lane.b32.xlu0 %v13413_v44, %s12758_s26 }
 0x279   : > { %2515 = vrot.lane.b32.xlu1 %v13392_v42, %s12760_s28 }
 0x27a   : > { %2635 = vrot.lane.b32.xlu0 %v13383_v38, %s12761_s29 }
 0x27d   : > { %2629 = vrot.lane.b32.xlu1 %v13332_v23, %s12761_s29 }
 0x27e   : > { %2309 = vrot.lane.b32.xlu0 %v13413_v44, %s15638_s27 }
 0x281   : > { %2633 = vrot.lane.b32.xlu1 %v13380_v37, %s12761_s29 }
 0x282   : > { %2749 = vrot.lane.b32.xlu0 %v13323_v19, %s15677_s1 }
 0x285   : > { %2637 = vrot.lane.b32.xlu1 %v13392_v42, %s12761_s29 }
 0x286   : > { %2753 = vrot.lane.b32.xlu0 %v13353_v30, %s15677_s1 }
 0x289   : > { %2747 = vrot.lane.b32.xlu1 %v13320_v16, %s15677_s1 }
 0x28a   : > { %2757 = vrot.lane.b32.xlu0 %v13383_v38, %s15677_s1 }
 0x28d   : > { %2751 = vrot.lane.b32.xlu1 %v13332_v23, %s15677_s1 }
 0x28e   : > { %2517 = vrot.lane.b32.xlu0 %v13413_v44, %s12760_s28 }
 0x291   : > { %2755 = vrot.lane.b32.xlu1 %v13380_v37, %s15677_s1 }
 0x292   : > { %2871 = vrot.lane.b32.xlu0 %v13323_v19, %s15626_s21 }
 0x295   : > { %2759 = vrot.lane.b32.xlu1 %v13392_v42, %s15677_s1 }
 0x296   : > { %2639 = vrot.lane.b32.xlu0 %v13413_v44, %s12761_s29 }
 0x299   : > { %2869 = vrot.lane.b32.xlu1 %v13320_v16, %s15626_s21 }
 0x29a   : > { %2875 = vrot.lane.b32.xlu0 %v13353_v30, %s15626_s21 }
 0x29b   : > { %v1999_v46 = vpop.permute.xlu1 %1998 }
 0x29c   : > { %v13471_v47 = vpop.permute.xlu0 %2505 }
 0x29d   : > { %2873 = vrot.lane.b32.xlu1 %v13332_v23, %s15626_s21 }
 0x29e   : > { %2761 = vrot.lane.b32.xlu0 %v13413_v44, %s15677_s1 }
 0x29f   : > { %v1953_v10 = vpop.permute.xlu1 %1952 }
 0x2a0   : > { %v2001_v49 = vpop.permute.xlu0 %2000 }
 0x2a1   : > { %2877 = vrot.lane.b32.xlu1 %v13380_v37, %s15626_s21 }
 0x2a2   : > { %2879 = vrot.lane.b32.xlu0 %v13383_v38, %s15626_s21 }
 0x2a3   : > { %v13481_v50 = vpop.permute.xlu1 %2193 }
 0x2a4   : > { %v1955_v51 = vpop.permute.xlu0 %1954 }
 0x2a5   : > { %2881 = vrot.lane.b32.xlu1 %v13392_v42, %s15626_s21 }
 0x2a6   : > { %2883 = vrot.lane.b32.xlu0 %v13413_v44, %s15626_s21  ;;  %s15695_s21 = smov 111  }
 0x2a7   : > { %v13490_v52 = vpop.permute.xlu1 %2315 }
 0x2a8   : > { %v13495_v56 = vpop.permute.xlu0 %2195 }
 0x2a9   : > { %2992 = vperm.xlu1 %12677, %v2989_v7  }
 0x2aa   : > { %3009 = vperm.xlu0 %12676, %v3003_v54  }
 0x2ab   : > { %v13500_v58 = vpop.permute.xlu1 %2503 }
 0x2ac   : > { %v13505_v59 = vpop.permute.xlu0 %2317 }
 0x2ad   : > { %3014 = vperm.xlu1 %12677, %v3004_v57  }
 0x2ae   : > { %3019 = vperm.xlu0 %12676, %v3005_v8  }
 0x2af   : > { %v1987_v61 = vpop.permute.xlu1 %1986 }
 0x2b0   : > { %v2018_v62 = vsel %vm678_vm0, %v1987_v61, %v1999_v46  ;;  %v1989_v2 = vpop.permute.xlu0 %1988  ;;  %v2006_v3 = vsel %vm678_vm0, %v1999_v46, %v1987_v61 }
 0x2b1   : > { %v2019_v4 = vsel %vm678_vm0, %v1989_v2, %v2001_v49  ;;  %3024 = vperm.xlu1 %12677, %v3006_v60   ;;  %v2007_v6 = vsel %vm678_vm0, %v2001_v49, %v1989_v2  ;;  %v2023_v11 = vmul.f32 %v2006_v3, %v13014_v13  ;;  %v2022_v1 = vmul.f32 %v2018_v62, %v13017_v14 }
 0x2b2   : > { %v2025_v20 = vmul.f32 %v2007_v6, %v13014_v13  ;;  %v2024_v22 = vmul.f32 %v2019_v4, %v13017_v14 }
 0x2b3   : > { %v1937_v24 = vpop.permute.xlu1 %1936 }
 0x2b4   : > { %v1939_v25 = vpop.permute.xlu0 %1938  ;;  %v11867_v26 = vpack.c.bf16 %v2025_v20, %v2023_v11  ;;  %v11869_v28 = vpack.c.bf16 %v2024_v22, %v2022_v1  ;;  %v1960_v1 = vsel %vm649_vm1, %v1953_v10, %v1937_v24 }
 0x2b5   : > { %v1961_v20 = vsel %vm649_vm1, %v1955_v51, %v1939_v25  ;;  %v1977_v12 = vmul.f32 %v1960_v1, %v13020_v15 }
 0x2b6   : > { %11868 = vmatprep.subr.bf16.mxu1 %v11867_v26  ;;  %v1972_v26 = vsel %vm649_vm1, %v1937_v24, %v1953_v10  ;;  %v1979_v9 = vmul.f32 %v1961_v20, %v13020_v15  ;;  %v1985_v20 = vld [vmem:[#allocation2 + $0x8] sm:$0xff] }
 0x2b7   : > { %v2182_v32 = vpop.permute.xlu1 %2181  ;;  %11870 = vmatpush1.bf16.msra.mxu1 %v11869_v28  ;;  %v1973_v28 = vsel %vm649_vm1, %v1939_v25, %v1955_v51  ;;  %v1976_v24 = vmul.f32 %v1972_v26, %v13024_v17 }
 0x2b8   : > { %v2184_v36 = vpop.permute.xlu0 %2183  ;;  %v1978_v25 = vmul.f32 %v1973_v28, %v13024_v17  ;;  %v2201_v1 = vsel %vm922_vm3, %v13481_v50, %v2182_v32  ;;  %v2213_v26 = vsel %vm922_vm3, %v2182_v32, %v13481_v50 }
 0x2bb   : > { %v13518_v46 = vpop.permute.xlu1 %2303 }
 0x2bc   : > { %v13520_v7 = vpop.permute.xlu0 %2305 }
 0x2bf   : > { %v13522_v49 = vpop.permute.xlu1 %2507 }
 0x2c0   : > { %v13524_v54 = vpop.permute.xlu0 %2509 }
 0x2c3   : > { %v2003_v57 = vpop.permute.xlu1 %2002 }
 0x2c4   : > { %v13526_v8 = vpop.permute.xlu0 %2513 }
 0x2c7   : > { %v1957_v60 = vpop.permute.xlu1 %1956 }
 0x2c8   : > { %v2005_v61 = vpop.permute.xlu0 %2004 }
 0x2cb   : > { %v13528_v62 = vpop.permute.xlu1 %2197 }
 0x2cc   : > { %v1959_v2 = vpop.permute.xlu0 %1958 }
 0x2cf   : > { %v13530_v3 = vpop.permute.xlu1 %2319 }
 0x2d0   : > { %v13532_v4 = vpop.permute.xlu0 %2199 }
 0x2d3   : > { %v13534_v6 = vpop.permute.xlu1 %2511 }
 0x2d4   : > { %v13536_v11 = vpop.permute.xlu0 %2321 }
 0x2d7   : > { %v1991_v22 = vpop.permute.xlu1 %1990 }
 0x2d8   : > { %v2008_v0 = vsel %vm678_vm0, %v2003_v57, %v1991_v22  ;;  %v2020_v43 = vsel %vm678_vm0, %v1991_v22, %v2003_v57  ;;  %v1993_v41 = vpop.permute.xlu0 %1992 }
 0x2d9   : > { %v2026_v35 = vmul.f32 %v2020_v43, %v13017_v14  ;;  %v2027_v34 = vmul.f32 %v2008_v0, %v13014_v13  ;;  %v2009_v29 = vsel %vm678_vm0, %v2005_v61, %v1993_v41  ;;  %v2021_v5 = vsel %vm678_vm0, %v1993_v41, %v2005_v61 }
 0x2da   : > { %v2028_v10 = vmul.f32 %v2021_v5, %v13017_v14  ;;  %v2029_v51 = vmul.f32 %v2009_v29, %v13014_v13  ;;  %v11875_v41 = vpack.c.bf16 %v1979_v9, %v1977_v12  ;;  %v11877_v61 = vpack.c.bf16 %v1978_v25, %v1976_v24 }
 0x2db   : > { %v13554_v57 = vpop.permute.xlu1 %2625  ;;  %v2202_v5 = vsel %vm922_vm3, %v13495_v56, %v2184_v36  ;;  %v2218_v25 = vmul.f32 %v2201_v1, %v13034_v27 }
 0x2dc   : > { %v13556_v43 = vpop.permute.xlu0 %2627  ;;  %v11871_v0 = vpack.c.bf16 %v2029_v51, %v2027_v34  ;;  %v11873_v22 = vpack.c.bf16 %v2028_v10, %v2026_v35  ;;  %v2214_v34 = vsel %vm922_vm3, %v2184_v36, %v13495_v56  ;;  %v2220_v50 = vmul.f32 %v2202_v5, %v13034_v27 }
 0x2dd   : > { %v2323_v5 = vsel %vm1066_vm5, %v13490_v52, %v13518_v46 }
 0x2de   : > { %11872 = vmatprep.subr.bf16.mxu1 %v11871_v0  ;;  %v2217_v0 = vmul.f32 %v2213_v26, %v13063_v39 }
 0x2df   : > { %v1941_v29 = vpop.permute.xlu1 %1940  ;;  %11874 = vmatpush1.bf16.msra.mxu1 %v11873_v22  ;;  %v2219_v22 = vmul.f32 %v2214_v34, %v13063_v39 }
 0x2e0   : > { %v1962_v35 = vsel %vm649_vm1, %v1957_v60, %v1941_v29  ;;  %v1974_v9 = vsel %vm649_vm1, %v1941_v29, %v1957_v60  ;;  %11876 = vmatprep.subr.bf16.mxu1 %v11875_v41  ;;  %v1943_v12 = vpop.permute.xlu0 %1942  ;;  %v15678_v60 = vmov 0.0   ;;  %v2324_v29 = vsel %vm1066_vm5, %v13505_v59, %v13520_v7 }
 0x2e1   : > { %v1980_v28 = vmul.f32 %v1974_v9, %v13024_v17  ;;  %v1981_v10 = vmul.f32 %v1962_v35, %v13020_v15  ;;  %v1963_v51 = vsel %vm649_vm1, %v1959_v2, %v1943_v12  ;;  %v1975_v24 = vsel %vm649_vm1, %v1943_v12, %v1959_v2  ;;  %v1931_v35 = vld [vmem:[#allocation2] sm:$0xff] }
 0x2e2   : > { %v1982_v56 = vmul.f32 %v1975_v24, %v13024_v17  ;;  %v1983_v32 = vmul.f32 %v1963_v51, %v13020_v15  ;;  %11636 = vmatmul.mubr.msk.f32.vlgmr.msra.gmra.mrb[0].mxu1 %vm2030_vm10, %v1985_v20  ;;  %v11885_v9 = vpack.c.bf16 %v2219_v22, %v2217_v0  ;;  %v2335_v12 = vsel %vm1066_vm5, %v13518_v46, %v13490_v52 }
 0x2e3   : > { %v2186_v36 = vpop.permute.xlu1 %2185  ;;  %11878 = vmatpush1.bf16.msra.mxu1 %v11877_v61  ;;  %2172 = vmatprep.mubr.f32.mxu1 %v15678_v60  ;;  %v11883_v61 = vpack.c.bf16 %v2220_v50, %v2218_v25  ;;  %v2336_v51 = vsel %vm1066_vm5, %v13520_v7, %v13505_v59  ;;  %v2342_v24 = vmul.f32 %v2324_v29, %v13067_v40  ;;  %v2180_v29 = vld [vmem:[#allocation2 + $0x10] sm:$0xff] }
 0x2e4   : > { %v11881_v41 = vpack.c.bf16 %v1982_v56, %v1980_v28  ;;  %v13580_v2 = vpop.permute.xlu0 %2631  ;;  %v11879_v1 = vpack.c.bf16 %v1983_v32, %v1981_v10  ;;  %v2203_v20 = vsel %vm922_vm3, %v13528_v62, %v2186_v36  ;;  %v2215_v26 = vsel %vm922_vm3, %v2186_v36, %v13528_v62 }
 0x2e5   : > { %v2340_v28 = vmul.f32 %v2323_v5, %v13067_v40  ;;  %v2221_v50 = vmul.f32 %v2215_v26, %v13063_v39  ;;  %v2222_v52 = vmul.f32 %v2203_v20, %v13034_v27  ;;  %v2341_v0 = vmul.f32 %v2336_v51, %v13105_v53 }
 0x2e6   : > { %11880 = vmatprep.subr.bf16.mxu1 %v11879_v1 }
 0x2e7   : > { %v2308_v34 = vpop.permute.xlu1 %2307  ;;  %11882 = vmatpush1.bf16.msra.mxu1 %v11881_v41  ;;  %v11891_v22 = vpack.c.bf16 %v2342_v24, %v2340_v28 }
 0x2e8   : > { %11884 = vmatprep.subr.bf16.mxu1 %v11883_v61  ;;  %v2188_v10 = vpop.permute.xlu0 %2187  ;;  %v2325_v41 = vsel %vm1066_vm5, %v13530_v3, %v2308_v34  ;;  %v2337_v1 = vsel %vm1066_vm5, %v2308_v34, %v13530_v3 }
 0x2e9   : > { %v2204_v62 = vsel %vm922_vm3, %v13532_v4, %v2188_v10  ;;  %v2216_v25 = vsel %vm922_vm3, %v2188_v10, %v13532_v4  ;;  %v2339_v4 = vmul.f32 %v2335_v12, %v13105_v53  ;;  %v2344_v12 = vmul.f32 %v2325_v41, %v13067_v40  ;;  %v2424_v41 = vld [vmem:[#allocation2 + $0x20] sm:$0xff] }
 0x2ea   : > { %v2223_v46 = vmul.f32 %v2216_v25, %v13063_v39  ;;  %v2224_v56 = vmul.f32 %v2204_v62, %v13034_v27  ;;  %11637 = vmatmul.mubr.msk.f32.vlgmr.msra.gmra.mrb[0].mxu1 %vm2030_vm10, %v1931_v35  ;;  %v2536_v62 = vsel %vm1326_vm6, %v13524_v54, %v13522_v49 }
 0x2eb   : > { %v13609_v32 = vpop.permute.xlu1 %2515  ;;  %11886 = vmatpush1.bf16.msra.mxu1 %v11885_v9  ;;  %2292 = vmatprep.mubr.f32.mxu1 %v15678_v60  ;;  %v11893_v20 = vpack.c.bf16 %v2341_v0, %v2339_v4  ;;  %v2343_v9 = vmul.f32 %v2337_v1, %v13105_v53 }
 0x2ec   : > { %v11889_v59 = vpack.c.bf16 %v2223_v46, %v2221_v50  ;;  %v13612_v7 = vpop.permute.xlu0 %2635  ;;  %v11887_v36 = vpack.c.bf16 %v2224_v56, %v2222_v52  ;;  %v2302_v50 = vld [vmem:[#allocation2 + $0x18] sm:$0xff]  ;;  %v2535_v46 = vsel %vm1326_vm6, %v13471_v47, %v13500_v58  ;;  %v2520_v56 = vsel %vm1326_vm6, %v13522_v49, %v13524_v54 }
 0x2ed   : > { %v2540_v49 = vmul.f32 %v2535_v46, %v13138_v63  ;;  %v2541_v54 = vmul.f32 %v2520_v56, %v13167_v18  ;;  %v2502_v46 = vld [vmem:[#allocation2 + $0x28] sm:$0xff] }
 0x2ee   : > { %11888 = vmatprep.subr.bf16.mxu1 %v11887_v36  ;;  %v2519_v36 = vsel %vm1326_vm6, %v13500_v58, %v13471_v47  ;;  %v2537_v58 = vsel %vm1326_vm6, %v13526_v8, %v13534_v6 }
 0x2ef   : > { %v2630_v5 = vpop.permute.xlu1 %2629  ;;  %11890 = vmatpush1.bf16.msra.mxu1 %v11889_v59  ;;  %v11903_v59 = vpack.c.bf16 %v13413_v44, %v13383_v38  ;;  %v11905_v38 = vpack.c.bf16 %v13392_v42, %v13380_v37  ;;  %v2539_v44 = vmul.f32 %v2519_v36, %v13167_v18  ;;  %v2657_v37 = vsel %vm1469_vm7, %v13556_v43, %v13554_v57 }
 0x2f0   : > { %11892 = vmatprep.subr.bf16.mxu1 %v11891_v22  ;;  %v2310_v61 = vpop.permute.xlu0 %2309  ;;  %v2658_v0 = vsel %vm1469_vm7, %v13580_v2, %v2630_v5  ;;  %v2642_v42 = vsel %vm1469_vm7, %v2630_v5, %v13580_v2  ;;  %v2641_v2 = vsel %vm1469_vm7, %v13554_v57, %v13556_v43 }
 0x2f1   : > { %v2326_v26 = vsel %vm1066_vm5, %v13536_v11, %v2310_v61  ;;  %v2338_v35 = vsel %vm1066_vm5, %v2310_v61, %v13536_v11  ;;  %v11899_v11 = vpack.c.bf16 %v13353_v30, %v13323_v19  ;;  %v11901_v19 = vpack.c.bf16 %v13332_v23, %v13320_v16 }
 0x2f2   : > { %v2345_v28 = vmul.f32 %v2338_v35, %v13105_v53  ;;  %v2346_v3 = vmul.f32 %v2326_v26, %v13067_v40  ;;  %11638 = vmatmul.mubr.msk.f32.vlgmr.msra.gmra.mrb[0].mxu1 %vm2030_vm10, %v2180_v29  ;;  %v2542_v30 = vmul.f32 %v2536_v62, %v13138_v63  ;;  %v2521_v23 = vsel %vm1326_vm6, %v13534_v6, %v13526_v8 }
 0x2f3   : > { %v13629_v34 = vpop.permute.xlu1 %2633  ;;  %11894 = vmatpush1.bf16.msra.mxu1 %v11893_v20  ;;  %2414 = vmatprep.mubr.f32.mxu1 %v15678_v60  ;;  %v11909_v1 = vpack.c.bf16 %v2541_v54, %v2539_v44  ;;  %v2543_v29 = vmul.f32 %v2521_v23, %v13167_v18  ;;  %v2544_v20 = vmul.f32 %v2537_v58, %v13138_v63 }
 0x2f4   : > { %v11897_v10 = vpack.c.bf16 %v2345_v28, %v2343_v9  ;;  %v13632_v51 = vpop.permute.xlu0 %2749  ;;  %v11895_v24 = vpack.c.bf16 %v2346_v3, %v2344_v12  ;;  %v11907_v47 = vpack.c.bf16 %v2542_v30, %v2540_v49  ;;  %v2664_v26 = vmul.f32 %v2658_v0, %v13175_v21 }
 0x2f5   : > { %v2663_v12 = vmul.f32 %v2642_v42, %v13203_v31  ;;  %v2659_v57 = vsel %vm1469_vm7, %v13612_v7, %v13629_v34 }
 0x2f6   : > { %11896 = vmatprep.subr.bf16.mxu1 %v11895_v24  ;;  %v2643_v24 = vsel %vm1469_vm7, %v13629_v34, %v13612_v7  ;;  %v2666_v34 = vmul.f32 %v2659_v57, %v13175_v21 }
 0x2f7   : > { %v13639_v25 = vpop.permute.xlu1 %2637  ;;  %11898 = vmatpush1.bf16.msra.mxu1 %v11897_v10 }
 0x2f8   : > { %11900 = vmatprep.subr.bf16.mxu1 %v11899_v11  ;;  %v2754_v52 = vpop.permute.xlu0 %2753  ;;  %v2661_v11 = vmul.f32 %v2641_v2, %v13203_v31 }
 0x2fa   : > { %11639 = vmatmul.mubr.msk.f32.vlgmr.msra.gmra.mrb[0].mxu1 %vm2030_vm10, %v2302_v50  ;;  %v11917_v56 = vpack.c.bf16 %v2663_v12, %v2661_v11 }
 0x2fb   : > { %v2748_v4 = vpop.permute.xlu1 %2747  ;;  %11902 = vmatpush1.bf16.msra.mxu1 %v11901_v19  ;;  %2492 = vmatprep.mubr.f32.mxu1 %v15678_v60  ;;  %v2665_v19 = vmul.f32 %v2643_v24, %v13203_v31 }
 0x2fc   : > { %v13659_v16 = vpop.permute.xlu0 %2757  ;;  %11904 = vmatprep.subr.bf16.mxu1 %v11903_v59  ;;  %v2779_v59 = vsel %vm1613_vm8, %v13632_v51, %v2748_v4  ;;  %v2763_v44 = vsel %vm1613_vm8, %v2748_v4, %v13632_v51 }
 0x2ff   : > { %v2752_v22 = vpop.permute.xlu1 %2751  ;;  %11906 = vmatpush1.bf16.msra.mxu1 %v11905_v38 }
 0x300   : > { %v2518_v61 = vpop.permute.xlu0 %2517  ;;  %11908 = vmatprep.subr.bf16.mxu1 %v11907_v47  ;;  %v2780_v43 = vsel %vm1613_vm8, %v2754_v52, %v2752_v22  ;;  %v2764_v36 = vsel %vm1613_vm8, %v2752_v22, %v2754_v52  ;;  %v2784_v47 = vmul.f32 %v2779_v59, %v13207_v33 }
 0x301   : > { %v2522_v8 = vsel %vm1326_vm6, %v13609_v32, %v2518_v61  ;;  %v2538_v6 = vsel %vm1326_vm6, %v2518_v61, %v13609_v32  ;;  %v2662_v32 = vmul.f32 %v2657_v37, %v13175_v21  ;;  %v2786_v54 = vmul.f32 %v2780_v43, %v13207_v33  ;;  %v2624_v61 = vld [vmem:[#allocation2 + $0x30] sm:$0xff] }
 0x302   : > { %v2545_v35 = vmul.f32 %v2522_v8, %v13167_v18  ;;  %v2546_v9 = vmul.f32 %v2538_v6, %v13138_v63  ;;  %11640 = vmatmul.mubr.msk.f32.vlgmr.msra.gmra.mrb[0].mxu1 %vm2030_vm10, %v2424_v41 }
 0x303   : > { %v2756_v5 = vpop.permute.xlu1 %2755  ;;  %11910 = vmatpush1.bf16.msra.mxu1 %v11909_v1  ;;  %2614 = vmatprep.mubr.f32.mxu1 %v15678_v60  ;;  %v11915_v62 = vpack.c.bf16 %v2664_v26, %v2662_v32  ;;  %v2783_v1 = vmul.f32 %v2763_v44, %v13232_v45  ;;  %v11923_v51 = vpack.c.bf16 %v2786_v54, %v2784_v47 }
 0x304   : > { %v11913_v28 = vpack.c.bf16 %v2545_v35, %v2543_v29  ;;  %v2872_v3 = vpop.permute.xlu0 %2871  ;;  %v11911_v10 = vpack.c.bf16 %v2546_v9, %v2544_v20  ;;  %v2765_v41 = vsel %vm1613_vm8, %v2756_v5, %v13659_v16  ;;  %v2781_v29 = vsel %vm1613_vm8, %v13659_v16, %v2756_v5 }
 0x305   : > { %v2787_v42 = vmul.f32 %v2765_v41, %v13232_v45  ;;  %v2788_v20 = vmul.f32 %v2781_v29, %v13207_v33  ;;  %v2997_v29 = vld [vmem:[%s15610_s9] sm:$0xff] }
 0x306   : > { %11912 = vmatprep.subr.bf16.mxu1 %v11911_v10 }
 0x307   : > { %v2760_v50 = vpop.permute.xlu1 %2759  ;;  %11914 = vmatpush1.bf16.msra.mxu1 %v11913_v28 }
 0x308   : > { %v2640_v30 = vpop.permute.xlu0 %2639  ;;  %11916 = vmatprep.subr.bf16.mxu1 %v11915_v62 }
 0x309   : > { %v2644_v49 = vsel %vm1469_vm7, %v13639_v25, %v2640_v30  ;;  %v2660_v7 = vsel %vm1469_vm7, %v2640_v30, %v13639_v25  ;;  %v2785_v25 = vmul.f32 %v2764_v36, %v13232_v45  ;;  %v2746_v30 = vld [vmem:[#allocation2 + $0x38] sm:$0xff] }
 0x30a   : > { %v2667_v23 = vmul.f32 %v2644_v49, %v13203_v31  ;;  %v2668_v38 = vmul.f32 %v2660_v7, %v13175_v21  ;;  %11641 = vmatmul.mubr.msk.f32.vlgmr.msra.gmra.mrb[0].mxu1 %vm2030_vm10, %v2502_v46 }
 0x30b   : > { %v2870_v52 = vpop.permute.xlu1 %2869  ;;  %11918 = vmatpush1.bf16.msra.mxu1 %v11917_v56  ;;  %2736 = vmatprep.mubr.f32.mxu1 %v15678_v60  ;;  %v11925_v37 = vpack.c.bf16 %v2785_v25, %v2783_v1 }
 0x30c   : > { %v11921_v58 = vpack.c.bf16 %v2667_v23, %v2665_v19  ;;  %v2876_v0 = vpop.permute.xlu0 %2875  ;;  %v11919_v22 = vpack.c.bf16 %v2668_v38, %v2666_v34  ;;  %v2901_v26 = vsel %vm1756_vm9, %v2872_v3, %v2870_v52  ;;  %v2885_v28 = vsel %vm1756_vm9, %v2870_v52, %v2872_v3  ;;  %v2868_v52 = vld [vmem:[#allocation2 + $0x40] sm:$0xff] }
 0x30d   : > { %v2906_v10 = vmul.f32 %v2901_v26, %v13240_v48  ;;  %v15679_v26 = vld [vmem:[#allocation10_spill] sm:$0xff] }
 0x30e   : > { %11920 = vmatprep.subr.bf16.mxu1 %v11919_v22 }
 0x30f   : > { %v2874_v4 = vpop.permute.xlu1 %2873  ;;  %11922 = vmatpush1.bf16.msra.mxu1 %v11921_v58 }
 0x310   : > { %v2902_v8 = vsel %vm1756_vm9, %v2876_v0, %v2874_v4  ;;  %v2762_v6 = vpop.permute.xlu0 %2761  ;;  %11924 = vmatprep.subr.bf16.mxu1 %v11923_v51  ;;  %v2886_v9 = vsel %vm1756_vm9, %v2874_v4, %v2876_v0  ;;  %v2998_v51 = vld [vmem:[%s15610_s9 + $0x8] sm:$0xff]  ;;  %v2999_v4 = vld [vmem:[%s15610_s9 + $0x10] sm:$0xff] }
 0x311   : > { %v2766_v35 = vsel %vm1613_vm8, %v2760_v50, %v2762_v6  ;;  %v2782_v16 = vsel %vm1613_vm8, %v2762_v6, %v2760_v50  ;;  %v2908_v2 = vmul.f32 %v2902_v8, %v13240_v48  ;;  %v2907_v57 = vmul.f32 %v2886_v9, %v13268_v55  ;;  %v15681_v9 = vld [vmem:[#allocation11_spill] sm:$0xff] }
 0x312   : > { %v2789_v5 = vmul.f32 %v2766_v35, %v13232_v45  ;;  %v2790_v32 = vmul.f32 %v2782_v16, %v13207_v33  ;;  %11642 = vmatmul.mubr.msk.f32.vlgmr.msra.gmra.mrb[0].mxu1 %vm2030_vm10, %v2624_v61  ;;  %v2905_v50 = vmul.f32 %v2885_v28, %v13268_v55  ;;  %v3000_v61 = vld [vmem:[%s15610_s9 + $0x18] sm:$0xff] }
 0x313   : > { %v2878_v12 = vpop.permute.xlu1 %2877  ;;  %11926 = vmatpush1.bf16.msra.mxu1 %v11925_v37  ;;  %2858 = vmatprep.mubr.f32.mxu1 %v15678_v60  ;;  %v11931_v43 = vpack.c.bf16 %v2908_v2, %v2906_v10 }
 0x314   : > { %v11929_v24 = vpack.c.bf16 %v2789_v5, %v2787_v42  ;;  %v2880_v11 = vpop.permute.xlu0 %2879  ;;  %v11927_v62 = vpack.c.bf16 %v2790_v32, %v2788_v20  ;;  %v11933_v3 = vpack.c.bf16 %v2907_v57, %v2905_v50 }
 0x315   : > { %v2887_v46 = vsel %vm1756_vm9, %v2878_v12, %v2880_v11  ;;  %v2903_v56 = vsel %vm1756_vm9, %v2880_v11, %v2878_v12 }
 0x316   : > { %11928 = vmatprep.subr.bf16.mxu1 %v11927_v62  ;;  %v2909_v7 = vmul.f32 %v2887_v46, %v13268_v55  ;;  %v2910_v34 = vmul.f32 %v2903_v56, %v13240_v48 }
 0x317   : > { %v2882_v19 = vpop.permute.xlu1 %2881  ;;  %11930 = vmatpush1.bf16.msra.mxu1 %v11929_v24  ;;  %v15683_v24 = vld [vmem:[#allocation12_spill] sm:$0xff] }
 0x318   : > { %v2884_v59 = vpop.permute.xlu0 %2883  ;;  %11932 = vmatprep.subr.bf16.mxu1 %v11931_v43 }
 0x319   : > { %v2888_v36 = vsel %vm1756_vm9, %v2882_v19, %v2884_v59  ;;  %v2904_v49 = vsel %vm1756_vm9, %v2884_v59, %v2882_v19  ;;  %v15685_v19 = vld [vmem:[#allocation13_spill] sm:$0xff] }
 0x31a   : > { %v2911_v54 = vmul.f32 %v2888_v36, %v13268_v55  ;;  %v2912_v23 = vmul.f32 %v2904_v49, %v13240_v48  ;;  %11643 = vmatmul.mubr.msk.f32.vlgmr.msra.gmra.mrb[0].mxu1 %vm2030_vm10, %v2746_v30 }
 0x31b   : > { %11934 = vmatpush1.bf16.msra.mxu1 %v11933_v3  ;;  %2980 = vmatprep.mubr.f32.mxu1 %v15678_v60 }
 0x31c   : > { %v11937_v38 = vpack.c.bf16 %v2911_v54, %v2909_v7  ;;  %v11935_v44 = vpack.c.bf16 %v2912_v23, %v2910_v34  ;;  %v15687_v34 = vld [vmem:[#allocation14_spill] sm:$0xff]  ;;  %v15689_v23 = vld [vmem:[#allocation15_spill] sm:$0xff] }
 0x31e   : > { %11936 = vmatprep.subr.bf16.mxu1 %v11935_v44 }
 0x31f   : > { %11938 = vmatpush1.bf16.msra.mxu1 %v11937_v38 }
 0x322   : > { %11644 = vmatmul.mubr.msk.f32.vlgmr.msra.gmra.mrb[0].mxu1 %vm2030_vm10, %v2868_v52 }
 0x323   : > { %3104 = vmatprep.mubr.f32.mxu1 %v15678_v60 }
 0x328   : > { %v2993_v47 = vpop.permute.xlu1 %2992 }
 0x329   : > { %v3010_v37 = vpop.permute.xlu0 %3009 }
 0x32c   : > { %v3015_v16 = vpop.permute.xlu1 %3014 }
 0x32d   : > { %v3020_v3 = vpop.permute.xlu0 %3019 }
 0x330   : > { %v3025_v7 = vpop.permute.xlu1 %3024 }
 0x3f5   : > { %v2982_v25 = vpop.f32.mrb[0].mxu1 }
 0x3f6   : > { %v2995_v58 = vadd.f32 %v2993_v47, %v2982_v25  ;;  %v2984_v0 = vpop.f32.mrb[1].mxu1  ;;  %v15691_v25 = vld [vmem:[#allocation16_spill] sm:$0xff] }
 0x3f7   : > { %v2996_v22 = vadd.f32 %v2993_v47, %v2984_v0 }
 0x3f8   : > { %v3001_v1 = vmax.f32 %v2995_v58, 0.0 }
 0x3f9   : > { %v3002_v41 = vmax.f32 %v2996_v22, 0.0 }
 0x3fb   : > { %3040 = vmatprep.subr.mxu1 %v3002_v41  ;;  %v15693_v41 = vld [vmem:[#allocation17_spill] sm:$0xff] }
 0x3fc   : > { %3041 = vmatpush1.msra.mxu1 %v3001_v1 }
 0x3fd   : > { %11645 = vmatmul.mubr.msk.f32.vlgmr.msra.gmra.mrb[2].mxu1 %vm3027_vm11, %v2997_v29 }
 0x3fe   : > { %3110 = vmatprep.mubr.f32.mxu1 %v15678_v60 }
 0x401   : > { %11646 = vmatmul.mubr.msk.f32.gmra.mrb[4].mxu1 %vm3027_vm11, %v2998_v51 }
 0x402   : > { %3116 = vmatprep.mubr.f32.mxu1 %v15678_v60 }
 0x405   : > { %11647 = vmatmul.mubr.msk.f32.gmra.mrb[6].mxu1 %vm3027_vm11, %v2999_v4 }
 0x406   : > { %3122 = vmatprep.mubr.f32.mxu1 %v15678_v60 }
 0x409   : > { %11648 = vmatmul.mubr.msk.f32.gmra.mrb[8].mxu1 %vm3027_vm11, %v3000_v61 }
 0x40a   : > { %3311 = vmatprep.mubr.f32.mxu1 %v15678_v60 }
 0x4d0   : > { %v3106_v42 = vpop.f32.mrb[2].mxu1 }
 0x4d1   : > { %v3107_v8 = vadd.f32 %v3106_v42, %v3010_v37  ;;  %v3108_v6 = vpop.f32.mrb[3].mxu1 }
 0x4d2   : > { %v3109_v20 = vadd.f32 %v3108_v6, %v3010_v37  ;;  %v4202_v6 = vld [vmem:[%s15613_s12] sm:$0xff] }
 0x4d3   : > { %v13773_v35 = vadd.f32 %v3107_v8, %v15679_v26  ;;  %v4216_v26 = vld [vmem:[%s15615_s14] sm:$0xff] }
 0x4d4   : > { %v13776_v2 = vadd.f32 %v3109_v20, %v15681_v9  ;;  %v3112_v5 = vpop.f32.mrb[4].mxu1  ;;  %v4217_v9 = vld [vmem:[%s15615_s14 + $0x8] sm:$0xff] }
 0x4d5   : > { %15680 = vst [vmem:[#allocation10_spill] sm:$0xff] %v13773_v35  ;;  %v13779_v32 = vmax.f32 %v13773_v35, 0.0  ;;  %v3113_v12 = vadd.f32 %v3112_v5, %v3015_v16  ;;  %v3114_v28 = vpop.f32.mrb[5].mxu1 }
 0x4d6   : > { %15682 = vst [vmem:[#allocation11_spill] sm:$0xff] %v13776_v2  ;;  %v13782_v10 = vmax.f32 %v13776_v2, 0.0  ;;  %v3115_v56 = vadd.f32 %v3114_v28, %v3015_v16 }
 0x4d7   : > { %v13785_v11 = vadd.f32 %v3113_v12, %v15683_v24  ;;  %3212 = vrot.lane.b32.xlu0 %v13779_v32, %s12756_s25  ;;  %v4218_v12 = vld [vmem:[%s15615_s14 + $0x10] sm:$0xff]  ;;  %v4219_v24 = vld [vmem:[%s15615_s14 + $0x18] sm:$0xff] }
 0x4d8   : > { %v3118_v62 = vpop.f32.mrb[6].mxu1  ;;  %3718 = vrot.lane.b32.xlu1 %v13782_v10, %s12760_s28  ;;  %v13807_v30 = vadd.f32 %v3115_v56, %v15685_v19 }
 0x4d9   : > { %15684 = vst [vmem:[#allocation12_spill] sm:$0xff] %v13785_v11  ;;  %v13792_v57 = vmax.f32 %v13785_v11, 0.0  ;;  %v3120_v43 = vpop.f32.mrb[7].mxu1  ;;  %v3119_v36 = vadd.f32 %v3118_v62, %v3020_v3 }
 0x4da   : > { %15686 = vst [vmem:[#allocation13_spill] sm:$0xff] %v13807_v30  ;;  %v13814_v59 = vmax.f32 %v13807_v30, 0.0  ;;  %v3121_v49 = vadd.f32 %v3120_v43, %v3020_v3 }
 0x4db   : > { %3166 = vrot.lane.b32.xlu0 %v13779_v32, %s12757_s3  ;;  %v13833_v54 = vadd.f32 %v3119_v36, %v15687_v34 }
 0x4dc   : > { %v3124_v50 = vpop.f32.mrb[8].mxu1  ;;  %3214 = vrot.lane.b32.xlu1 %v13792_v57, %s12756_s25  ;;  %v13836_v38 = vadd.f32 %v3121_v49, %v15689_v23 }
 0x4dd   : > { %v3126_v46 = vpop.f32.mrb[9].mxu1  ;;  %15688 = vst [vmem:[#allocation14_spill] sm:$0xff] %v13833_v54  ;;  %v3125_v44 = vadd.f32 %v3124_v50, %v3025_v7  ;;  %v13843_v52 = vmax.f32 %v13833_v54, 0.0 }
 0x4de   : > { %15690 = vst [vmem:[#allocation15_spill] sm:$0xff] %v13836_v38  ;;  %v13846_v47 = vmax.f32 %v13836_v38, 0.0  ;;  %v3127_v22 = vadd.f32 %v3126_v46, %v3025_v7 }
 0x4df   : > { %3406 = vrot.lane.b32.xlu0 %v13779_v32, %s12758_s26  ;;  %v13849_v58 = vadd.f32 %v3125_v44, %v15691_v25 }
 0x4e0   : > { %3168 = vrot.lane.b32.xlu1 %v13792_v57, %s12757_s3  ;;  %v13871_v1 = vadd.f32 %v3127_v22, %v15693_v41 }
 0x4e1   : > { %15692 = vst [vmem:[#allocation16_spill] sm:$0xff] %v13849_v58  ;;  %v13856_v0 = vmax.f32 %v13849_v58, 0.0 }
 0x4e2   : > { %15694 = vst [vmem:[#allocation17_spill] sm:$0xff] %v13871_v1  ;;  %v13878_v29 = vmax.f32 %v13871_v1, 0.0 }
 0x4e3   : > { %3528 = vrot.lane.b32.xlu0 %v13779_v32, %s15638_s27 }
 0x4e4   : > { %3408 = vrot.lane.b32.xlu1 %v13792_v57, %s12758_s26 }
 0x4e7   : > { %3716 = vrot.lane.b32.xlu0 %v13779_v32, %s12760_s28 }
 0x4e8   : > { %3530 = vrot.lane.b32.xlu1 %v13792_v57, %s15638_s27 }
 0x4eb   : > { %3200 = vrot.lane.b32.xlu0 %v13782_v10, %s12756_s25 }
 0x4ec   : > { %3202 = vrot.lane.b32.xlu1 %v13814_v59, %s12756_s25 }
 0x4ef   : > { %3150 = vrot.lane.b32.xlu0 %v13782_v10, %s12757_s3 }
 0x4f0   : > { %3152 = vrot.lane.b32.xlu1 %v13814_v59, %s12757_s3 }
 0x4f3   : > { %3394 = vrot.lane.b32.xlu0 %v13782_v10, %s12758_s26 }
 0x4f4   : > { %3396 = vrot.lane.b32.xlu1 %v13814_v59, %s12758_s26 }
 0x4f7   : > { %3516 = vrot.lane.b32.xlu0 %v13782_v10, %s15638_s27 }
 0x4f8   : > { %3518 = vrot.lane.b32.xlu1 %v13814_v59, %s15638_s27 }
 0x4fb   : > { %3720 = vrot.lane.b32.xlu0 %v13792_v57, %s12760_s28 }
 0x4fc   : > { %3722 = vrot.lane.b32.xlu1 %v13814_v59, %s12760_s28 }
 0x4ff   : > { %3216 = vrot.lane.b32.xlu0 %v13843_v52, %s12756_s25 }
 0x500   : > { %3726 = vrot.lane.b32.xlu1 %v13846_v47, %s12760_s28 }
 0x503   : > { %3170 = vrot.lane.b32.xlu0 %v13843_v52, %s12757_s3 }
 0x504   : > { %3218 = vrot.lane.b32.xlu1 %v13856_v0, %s12756_s25 }
 0x507   : > { %3410 = vrot.lane.b32.xlu0 %v13843_v52, %s12758_s26 }
 0x508   : > { %3172 = vrot.lane.b32.xlu1 %v13856_v0, %s12757_s3 }
 0x50b   : > { %3532 = vrot.lane.b32.xlu0 %v13843_v52, %s15638_s27 }
 0x50c   : > { %3412 = vrot.lane.b32.xlu1 %v13856_v0, %s12758_s26 }
 0x50f   : > { %3724 = vrot.lane.b32.xlu0 %v13843_v52, %s12760_s28 }
 0x510   : > { %3534 = vrot.lane.b32.xlu1 %v13856_v0, %s15638_s27 }
 0x513   : > { %3204 = vrot.lane.b32.xlu0 %v13846_v47, %s12756_s25 }
 0x514   : > { %3206 = vrot.lane.b32.xlu1 %v13878_v29, %s12756_s25 }
 0x517   : > { %3838 = vrot.lane.b32.xlu0 %v13779_v32, %s12761_s29 }
 0x518   : > { %3840 = vrot.lane.b32.xlu1 %v13782_v10, %s12761_s29 }
 0x51b   : > { %3154 = vrot.lane.b32.xlu0 %v13846_v47, %s12757_s3 }
 0x51c   : > { %3156 = vrot.lane.b32.xlu1 %v13878_v29, %s12757_s3 }
 0x51f   : > { %3398 = vrot.lane.b32.xlu0 %v13846_v47, %s12758_s26 }
 0x520   : > { %3844 = vrot.lane.b32.xlu1 %v13814_v59, %s12761_s29 }
 0x523   : > { %3520 = vrot.lane.b32.xlu0 %v13846_v47, %s15638_s27 }
 0x524   : > { %3400 = vrot.lane.b32.xlu1 %v13878_v29, %s12758_s26 }
 0x527   : > { %3728 = vrot.lane.b32.xlu0 %v13856_v0, %s12760_s28 }
 0x528   : > { %3848 = vrot.lane.b32.xlu1 %v13846_v47, %s12761_s29 }
 0x52b   : > { %3842 = vrot.lane.b32.xlu0 %v13792_v57, %s12761_s29 }
 0x52c   : > { %3522 = vrot.lane.b32.xlu1 %v13878_v29, %s15638_s27  ;;  %s15700_s27 = smov 1  }
 0x52f   : > { %3846 = vrot.lane.b32.xlu0 %v13843_v52, %s12761_s29 }
 0x530   : > { %3962 = vrot.lane.b32.xlu1 %v13782_v10, %s15677_s1 }
 0x533   : > { %3850 = vrot.lane.b32.xlu0 %v13856_v0, %s12761_s29 }
 0x534   : > { %3966 = vrot.lane.b32.xlu1 %v13814_v59, %s15677_s1 }
 0x537   : > { %3960 = vrot.lane.b32.xlu0 %v13779_v32, %s15677_s1 }
 0x538   : > { %3970 = vrot.lane.b32.xlu1 %v13846_v47, %s15677_s1 }
 0x53b   : > { %3964 = vrot.lane.b32.xlu0 %v13792_v57, %s15677_s1 }
 0x53c   : > { %3730 = vrot.lane.b32.xlu1 %v13878_v29, %s12760_s28 }
 0x53f   : > { %3968 = vrot.lane.b32.xlu0 %v13843_v52, %s15677_s1 }
 0x540   : > { %4084 = vrot.lane.b32.xlu1 %v13782_v10, %s15695_s21 }
 0x543   : > { %3972 = vrot.lane.b32.xlu0 %v13856_v0, %s15677_s1 }
 0x544   : > { %3852 = vrot.lane.b32.xlu1 %v13878_v29, %s12761_s29 }
 0x547   : > { %4082 = vrot.lane.b32.xlu0 %v13779_v32, %s15695_s21 }
 0x548   : > { %4088 = vrot.lane.b32.xlu1 %v13814_v59, %s15695_s21 }
 0x549   : > { %v3213_v51 = vpop.permute.xlu0 %3212 }
 0x54a   : > { %v13936_v4 = vpop.permute.xlu1 %3718 }
 0x54b   : > { %4086 = vrot.lane.b32.xlu0 %v13792_v57, %s15695_s21 }
 0x54c   : > { %3974 = vrot.lane.b32.xlu1 %v13878_v29, %s15677_s1 }
 0x54d   : > { %v3167_v61 = vpop.permute.xlu0 %3166 }
 0x54e   : > { %v3215_v37 = vpop.permute.xlu1 %3214 }
 0x54f   : > { %4090 = vrot.lane.b32.xlu0 %v13843_v52, %s15695_s21 }
 0x550   : > { %4092 = vrot.lane.b32.xlu1 %v13846_v47, %s15695_s21 }
 0x551   : > { %v13946_v42 = vpop.permute.xlu0 %3406 }
 0x552   : > { %v3169_v8 = vpop.permute.xlu1 %3168 }
 0x553   : > { %4094 = vrot.lane.b32.xlu0 %v13856_v0, %s15695_s21 }
 0x554   : > { %4096 = vrot.lane.b32.xlu1 %v13878_v29, %s15695_s21 }
 0x555   : > { %v13955_v20 = vpop.permute.xlu0 %3528 }
 0x556   : > { %v13960_v16 = vpop.permute.xlu1 %3408 }
 0x557   : > { %4205 = vperm.xlu0 %12676, %v4202_v6  }
 0x558   : > { %4222 = vperm.xlu1 %12677, %v4216_v26  }
 0x559   : > { %v13965_v5 = vpop.permute.xlu0 %3716 }
 0x55a   : > { %v13970_v28 = vpop.permute.xlu1 %3530 }
 0x55b   : > { %4227 = vperm.xlu0 %12676, %v4217_v9  }
 0x55c   : > { %4232 = vperm.xlu1 %12677, %v4218_v12  }
 0x55d   : > { %v3201_v62 = vpop.permute.xlu0 %3200 }
 0x55e   : > { %v3220_v43 = vsel %vm678_vm0, %v3213_v51, %v3201_v62  ;;  %v3232_v50 = vsel %vm678_vm0, %v3201_v62, %v3213_v51  ;;  %v3203_v46 = vpop.permute.xlu1 %3202 }
 0x55f   : > { %v3236_v56 = vmul.f32 %v3232_v50, %v13017_v14  ;;  %v3237_v19 = vmul.f32 %v3220_v43, %v13014_v13  ;;  %v3221_v3 = vsel %vm678_vm0, %v3215_v37, %v3203_v46  ;;  %v3233_v36 = vsel %vm678_vm0, %v3203_v46, %v3215_v37  ;;  %4237 = vperm.xlu0 %12676, %v4219_v24  }
 0x560   : > { %v3238_v49 = vmul.f32 %v3233_v36, %v13017_v14  ;;  %v3239_v7 = vmul.f32 %v3221_v3, %v13014_v13 }
 0x561   : > { %v3151_v34 = vpop.permute.xlu0 %3150 }
 0x562   : > { %v11941_v23 = vpack.c.bf16 %v3238_v49, %v3236_v56  ;;  %v3153_v44 = vpop.permute.xlu1 %3152  ;;  %v11939_v25 = vpack.c.bf16 %v3239_v7, %v3237_v19  ;;  %v3174_v36 = vsel %vm649_vm1, %v3167_v61, %v3151_v34 }
 0x563   : > { %v3175_v49 = vsel %vm649_vm1, %v3169_v8, %v3153_v44  ;;  %v3191_v35 = vmul.f32 %v3174_v36, %v13020_v15 }
 0x564   : > { %11940 = vmatprep.subr.bf16.mxu1 %v11939_v25  ;;  %v3187_v25 = vsel %vm649_vm1, %v3153_v44, %v3169_v8  ;;  %v3193_v55 = vmul.f32 %v3175_v49, %v13020_v15  ;;  %v3199_v49 = vld [vmem:[#allocation4 + $0x8] sm:$0xff] }
 0x565   : > { %11942 = vmatpush1.bf16.msra.mxu1 %v11941_v23  ;;  %v3395_v22 = vpop.permute.xlu0 %3394  ;;  %v3186_v23 = vsel %vm649_vm1, %v3151_v34, %v3167_v61  ;;  %v3192_v44 = vmul.f32 %v3187_v25, %v13024_v17 }
 0x566   : > { %v3397_v41 = vpop.permute.xlu1 %3396  ;;  %v3190_v34 = vmul.f32 %v3186_v23, %v13024_v17  ;;  %v3414_v36 = vsel %vm922_vm3, %v13946_v42, %v3395_v22  ;;  %v3426_v23 = vsel %vm922_vm3, %v3395_v22, %v13946_v42 }
 0x569   : > { %v13983_v51 = vpop.permute.xlu0 %3516 }
 0x56a   : > { %v13985_v6 = vpop.permute.xlu1 %3518 }
 0x56d   : > { %v13987_v26 = vpop.permute.xlu0 %3720 }
 0x56e   : > { %v13989_v37 = vpop.permute.xlu1 %3722 }
 0x571   : > { %v3217_v9 = vpop.permute.xlu0 %3216 }
 0x572   : > { %v13991_v12 = vpop.permute.xlu1 %3726 }
 0x575   : > { %v3171_v24 = vpop.permute.xlu0 %3170 }
 0x576   : > { %v3219_v62 = vpop.permute.xlu1 %3218 }
 0x579   : > { %v13993_v43 = vpop.permute.xlu0 %3410 }
 0x57a   : > { %v3173_v50 = vpop.permute.xlu1 %3172 }
 0x57d   : > { %v13995_v46 = vpop.permute.xlu0 %3532 }
 0x57e   : > { %v13997_v56 = vpop.permute.xlu1 %3412 }
 0x581   : > { %v13999_v19 = vpop.permute.xlu0 %3724 }
 0x582   : > { %v14001_v3 = vpop.permute.xlu1 %3534 }
 0x585   : > { %v3205_v7 = vpop.permute.xlu0 %3204 }
 0x586   : > { %v3222_v1 = vsel %vm678_vm0, %v3217_v9, %v3205_v7  ;;  %v3234_v58 = vsel %vm678_vm0, %v3205_v7, %v3217_v9  ;;  %v3207_v38 = vpop.permute.xlu1 %3206 }
 0x587   : > { %v3240_v54 = vmul.f32 %v3234_v58, %v13017_v14  ;;  %v3241_v30 = vmul.f32 %v3222_v1, %v13014_v13  ;;  %v3223_v11 = vsel %vm678_vm0, %v3219_v62, %v3207_v38  ;;  %v3235_v2 = vsel %vm678_vm0, %v3207_v38, %v3219_v62 }
 0x588   : > { %v3242_v61 = vmul.f32 %v3235_v2, %v13017_v14  ;;  %v3243_v8 = vmul.f32 %v3223_v11, %v13014_v13  ;;  %v11947_v38 = vpack.c.bf16 %v3193_v55, %v3191_v35  ;;  %v11949_v62 = vpack.c.bf16 %v3192_v44, %v3190_v34 }
 0x589   : > { %v14019_v9 = vpop.permute.xlu0 %3838  ;;  %v3415_v2 = vsel %vm922_vm3, %v13960_v16, %v3397_v41  ;;  %v3431_v44 = vmul.f32 %v3414_v36, %v13034_v27  ;;  %v3536_v36 = vsel %vm1066_vm5, %v13955_v20, %v13983_v51 }
 0x58a   : > { %v11945_v58 = vpack.c.bf16 %v3242_v61, %v3240_v54  ;;  %v14021_v1 = vpop.permute.xlu1 %3840  ;;  %v11943_v7 = vpack.c.bf16 %v3243_v8, %v3241_v30  ;;  %v3427_v54 = vsel %vm922_vm3, %v3397_v41, %v13960_v16  ;;  %v3433_v42 = vmul.f32 %v3415_v2, %v13034_v27 }
 0x58b   : > { %v3537_v2 = vsel %vm1066_vm5, %v13970_v28, %v13985_v6 }
 0x58c   : > { %11944 = vmatprep.subr.bf16.mxu1 %v11943_v7 }
 0x58d   : > { %11946 = vmatpush1.bf16.msra.mxu1 %v11945_v58  ;;  %v3155_v11 = vpop.permute.xlu0 %3154  ;;  %v3432_v58 = vmul.f32 %v3427_v54, %v13063_v39  ;;  %v3145_v54 = vld [vmem:[#allocation4] sm:$0xff] }
 0x58e   : > { %v3176_v30 = vsel %vm649_vm1, %v3171_v24, %v3155_v11  ;;  %v3188_v55 = vsel %vm649_vm1, %v3155_v11, %v3171_v24  ;;  %v3157_v35 = vpop.permute.xlu1 %3156  ;;  %11948 = vmatprep.subr.bf16.mxu1 %v11947_v38  ;;  %v3430_v24 = vmul.f32 %v3426_v23, %v13063_v39 }
 0x58f   : > { %v3194_v25 = vmul.f32 %v3188_v55, %v13024_v17  ;;  %v3195_v61 = vmul.f32 %v3176_v30, %v13020_v15  ;;  %v3177_v8 = vsel %vm649_vm1, %v3173_v50, %v3157_v35  ;;  %v3189_v34 = vsel %vm649_vm1, %v3157_v35, %v3173_v50 }
 0x590   : > { %v3196_v16 = vmul.f32 %v3189_v34, %v13024_v17  ;;  %v3197_v22 = vmul.f32 %v3177_v8, %v13020_v15  ;;  %11649 = vmatmul.mubr.msk.f32.vlgmr.msra.gmra.mrb[10].mxu1 %vm2030_vm10, %v3199_v49  ;;  %v11957_v30 = vpack.c.bf16 %v3432_v58, %v3430_v24  ;;  %v3548_v55 = vsel %vm1066_vm5, %v13983_v51, %v13955_v20 }
 0x591   : > { %11950 = vmatpush1.bf16.msra.mxu1 %v11949_v62  ;;  %v3399_v41 = vpop.permute.xlu0 %3398  ;;  %3385 = vmatprep.mubr.f32.mxu1 %v15678_v60  ;;  %v11955_v62 = vpack.c.bf16 %v3433_v42, %v3431_v44  ;;  %v3553_v35 = vmul.f32 %v3536_v36, %v13067_v40  ;;  %v3555_v8 = vmul.f32 %v3537_v2, %v13067_v40  ;;  %v3393_v36 = vld [vmem:[#allocation4 + $0x10] sm:$0xff] }
 0x592   : > { %v11953_v7 = vpack.c.bf16 %v3196_v16, %v3194_v25  ;;  %v14045_v50 = vpop.permute.xlu1 %3844  ;;  %v11951_v38 = vpack.c.bf16 %v3197_v22, %v3195_v61  ;;  %v3416_v11 = vsel %vm922_vm3, %v13993_v43, %v3399_v41  ;;  %v3428_v49 = vsel %vm922_vm3, %v3399_v41, %v13993_v43 }
 0x593   : > { %v3549_v61 = vsel %vm1066_vm5, %v13985_v6, %v13970_v28  ;;  %v3434_v44 = vmul.f32 %v3428_v49, %v13063_v39  ;;  %v3435_v20 = vmul.f32 %v3416_v11, %v13034_v27  ;;  %v11963_v24 = vpack.c.bf16 %v3555_v8, %v3553_v35 }
 0x594   : > { %11952 = vmatprep.subr.bf16.mxu1 %v11951_v38  ;;  %v3554_v41 = vmul.f32 %v3549_v61, %v13105_v53  ;;  %v3749_v8 = vsel %vm1326_vm6, %v13989_v37, %v13987_v26 }
 0x595   : > { %11954 = vmatpush1.bf16.msra.mxu1 %v11953_v7  ;;  %v3521_v23 = vpop.permute.xlu0 %3520 }
 0x596   : > { %v3401_v25 = vpop.permute.xlu1 %3400  ;;  %11956 = vmatprep.subr.bf16.mxu1 %v11955_v62  ;;  %v3538_v58 = vsel %vm1066_vm5, %v13995_v46, %v3521_v23  ;;  %v3550_v7 = vsel %vm1066_vm5, %v3521_v23, %v13995_v46 }
 0x597   : > { %v3417_v43 = vsel %vm922_vm3, %v13997_v56, %v3401_v25  ;;  %v3429_v34 = vsel %vm922_vm3, %v3401_v25, %v13997_v56  ;;  %v3552_v56 = vmul.f32 %v3548_v55, %v13105_v53 }
 0x598   : > { %v3436_v51 = vmul.f32 %v3429_v34, %v13063_v39  ;;  %v3437_v42 = vmul.f32 %v3417_v43, %v13034_v27  ;;  %11650 = vmatmul.mubr.msk.f32.vlgmr.msra.gmra.mrb[10].mxu1 %vm2030_vm10, %v3145_v54  ;;  %v3556_v54 = vmul.f32 %v3550_v7, %v13105_v53  ;;  %v3515_v34 = vld [vmem:[#allocation4 + $0x18] sm:$0xff] }
 0x599   : > { %11958 = vmatpush1.bf16.msra.mxu1 %v11957_v30  ;;  %v14074_v28 = vpop.permute.xlu0 %3728  ;;  %3505 = vmatprep.mubr.f32.mxu1 %v15678_v60  ;;  %v11965_v62 = vpack.c.bf16 %v3554_v41, %v3552_v56  ;;  %v3557_v30 = vmul.f32 %v3538_v58, %v13067_v40 }
 0x59a   : > { %v11961_v6 = vpack.c.bf16 %v3436_v51, %v3434_v44  ;;  %v14077_v16 = vpop.permute.xlu1 %3848  ;;  %v11959_v22 = vpack.c.bf16 %v3437_v42, %v3435_v20  ;;  %v3748_v20 = vsel %vm1326_vm6, %v13936_v4, %v13965_v5  ;;  %v3733_v51 = vsel %vm1326_vm6, %v13987_v26, %v13989_v37 }
 0x59b   : > { %v11975_v42 = vpack.c.bf16 %v13878_v29, %v13846_v47  ;;  %v3753_v26 = vmul.f32 %v3748_v20, %v13138_v63  ;;  %v3754_v37 = vmul.f32 %v3733_v51, %v13167_v18  ;;  %v11977_v47 = vpack.c.bf16 %v13856_v0, %v13843_v52 }
 0x59c   : > { %11960 = vmatprep.subr.bf16.mxu1 %v11959_v22  ;;  %v3870_v52 = vsel %vm1469_vm7, %v14021_v1, %v14019_v9 }
 0x59d   : > { %11962 = vmatpush1.bf16.msra.mxu1 %v11961_v6  ;;  %v3843_v38 = vpop.permute.xlu0 %3842  ;;  %v3732_v6 = vsel %vm1326_vm6, %v13965_v5, %v13936_v4  ;;  %v3750_v5 = vsel %vm1326_vm6, %v13991_v12, %v13999_v19 }
 0x59e   : > { %v3523_v2 = vpop.permute.xlu1 %3522  ;;  %11964 = vmatprep.subr.bf16.mxu1 %v11963_v24  ;;  %v3752_v29 = vmul.f32 %v3732_v6, %v13167_v18  ;;  %v3871_v56 = vsel %vm1469_vm7, %v14045_v50, %v3843_v38  ;;  %v3637_v24 = vld [vmem:[#allocation4 + $0x20] sm:$0xff]  ;;  %v3855_v0 = vsel %vm1469_vm7, %v3843_v38, %v14045_v50  ;;  %v3854_v50 = vsel %vm1469_vm7, %v14019_v9, %v14021_v1 }
 0x59f   : > { %v3539_v11 = vsel %vm1066_vm5, %v14001_v3, %v3523_v2  ;;  %v3551_v49 = vsel %vm1066_vm5, %v3523_v2, %v14001_v3  ;;  %v11971_v3 = vpack.c.bf16 %v13814_v59, %v13782_v10  ;;  %v11973_v10 = vpack.c.bf16 %v13792_v57, %v13779_v32 }
 0x5a0   : > { %v3558_v55 = vmul.f32 %v3551_v49, %v13105_v53  ;;  %v3559_v46 = vmul.f32 %v3539_v11, %v13067_v40  ;;  %11651 = vmatmul.mubr.msk.f32.vlgmr.msra.gmra.mrb[10].mxu1 %vm2030_vm10, %v3393_v36  ;;  %v3755_v59 = vmul.f32 %v3749_v8, %v13138_v63  ;;  %v3734_v57 = vsel %vm1326_vm6, %v13999_v19, %v13991_v12 }
 0x5a1   : > { %11966 = vmatpush1.bf16.msra.mxu1 %v11965_v62  ;;  %v14094_v23 = vpop.permute.xlu0 %3846  ;;  %3627 = vmatprep.mubr.f32.mxu1 %v15678_v60  ;;  %v11981_v58 = vpack.c.bf16 %v3754_v37, %v3752_v29  ;;  %v3756_v7 = vmul.f32 %v3734_v57, %v13167_v18  ;;  %v3757_v2 = vmul.f32 %v3750_v5, %v13138_v63 }
 0x5a2   : > { %v11969_v35 = vpack.c.bf16 %v3558_v55, %v3556_v54  ;;  %v14097_v25 = vpop.permute.xlu1 %3962  ;;  %v11967_v61 = vpack.c.bf16 %v3559_v46, %v3557_v30  ;;  %v11979_v4 = vpack.c.bf16 %v3755_v59, %v3753_v26  ;;  %v3877_v62 = vmul.f32 %v3871_v56, %v13175_v21 }
 0x5a3   : > { %v3876_v54 = vmul.f32 %v3855_v0, %v13203_v31  ;;  %v3872_v9 = vsel %vm1469_vm7, %v14077_v16, %v14094_v23 }
 0x5a4   : > { %11968 = vmatprep.subr.bf16.mxu1 %v11967_v61  ;;  %v3874_v61 = vmul.f32 %v3854_v50, %v13203_v31 }
 0x5a5   : > { %11970 = vmatpush1.bf16.msra.mxu1 %v11969_v35  ;;  %v14104_v43 = vpop.permute.xlu0 %3850  ;;  %v3856_v35 = vsel %vm1469_vm7, %v14094_v23, %v14077_v16  ;;  %v3879_v23 = vmul.f32 %v3872_v9, %v13175_v21 }
 0x5a6   : > { %v3967_v44 = vpop.permute.xlu1 %3966  ;;  %11972 = vmatprep.subr.bf16.mxu1 %v11971_v3  ;;  %v11989_v20 = vpack.c.bf16 %v3876_v54, %v3874_v61  ;;  %v3878_v51 = vmul.f32 %v3856_v35, %v13203_v31 }
 0x5a8   : > { %11652 = vmatmul.mubr.msk.f32.vlgmr.msra.gmra.mrb[10].mxu1 %vm2030_vm10, %v3515_v34  ;;  %v3715_v34 = vld [vmem:[#allocation4 + $0x28] sm:$0xff] }
 0x5a9   : > { %v3961_v22 = vpop.permute.xlu0 %3960  ;;  %11974 = vmatpush1.bf16.msra.mxu1 %v11973_v10  ;;  %3705 = vmatprep.mubr.f32.mxu1 %v15678_v60 }
 0x5aa   : > { %v14124_v32 = vpop.permute.xlu1 %3970  ;;  %11976 = vmatprep.subr.bf16.mxu1 %v11975_v42  ;;  %v3992_v59 = vsel %vm1613_vm8, %v14097_v25, %v3961_v22 }
 0x5ab   : > { %v3997_v29 = vmul.f32 %v3992_v59, %v13207_v33 }
 0x5ad   : > { %v3965_v41 = vpop.permute.xlu0 %3964  ;;  %11978 = vmatpush1.bf16.msra.mxu1 %v11977_v47  ;;  %v3976_v47 = vsel %vm1613_vm8, %v3961_v22, %v14097_v25 }
 0x5ae   : > { %v3731_v36 = vpop.permute.xlu1 %3730  ;;  %11980 = vmatprep.subr.bf16.mxu1 %v11979_v4  ;;  %v3993_v1 = vsel %vm1613_vm8, %v3967_v44, %v3965_v41  ;;  %v3977_v42 = vsel %vm1613_vm8, %v3965_v41, %v3967_v44 }
 0x5af   : > { %v3735_v12 = vsel %vm1326_vm6, %v14074_v28, %v3731_v36  ;;  %v3751_v19 = vsel %vm1326_vm6, %v3731_v36, %v14074_v28  ;;  %v3875_v28 = vmul.f32 %v3870_v52, %v13175_v21  ;;  %v3999_v26 = vmul.f32 %v3993_v1, %v13207_v33 }
 0x5b0   : > { %v3758_v11 = vmul.f32 %v3735_v12, %v13167_v18  ;;  %v3759_v49 = vmul.f32 %v3751_v19, %v13138_v63  ;;  %11653 = vmatmul.mubr.msk.f32.vlgmr.msra.gmra.mrb[10].mxu1 %vm2030_vm10, %v3637_v24  ;;  %v3996_v24 = vmul.f32 %v3976_v47, %v13232_v45 }
 0x5b1   : > { %v3969_v38 = vpop.permute.xlu0 %3968  ;;  %11982 = vmatpush1.bf16.msra.mxu1 %v11981_v58  ;;  %3827 = vmatprep.mubr.f32.mxu1 %v15678_v60  ;;  %v11987_v3 = vpack.c.bf16 %v3877_v62, %v3875_v28  ;;  %v11995_v25 = vpack.c.bf16 %v3999_v26, %v3997_v29 }
 0x5b2   : > { %v11985_v30 = vpack.c.bf16 %v3758_v11, %v3756_v7  ;;  %v4085_v55 = vpop.permute.xlu1 %4084  ;;  %v11983_v46 = vpack.c.bf16 %v3759_v49, %v3757_v2  ;;  %v3978_v41 = vsel %vm1613_vm8, %v3969_v38, %v14124_v32  ;;  %v3994_v58 = vsel %vm1613_vm8, %v14124_v32, %v3969_v38  ;;  %v3837_v7 = vld [vmem:[#allocation4 + $0x30] sm:$0xff] }
 0x5b3   : > { %v4000_v52 = vmul.f32 %v3978_v41, %v13232_v45  ;;  %v4001_v19 = vmul.f32 %v3994_v58, %v13207_v33  ;;  %v4210_v58 = vld [vmem:[%s15614_s13] sm:$0xff] }
 0x5b4   : > { %11984 = vmatprep.subr.bf16.mxu1 %v11983_v46 }
 0x5b5   : > { %v3973_v8 = vpop.permute.xlu0 %3972  ;;  %11986 = vmatpush1.bf16.msra.mxu1 %v11985_v30 }
 0x5b6   : > { %v3853_v10 = vpop.permute.xlu1 %3852  ;;  %11988 = vmatprep.subr.bf16.mxu1 %v11987_v3  ;;  %v15696_v3 = vld [vmem:[#allocation9_spill] sm:$0xff] }
 0x5b7   : > { %v3857_v6 = vsel %vm1469_vm7, %v14104_v43, %v3853_v10  ;;  %v3873_v16 = vsel %vm1469_vm7, %v3853_v10, %v14104_v43  ;;  %v3998_v43 = vmul.f32 %v3977_v42, %v13232_v45  ;;  %v3959_v10 = vld [vmem:[#allocation4 + $0x38] sm:$0xff] }
 0x5b8   : > { %v3880_v37 = vmul.f32 %v3857_v6, %v13203_v31  ;;  %v3881_v57 = vmul.f32 %v3873_v16, %v13175_v21  ;;  %11654 = vmatmul.mubr.msk.f32.vlgmr.msra.gmra.mrb[10].mxu1 %vm2030_vm10, %v3715_v34 }
 0x5b9   : > { %v4083_v44 = vpop.permute.xlu0 %4082  ;;  %11990 = vmatpush1.bf16.msra.mxu1 %v11989_v20  ;;  %3949 = vmatprep.mubr.f32.mxu1 %v15678_v60  ;;  %v11997_v36 = vpack.c.bf16 %v3998_v43, %v3996_v24 }
 0x5ba   : > { %v11993_v4 = vpack.c.bf16 %v3880_v37, %v3878_v51  ;;  %v4089_v5 = vpop.permute.xlu1 %4088  ;;  %v11991_v56 = vpack.c.bf16 %v3881_v57, %v3879_v23  ;;  %v4114_v2 = vsel %vm1756_vm9, %v4085_v55, %v4083_v44  ;;  %v4098_v54 = vsel %vm1756_vm9, %v4083_v44, %v4085_v55  ;;  %v4081_v44 = vld [vmem:[#allocation4 + $0x40] sm:$0xff] }
 0x5bb   : > { %v4119_v30 = vmul.f32 %v4114_v2, %v13240_v48  ;;  %v15697_v2 = vld [vmem:[#allocation10_spill] sm:$0xff] }
 0x5bc   : > { %11992 = vmatprep.subr.bf16.mxu1 %v11991_v56 }
 0x5bd   : > { %v4087_v22 = vpop.permute.xlu0 %4086  ;;  %11994 = vmatpush1.bf16.msra.mxu1 %v11993_v4 }
 0x5be   : > { %v4115_v0 = vsel %vm1756_vm9, %v4089_v5, %v4087_v22  ;;  %v3975_v12 = vpop.permute.xlu1 %3974  ;;  %11996 = vmatprep.subr.bf16.mxu1 %v11995_v25  ;;  %v4099_v11 = vsel %vm1756_vm9, %v4087_v22, %v4089_v5  ;;  %v4211_v25 = vld [vmem:[%s15614_s13 + $0x8] sm:$0xff]  ;;  %v4212_v22 = vld [vmem:[%s15614_s13 + $0x10] sm:$0xff] }
 0x5bf   : > { %v3979_v62 = vsel %vm1613_vm8, %v3973_v8, %v3975_v12  ;;  %v3995_v32 = vsel %vm1613_vm8, %v3975_v12, %v3973_v8  ;;  %v4121_v49 = vmul.f32 %v4115_v0, %v13240_v48  ;;  %v4120_v9 = vmul.f32 %v4099_v11, %v15696_v3 }
 0x5c0   : > { %v4002_v50 = vmul.f32 %v3979_v62, %v13232_v45  ;;  %v4003_v38 = vmul.f32 %v3995_v32, %v13207_v33  ;;  %11655 = vmatmul.mubr.msk.f32.vlgmr.msra.gmra.mrb[10].mxu1 %vm2030_vm10, %v3837_v7  ;;  %v4118_v8 = vmul.f32 %v4098_v54, %v15696_v3  ;;  %v4213_v7 = vld [vmem:[%s15614_s13 + $0x18] sm:$0xff]  ;;  %v15698_v32 = vld [vmem:[#allocation11_spill] sm:$0xff] }
 0x5c1   : > { %v4091_v28 = vpop.permute.xlu0 %4090  ;;  %11998 = vmatpush1.bf16.msra.mxu1 %v11997_v36  ;;  %4071 = vmatprep.mubr.f32.mxu1 %v15678_v60  ;;  %v12003_v1 = vpack.c.bf16 %v4121_v49, %v4119_v30 }
 0x5c2   : > { %v12001_v46 = vpack.c.bf16 %v4002_v50, %v4000_v52  ;;  %v4093_v35 = vpop.permute.xlu1 %4092  ;;  %v11999_v61 = vpack.c.bf16 %v4003_v38, %v4001_v19  ;;  %v12005_v55 = vpack.c.bf16 %v4120_v9, %v4118_v8 }
 0x5c3   : > { %v4100_v34 = vsel %vm1756_vm9, %v4091_v28, %v4093_v35  ;;  %v4116_v20 = vsel %vm1756_vm9, %v4093_v35, %v4091_v28 }
 0x5c4   : > { %12000 = vmatprep.subr.bf16.mxu1 %v11999_v61  ;;  %v4122_v16 = vmul.f32 %v4100_v34, %v15696_v3  ;;  %v4123_v23 = vmul.f32 %v4116_v20, %v13240_v48  ;;  %v15699_v61 = vld [vmem:[#allocation12_spill] sm:$0xff] }
 0x5c5   : > { %v4095_v51 = vpop.permute.xlu0 %4094  ;;  %12002 = vmatpush1.bf16.msra.mxu1 %v12001_v46 }
 0x5c6   : > { %v4097_v59 = vpop.permute.xlu1 %4096  ;;  %12004 = vmatprep.subr.bf16.mxu1 %v12003_v1 }
 0x5c7   : > { %v4101_v42 = vsel %vm1756_vm9, %v4095_v51, %v4097_v59  ;;  %v4117_v6 = vsel %vm1756_vm9, %v4097_v59, %v4095_v51  ;;  %v15701_v51 = vld [vmem:[#allocation13_spill] sm:$0xff] }
 0x5c8   : > { %v4124_v26 = vmul.f32 %v4101_v42, %v15696_v3  ;;  %v4125_v37 = vmul.f32 %v4117_v6, %v13240_v48  ;;  %11656 = vmatmul.mubr.msk.f32.vlgmr.msra.gmra.mrb[10].mxu1 %vm2030_vm10, %v3959_v10 }
 0x5c9   : > { %12006 = vmatpush1.bf16.msra.mxu1 %v12005_v55  ;;  %4193 = vmatprep.mubr.f32.mxu1 %v15678_v60 }
 0x5ca   : > { %v12009_v57 = vpack.c.bf16 %v4124_v26, %v4122_v16  ;;  %v12007_v47 = vpack.c.bf16 %v4125_v37, %v4123_v23  ;;  %v15702_v23 = vld [vmem:[#allocation14_spill] sm:$0xff]  ;;  %v15703_v37 = vld [vmem:[#allocation15_spill] sm:$0xff] }
 0x5cc   : > { %12008 = vmatprep.subr.bf16.mxu1 %v12007_v47 }
 0x5cd   : > { %12010 = vmatpush1.bf16.msra.mxu1 %v12009_v57 }
 0x5d0   : > { %11657 = vmatmul.mubr.msk.f32.vlgmr.msra.gmra.mrb[10].mxu1 %vm2030_vm10, %v4081_v44 }
 0x5d1   : > { %4988 = vmatprep.mubr.f32.mxu1 %v15678_v60 }
 0x5d6   : > { %v4206_v29 = vpop.permute.xlu0 %4205 }
 0x5d7   : > { %v4223_v36 = vpop.permute.xlu1 %4222 }
 0x5da   : > { %v4228_v50 = vpop.permute.xlu0 %4227 }
 0x5db   : > { %v4233_v55 = vpop.permute.xlu1 %4232 }
 0x5de   : > { %v4238_v16 = vpop.permute.xlu0 %4237 }
 0x6a3   : > { %v4195_v43 = vpop.f32.mrb[10].mxu1 }
 0x6a4   : > { %v4208_v4 = vadd.f32 %v4206_v29, %v4195_v43  ;;  %v4197_v5 = vpop.f32.mrb[11].mxu1  ;;  %v15704_v43 = vld [vmem:[#allocation16_spill] sm:$0xff] }
 0x6a5   : > { %v4209_v56 = vadd.f32 %v4206_v29, %v4197_v5 }
 0x6a6   : > { %v4214_v24 = vmax.f32 %v4208_v4, 0.0 }
 0x6a7   : > { %v4215_v41 = vmax.f32 %v4209_v56, 0.0 }
 0x6a9   : > { %4252 = vmatprep.subr.mxu0 %v4215_v41  ;;  %v15705_v41 = vld [vmem:[#allocation17_spill] sm:$0xff] }
 0x6aa   : > { %4253 = vmatpush1.msra.mxu0 %v4214_v24 }
 0x6ab   : > { %11658 = vmatmul.mubr.msk.f32.vlgmr.msra.gmra.mrb[8].mxu0 %vm3027_vm11, %v4210_v58 }
 0x6ac   : > { %4322 = vmatprep.mubr.f32.mxu0 %v15678_v60 }
 0x6af   : > { %11659 = vmatmul.mubr.msk.f32.gmra.mrb[10].mxu0 %vm3027_vm11, %v4211_v25 }
 0x6b0   : > { %4328 = vmatprep.mubr.f32.mxu0 %v15678_v60 }
 0x6b3   : > { %11660 = vmatmul.mubr.msk.f32.gmra.mrb[12].mxu0 %vm3027_vm11, %v4212_v22 }
 0x6b4   : > { %4334 = vmatprep.mubr.f32.mxu0 %v15678_v60 }
 0x6b7   : > { %11661 = vmatmul.mubr.msk.f32.gmra.mrb[14].mxu0 %vm3027_vm11, %v4213_v7 }
 0x6b8   : > { %4528 = vmatprep.mubr.f32.mxu0 %v15678_v60 }
 0x77e   : > { %v4318_v52 = vpop.f32.mrb[8].mxu0 }
 0x77f   : > { %v4319_v0 = vadd.f32 %v4318_v52, %v4223_v36  ;;  %v4320_v12 = vpop.f32.mrb[9].mxu0 }
 0x780   : > { %v4321_v19 = vadd.f32 %v4320_v12, %v4223_v36  ;;  %v4848_v12 = vld [vmem:[%s15617_s16] sm:$0xff] }
 0x781   : > { %v4341_v62 = vadd.f32 %v4319_v0, %v15697_v2  ;;  %v4849_v2 = vld [vmem:[%s15617_s16 + $0x8] sm:$0xff] }
 0x782   : > { %v4342_v11 = vadd.f32 %v4321_v19, %v15698_v32  ;;  %v4324_v49 = vpop.f32.mrb[10].mxu0 }
 0x783   : > { %v14239_v38 = vmax.f32 %v4341_v62, 0.0  ;;  %v4326_v28 = vpop.f32.mrb[11].mxu0  ;;  %v4325_v30 = vadd.f32 %v4324_v49, %v4228_v50 }
 0x784   : > { %v14241_v54 = vmax.f32 %v4342_v11, 0.0  ;;  %v4327_v20 = vadd.f32 %v4326_v28, %v4228_v50 }
 0x785   : > { %4426 = vrot.lane.b32.xlu1 %v14239_v38, %s12756_s25  ;;  %v4343_v9 = vadd.f32 %v4325_v30, %v15699_v61 }
 0x786   : > { %v4330_v46 = vpop.f32.mrb[12].mxu0  ;;  %5179 = vrot.lane.b32.xlu0 %v14241_v54, %s12760_s28  ;;  %v4344_v10 = vadd.f32 %v4327_v20, %v15701_v51 }
 0x787   : > { %v4332_v35 = vpop.f32.mrb[13].mxu0  ;;  %v14252_v34 = vmax.f32 %v4343_v9, 0.0  ;;  %v4331_v42 = vadd.f32 %v4330_v46, %v4233_v55 }
 0x788   : > { %v14271_v59 = vmax.f32 %v4344_v10, 0.0  ;;  %v4333_v6 = vadd.f32 %v4332_v35, %v4233_v55 }
 0x789   : > { %4886 = vrot.lane.b32.xlu1 %v14239_v38, %s12758_s26  ;;  %v4345_v26 = vadd.f32 %v4331_v42, %v15702_v23 }
 0x78a   : > { %v4336_v1 = vpop.f32.mrb[14].mxu0  ;;  %5493 = vrot.lane.b32.xlu0 %v14241_v54, %s12761_s29  ;;  %v4346_v57 = vadd.f32 %v4333_v6, %v15703_v37 }
 0x78b   : > { %v4338_v8 = vpop.f32.mrb[15].mxu0  ;;  %v4337_v47 = vadd.f32 %v4336_v1, %v4238_v16  ;;  %v14295_v44 = vmax.f32 %v4345_v26, 0.0 }
 0x78c   : > { %v14297_v29 = vmax.f32 %v4346_v57, 0.0  ;;  %v4339_v56 = vadd.f32 %v4338_v8, %v4238_v16 }
 0x78d   : > { %4379 = vrot.lane.b32.xlu1 %v14239_v38, %s12757_s3  ;;  %v4347_v4 = vadd.f32 %v4337_v47, %v15704_v43 }
 0x78e   : > { %4428 = vrot.lane.b32.xlu0 %v14252_v34, %s12756_s25  ;;  %v4348_v24 = vadd.f32 %v4339_v56, %v15705_v41 }
 0x78f   : > { %v14304_v5 = vmax.f32 %v4347_v4, 0.0 }
 0x790   : > { %v14323_v58 = vmax.f32 %v4348_v24, 0.0 }
 0x791   : > { %4639 = vrot.lane.b32.xlu1 %v14239_v38, %s15700_s27 }
 0x792   : > { %4888 = vrot.lane.b32.xlu0 %v14252_v34, %s12758_s26 }
 0x795   : > { %5177 = vrot.lane.b32.xlu1 %v14239_v38, %s12760_s28 }
 0x796   : > { %4381 = vrot.lane.b32.xlu0 %v14252_v34, %s12757_s3 }
 0x799   : > { %5491 = vrot.lane.b32.xlu1 %v14239_v38, %s12761_s29 }
 0x79a   : > { %4641 = vrot.lane.b32.xlu0 %v14252_v34, %s15700_s27 }
 0x79d   : > { %4414 = vrot.lane.b32.xlu1 %v14241_v54, %s12756_s25 }
 0x79e   : > { %4416 = vrot.lane.b32.xlu0 %v14271_v59, %s12756_s25 }
 0x7a1   : > { %4874 = vrot.lane.b32.xlu1 %v14241_v54, %s12758_s26 }
 0x7a2   : > { %4876 = vrot.lane.b32.xlu0 %v14271_v59, %s12758_s26 }
 0x7a5   : > { %4363 = vrot.lane.b32.xlu1 %v14241_v54, %s12757_s3 }
 0x7a6   : > { %4365 = vrot.lane.b32.xlu0 %v14271_v59, %s12757_s3 }
 0x7a9   : > { %4627 = vrot.lane.b32.xlu1 %v14241_v54, %s15700_s27 }
 0x7aa   : > { %4629 = vrot.lane.b32.xlu0 %v14271_v59, %s15700_s27 }
 0x7ad   : > { %5181 = vrot.lane.b32.xlu1 %v14252_v34, %s12760_s28 }
 0x7ae   : > { %5183 = vrot.lane.b32.xlu0 %v14271_v59, %s12760_s28 }
 0x7b1   : > { %4430 = vrot.lane.b32.xlu1 %v14295_v44, %s12756_s25 }
 0x7b2   : > { %5187 = vrot.lane.b32.xlu0 %v14297_v29, %s12760_s28 }
 0x7b5   : > { %4890 = vrot.lane.b32.xlu1 %v14295_v44, %s12758_s26 }
 0x7b6   : > { %4432 = vrot.lane.b32.xlu0 %v14304_v5, %s12756_s25 }
 0x7b9   : > { %4383 = vrot.lane.b32.xlu1 %v14295_v44, %s12757_s3 }
 0x7ba   : > { %4892 = vrot.lane.b32.xlu0 %v14304_v5, %s12758_s26 }
 0x7bd   : > { %4643 = vrot.lane.b32.xlu1 %v14295_v44, %s15700_s27 }
 0x7be   : > { %4385 = vrot.lane.b32.xlu0 %v14304_v5, %s12757_s3 }
 0x7c1   : > { %5185 = vrot.lane.b32.xlu1 %v14295_v44, %s12760_s28 }
 0x7c2   : > { %4645 = vrot.lane.b32.xlu0 %v14304_v5, %s15700_s27 }
 0x7c5   : > { %4418 = vrot.lane.b32.xlu1 %v14297_v29, %s12756_s25 }
 0x7c6   : > { %4420 = vrot.lane.b32.xlu0 %v14323_v58, %s12756_s25 }
 0x7c9   : > { %4878 = vrot.lane.b32.xlu1 %v14297_v29, %s12758_s26 }
 0x7ca   : > { %4880 = vrot.lane.b32.xlu0 %v14323_v58, %s12758_s26 }
 0x7cd   : > { %5495 = vrot.lane.b32.xlu1 %v14252_v34, %s12761_s29 }
 0x7ce   : > { %5497 = vrot.lane.b32.xlu0 %v14271_v59, %s12761_s29 }
 0x7d1   : > { %4367 = vrot.lane.b32.xlu1 %v14297_v29, %s12757_s3 }
 0x7d2   : > { %4369 = vrot.lane.b32.xlu0 %v14323_v58, %s12757_s3 }
 0x7d5   : > { %4631 = vrot.lane.b32.xlu1 %v14297_v29, %s15700_s27 }
 0x7d6   : > { %5627 = vrot.lane.b32.xlu0 %v14241_v54, %s15677_s1 }
 0x7d9   : > { %5189 = vrot.lane.b32.xlu1 %v14304_v5, %s12760_s28 }
 0x7da   : > { %4633 = vrot.lane.b32.xlu0 %v14323_v58, %s15700_s27 }
 0x7dd   : > { %5625 = vrot.lane.b32.xlu1 %v14239_v38, %s15677_s1 }
 0x7de   : > { %5631 = vrot.lane.b32.xlu0 %v14271_v59, %s15677_s1 }
 0x7e1   : > { %5629 = vrot.lane.b32.xlu1 %v14252_v34, %s15677_s1 }
 0x7e2   : > { %5191 = vrot.lane.b32.xlu0 %v14323_v58, %s12760_s28 }
 0x7e5   : > { %5499 = vrot.lane.b32.xlu1 %v14295_v44, %s12761_s29 }
 0x7e6   : > { %5501 = vrot.lane.b32.xlu0 %v14297_v29, %s12761_s29 }
 0x7e9   : > { %5503 = vrot.lane.b32.xlu1 %v14304_v5, %s12761_s29 }
 0x7ea   : > { %5635 = vrot.lane.b32.xlu0 %v14297_v29, %s15677_s1 }
 0x7ed   : > { %5633 = vrot.lane.b32.xlu1 %v14295_v44, %s15677_s1 }
 0x7ee   : > { %6031 = vrot.lane.b32.xlu0 %v14241_v54, %s15695_s21 }
 0x7f1   : > { %5637 = vrot.lane.b32.xlu1 %v14304_v5, %s15677_s1 }
 0x7f2   : > { %6035 = vrot.lane.b32.xlu0 %v14271_v59, %s15695_s21 }
 0x7f5   : > { %6029 = vrot.lane.b32.xlu1 %v14239_v38, %s15695_s21 }
 0x7f6   : > { %5505 = vrot.lane.b32.xlu0 %v14323_v58, %s12761_s29 }
 0x7f7   : > { %v4427_v25 = vpop.permute.xlu1 %4426 }
 0x7f8   : > { %v14377_v22 = vpop.permute.xlu0 %5179 }
 0x7f9   : > { %6033 = vrot.lane.b32.xlu1 %v14252_v34, %s15695_s21 }
 0x7fa   : > { %5639 = vrot.lane.b32.xlu0 %v14323_v58, %s15677_s1 }
 0x7fb   : > { %v4887_v7 = vpop.permute.xlu1 %4886 }
 0x7fc   : > { %v14383_v36 = vpop.permute.xlu0 %5493 }
 0x7fd   : > { %6037 = vrot.lane.b32.xlu1 %v14295_v44, %s15695_s21 }
 0x7fe   : > { %6039 = vrot.lane.b32.xlu0 %v14297_v29, %s15695_s21 }
 0x7ff   : > { %v4380_v52 = vpop.permute.xlu1 %4379 }
 0x800   : > { %v4429_v0 = vpop.permute.xlu0 %4428 }
 0x801   : > { %6041 = vrot.lane.b32.xlu1 %v14304_v5, %s15695_s21 }
 0x802   : > { %6043 = vrot.lane.b32.xlu0 %v14323_v58, %s15695_s21 }
 0x803   : > { %v14396_v19 = vpop.permute.xlu1 %4639 }
 0x804   : > { %v4889_v62 = vpop.permute.xlu0 %4888 }
 0x805   : > { %4852 = vperm.xlu1 %12677, %v4848_v12  }
 0x806   : > { %4857 = vperm.xlu0 %12676, %v4849_v2  }
 0x807   : > { %v14401_v32 = vpop.permute.xlu1 %5177 }
 0x808   : > { %v4382_v11 = vpop.permute.xlu0 %4381 }
 0x80b   : > { %v14403_v49 = vpop.permute.xlu1 %5491 }
 0x80c   : > { %v14405_v50 = vpop.permute.xlu0 %4641 }
 0x80f   : > { %v4415_v28 = vpop.permute.xlu1 %4414 }
 0x810   : > { %v4434_v30 = vsel %vm678_vm0, %v4427_v25, %v4415_v28  ;;  %v4446_v46 = vsel %vm678_vm0, %v4415_v28, %v4427_v25  ;;  %v4417_v35 = vpop.permute.xlu0 %4416 }
 0x811   : > { %v4450_v61 = vmul.f32 %v4446_v46, %v13017_v14  ;;  %v4451_v9 = vmul.f32 %v4434_v30, %v13014_v13  ;;  %v4435_v1 = vsel %vm678_vm0, %v4429_v0, %v4417_v35  ;;  %v4447_v8 = vsel %vm678_vm0, %v4417_v35, %v4429_v0 }
 0x812   : > { %v4452_v20 = vmul.f32 %v4447_v8, %v13017_v14  ;;  %v4453_v51 = vmul.f32 %v4435_v1, %v13014_v13 }
 0x813   : > { %v4875_v10 = vpop.permute.xlu1 %4874 }
 0x814   : > { %v14415_v55 = vpack.c.bf16 %v4452_v20, %v4450_v61  ;;  %v4894_v42 = vsel %vm922_vm3, %v4887_v7, %v4875_v10  ;;  %v4906_v6 = vsel %vm922_vm3, %v4875_v10, %v4887_v7  ;;  %v4877_v16 = vpop.permute.xlu0 %4876  ;;  %v14419_v23 = vpack.c.bf16 %v4453_v51, %v4451_v9 }
 0x815   : > { %v4910_v26 = vmul.f32 %v4906_v6, %v13063_v39  ;;  %v4911_v37 = vmul.f32 %v4894_v42, %v13034_v27  ;;  %v4895_v57 = vsel %vm922_vm3, %v4889_v62, %v4877_v16  ;;  %v4907_v47 = vsel %vm922_vm3, %v4877_v16, %v4889_v62 }
 0x816   : > { %v4912_v43 = vmul.f32 %v4907_v47, %v13063_v39  ;;  %v4913_v4 = vmul.f32 %v4895_v57, %v13034_v27  ;;  %12012 = vmatprep.subr.bf16.mxu0 %v14419_v23 }
 0x817   : > { %12014 = vmatpush1.bf16.msra.mxu0 %v14415_v55  ;;  %v4364_v56 = vpop.permute.xlu1 %4363 }
 0x818   : > { %v12045_v41 = vpack.c.bf16 %v4912_v43, %v4910_v26  ;;  %v4366_v24 = vpop.permute.xlu0 %4365  ;;  %v12043_v25 = vpack.c.bf16 %v4913_v4, %v4911_v37  ;;  %v4387_v51 = vsel %vm649_vm1, %v4380_v52, %v4364_v56  ;;  %v4399_v6 = vsel %vm649_vm1, %v4364_v56, %v4380_v52 }
 0x819   : > { %v4388_v10 = vsel %vm649_vm1, %v4382_v11, %v4366_v24  ;;  %v4400_v16 = vsel %vm649_vm1, %v4366_v24, %v4382_v11  ;;  %v4403_v56 = vmul.f32 %v4399_v6, %v13024_v17 }
 0x81a   : > { %12044 = vmatprep.subr.bf16.mxu1 %v12043_v25  ;;  %v4404_v25 = vmul.f32 %v4387_v51, %v13020_v15  ;;  %v4406_v3 = vmul.f32 %v4388_v10, %v13020_v15  ;;  %v4405_v24 = vmul.f32 %v4400_v16, %v13024_v17 }
 0x81b   : > { %12046 = vmatpush1.bf16.msra.mxu1 %v12045_v41  ;;  %v4628_v7 = vpop.permute.xlu1 %4627 }
 0x81c   : > { %v14429_v0 = vpop.permute.xlu0 %4629 }
 0x81f   : > { %v14431_v12 = vpop.permute.xlu1 %5181 }
 0x820   : > { %v14433_v2 = vpop.permute.xlu0 %5183 }
 0x823   : > { %v4431_v62 = vpop.permute.xlu1 %4430 }
 0x824   : > { %v14435_v28 = vpop.permute.xlu0 %5187 }
 0x827   : > { %v4891_v30 = vpop.permute.xlu1 %4890 }
 0x828   : > { %v4433_v46 = vpop.permute.xlu0 %4432 }
 0x82b   : > { %v4384_v35 = vpop.permute.xlu1 %4383 }
 0x82c   : > { %v4893_v61 = vpop.permute.xlu0 %4892 }
 0x82f   : > { %v14437_v9 = vpop.permute.xlu1 %4643 }
 0x830   : > { %v14439_v1 = vpop.permute.xlu0 %4385 }
 0x833   : > { %v14441_v8 = vpop.permute.xlu1 %5185 }
 0x834   : > { %v14443_v20 = vpop.permute.xlu0 %4645 }
 0x837   : > { %v4419_v42 = vpop.permute.xlu1 %4418 }
 0x838   : > { %v4436_v26 = vsel %vm678_vm0, %v4431_v62, %v4419_v42  ;;  %v4448_v37 = vsel %vm678_vm0, %v4419_v42, %v4431_v62  ;;  %v4421_v57 = vpop.permute.xlu0 %4420 }
 0x839   : > { %v4454_v47 = vmul.f32 %v4448_v37, %v13017_v14  ;;  %v4455_v43 = vmul.f32 %v4436_v26, %v13014_v13  ;;  %v4437_v4 = vsel %vm678_vm0, %v4433_v46, %v4421_v57  ;;  %v4449_v41 = vsel %vm678_vm0, %v4421_v57, %v4433_v46 }
 0x83a   : > { %v4456_v52 = vmul.f32 %v4449_v41, %v13017_v14  ;;  %v4457_v11 = vmul.f32 %v4437_v4, %v13014_v13 }
 0x83b   : > { %v4879_v62 = vpop.permute.xlu1 %4878 }
 0x83c   : > { %v14461_v42 = vpack.c.bf16 %v4456_v52, %v4454_v47  ;;  %v4896_v26 = vsel %vm922_vm3, %v4891_v30, %v4879_v62  ;;  %v4908_v37 = vsel %vm922_vm3, %v4879_v62, %v4891_v30  ;;  %v4881_v46 = vpop.permute.xlu0 %4880  ;;  %v12015_v57 = vpack.c.bf16 %v4457_v11, %v4455_v43  ;;  %v11662_v30 = vld [vmem:[%s15616_s15 + $0x10] sm:$0xff] }
 0x83d   : > { %v4914_v51 = vmul.f32 %v4908_v37, %v13063_v39  ;;  %v4915_v10 = vmul.f32 %v4896_v26, %v13034_v27  ;;  %v4897_v41 = vsel %vm922_vm3, %v4893_v61, %v4881_v46  ;;  %v4909_v4 = vsel %vm922_vm3, %v4881_v46, %v4893_v61 }
 0x83e   : > { %v4916_v6 = vmul.f32 %v4909_v4, %v13063_v39  ;;  %v4917_v16 = vmul.f32 %v4897_v41, %v13034_v27  ;;  %12016 = vmatprep.subr.bf16.mxu0 %v12015_v57  ;;  %v12019_v47 = vpack.c.bf16 %v4406_v3, %v4404_v25  ;;  %v4647_v43 = vsel %vm1066_vm5, %v14396_v19, %v4628_v7 }
 0x83f   : > { %12018 = vmatpush1.bf16.msra.mxu0 %v14461_v42  ;;  %v14472_v52 = vpop.permute.xlu1 %5495  ;;  %v12021_v26 = vpack.c.bf16 %v4405_v24, %v4403_v56  ;;  %v4659_v3 = vsel %vm1066_vm5, %v4628_v7, %v14396_v19  ;;  %v4664_v25 = vmul.f32 %v4647_v43, %v13067_v40  ;;  %v4648_v37 = vsel %vm1066_vm5, %v14405_v50, %v14429_v0  ;;  %v11663_v56 = vld [vmem:[%s15616_s15 + $0x18] sm:$0xff] }
 0x840   : > { %v12049_v11 = vpack.c.bf16 %v4916_v6, %v4914_v51  ;;  %v14479_v62 = vpop.permute.xlu0 %5497  ;;  %12020 = vmatprep.subr.bf16.mxu0 %v12019_v47  ;;  %v12047_v61 = vpack.c.bf16 %v4917_v16, %v4915_v10  ;;  %v11678_v51 = vld [vmem:[%s15616_s15 + $0x50] sm:$0xff]  ;;  %v4660_v19 = vsel %vm1066_vm5, %v14429_v0, %v14405_v50  ;;  %v4666_v50 = vmul.f32 %v4648_v37, %v13067_v40  ;;  %v11679_v47 = vld [vmem:[%s15616_s15 + $0x58] sm:$0xff] }
 0x842   : > { %12048 = vmatprep.subr.bf16.mxu1 %v12047_v61  ;;  %11664 = vmatmul.mubr.msk.f32.vlgmr.msra.gmra.mrb[16].mxu0 %vm2030_vm10, %v11662_v30  ;;  %v4665_v30 = vmul.f32 %v4660_v19, %v13105_v53 }
 0x843   : > { %12022 = vmatpush1.bf16.msra.mxu0 %v12021_v26  ;;  %12050 = vmatpush1.bf16.msra.mxu1 %v12049_v11  ;;  %v4368_v46 = vpop.permute.xlu1 %4367  ;;  %v14526_v26 = vpack.c.bf16 %v4666_v50, %v4664_v25  ;;  %v11676_v25 = vld [vmem:[%s15616_s15 + $0x40] sm:$0xff] }
 0x844   : > { %v4389_v7 = vsel %vm649_vm1, %v4384_v35, %v4368_v46  ;;  %v4401_v24 = vsel %vm649_vm1, %v4368_v46, %v4384_v35  ;;  %v4370_v10 = vpop.permute.xlu0 %4369  ;;  %12052 = vmatprep.subr.bf16.mxu1 %v14419_v23  ;;  %4534 = vmatprep.mubr.f32.mxu0 %v15678_v60  ;;  %v4357_v46 = vld [vmem:[%s15616_s15] sm:$0xff] }
 0x845   : > { %v4407_v41 = vmul.f32 %v4401_v24, %v13024_v17  ;;  %v4408_v4 = vmul.f32 %v4389_v7, %v13020_v15  ;;  %v4390_v6 = vsel %vm649_vm1, %v14439_v1, %v4370_v10  ;;  %v4402_v16 = vsel %vm649_vm1, %v4370_v10, %v14439_v1  ;;  %v11677_v10 = vld [vmem:[%s15616_s15 + $0x48] sm:$0xff] }
 0x846   : > { %v4409_v0 = vmul.f32 %v4402_v16, %v13024_v17  ;;  %v4410_v35 = vmul.f32 %v4390_v6, %v13020_v15  ;;  %11680 = vmatmul.mubr.msk.f32.vlgmr.msra.gmra.mrb[12].mxu1 %vm2030_vm10, %v11678_v51  ;;  %11665 = vmatmul.mubr.msk.f32.gmra.mrb[18].mxu0 %vm2030_vm10, %v11663_v56  ;;  %v4663_v1 = vmul.f32 %v4659_v3, %v13105_v53 }
 0x847   : > { %12054 = vmatpush1.bf16.msra.mxu1 %v14415_v55  ;;  %v4632_v23 = vpop.permute.xlu1 %4631  ;;  %4994 = vmatprep.mubr.f32.mxu1 %v15678_v60  ;;  %v5210_v55 = vsel %vm1326_vm6, %v14433_v2, %v14431_v12  ;;  %v14530_v3 = vpack.c.bf16 %v14271_v59, %v14241_v54  ;;  %v14543_v51 = vpack.c.bf16 %v14252_v34, %v14239_v38 }
 0x848   : > { %v12025_v43 = vpack.c.bf16 %v4409_v0, %v4407_v41  ;;  %v14519_v11 = vpop.permute.xlu0 %5627  ;;  %12056 = vmatprep.subr.bf16.mxu1 %v12015_v57  ;;  %v12023_v61 = vpack.c.bf16 %v4410_v35, %v4408_v4  ;;  %4611 = vmatprep.mubr.f32.mxu0 %v15678_v60  ;;  %v4661_v37 = vsel %vm1066_vm5, %v4632_v23, %v14437_v9 }
 0x849   : > { %v14547_v54 = vpack.c.bf16 %v14323_v58, %v14297_v29  ;;  %v5209_v59 = vsel %vm1326_vm6, %v14377_v22, %v14401_v32  ;;  %v4649_v56 = vsel %vm1066_vm5, %v14437_v9, %v4632_v23  ;;  %v5194_v38 = vsel %vm1326_vm6, %v14431_v12, %v14433_v2 }
 0x84a   : > { %12024 = vmatprep.subr.bf16.mxu0 %v12023_v61  ;;  %11681 = vmatmul.mubr.msk.f32.gmra.mrb[14].mxu1 %vm2030_vm10, %v11679_v47  ;;  %v5216_v34 = vmul.f32 %v5210_v55, %v13138_v63  ;;  %v4667_v9 = vmul.f32 %v4661_v37, %v13105_v53  ;;  %v4668_v12 = vmul.f32 %v4649_v56, %v13067_v40  ;;  %v11669_v56 = vld [vmem:[%s15616_s15 + $0x28] sm:$0xff] }
 0x84b   : > { %12026 = vmatpush1.bf16.msra.mxu0 %v12025_v43  ;;  %12058 = vmatpush1.bf16.msra.mxu1 %v14461_v42  ;;  %v5190_v57 = vpop.permute.xlu1 %5189  ;;  %v14552_v42 = vpack.c.bf16 %v4665_v30, %v4663_v1  ;;  %v5193_v41 = vsel %vm1326_vm6, %v14401_v32, %v14377_v22  ;;  %v5214_v4 = vmul.f32 %v5209_v59, %v13138_v63  ;;  %v11684_v30 = vld [vmem:[%s15616_s15 + $0x60] sm:$0xff] }
 0x84c   : > { %v4634_v19 = vpop.permute.xlu0 %4633  ;;  %12028 = vmatprep.subr.bf16.mxu0 %v14526_v26  ;;  %12060 = vmatprep.subr.bf16.mxu1 %v14530_v3  ;;  %v5215_v50 = vmul.f32 %v5194_v38, %v13167_v18  ;;  %v14599_v35 = vpack.c.bf16 %v14304_v5, %v14295_v44  ;;  %v5195_v22 = vsel %vm1326_vm6, %v14441_v8, %v14435_v28  ;;  %v11668_v5 = vld [vmem:[%s15616_s15 + $0x20] sm:$0xff] }
 0x84d   : > { %v4650_v29 = vsel %vm1066_vm5, %v14443_v20, %v4634_v19  ;;  %v4662_v58 = vsel %vm1066_vm5, %v4634_v19, %v14443_v20  ;;  %5071 = vmatprep.mubr.f32.mxu1 %v15678_v60  ;;  %v4358_v20 = vld [vmem:[%s15616_s15 + $0x8] sm:$0xff]  ;;  %v12067_v32 = vpack.c.bf16 %v5216_v34, %v5214_v4  ;;  %v5213_v23 = vmul.f32 %v5193_v41, %v13167_v18 }
 0x84e   : > { %v4669_v7 = vmul.f32 %v4662_v58, %v13105_v53  ;;  %v4670_v24 = vmul.f32 %v4650_v29, %v13067_v40  ;;  %11666 = vmatmul.mubr.msk.f32.vlgmr.msra.gmra.mrb[16].mxu0 %vm2030_vm10, %v4357_v46  ;;  %11682 = vmatmul.mubr.msk.f32.vlgmr.msra.gmra.mrb[12].mxu1 %vm2030_vm10, %v11676_v25  ;;  %v5211_v47 = vsel %vm1326_vm6, %v14435_v28, %v14441_v8  ;;  %v11685_v19 = vld [vmem:[%s15616_s15 + $0x68] sm:$0xff]  ;;  %v11672_v58 = vld [vmem:[%s15616_s15 + $0x30] sm:$0xff] }
 0x84f   : > { %12030 = vmatpush1.bf16.msra.mxu0 %v14552_v42  ;;  %v14574_v2 = vpop.permute.xlu1 %5625  ;;  %12062 = vmatpush1.bf16.msra.mxu1 %v14543_v51  ;;  %v12069_v43 = vpack.c.bf16 %v5215_v50, %v5213_v23  ;;  %v5217_v28 = vmul.f32 %v5195_v22, %v13167_v18  ;;  %v5218_v55 = vmul.f32 %v5211_v47, %v13138_v63  ;;  %v11710_v23 = vld [vmem:[%s15616_s15 + $0xd0] sm:$0xff] }
 0x850   : > { %v14587_v6 = vpack.c.bf16 %v4669_v7, %v4667_v9  ;;  %v14589_v16 = vpop.permute.xlu0 %5631  ;;  %12064 = vmatprep.subr.bf16.mxu1 %v14547_v54  ;;  %4617 = vmatprep.mubr.f32.mxu0 %v15678_v60  ;;  %v14595_v0 = vpack.c.bf16 %v4670_v24, %v4668_v12  ;;  %v11688_v9 = vld [vmem:[%s15616_s15 + $0x70] sm:$0xff]  ;;  %v11673_v12 = vld [vmem:[%s15616_s15 + $0x38] sm:$0xff]  ;;  %v5524_v41 = vsel %vm1469_vm7, %v14479_v62, %v14472_v52 }
 0x851   : > { %5077 = vmatprep.mubr.f32.mxu1 %v15678_v60  ;;  %v5507_v22 = vsel %vm1469_vm7, %v14403_v49, %v14383_v36  ;;  %v5523_v47 = vsel %vm1469_vm7, %v14383_v36, %v14403_v49 }
 0x852   : > { %11667 = vmatmul.mubr.msk.f32.gmra.mrb[18].mxu0 %vm2030_vm10, %v4358_v20  ;;  %11683 = vmatmul.mubr.msk.f32.gmra.mrb[14].mxu1 %vm2030_vm10, %v11677_v10  ;;  %v11689_v20 = vld [vmem:[%s15616_s15 + $0x78] sm:$0xff]  ;;  %v5508_v10 = vsel %vm1469_vm7, %v14472_v52, %v14479_v62  ;;  %v11694_v62 = vld [vmem:[%s15616_s15 + $0x90] sm:$0xff]  ;;  %v5527_v36 = vmul.f32 %v5507_v22, %v13203_v31 }
 0x853   : > { %12032 = vmatprep.subr.bf16.mxu0 %v14595_v0  ;;  %v14611_v1 = vpop.permute.xlu1 %5629  ;;  %12066 = vmatpush1.bf16.msra.mxu1 %v14599_v35 }
 0x854   : > { %12034 = vmatpush1.bf16.msra.mxu0 %v14587_v6  ;;  %v5192_v44 = vpop.permute.xlu0 %5191  ;;  %12068 = vmatprep.subr.bf16.mxu1 %v12067_v32  ;;  %v5642_v4 = vsel %vm1613_vm8, %v14611_v1, %v14589_v16 }
 0x855   : > { %v5196_v8 = vsel %vm1326_vm6, %v5190_v57, %v5192_v44  ;;  %v5212_v61 = vsel %vm1326_vm6, %v5192_v44, %v5190_v57  ;;  %12036 = vmatprep.subr.bf16.mxu0 %v14530_v3  ;;  %4741 = vmatprep.mubr.f32.mxu0 %v15678_v60  ;;  %v14704_v44 = vmul.f32 %v5508_v10, %v13203_v31 }
 0x856   : > { %v5219_v37 = vmul.f32 %v5196_v8, %v13167_v18  ;;  %v5220_v46 = vmul.f32 %v5212_v61, %v13138_v63  ;;  %5157 = vmatprep.mubr.f32.mxu1 %v15678_v60 }
 0x857   : > { %11670 = vmatmul.mubr.msk.f32.vlgmr.msra.gmra.mrb[16].mxu0 %vm2030_vm10, %v11668_v5  ;;  %11686 = vmatmul.mubr.msk.f32.vlgmr.msra.gmra.mrb[12].mxu1 %vm2030_vm10, %v11684_v30  ;;  %v14632_v25 = vpop.permute.xlu1 %5499  ;;  %v5657_v5 = vsel %vm1613_vm8, %v14519_v11, %v14574_v2  ;;  %v5663_v30 = vmul.f32 %v5642_v4, %v13232_v45 }
 0x858   : > { %v12073_v59 = vpack.c.bf16 %v5219_v37, %v5217_v28  ;;  %12038 = vmatpush1.bf16.msra.mxu0 %v14543_v51  ;;  %12070 = vmatpush1.bf16.msra.mxu1 %v12069_v43  ;;  %v14635_v57 = vpop.permute.xlu0 %5501  ;;  %v12071_v38 = vpack.c.bf16 %v5220_v46, %v5218_v55  ;;  %v12093_v28 = vpack.c.bf16 %v14704_v44, %v5527_v36  ;;  %v15706_v36 = vld [vmem:[#allocation9_spill] sm:$0xff] }
 0x859   : > { %12040 = vmatprep.subr.bf16.mxu0 %v14547_v54  ;;  %4747 = vmatprep.mubr.f32.mxu0 %v15678_v60  ;;  %v5662_v8 = vmul.f32 %v5657_v5, %v13207_v33  ;;  %v5525_v61 = vsel %vm1469_vm7, %v14635_v57, %v14632_v25 }
 0x85a   : > { %5163 = vmatprep.mubr.f32.mxu1 %v15678_v60  ;;  %12072 = vmatprep.subr.bf16.mxu1 %v12071_v38 }
 0x85b   : > { %11671 = vmatmul.mubr.msk.f32.gmra.mrb[18].mxu0 %vm2030_vm10, %v11669_v56  ;;  %11687 = vmatmul.mubr.msk.f32.gmra.mrb[14].mxu1 %vm2030_vm10, %v11685_v19  ;;  %v14648_v34 = vpop.permute.xlu1 %5503 }
 0x85c   : > { %12042 = vmatpush1.bf16.msra.mxu0 %v14599_v35  ;;  %12074 = vmatpush1.bf16.msra.mxu1 %v12073_v59  ;;  %v14651_v29 = vpop.permute.xlu0 %5635 }
 0x85d   : > { %12076 = vmatprep.subr.bf16.mxu0 %v14530_v3  ;;  %12108 = vmatprep.subr.bf16.mxu1 %v12067_v32  ;;  %v5658_v32 = vsel %vm1613_vm8, %v14589_v16, %v14611_v1  ;;  %v5641_v16 = vsel %vm1613_vm8, %v14574_v2, %v14519_v11  ;;  %v5530_v1 = vmul.f32 %v5524_v41, %v13175_v21  ;;  %v11695_v2 = vld [vmem:[%s15616_s15 + $0x98] sm:$0xff] }
 0x85e   : > { %4831 = vmatprep.mubr.f32.mxu0 %v15678_v60  ;;  %5291 = vmatprep.mubr.f32.mxu1 %v15678_v60  ;;  %v5664_v49 = vmul.f32 %v5658_v32, %v13207_v33 }
 0x85f   : > { %11674 = vmatmul.mubr.msk.f32.vlgmr.msra.gmra.mrb[16].mxu0 %vm2030_vm10, %v11672_v58  ;;  %11690 = vmatmul.mubr.msk.f32.vlgmr.msra.gmra.mrb[12].mxu1 %vm2030_vm10, %v11688_v9  ;;  %v5634_v7 = vpop.permute.xlu1 %5633 }
 0x860   : > { %12078 = vmatpush1.bf16.msra.mxu0 %v14543_v51  ;;  %12110 = vmatpush1.bf16.msra.mxu1 %v12069_v43  ;;  %v14665_v24 = vpop.permute.xlu0 %6031  ;;  %v5661_v43 = vmul.f32 %v5641_v16, %v13232_v45  ;;  %v5643_v37 = vsel %vm1613_vm8, %v5634_v7, %v14651_v29  ;;  %v12099_v19 = vpack.c.bf16 %v5664_v49, %v5662_v8  ;;  %v11709_v16 = vld [vmem:[%s15616_s15 + $0xc8] sm:$0xff] }
 0x861   : > { %12080 = vmatprep.subr.bf16.mxu0 %v14547_v54  ;;  %12112 = vmatprep.subr.bf16.mxu1 %v12071_v38  ;;  %v5532_v38 = vmul.f32 %v5525_v61, %v13175_v21  ;;  %v11700_v61 = vld [vmem:[%s15616_s15 + $0xa0] sm:$0xff] }
 0x862   : > { %4837 = vmatprep.mubr.f32.mxu0 %v15678_v60  ;;  %5297 = vmatprep.mubr.f32.mxu1 %v15678_v60 }
 0x863   : > { %11675 = vmatmul.mubr.msk.f32.gmra.mrb[18].mxu0 %vm2030_vm10, %v11673_v12  ;;  %11691 = vmatmul.mubr.msk.f32.gmra.mrb[14].mxu1 %vm2030_vm10, %v11689_v20  ;;  %v5638_v50 = vpop.permute.xlu1 %5637  ;;  %v11708_v12 = vld [vmem:[%s15616_s15 + $0xc0] sm:$0xff] }
 0x864   : > { %12082 = vmatpush1.bf16.msra.mxu0 %v14599_v35  ;;  %12114 = vmatpush1.bf16.msra.mxu1 %v12073_v59  ;;  %v6036_v52 = vpop.permute.xlu0 %6035  ;;  %v5509_v59 = vsel %vm1469_vm7, %v14632_v25, %v14635_v57  ;;  %v5665_v57 = vmul.f32 %v5643_v37, %v13232_v45 }
 0x865   : > { %12084 = vmatprep.subr.bf16.mxu0 %v14526_v26  ;;  %12116 = vmatprep.subr.bf16.mxu1 %v14530_v3  ;;  %v5528_v3 = vmul.f32 %v5523_v47, %v13175_v21  ;;  %v5531_v47 = vmul.f32 %v5509_v59, %v13203_v31 }
 0x866   : > { %5392 = vmatprep.mubr.f32.mxu0 %v15678_v60  ;;  %5840 = vmatprep.mubr.f32.mxu1 %v15678_v60 }
 0x867   : > { %11696 = vmatmul.mubr.msk.f32.vlgmr.msra.gmra.mrb[20].mxu0 %vm2030_vm10, %v11694_v62  ;;  %11712 = vmatmul.mubr.msk.f32.vlgmr.msra.gmra.mrb[16].mxu1 %vm2030_vm10, %v11710_v23  ;;  %v6030_v26 = vpop.permute.xlu1 %6029  ;;  %v12091_v46 = vpack.c.bf16 %v5530_v1, %v5528_v3 }
 0x868   : > { %12086 = vmatpush1.bf16.msra.mxu0 %v14552_v42  ;;  %12118 = vmatpush1.bf16.msra.mxu1 %v14543_v51  ;;  %v5506_v11 = vpop.permute.xlu0 %5505  ;;  %v11711_v51 = vld [vmem:[%s15616_s15 + $0xd8] sm:$0xff]  ;;  %v14740_v42 = vpack.c.bf16 %v5663_v30, %v5661_v43  ;;  %v6045_v1 = vsel %vm1756_vm9, %v6030_v26, %v14665_v24 }
 0x869   : > { %v5526_v55 = vsel %vm1469_vm7, %v5506_v11, %v14648_v34  ;;  %12088 = vmatprep.subr.bf16.mxu0 %v14595_v0  ;;  %12120 = vmatprep.subr.bf16.mxu1 %v14547_v54  ;;  %v5659_v0 = vsel %vm1613_vm8, %v14651_v29, %v5634_v7  ;;  %v5510_v54 = vsel %vm1469_vm7, %v14648_v34, %v5506_v11  ;;  %v11692_v34 = vld [vmem:[%s15616_s15 + $0x80] sm:$0xff] }
 0x86a   : > { %5398 = vmatprep.mubr.f32.mxu0 %v15678_v60  ;;  %5846 = vmatprep.mubr.f32.mxu1 %v15678_v60  ;;  %v5534_v58 = vmul.f32 %v5526_v55, %v13175_v21  ;;  %v5533_v41 = vmul.f32 %v5510_v54, %v13203_v31  ;;  %v11716_v55 = vld [vmem:[%s15616_s15 + $0xe0] sm:$0xff]  ;;  %v11717_v54 = vld [vmem:[%s15616_s15 + $0xe8] sm:$0xff] }
 0x86b   : > { %11697 = vmatmul.mubr.msk.f32.gmra.mrb[22].mxu0 %vm2030_vm10, %v11695_v2  ;;  %v6034_v56 = vpop.permute.xlu1 %6033  ;;  %11713 = vmatmul.mubr.msk.f32.gmra.mrb[18].mxu1 %vm2030_vm10, %v11711_v51  ;;  %v6065_v2 = vmul.f32 %v6045_v1, %v15706_v36 }
 0x86c   : > { %12090 = vmatpush1.bf16.msra.mxu0 %v14587_v6  ;;  %v5640_v25 = vpop.permute.xlu0 %5639  ;;  %v6062_v29 = vsel %vm1756_vm9, %v6036_v52, %v6034_v56  ;;  %12122 = vmatpush1.bf16.msra.mxu1 %v14599_v35  ;;  %v5666_v6 = vmul.f32 %v5659_v0, %v13207_v33  ;;  %v6061_v35 = vsel %vm1756_vm9, %v14665_v24, %v6030_v26 }
 0x86d   : > { %v5644_v9 = vsel %vm1613_vm8, %v5638_v50, %v5640_v25  ;;  %v5660_v7 = vsel %vm1613_vm8, %v5640_v25, %v5638_v50  ;;  %12092 = vmatprep.subr.bf16.mxu0 %v12091_v46  ;;  %12124 = vmatprep.subr.bf16.mxu1 %v12099_v19  ;;  %v6046_v4 = vsel %vm1756_vm9, %v6034_v56, %v6036_v52  ;;  %v11693_v52 = vld [vmem:[%s15616_s15 + $0x88] sm:$0xff]  ;;  %v11705_v25 = vld [vmem:[%s15616_s15 + $0xb8] sm:$0xff] }
 0x86e   : > { %v5667_v20 = vmul.f32 %v5644_v9, %v13232_v45  ;;  %v5668_v10 = vmul.f32 %v5660_v7, %v13207_v33  ;;  %5475 = vmatprep.mubr.f32.mxu0 %v15678_v60  ;;  %5923 = vmatprep.mubr.f32.mxu1 %v15678_v60  ;;  %v6068_v22 = vmul.f32 %v6062_v29, %v13240_v48 }
 0x86f   : > { %v6038_v50 = vpop.permute.xlu1 %6037  ;;  %11698 = vmatmul.mubr.msk.f32.vlgmr.msra.gmra.mrb[20].mxu0 %vm2030_vm10, %v11692_v34  ;;  %11714 = vmatmul.mubr.msk.f32.vlgmr.msra.gmra.mrb[16].mxu1 %vm2030_vm10, %v11708_v12  ;;  %v12095_v62 = vpack.c.bf16 %v5534_v58, %v5532_v38  ;;  %v6066_v5 = vmul.f32 %v6061_v35, %v13240_v48  ;;  %v12097_v30 = vpack.c.bf16 %v5533_v41, %v5531_v47  ;;  %v11720_v58 = vld [vmem:[%s15616_s15 + $0xf0] sm:$0xff] }
 0x870   : > { %v6040_v32 = vpop.permute.xlu0 %6039  ;;  %v12103_v23 = vpack.c.bf16 %v5668_v10, %v5666_v6  ;;  %v12105_v44 = vpack.c.bf16 %v5667_v20, %v5665_v57  ;;  %12094 = vmatpush1.bf16.msra.mxu0 %v12093_v28  ;;  %12126 = vmatpush1.bf16.msra.mxu1 %v14740_v42  ;;  %v6067_v49 = vmul.f32 %v6046_v4, %v15706_v36  ;;  %v11721_v57 = vld [vmem:[%s15616_s15 + $0xf8] sm:$0xff] }
 0x871   : > { %12096 = vmatprep.subr.bf16.mxu0 %v12095_v62  ;;  %5481 = vmatprep.mubr.f32.mxu0 %v15678_v60  ;;  %v6063_v3 = vsel %vm1756_vm9, %v6040_v32, %v6038_v50  ;;  %v6047_v11 = vsel %vm1756_vm9, %v6038_v50, %v6040_v32  ;;  %v12131_v26 = vpack.c.bf16 %v6068_v22, %v6066_v5 }
 0x872   : > { %5929 = vmatprep.mubr.f32.mxu1 %v15678_v60  ;;  %12128 = vmatprep.subr.bf16.mxu1 %v12103_v23  ;;  %v6070_v51 = vmul.f32 %v6063_v3, %v13240_v48  ;;  %v12133_v59 = vpack.c.bf16 %v6067_v49, %v6065_v2  ;;  %v6069_v0 = vmul.f32 %v6047_v11, %v15706_v36 }
 0x873   : > { %v6042_v43 = vpop.permute.xlu1 %6041  ;;  %11699 = vmatmul.mubr.msk.f32.gmra.mrb[22].mxu0 %vm2030_vm10, %v11693_v52  ;;  %11715 = vmatmul.mubr.msk.f32.gmra.mrb[18].mxu1 %vm2030_vm10, %v11709_v16 }
 0x874   : > { %v6044_v24 = vpop.permute.xlu0 %6043  ;;  %12098 = vmatpush1.bf16.msra.mxu0 %v12097_v30  ;;  %12130 = vmatpush1.bf16.msra.mxu1 %v12105_v44 }
 0x875   : > { %v6048_v28 = vsel %vm1756_vm9, %v6042_v43, %v6044_v24  ;;  %v6064_v8 = vsel %vm1756_vm9, %v6044_v24, %v6042_v43  ;;  %12100 = vmatprep.subr.bf16.mxu0 %v12099_v19  ;;  %12132 = vmatprep.subr.bf16.mxu1 %v12131_v26  ;;  %v11701_v19 = vld [vmem:[%s15616_s15 + $0xa8] sm:$0xff] }
 0x876   : > { %v6071_v37 = vmul.f32 %v6048_v28, %v15706_v36  ;;  %v6072_v46 = vmul.f32 %v6064_v8, %v13240_v48  ;;  %5605 = vmatprep.mubr.f32.mxu0 %v15678_v60  ;;  %6009 = vmatprep.mubr.f32.mxu1 %v15678_v60 }
 0x877   : > { %11702 = vmatmul.mubr.msk.f32.vlgmr.msra.gmra.mrb[20].mxu0 %vm2030_vm10, %v11700_v61  ;;  %11718 = vmatmul.mubr.msk.f32.vlgmr.msra.gmra.mrb[16].mxu1 %vm2030_vm10, %v11716_v55 }
 0x878   : > { %v12135_v56 = vpack.c.bf16 %v6072_v46, %v6070_v51  ;;  %v12137_v38 = vpack.c.bf16 %v6071_v37, %v6069_v0  ;;  %12102 = vmatpush1.bf16.msra.mxu0 %v14740_v42  ;;  %12134 = vmatpush1.bf16.msra.mxu1 %v12133_v59  ;;  %v11704_v42 = vld [vmem:[%s15616_s15 + $0xb0] sm:$0xff] }
 0x879   : > { %12104 = vmatprep.subr.bf16.mxu0 %v12103_v23  ;;  %5611 = vmatprep.mubr.f32.mxu0 %v15678_v60 }
 0x87a   : > { %6015 = vmatprep.mubr.f32.mxu1 %v15678_v60  ;;  %12136 = vmatprep.subr.bf16.mxu1 %v12135_v56 }
 0x87b   : > { %11703 = vmatmul.mubr.msk.f32.gmra.mrb[22].mxu0 %vm2030_vm10, %v11701_v19  ;;  %11719 = vmatmul.mubr.msk.f32.gmra.mrb[18].mxu1 %vm2030_vm10, %v11717_v54 }
 0x87c   : > { %12106 = vmatpush1.bf16.msra.mxu0 %v12105_v44  ;;  %12138 = vmatpush1.bf16.msra.mxu1 %v12137_v38 }
 0x87d   : > { %5739 = vmatprep.mubr.f32.mxu0 %v15678_v60  ;;  %6143 = vmatprep.mubr.f32.mxu1 %v15678_v60 }
 0x87f   : > { %11706 = vmatmul.mubr.msk.f32.vlgmr.msra.gmra.mrb[20].mxu0 %vm2030_vm10, %v11704_v42  ;;  %11722 = vmatmul.mubr.msk.f32.vlgmr.msra.gmra.mrb[16].mxu1 %vm2030_vm10, %v11720_v58 }
 0x880   : > { %5745 = vmatprep.mubr.f32.mxu0 %v15678_v60  ;;  %6149 = vmatprep.mubr.f32.mxu1 %v15678_v60 }
 0x883   : > { %11707 = vmatmul.mubr.msk.f32.gmra.mrb[22].mxu0 %vm2030_vm10, %v11705_v25  ;;  %11723 = vmatmul.mubr.msk.f32.gmra.mrb[18].mxu1 %vm2030_vm10, %v11721_v57 }
 0x884   : > { %6291 = vmatprep.mubr.f32.mxu0 %v15678_v60  ;;  %6659 = vmatprep.mubr.f32.mxu1 %v15678_v60  ;;  %v4853_v35 = vpop.permute.xlu1 %4852 }
 0x885   : > { %v4858_v62 = vpop.permute.xlu0 %4857 }
 0x932   : > { %v14850_v29 = vpop.f32.mrb[16].mxu0  ;;  %v5293_v9 = vpop.f32.mrb[12].mxu1 }
 0x933   : > { %v14852_v7 = vpop.f32.mrb[17].mxu0  ;;  %v5295_v34 = vpop.f32.mrb[13].mxu1  ;;  %v5308_v56 = vadd.f32 %v5293_v9, %v4853_v35  ;;  %v4860_v57 = vadd.f32 %v4853_v35, %v14850_v29 }
 0x934   : > { %v5309_v0 = vadd.f32 %v5295_v34, %v4853_v35  ;;  %v4861_v34 = vadd.f32 %v4853_v35, %v14852_v7 }
 0x935   : > { %v14886_v54 = vmax.f32 %v5308_v56, 0.0  ;;  %v14903_v9 = vmax.f32 %v4860_v57, 0.0  ;;  %v11724_v56 = vld [vmem:[%s15618_s17 + $0x4] sm:$0x7] }
 0x936   : > { %v14854_v12 = vpop.f32.mrb[18].mxu0  ;;  %v5299_v6 = vpop.f32.mrb[14].mxu1  ;;  %v14881_v38 = vmax.f32 %v5309_v0, 0.0 }
 0x937   : > { %v14856_v20 = vpop.f32.mrb[19].mxu0  ;;  %v5301_v10 = vpop.f32.mrb[15].mxu1  ;;  %v5310_v42 = vadd.f32 %v5299_v6, %v4858_v62  ;;  %v4862_v6 = vadd.f32 %v4858_v62, %v14854_v12  ;;  %v6168_v12 = vld [vmem:[%s15619_s18] sm:$0x7] }
 0x938   : > { %v5311_v19 = vadd.f32 %v5301_v10, %v4858_v62  ;;  %v14910_v10 = vmax.f32 %v4861_v34, 0.0  ;;  %v4863_v29 = vadd.f32 %v4858_v62, %v14856_v20 }
 0x939   : > { %v14894_v25 = vmax.f32 %v5310_v42, 0.0 }
 0x93a   : > { %v14888_v58 = vmax.f32 %v5311_v19, 0.0  ;;  %v14919_v7 = vmax.f32 %v4863_v29, 0.0 }
 0x952   : > { %v5741_v41 = vpop.f32.mrb[20].mxu0  ;;  %v6145_v4 = vpop.f32.mrb[16].mxu1 }
 0x953   : > { %v5756_v50 = vadd.f32 %v5741_v41, %v4853_v35  ;;  %v5743_v22 = vpop.f32.mrb[21].mxu0  ;;  %v6147_v32 = vpop.f32.mrb[17].mxu1  ;;  %v6160_v47 = vadd.f32 %v6145_v4, %v4853_v35  ;;  %v14912_v41 = vmax.f32 %v4862_v6, 0.0  ;;  %v11732_v6 = vld [vmem:[%s15618_s17 + $0x14] sm:$0x7] }
 0x954   : > { %v5757_v44 = vadd.f32 %v5743_v22, %v4853_v35  ;;  %v6161_v52 = vadd.f32 %v6147_v32, %v4853_v35 }
 0x955   : > { %v14858_v23 = vmax.f32 %v5756_v50, 0.0  ;;  %v6164_v24 = vmax.f32 %v6160_v47, 0.0 }
 0x956   : > { %v5747_v16 = vpop.f32.mrb[22].mxu0  ;;  %v6151_v1 = vpop.f32.mrb[18].mxu1  ;;  %v5761_v28 = vmax.f32 %v5757_v44, 0.0  ;;  %v6165_v8 = vmax.f32 %v6161_v52, 0.0 }
 0x957   : > { %v5758_v5 = vadd.f32 %v5747_v16, %v4858_v62  ;;  %v6162_v30 = vadd.f32 %v6151_v1, %v4858_v62  ;;  %v6153_v49 = vpop.f32.mrb[19].mxu1  ;;  %6208 = vrot.lane.b32.xlu1 %v14858_v23, %s12756_s25  ;;  %v5749_v3 = vpop.f32.mrb[23].mxu0 }
 0x958   : > { %v6163_v43 = vadd.f32 %v6153_v49, %v4858_v62  ;;  %v5759_v11 = vadd.f32 %v5749_v3, %v4858_v62 }
 0x959   : > { %v5762_v26 = vmax.f32 %v5758_v5, 0.0  ;;  %v6166_v2 = vmax.f32 %v6162_v30, 0.0 }
 0x95a   : > { %v6167_v61 = vmax.f32 %v6163_v43, 0.0  ;;  %v5763_v55 = vmax.f32 %v5759_v11, 0.0 }
 0x95b   : > { %v14863_v51 = vpack.c.bf16 %v5762_v26, %v14858_v23  ;;  %v14865_v37 = vpack.c.bf16 %v6166_v2, %v6164_v24  ;;  %6576 = vrot.lane.b32.xlu1 %v6164_v24, %s12756_s25  ;;  %6210 = vrot.lane.b32.xlu0 %v5762_v26, %s12756_s25 }
 0x95c   : > { %v14869_v46 = vpack.c.bf16 %v6167_v61, %v6165_v8  ;;  %v14871_v59 = vpack.c.bf16 %v5763_v55, %v5761_v28 }
 0x95f   : > { %6200 = vrot.lane.b32.xlu1 %v5761_v28, %s12756_s25  ;;  %6578 = vrot.lane.b32.xlu0 %v6166_v2, %s12756_s25 }
 0x963   : > { %6570 = vrot.lane.b32.xlu1 %v6165_v8, %s12756_s25  ;;  %6202 = vrot.lane.b32.xlu0 %v5763_v55, %s12756_s25 }
 0x967   : > { %6180 = vrot.lane.b32.xlu1 %v6164_v24, %s12757_s3  ;;  %6572 = vrot.lane.b32.xlu0 %v6167_v61, %s12756_s25 }
 0x96b   : > { %6172 = vrot.lane.b32.xlu1 %v6165_v8, %s12757_s3  ;;  %6182 = vrot.lane.b32.xlu0 %v6166_v2, %s12757_s3 }
 0x96f   : > { %6376 = vrot.lane.b32.xlu1 %v14881_v38, %s15700_s27  ;;  %6174 = vrot.lane.b32.xlu0 %v6167_v61, %s12757_s3 }
 0x973   : > { %6384 = vrot.lane.b32.xlu1 %v14886_v54, %s15700_s27  ;;  %6378 = vrot.lane.b32.xlu0 %v14888_v58, %s15700_s27 }
 0x977   : > { %7218 = vrot.lane.b32.xlu1 %v5761_v28, %s12758_s26  ;;  %6386 = vrot.lane.b32.xlu0 %v14894_v25, %s15700_s27 }
 0x97b   : > { %7224 = vrot.lane.b32.xlu1 %v14858_v23, %s12758_s26  ;;  %7220 = vrot.lane.b32.xlu0 %v5763_v55, %s12758_s26 }
 0x97f   : > { %7470 = vrot.lane.b32.xlu1 %v14903_v9, %s12760_s28  ;;  %7226 = vrot.lane.b32.xlu0 %v5762_v26, %s12758_s26 }
 0x983   : > { %7474 = vrot.lane.b32.xlu1 %v14912_v41, %s12760_s28  ;;  %7472 = vrot.lane.b32.xlu0 %v14910_v10, %s12760_s28 }
 0x987   : > { %7730 = vrot.lane.b32.xlu1 %v6165_v8, %s15700_s27  ;;  %7476 = vrot.lane.b32.xlu0 %v14919_v7, %s12760_s28 }
 0x98b   : > { %7736 = vrot.lane.b32.xlu1 %v6164_v24, %s15700_s27  ;;  %7732 = vrot.lane.b32.xlu0 %v6167_v61, %s15700_s27 }
 0x98f   : > { %8770 = vrot.lane.b32.xlu1 %v14858_v23, %s12760_s28  ;;  %7738 = vrot.lane.b32.xlu0 %v6166_v2, %s15700_s27 }
 0x993   : > { %8774 = vrot.lane.b32.xlu1 %v5762_v26, %s12760_s28  ;;  %8772 = vrot.lane.b32.xlu0 %v5761_v28, %s12760_s28 }
 0x997   : > { %10275 = vrot.lane.b32.xlu1 %v14886_v54, %s12761_s29  ;;  %8776 = vrot.lane.b32.xlu0 %v5763_v55, %s12760_s28 }
 0x99b   : > { %10279 = vrot.lane.b32.xlu1 %v14894_v25, %s12761_s29  ;;  %10277 = vrot.lane.b32.xlu0 %v14881_v38, %s12761_s29 }
 0x99f   : > { %10374 = vrot.lane.b32.xlu1 %v14903_v9, %s15677_s1  ;;  %10281 = vrot.lane.b32.xlu0 %v14888_v58, %s12761_s29 }
 0x9a3   : > { %10378 = vrot.lane.b32.xlu1 %v14912_v41, %s15677_s1  ;;  %10376 = vrot.lane.b32.xlu0 %v14910_v10, %s15677_s1 }
 0x9a7   : > { %10708 = vrot.lane.b32.xlu1 %v14886_v54, %s15677_s1  ;;  %10380 = vrot.lane.b32.xlu0 %v14919_v7, %s15677_s1 }
 0x9ab   : > { %10712 = vrot.lane.b32.xlu1 %v14894_v25, %s15677_s1  ;;  %10710 = vrot.lane.b32.xlu0 %v14881_v38, %s15677_s1 }
 0x9af   : > { %11354 = vrot.lane.b32.xlu1 %v14903_v9, %s15695_s21  ;;  %10714 = vrot.lane.b32.xlu0 %v14888_v58, %s15677_s1 }
 0x9b3   : > { %11358 = vrot.lane.b32.xlu1 %v14912_v41, %s15695_s21  ;;  %11356 = vrot.lane.b32.xlu0 %v14910_v10, %s15695_s21 }
 0x9b7   : > { %6556 = vperm.xlu1 %12677, %v6168_v12   ;;  %11360 = vrot.lane.b32.xlu0 %v14919_v7, %s15695_s21 }
 0x9c9   : > { %v6209_v20 = vpop.permute.xlu1 %6208 }
 0x9cd   : > { %v6577_v35 = vpop.permute.xlu1 %6576  ;;  %v6211_v4 = vpop.permute.xlu0 %6210 }
 0x9d1   : > { %v6201_v50 = vpop.permute.xlu1 %6200  ;;  %v6579_v22 = vpop.permute.xlu0 %6578 }
 0x9d2   : > { %v6212_v32 = vsel %vm678_vm0, %v6209_v20, %v6201_v50  ;;  %v6218_v62 = vsel %vm678_vm0, %v6201_v50, %v6209_v20  ;;  %v15008_v20 = vpack.c.bf16 %v14919_v7, %v14910_v10 }
 0x9d3   : > { %v6220_v16 = vmul.f32 %v6218_v62, %v13017_v14  ;;  %v6221_v1 = vmul.f32 %v6212_v32, %v13014_v13 }
 0x9d5   : > { %v6571_v23 = vpop.permute.xlu1 %6570  ;;  %v6203_v47 = vpop.permute.xlu0 %6202 }
 0x9d6   : > { %v6213_v44 = vsel %vm678_vm0, %v6211_v4, %v6203_v47  ;;  %v6219_v52 = vsel %vm678_vm0, %v6203_v47, %v6211_v4  ;;  %v6580_v49 = vsel %vm678_vm0, %v6577_v35, %v6571_v23  ;;  %v6586_v3 = vsel %vm678_vm0, %v6571_v23, %v6577_v35 }
 0x9d7   : > { %v6222_v5 = vmul.f32 %v6219_v52, %v13017_v14  ;;  %v6223_v30 = vmul.f32 %v6213_v44, %v13014_v13  ;;  %v6588_v8 = vmul.f32 %v6586_v3, %v13017_v14  ;;  %v6589_v61 = vmul.f32 %v6580_v49, %v13014_v13 }
 0x9d9   : > { %v14977_v43 = vpack.c.bf16 %v6222_v5, %v6220_v16  ;;  %v6181_v11 = vpop.permute.xlu1 %6180  ;;  %v6573_v24 = vpop.permute.xlu0 %6572  ;;  %v14979_v26 = vpack.c.bf16 %v6223_v30, %v6221_v1  ;;  %v15030_v16 = vpack.c.bf16 %v14912_v41, %v14903_v9  ;;  %v15034_v30 = vpack.c.bf16 %v14888_v58, %v14881_v38 }
 0x9da   : > { %v6581_v2 = vsel %vm678_vm0, %v6579_v22, %v6573_v24  ;;  %v6587_v28 = vsel %vm678_vm0, %v6573_v24, %v6579_v22 }
 0x9db   : > { %v6590_v55 = vmul.f32 %v6587_v28, %v13017_v14  ;;  %v6591_v0 = vmul.f32 %v6581_v2, %v13014_v13  ;;  %12140 = vmatprep.subr.bf16.mxu0 %v14979_v26 }
 0x9dc   : > { %12142 = vmatpush1.bf16.msra.mxu0 %v14977_v43 }
 0x9dd   : > { %v14992_v19 = vpack.c.bf16 %v6590_v55, %v6588_v8  ;;  %v6173_v42 = vpop.permute.xlu1 %6172  ;;  %v6183_v57 = vpop.permute.xlu0 %6182  ;;  %v14994_v34 = vpack.c.bf16 %v6591_v0, %v6589_v61  ;;  %v11727_v61 = vld [vmem:[%s15618_s17 + $0x8] sm:$0x7]  ;;  %v11735_v55 = vld [vmem:[%s15618_s17 + $0x18] sm:$0x7] }
 0x9de   : > { %v6184_v13 = vsel %vm649_vm1, %v6181_v11, %v6173_v42  ;;  %v6190_v14 = vsel %vm649_vm1, %v6173_v42, %v6181_v11 }
 0x9df   : > { %12156 = vmatprep.subr.bf16.mxu1 %v14994_v34  ;;  %11725 = vmatmul.mubr.msk.f32.vlgmr.msra.gmra.mrb[24].mxu0 %vm678_vm0, %v11724_v56  ;;  %v6192_v50 = vmul.f32 %v6190_v14, %v13024_v17  ;;  %v6193_v22 = vmul.f32 %v6184_v13, %v13020_v15  ;;  %v15064_v56 = vpack.c.bf16 %v14894_v25, %v14886_v54 }
 0x9e0   : > { %12158 = vmatpush1.bf16.msra.mxu1 %v14992_v19  ;;  %6365 = vmatprep.mubr.f32.mxu0 %v15678_v60 }
 0x9e1   : > { %v6377_v29 = vpop.permute.xlu1 %6376  ;;  %12160 = vmatprep.subr.bf16.mxu1 %v14979_v26  ;;  %v6175_v12 = vpop.permute.xlu0 %6174 }
 0x9e2   : > { %v6185_v35 = vsel %vm649_vm1, %v6183_v57, %v6175_v12  ;;  %v6191_v4 = vsel %vm649_vm1, %v6175_v12, %v6183_v57  ;;  %v11729_v12 = vld [vmem:[%s15618_s17 + $0xc] sm:$0x7] }
 0x9e3   : > { %v6194_v32 = vmul.f32 %v6191_v4, %v13024_v17  ;;  %v6195_v62 = vmul.f32 %v6185_v35, %v13020_v15  ;;  %11733 = vmatmul.mubr.msk.f32.vlgmr.msra.gmra.mrb[20].mxu1 %vm678_vm0, %v11732_v6  ;;  %v6169_v15 = vld [vmem:[%s15618_s17] sm:$0x7]  ;;  %v11731_v17 = vld [vmem:[%s15618_s17 + $0x10] sm:$0x7]  ;;  %v11737_v35 = vld [vmem:[%s15618_s17 + $0x1c] sm:$0x7] }
 0x9e4   : > { %12162 = vmatpush1.bf16.msra.mxu1 %v14977_v43  ;;  %6733 = vmatprep.mubr.f32.mxu1 %v15678_v60 }
 0x9e5   : > { %v12145_v10 = vpack.c.bf16 %v6194_v32, %v6192_v50  ;;  %v6385_v7 = vpop.permute.xlu1 %6384  ;;  %v6379_v23 = vpop.permute.xlu0 %6378  ;;  %12164 = vmatprep.subr.bf16.mxu1 %v15008_v20  ;;  %v12143_v47 = vpack.c.bf16 %v6195_v62, %v6193_v22  ;;  %v11749_v22 = vld [vmem:[%s15618_s17 + $0x14] sm:$0x7] }
 0x9e6   : > { %v6394_v44 = vsel %vm1066_vm5, %v6377_v29, %v6385_v7  ;;  %v6388_v52 = vsel %vm1066_vm5, %v6385_v7, %v6377_v29  ;;  %v6904_v7 = vld [vmem:[%s15618_s17] sm:$0x7] }
 0x9e7   : > { %12144 = vmatprep.subr.bf16.mxu0 %v12143_v47  ;;  %v6396_v49 = vmul.f32 %v6394_v44, %v13105_v53  ;;  %v6397_v24 = vmul.f32 %v6388_v52, %v13067_v40 }
 0x9e8   : > { %12146 = vmatpush1.bf16.msra.mxu0 %v12145_v10 }
 0x9e9   : > { %v7219_v1 = vpop.permute.xlu1 %7218  ;;  %v6387_v5 = vpop.permute.xlu0 %6386 }
 0x9ea   : > { %v6389_v3 = vsel %vm1066_vm5, %v6387_v5, %v6379_v23  ;;  %v6395_v11 = vsel %vm1066_vm5, %v6379_v23, %v6387_v5  ;;  %v11752_v5 = vld [vmem:[%s15618_s17 + $0x18] sm:$0x7] }
 0x9eb   : > { %v6398_v2 = vmul.f32 %v6395_v11, %v13105_v53  ;;  %v6399_v28 = vmul.f32 %v6389_v3, %v13067_v40  ;;  %11726 = vmatmul.mubr.msk.f32.vlgmr.msra.gmra.mrb[24].mxu0 %vm678_vm0, %v6169_v15  ;;  %11734 = vmatmul.mubr.msk.f32.vlgmr.msra.gmra.mrb[20].mxu1 %vm678_vm0, %v11731_v17 }
 0x9ec   : > { %12166 = vmatpush1.bf16.msra.mxu1 %v15030_v16  ;;  %6467 = vmatprep.mubr.f32.mxu0 %v15678_v60 }
 0x9ed   : > { %v15046_v38 = vpack.c.bf16 %v6398_v2, %v6396_v49  ;;  %12168 = vmatprep.subr.bf16.mxu1 %v15034_v30  ;;  %v7225_v58 = vpop.permute.xlu1 %7224  ;;  %v7221_v9 = vpop.permute.xlu0 %7220  ;;  %v15049_v41 = vpack.c.bf16 %v6399_v28, %v6397_v24  ;;  %6809 = vmatprep.mubr.f32.mxu1 %v15678_v60  ;;  %v11745_v28 = vld [vmem:[%s15618_s17 + $0xc] sm:$0x7] }
 0x9ee   : > { %v7228_v8 = vsel %vm922_vm3, %v7225_v58, %v7219_v1  ;;  %v7234_v6 = vsel %vm922_vm3, %v7219_v1, %v7225_v58  ;;  %v11743_v1 = vld [vmem:[%s15618_s17 + $0x8] sm:$0x7]  ;;  %v11754_v58 = vld [vmem:[%s15618_s17 + $0x1c] sm:$0x7] }
 0x9ef   : > { %12148 = vmatprep.subr.bf16.mxu0 %v15049_v41  ;;  %v7237_v57 = vmul.f32 %v7228_v8, %v13034_v27  ;;  %v7236_v29 = vmul.f32 %v7234_v6, %v13063_v39  ;;  %v11757_v6 = vld [vmem:[%s15618_s17 + $0x20] sm:$0x7] }
 0x9f0   : > { %12150 = vmatpush1.bf16.msra.mxu0 %v15046_v38 }
 0x9f1   : > { %v7227_v0 = vpop.permute.xlu0 %7226  ;;  %12152 = vmatprep.subr.bf16.mxu0 %v15008_v20  ;;  %v7471_v4 = vpop.permute.xlu1 %7470 }
 0x9f2   : > { %v7229_v42 = vsel %vm922_vm3, %v7227_v0, %v7221_v9  ;;  %v7235_v13 = vsel %vm922_vm3, %v7221_v9, %v7227_v0 }
 0x9f3   : > { %v7239_v14 = vmul.f32 %v7229_v42, %v13034_v27  ;;  %11728 = vmatmul.mubr.msk.f32.vlgmr.msra.gmra.mrb[24].mxu0 %vm678_vm0, %v11727_v61  ;;  %11736 = vmatmul.mubr.msk.f32.vlgmr.msra.gmra.mrb[20].mxu1 %vm678_vm0, %v11735_v55  ;;  %v7238_v25 = vmul.f32 %v7235_v13, %v13063_v39  ;;  %v11740_v39 = vld [vmem:[%s15618_s17 + $0x4] sm:$0x7]  ;;  %v11767_v55 = vld [vmem:[%s15618_s17 + $0x34] sm:$0x7] }
 0x9f4   : > { %12170 = vmatpush1.bf16.msra.mxu1 %v15064_v56  ;;  %12154 = vmatpush1.bf16.msra.mxu0 %v15030_v16  ;;  %v11758_v61 = vld [vmem:[%s15618_s17 + $0x24] sm:$0x7] }
 0x9f5   : > { %12172 = vmatprep.subr.bf16.mxu0 %v14994_v34  ;;  %v12187_v54 = vpack.c.bf16 %v7239_v14, %v7237_v57  ;;  %6545 = vmatprep.mubr.f32.mxu0 %v15678_v60  ;;  %v7473_v27 = vpop.permute.xlu0 %7472  ;;  %v12189_v50 = vpack.c.bf16 %v7238_v25, %v7236_v29  ;;  %v7475_v62 = vpop.permute.xlu1 %7474 }
 0x9f6   : > { %6887 = vmatprep.mubr.f32.mxu1 %v15678_v60  ;;  %v7478_v44 = vsel %vm1326_vm6, %v7471_v4, %v7473_v27 }
 0x9f7   : > { %12188 = vmatprep.subr.bf16.mxu1 %v12187_v54  ;;  %v7488_v17 = vmul.f32 %v7478_v44, %v13167_v18  ;;  %v11766_v54 = vld [vmem:[%s15618_s17 + $0x30] sm:$0x7] }
 0x9f9   : > { %v7477_v32 = vpop.permute.xlu0 %7476  ;;  %v7731_v49 = vpop.permute.xlu1 %7730 }
 0x9fa   : > { %v7487_v10 = vsel %vm1326_vm6, %v7477_v32, %v7475_v62  ;;  %v7479_v23 = vsel %vm1326_vm6, %v7475_v62, %v7477_v32 }
 0x9fb   : > { %11730 = vmatmul.mubr.msk.f32.vlgmr.msra.gmra.mrb[24].mxu0 %vm678_vm0, %v11729_v12  ;;  %11738 = vmatmul.mubr.msk.f32.vlgmr.msra.gmra.mrb[20].mxu1 %vm678_vm0, %v11737_v35  ;;  %v7490_v52 = vmul.f32 %v7479_v23, %v13167_v18  ;;  %v11763_v12 = vld [vmem:[%s15618_s17 + $0x2c] sm:$0x7]  ;;  %v11772_v35 = vld [vmem:[%s15618_s17 + $0x3c] sm:$0x7] }
 0x9fc   : > { %12174 = vmatpush1.bf16.msra.mxu0 %v14992_v19  ;;  %12190 = vmatpush1.bf16.msra.mxu1 %v12189_v50  ;;  %v11776_v50 = vld [vmem:[%s15618_s17 + $0x24] sm:$0x7] }
 0x9fd   : > { %12176 = vmatprep.subr.bf16.mxu0 %v14979_v26  ;;  %12192 = vmatprep.subr.bf16.mxu1 %v14994_v34  ;;  %v7486_v26 = vsel %vm1326_vm6, %v7473_v27, %v7471_v4  ;;  %v7491_v34 = vmul.f32 %v7487_v10, %v13138_v63  ;;  %v7733_v15 = vpop.permute.xlu0 %7732  ;;  %v15137_v3 = vpack.c.bf16 %v7490_v52, %v7488_v17  ;;  %v7737_v24 = vpop.permute.xlu1 %7736  ;;  %v11770_v27 = vld [vmem:[%s15618_s17 + $0x38] sm:$0x7] }
 0x9fe   : > { %6973 = vmatprep.mubr.f32.mxu0 %v15678_v60  ;;  %7307 = vmatprep.mubr.f32.mxu1 %v15678_v60  ;;  %v7740_v9 = vsel %vm1066_vm5, %v7737_v24, %v7731_v49  ;;  %v11788_v17 = vld [vmem:[%s15618_s17 + $0x38] sm:$0x7] }
 0x9ff   : > { %11741 = vmatmul.mubr.msk.f32.vlgmr.msra.gmra.mrb[26].mxu0 %vm678_vm0, %v11740_v39  ;;  %11750 = vmatmul.mubr.msk.f32.vlgmr.msra.gmra.mrb[22].mxu1 %vm678_vm0, %v11749_v22  ;;  %v7749_v0 = vmul.f32 %v7740_v9, %v13067_v40  ;;  %v11785_v39 = vld [vmem:[%s15618_s17 + $0x34] sm:$0x7] }
 0xa00   : > { %12178 = vmatpush1.bf16.msra.mxu0 %v14977_v43  ;;  %12194 = vmatpush1.bf16.msra.mxu1 %v14992_v19  ;;  %v11748_v43 = vld [vmem:[%s15618_s17 + $0x10] sm:$0x7]  ;;  %v7489_v19 = vmul.f32 %v7486_v26, %v13138_v63 }
 0xa01   : > { %12180 = vmatprep.subr.bf16.mxu0 %v15008_v20  ;;  %12196 = vmatprep.subr.bf16.mxu1 %v15034_v30  ;;  %v7739_v11 = vpop.permute.xlu0 %7738  ;;  %v8771_v4 = vpop.permute.xlu1 %8770 }
 0xa02   : > { %7047 = vmatprep.mubr.f32.mxu0 %v15678_v60  ;;  %7381 = vmatprep.mubr.f32.mxu1 %v15678_v60  ;;  %v15120_v47 = vpack.c.bf16 %v7491_v34, %v7489_v19  ;;  %v7741_v2 = vsel %vm1066_vm5, %v7739_v11, %v7733_v15  ;;  %v7747_v42 = vsel %vm1066_vm5, %v7733_v15, %v7739_v11  ;;  %v11775_v34 = vld [vmem:[%s15618_s17 + $0x20] sm:$0x7]  ;;  %v11779_v15 = vld [vmem:[%s15618_s17 + $0x28] sm:$0x7]  ;;  %v11802_v11 = vld [vmem:[%s15618_s17 + $0x14] sm:$0x7] }
 0xa03   : > { %v7751_v8 = vmul.f32 %v7741_v2, %v13067_v40  ;;  %v7746_v40 = vsel %vm1066_vm5, %v7731_v49, %v7737_v24  ;;  %v7750_v13 = vmul.f32 %v7747_v42, %v13105_v53  ;;  %v11793_v49 = vld [vmem:[%s15618_s17 + $0x4] sm:$0x7]  ;;  %v11801_v24 = vld [vmem:[%s15618_s17 + $0x10] sm:$0x7]  ;;  %v11805_v2 = vld [vmem:[%s15618_s17 + $0x18] sm:$0x7] }
 0xa04   : > { %v7748_v14 = vmul.f32 %v7746_v40, %v13105_v53  ;;  %v11761_v53 = vld [vmem:[%s15618_s17 + $0x28] sm:$0x7]  ;;  %v11822_v42 = vld [vmem:[%s15618_s17 + $0x18] sm:$0x7] }
 0xa05   : > { %v15174_v57 = vpack.c.bf16 %v7751_v8, %v7749_v0  ;;  %v8773_v29 = vpop.permute.xlu0 %8772  ;;  %v8775_v32 = vpop.permute.xlu1 %8774  ;;  %v11819_v8 = vld [vmem:[%s15618_s17 + $0x14] sm:$0x7]  ;;  %v11813_v0 = vld [vmem:[%s15618_s17 + $0x8] sm:$0x7] }
 0xa06   : > { %v15191_v25 = vpack.c.bf16 %v7750_v13, %v7748_v14  ;;  %v8786_v10 = vsel %vm1326_vm6, %v8773_v29, %v8771_v4  ;;  %v8778_v44 = vsel %vm1326_vm6, %v8771_v4, %v8773_v29 }
 0xa07   : > { %11742 = vmatmul.mubr.msk.f32.vlgmr.msra.gmra.mrb[26].mxu0 %vm678_vm0, %v6904_v7  ;;  %11751 = vmatmul.mubr.msk.f32.vlgmr.msra.gmra.mrb[22].mxu1 %vm678_vm0, %v11748_v43  ;;  %v11784_v7 = vld [vmem:[%s15618_s17 + $0x30] sm:$0x7]  ;;  %v8789_v43 = vmul.f32 %v8786_v10, %v13138_v63  ;;  %v8788_v52 = vmul.f32 %v8778_v44, %v13167_v18 }
 0xa08   : > { %12182 = vmatpush1.bf16.msra.mxu0 %v15030_v16  ;;  %12198 = vmatpush1.bf16.msra.mxu1 %v15064_v56 }
 0xa09   : > { %12184 = vmatprep.subr.bf16.mxu0 %v15034_v30  ;;  %12200 = vmatprep.subr.bf16.mxu1 %v15120_v47  ;;  %v8777_v22 = vpop.permute.xlu0 %8776 }
 0xa0a   : > { %7122 = vmatprep.mubr.f32.mxu0 %v15678_v60  ;;  %7456 = vmatprep.mubr.f32.mxu1 %v15678_v60  ;;  %v8787_v62 = vsel %vm1326_vm6, %v8777_v22, %v8775_v32  ;;  %v8779_v19 = vsel %vm1326_vm6, %v8775_v32, %v8777_v22  ;;  %v11837_v22 = vld [vmem:[%s15618_s17 + $0x34] sm:$0x7] }
 0xa0b   : > { %v8791_v26 = vmul.f32 %v8787_v62, %v13138_v63  ;;  %v8790_v63 = vmul.f32 %v8779_v19, %v13167_v18  ;;  %v11781_v18 = vld [vmem:[%s15618_s17 + $0x2c] sm:$0x7] }
 0xa0d   : > { %v15256_v23 = vpack.c.bf16 %v8791_v26, %v8789_v43  ;;  %v15345_v9 = vpop.permute.xlu0 %10277 }
 0xa0f   : > { %11744 = vmatmul.mubr.msk.f32.vlgmr.msra.gmra.mrb[26].mxu0 %vm678_vm0, %v11743_v1  ;;  %11753 = vmatmul.mubr.msk.f32.vlgmr.msra.gmra.mrb[22].mxu1 %vm678_vm0, %v11752_v5  ;;  %v15273_v1 = vpack.c.bf16 %v8790_v63, %v8788_v52  ;;  %v11790_v5 = vld [vmem:[%s15618_s17 + $0x3c] sm:$0x7] }
 0xa10   : > { %12186 = vmatpush1.bf16.msra.mxu0 %v15064_v56  ;;  %12202 = vmatpush1.bf16.msra.mxu1 %v15137_v3 }
 0xa11   : > { %12204 = vmatprep.subr.bf16.mxu0 %v15008_v20  ;;  %12220 = vmatprep.subr.bf16.mxu1 %v15034_v30 }
 0xa12   : > { %7199 = vmatprep.mubr.f32.mxu0 %v15678_v60  ;;  %7559 = vmatprep.mubr.f32.mxu1 %v15678_v60 }
 0xa17   : > { %11746 = vmatmul.mubr.msk.f32.vlgmr.msra.gmra.mrb[26].mxu0 %vm678_vm0, %v11745_v28  ;;  %11755 = vmatmul.mubr.msk.f32.vlgmr.msra.gmra.mrb[22].mxu1 %vm678_vm0, %v11754_v58  ;;  %v11798_v28 = vld [vmem:[%s15618_s17 + $0xc] sm:$0x7]  ;;  %v11807_v58 = vld [vmem:[%s15618_s17 + $0x1c] sm:$0x7] }
 0xa18   : > { %12206 = vmatpush1.bf16.msra.mxu0 %v15030_v16  ;;  %12222 = vmatpush1.bf16.msra.mxu1 %v15064_v56 }
 0xa19   : > { %12208 = vmatprep.subr.bf16.mxu0 %v15049_v41  ;;  %12224 = vmatprep.subr.bf16.mxu1 %v15008_v20 }
 0xa1a   : > { %7647 = vmatprep.mubr.f32.mxu0 %v15678_v60  ;;  %7985 = vmatprep.mubr.f32.mxu1 %v15678_v60 }
 0xa1b   : > { %11759 = vmatmul.mubr.msk.f32.vlgmr.msra.gmra.mrb[28].mxu0 %vm678_vm0, %v11758_v61  ;;  %11768 = vmatmul.mubr.msk.f32.vlgmr.msra.gmra.mrb[24].mxu1 %vm678_vm0, %v11767_v55  ;;  %v15357_v61 = vpop.permute.xlu1 %10275 }
 0xa1c   : > { %12210 = vmatpush1.bf16.msra.mxu0 %v15046_v38  ;;  %12226 = vmatpush1.bf16.msra.mxu1 %v15030_v16  ;;  %v10283_v19 = vsel %vm1469_vm7, %v15357_v61, %v15345_v9 }
 0xa1d   : > { %12212 = vmatprep.subr.bf16.mxu0 %v15174_v57  ;;  %12228 = vmatprep.subr.bf16.mxu1 %v14871_v59 }
 0xa1e   : > { %7721 = vmatprep.mubr.f32.mxu0 %v15678_v60  ;;  %8059 = vmatprep.mubr.f32.mxu1 %v15678_v60 }
 0xa23   : > { %11760 = vmatmul.mubr.msk.f32.vlgmr.msra.gmra.mrb[28].mxu0 %vm678_vm0, %v11757_v6  ;;  %11769 = vmatmul.mubr.msk.f32.vlgmr.msra.gmra.mrb[24].mxu1 %vm678_vm0, %v11766_v54 }
 0xa24   : > { %12214 = vmatpush1.bf16.msra.mxu0 %v15191_v25  ;;  %12230 = vmatpush1.bf16.msra.mxu1 %v14863_v51 }
 0xa25   : > { %12216 = vmatprep.subr.bf16.mxu0 %v14871_v59  ;;  %12232 = vmatprep.subr.bf16.mxu1 %v14869_v46 }
 0xa26   : > { %7819 = vmatprep.mubr.f32.mxu0 %v15678_v60  ;;  %8135 = vmatprep.mubr.f32.mxu1 %v15678_v60 }
 0xa2b   : > { %11762 = vmatmul.mubr.msk.f32.vlgmr.msra.gmra.mrb[28].mxu0 %vm678_vm0, %v11761_v53  ;;  %11771 = vmatmul.mubr.msk.f32.vlgmr.msra.gmra.mrb[24].mxu1 %vm678_vm0, %v11770_v27  ;;  %v11815_v53 = vld [vmem:[%s15618_s17 + $0xc] sm:$0x7]  ;;  %v11824_v27 = vld [vmem:[%s15618_s17 + $0x1c] sm:$0x7] }
 0xa2c   : > { %12218 = vmatpush1.bf16.msra.mxu0 %v14863_v51  ;;  %12234 = vmatpush1.bf16.msra.mxu1 %v14865_v37 }
 0xa2d   : > { %12236 = vmatprep.subr.bf16.mxu0 %v15034_v30  ;;  %12252 = vmatprep.subr.bf16.mxu1 %v15120_v47 }
 0xa2e   : > { %7897 = vmatprep.mubr.f32.mxu0 %v15678_v60  ;;  %8213 = vmatprep.mubr.f32.mxu1 %v15678_v60 }
 0xa33   : > { %11764 = vmatmul.mubr.msk.f32.vlgmr.msra.gmra.mrb[28].mxu0 %vm678_vm0, %v11763_v12  ;;  %11773 = vmatmul.mubr.msk.f32.vlgmr.msra.gmra.mrb[24].mxu1 %vm678_vm0, %v11772_v35  ;;  %v10291_v12 = vsel %vm1469_vm7, %v15345_v9, %v15357_v61  ;;  %v11840_v9 = vld [vmem:[%s15618_s17 + $0x38] sm:$0x7]  ;;  %v11842_v61 = vld [vmem:[%s15618_s17 + $0x3c] sm:$0x7] }
 0xa34   : > { %12238 = vmatpush1.bf16.msra.mxu0 %v15064_v56  ;;  %12254 = vmatpush1.bf16.msra.mxu1 %v15137_v3  ;;  %v10294_v32 = vmul.f32 %v10291_v12, %v13175_v21 }
 0xa35   : > { %12240 = vmatprep.subr.bf16.mxu0 %v15008_v20  ;;  %12256 = vmatprep.subr.bf16.mxu1 %v15034_v30 }
 0xa36   : > { %8299 = vmatprep.mubr.f32.mxu0 %v15678_v60  ;;  %8611 = vmatprep.mubr.f32.mxu1 %v15678_v60 }
 0xa37   : > { %11777 = vmatmul.mubr.msk.f32.vlgmr.msra.gmra.mrb[30].mxu0 %vm678_vm0, %v11776_v50  ;;  %11786 = vmatmul.mubr.msk.f32.vlgmr.msra.gmra.mrb[26].mxu1 %vm678_vm0, %v11785_v39  ;;  %v11828_v39 = vld [vmem:[%s15618_s17 + $0x24] sm:$0x7] }
 0xa38   : > { %12242 = vmatpush1.bf16.msra.mxu0 %v15030_v16  ;;  %12258 = vmatpush1.bf16.msra.mxu1 %v15064_v56 }
 0xa39   : > { %12244 = vmatprep.subr.bf16.mxu0 %v14871_v59  ;;  %12260 = vmatprep.subr.bf16.mxu1 %v14869_v46 }
 0xa3a   : > { %8373 = vmatprep.mubr.f32.mxu0 %v15678_v60  ;;  %8685 = vmatprep.mubr.f32.mxu1 %v15678_v60 }
 0xa3f   : > { %11778 = vmatmul.mubr.msk.f32.vlgmr.msra.gmra.mrb[30].mxu0 %vm678_vm0, %v11775_v34  ;;  %11787 = vmatmul.mubr.msk.f32.vlgmr.msra.gmra.mrb[26].mxu1 %vm678_vm0, %v11784_v7 }
 0xa40   : > { %12246 = vmatpush1.bf16.msra.mxu0 %v14863_v51  ;;  %12262 = vmatpush1.bf16.msra.mxu1 %v14865_v37 }
 0xa41   : > { %12248 = vmatprep.subr.bf16.mxu0 %v14869_v46  ;;  %12264 = vmatprep.subr.bf16.mxu1 %v15256_v23 }
 0xa42   : > { %8448 = vmatprep.mubr.f32.mxu0 %v15678_v60  ;;  %8760 = vmatprep.mubr.f32.mxu1 %v15678_v60 }
 0xa47   : > { %11780 = vmatmul.mubr.msk.f32.vlgmr.msra.gmra.mrb[30].mxu0 %vm678_vm0, %v11779_v15  ;;  %11789 = vmatmul.mubr.msk.f32.vlgmr.msra.gmra.mrb[26].mxu1 %vm678_vm0, %v11788_v17  ;;  %v10293_v17 = vmul.f32 %v10283_v19, %v13203_v31 }
 0xa48   : > { %12250 = vmatpush1.bf16.msra.mxu0 %v14865_v37  ;;  %12266 = vmatpush1.bf16.msra.mxu1 %v15273_v1 }
 0xa49   : > { %12268 = vmatprep.subr.bf16.mxu0 %v15008_v20  ;;  %12284 = vmatprep.subr.bf16.mxu1 %v15034_v30 }
 0xa4a   : > { %8525 = vmatprep.mubr.f32.mxu0 %v15678_v60  ;;  %8859 = vmatprep.mubr.f32.mxu1 %v15678_v60 }
 0xa4f   : > { %11782 = vmatmul.mubr.msk.f32.vlgmr.msra.gmra.mrb[30].mxu0 %vm678_vm0, %v11781_v18  ;;  %11791 = vmatmul.mubr.msk.f32.vlgmr.msra.gmra.mrb[26].mxu1 %vm678_vm0, %v11790_v5  ;;  %v11827_v5 = vld [vmem:[%s15618_s17 + $0x20] sm:$0x7] }
 0xa50   : > { %12270 = vmatpush1.bf16.msra.mxu0 %v15030_v16  ;;  %12286 = vmatpush1.bf16.msra.mxu1 %v15064_v56 }
 0xa51   : > { %12272 = vmatprep.subr.bf16.mxu0 %v15049_v41  ;;  %12288 = vmatprep.subr.bf16.mxu1 %v15008_v20  ;;  %v8876_v41 = vld [vmem:[%s15618_s17] sm:$0x7] }
 0xa52   : > { %8945 = vmatprep.mubr.f32.mxu0 %v15678_v60  ;;  %9257 = vmatprep.mubr.f32.mxu1 %v15678_v60 }
 0xa53   : > { %11794 = vmatmul.mubr.msk.f32.vlgmr.msra.gmra.mrb[32].mxu0 %vm678_vm0, %v11793_v49  ;;  %11803 = vmatmul.mubr.msk.f32.vlgmr.msra.gmra.mrb[28].mxu1 %vm678_vm0, %v11802_v11  ;;  %v11836_v49 = vld [vmem:[%s15618_s17 + $0x30] sm:$0x7] }
 0xa54   : > { %12274 = vmatpush1.bf16.msra.mxu0 %v15046_v38  ;;  %12290 = vmatpush1.bf16.msra.mxu1 %v15030_v16  ;;  %v11796_v38 = vld [vmem:[%s15618_s17 + $0x8] sm:$0x7] }
 0xa55   : > { %12276 = vmatprep.subr.bf16.mxu0 %v15174_v57  ;;  %12292 = vmatprep.subr.bf16.mxu1 %v14871_v59 }
 0xa56   : > { %9019 = vmatprep.mubr.f32.mxu0 %v15678_v60  ;;  %9331 = vmatprep.mubr.f32.mxu1 %v15678_v60 }
 0xa5b   : > { %11795 = vmatmul.mubr.msk.f32.vlgmr.msra.gmra.mrb[32].mxu0 %vm678_vm0, %v8876_v41  ;;  %11804 = vmatmul.mubr.msk.f32.vlgmr.msra.gmra.mrb[28].mxu1 %vm678_vm0, %v11801_v24 }
 0xa5c   : > { %12278 = vmatpush1.bf16.msra.mxu0 %v15191_v25  ;;  %12294 = vmatpush1.bf16.msra.mxu1 %v14863_v51 }
 0xa5d   : > { %12280 = vmatprep.subr.bf16.mxu0 %v14871_v59  ;;  %12296 = vmatprep.subr.bf16.mxu1 %v14869_v46 }
 0xa5e   : > { %9094 = vmatprep.mubr.f32.mxu0 %v15678_v60  ;;  %9406 = vmatprep.mubr.f32.mxu1 %v15678_v60 }
 0xa63   : > { %11797 = vmatmul.mubr.msk.f32.vlgmr.msra.gmra.mrb[32].mxu0 %vm678_vm0, %v11796_v38  ;;  %11806 = vmatmul.mubr.msk.f32.vlgmr.msra.gmra.mrb[28].mxu1 %vm678_vm0, %v11805_v2 }
 0xa64   : > { %12282 = vmatpush1.bf16.msra.mxu0 %v14863_v51  ;;  %12298 = vmatpush1.bf16.msra.mxu1 %v14865_v37 }
 0xa65   : > { %12300 = vmatprep.subr.bf16.mxu0 %v15034_v30  ;;  %12316 = vmatprep.subr.bf16.mxu1 %v15120_v47  ;;  %v11810_v47 = vld [vmem:[%s15618_s17 + $0x4] sm:$0x7] }
 0xa66   : > { %9171 = vmatprep.mubr.f32.mxu0 %v15678_v60  ;;  %9483 = vmatprep.mubr.f32.mxu1 %v15678_v60 }
 0xa6b   : > { %11799 = vmatmul.mubr.msk.f32.vlgmr.msra.gmra.mrb[32].mxu0 %vm678_vm0, %v11798_v28  ;;  %11808 = vmatmul.mubr.msk.f32.vlgmr.msra.gmra.mrb[28].mxu1 %vm678_vm0, %v11807_v58  ;;  %v11831_v58 = vld [vmem:[%s15618_s17 + $0x28] sm:$0x7] }
 0xa6c   : > { %12302 = vmatpush1.bf16.msra.mxu0 %v15064_v56  ;;  %12318 = vmatpush1.bf16.msra.mxu1 %v15137_v3  ;;  %v10282_v3 = vpop.permute.xlu0 %10281 }
 0xa6d   : > { %12304 = vmatprep.subr.bf16.mxu0 %v15008_v20  ;;  %12320 = vmatprep.subr.bf16.mxu1 %v15034_v30  ;;  %v10280_v20 = vpop.permute.xlu1 %10279  ;;  %v9500_v30 = vld [vmem:[%s15618_s17] sm:$0x7] }
 0xa6e   : > { %9569 = vmatprep.mubr.f32.mxu0 %v15678_v60  ;;  %9881 = vmatprep.mubr.f32.mxu1 %v15678_v60  ;;  %v10292_v6 = vsel %vm1469_vm7, %v10282_v3, %v10280_v20  ;;  %v10284_v26 = vsel %vm1469_vm7, %v10280_v20, %v10282_v3  ;;  %v11855_v20 = vld [vmem:[%s15618_s17 + $0x34] sm:$0x7] }
 0xa6f   : > { %11811 = vmatmul.mubr.msk.f32.vlgmr.msra.gmra.mrb[34].mxu0 %vm678_vm0, %v11810_v47  ;;  %11820 = vmatmul.mubr.msk.f32.vlgmr.msra.gmra.mrb[30].mxu1 %vm678_vm0, %v11819_v8  ;;  %v10296_v4 = vmul.f32 %v10292_v6, %v13175_v21  ;;  %v10295_v63 = vmul.f32 %v10284_v26, %v13203_v31  ;;  %v11833_v8 = vld [vmem:[%s15618_s17 + $0x2c] sm:$0x7] }
 0xa70   : > { %12306 = vmatpush1.bf16.msra.mxu0 %v15030_v16  ;;  %12322 = vmatpush1.bf16.msra.mxu1 %v15064_v56  ;;  %v11818_v16 = vld [vmem:[%s15618_s17 + $0x10] sm:$0x7]  ;;  %v10377_v55 = vpop.permute.xlu0 %10376 }
 0xa71   : > { %12308 = vmatprep.subr.bf16.mxu0 %v14871_v59  ;;  %12324 = vmatprep.subr.bf16.mxu1 %v14869_v46  ;;  %v10375_v56 = vpop.permute.xlu1 %10374  ;;  %v12339_v21 = vpack.c.bf16 %v10296_v4, %v10294_v32  ;;  %v12341_v41 = vpack.c.bf16 %v10295_v63, %v10293_v17 }
 0xa72   : > { %9643 = vmatprep.mubr.f32.mxu0 %v15678_v60  ;;  %9955 = vmatprep.mubr.f32.mxu1 %v15678_v60  ;;  %v10390_v35 = vsel %vm1613_vm8, %v10377_v55, %v10375_v56  ;;  %v10382_v44 = vsel %vm1613_vm8, %v10375_v56, %v10377_v55  ;;  %v11845_v55 = vld [vmem:[%s15618_s17 + $0x20] sm:$0x7] }
 0xa73   : > { %v10393_v62 = vmul.f32 %v10390_v35, %v13207_v33  ;;  %v10392_v18 = vmul.f32 %v10382_v44, %v13232_v45 }
 0xa74   : > { %v10381_v40 = vpop.permute.xlu0 %10380 }
 0xa75   : > { %v10379_v13 = vpop.permute.xlu1 %10378 }
 0xa76   : > { %v10391_v54 = vsel %vm1613_vm8, %v10381_v40, %v10379_v13  ;;  %v10383_v34 = vsel %vm1613_vm8, %v10379_v13, %v10381_v40  ;;  %v11849_v13 = vld [vmem:[%s15618_s17 + $0x28] sm:$0x7] }
 0xa77   : > { %11812 = vmatmul.mubr.msk.f32.vlgmr.msra.gmra.mrb[34].mxu0 %vm678_vm0, %v9500_v30  ;;  %11821 = vmatmul.mubr.msk.f32.vlgmr.msra.gmra.mrb[30].mxu1 %vm678_vm0, %v11818_v16  ;;  %v10395_v50 = vmul.f32 %v10391_v54, %v13207_v33  ;;  %v10394_v52 = vmul.f32 %v10383_v34, %v13232_v45  ;;  %v11860_v54 = vld [vmem:[%s15618_s17 + $0x3c] sm:$0x7] }
 0xa78   : > { %12310 = vmatpush1.bf16.msra.mxu0 %v14863_v51  ;;  %12326 = vmatpush1.bf16.msra.mxu1 %v14865_v37  ;;  %v10711_v14 = vpop.permute.xlu0 %10710 }
 0xa79   : > { %12312 = vmatprep.subr.bf16.mxu0 %v14869_v46  ;;  %12328 = vmatprep.subr.bf16.mxu1 %v15256_v23  ;;  %v10709_v29 = vpop.permute.xlu1 %10708  ;;  %v15433_v43 = vpack.c.bf16 %v10395_v50, %v10393_v62  ;;  %v12345_v24 = vpack.c.bf16 %v10394_v52, %v10392_v18 }
 0xa7a   : > { %9718 = vmatprep.mubr.f32.mxu0 %v15678_v60  ;;  %10030 = vmatprep.mubr.f32.mxu1 %v15678_v60  ;;  %v10724_v15 = vsel %vm1613_vm8, %v10711_v14, %v10709_v29  ;;  %v10716_v2 = vsel %vm1613_vm8, %v10709_v29, %v10711_v14  ;;  %v11858_v14 = vld [vmem:[%s15618_s17 + $0x38] sm:$0x7] }
 0xa7b   : > { %v10727_v11 = vmul.f32 %v10724_v15, %v13207_v33 }
 0xa7c   : > { %v10715_v10 = vpop.permute.xlu0 %10714 }
 0xa7d   : > { %v10713_v7 = vpop.permute.xlu1 %10712 }
 0xa7e   : > { %v10717_v38 = vsel %vm1613_vm8, %v10713_v7, %v10715_v10 }
 0xa7f   : > { %11814 = vmatmul.mubr.msk.f32.vlgmr.msra.gmra.mrb[34].mxu0 %vm678_vm0, %v11813_v0  ;;  %11823 = vmatmul.mubr.msk.f32.vlgmr.msra.gmra.mrb[30].mxu1 %vm678_vm0, %v11822_v42  ;;  %v10728_v28 = vmul.f32 %v10717_v38, %v13232_v45 }
 0xa80   : > { %12314 = vmatpush1.bf16.msra.mxu0 %v14865_v37  ;;  %12330 = vmatpush1.bf16.msra.mxu1 %v15273_v1 }
 0xa81   : > { %12332 = vmatprep.subr.bf16.mxu0 %v14871_v59  ;;  %12348 = vmatprep.subr.bf16.mxu1 %v14869_v46  ;;  %v11355_v3 = vpop.permute.xlu1 %11354 }
 0xa82   : > { %9795 = vmatprep.mubr.f32.mxu0 %v15678_v60  ;;  %10107 = vmatprep.mubr.f32.mxu1 %v15678_v60 }
 0xa85   : > { %v11359_v16 = vpop.permute.xlu1 %11358 }
 0xa87   : > { %11816 = vmatmul.mubr.msk.f32.vlgmr.msra.gmra.mrb[34].mxu0 %vm678_vm0, %v11815_v53  ;;  %11825 = vmatmul.mubr.msk.f32.vlgmr.msra.gmra.mrb[30].mxu1 %vm678_vm0, %v11824_v27 }
 0xa88   : > { %12334 = vmatpush1.bf16.msra.mxu0 %v14863_v51  ;;  %12350 = vmatpush1.bf16.msra.mxu1 %v14865_v37 }
 0xa89   : > { %12336 = vmatprep.subr.bf16.mxu0 %v15174_v57  ;;  %12352 = vmatprep.subr.bf16.mxu1 %v14871_v59  ;;  %v10725_v57 = vsel %vm1613_vm8, %v10715_v10, %v10713_v7  ;;  %v15542_v53 = vpop.permute.xlu1 %6556 }
 0xa8a   : > { %10193 = vmatprep.mubr.f32.mxu0 %v15678_v60  ;;  %10549 = vmatprep.mubr.f32.mxu1 %v15678_v60 }
 0xa8b   : > { %11829 = vmatmul.mubr.msk.f32.vlgmr.msra.gmra.mrb[36].mxu0 %vm678_vm0, %v11828_v39  ;;  %11838 = vmatmul.mubr.msk.f32.vlgmr.msra.gmra.mrb[32].mxu1 %vm678_vm0, %v11837_v22 }
 0xa8c   : > { %12338 = vmatpush1.bf16.msra.mxu0 %v15191_v25  ;;  %12354 = vmatpush1.bf16.msra.mxu1 %v14863_v51  ;;  %v10729_v25 = vmul.f32 %v10725_v57, %v13207_v33  ;;  %v10726_v33 = vmul.f32 %v10716_v2, %v13232_v45  ;;  %v11357_v45 = vpop.permute.xlu0 %11356 }
 0xa8d   : > { %12340 = vmatprep.subr.bf16.mxu0 %v12339_v21  ;;  %12356 = vmatprep.subr.bf16.mxu1 %v15433_v43  ;;  %v11362_v42 = vsel %vm1756_vm9, %v11355_v3, %v11357_v45 }
 0xa8e   : > { %10267 = vmatprep.mubr.f32.mxu0 %v15678_v60  ;;  %10623 = vmatprep.mubr.f32.mxu1 %v15678_v60  ;;  %v12359_v31 = vpack.c.bf16 %v10729_v25, %v10727_v11  ;;  %v12361_v47 = vpack.c.bf16 %v10728_v28, %v10726_v33 }
 0xa90   : > { %v11361_v30 = vpop.permute.xlu0 %11360 }
 0xa91   : > { %v11363_v56 = vsel %vm1756_vm9, %v11359_v16, %v11361_v30 }
 0xa92   : > { %v11374_v40 = vmul.f32 %v11363_v56, %v15706_v36 }
 0xa93   : > { %11830 = vmatmul.mubr.msk.f32.vlgmr.msra.gmra.mrb[36].mxu0 %vm678_vm0, %v11827_v5  ;;  %11839 = vmatmul.mubr.msk.f32.vlgmr.msra.gmra.mrb[32].mxu1 %vm678_vm0, %v11836_v49 }
 0xa94   : > { %12342 = vmatpush1.bf16.msra.mxu0 %v12341_v41  ;;  %12358 = vmatpush1.bf16.msra.mxu1 %v12345_v24 }
 0xa95   : > { %12344 = vmatprep.subr.bf16.mxu0 %v15433_v43  ;;  %12360 = vmatprep.subr.bf16.mxu1 %v12359_v31 }
 0xa96   : > { %10364 = vmatprep.mubr.f32.mxu0 %v15678_v60  ;;  %10698 = vmatprep.mubr.f32.mxu1 %v15678_v60 }
 0xa9b   : > { %11832 = vmatmul.mubr.msk.f32.vlgmr.msra.gmra.mrb[36].mxu0 %vm678_vm0, %v11831_v58  ;;  %11841 = vmatmul.mubr.msk.f32.vlgmr.msra.gmra.mrb[32].mxu1 %vm678_vm0, %v11840_v9 }
 0xa9c   : > { %12346 = vmatpush1.bf16.msra.mxu0 %v12345_v24  ;;  %12362 = vmatpush1.bf16.msra.mxu1 %v12361_v47 }
 0xa9d   : > { %12364 = vmatprep.subr.bf16.mxu0 %v14869_v46  ;;  %12380 = vmatprep.subr.bf16.mxu1 %v15256_v23  ;;  %v11846_v23 = vld [vmem:[%s15618_s17 + $0x24] sm:$0x7] }
 0xa9e   : > { %10463 = vmatprep.mubr.f32.mxu0 %v15678_v60  ;;  %10797 = vmatprep.mubr.f32.mxu1 %v15678_v60 }
 0xaa3   : > { %11834 = vmatmul.mubr.msk.f32.vlgmr.msra.gmra.mrb[36].mxu0 %vm678_vm0, %v11833_v8  ;;  %11843 = vmatmul.mubr.msk.f32.vlgmr.msra.gmra.mrb[32].mxu1 %vm678_vm0, %v11842_v61 }
 0xaa4   : > { %12366 = vmatpush1.bf16.msra.mxu0 %v14865_v37  ;;  %12382 = vmatpush1.bf16.msra.mxu1 %v15273_v1  ;;  %v11371_v1 = vsel %vm1756_vm9, %v11361_v30, %v11359_v16 }
 0xaa5   : > { %12368 = vmatprep.subr.bf16.mxu0 %v14871_v59  ;;  %12384 = vmatprep.subr.bf16.mxu1 %v14869_v46  ;;  %v11370_v46 = vsel %vm1756_vm9, %v11357_v45, %v11355_v3  ;;  %v11375_v59 = vmul.f32 %v11371_v1, %v13240_v48 }
 0xaa6   : > { %10883 = vmatprep.mubr.f32.mxu0 %v15678_v60  ;;  %11195 = vmatprep.mubr.f32.mxu1 %v15678_v60 }
 0xaa7   : > { %11847 = vmatmul.mubr.msk.f32.vlgmr.msra.gmra.mrb[38].mxu0 %vm678_vm0, %v11846_v23  ;;  %11856 = vmatmul.mubr.msk.f32.vlgmr.msra.gmra.mrb[34].mxu1 %vm678_vm0, %v11855_v20 }
 0xaa8   : > { %12370 = vmatpush1.bf16.msra.mxu0 %v14863_v51  ;;  %12386 = vmatpush1.bf16.msra.mxu1 %v14865_v37  ;;  %v11854_v51 = vld [vmem:[%s15618_s17 + $0x30] sm:$0x7]  ;;  %v11373_v37 = vmul.f32 %v11370_v46, %v13240_v48  ;;  %v11372_v48 = vmul.f32 %v11362_v42, %v15706_v36  ;;  %v11851_v36 = vld [vmem:[%s15618_s17 + $0x2c] sm:$0x7] }
 0xaa9   : > { %12372 = vmatprep.subr.bf16.mxu0 %v15433_v43  ;;  %12388 = vmatprep.subr.bf16.mxu1 %v12359_v31 }
 0xaaa   : > { %10957 = vmatprep.mubr.f32.mxu0 %v15678_v60  ;;  %11269 = vmatprep.mubr.f32.mxu1 %v15678_v60  ;;  %v12391_v0 = vpack.c.bf16 %v11375_v59, %v11373_v37  ;;  %v12393_v6 = vpack.c.bf16 %v11374_v40, %v11372_v48 }
 0xaaf   : > { %11848 = vmatmul.mubr.msk.f32.vlgmr.msra.gmra.mrb[38].mxu0 %vm678_vm0, %v11845_v55  ;;  %11857 = vmatmul.mubr.msk.f32.vlgmr.msra.gmra.mrb[34].mxu1 %vm678_vm0, %v11854_v51 }
 0xab0   : > { %12374 = vmatpush1.bf16.msra.mxu0 %v12345_v24  ;;  %12390 = vmatpush1.bf16.msra.mxu1 %v12361_v47 }
 0xab1   : > { %12376 = vmatprep.subr.bf16.mxu0 %v12359_v31  ;;  %12392 = vmatprep.subr.bf16.mxu1 %v12391_v0 }
 0xab2   : > { %11032 = vmatprep.mubr.f32.mxu0 %v15678_v60  ;;  %11344 = vmatprep.mubr.f32.mxu1 %v15678_v60 }
 0xab7   : > { %11850 = vmatmul.mubr.msk.f32.vlgmr.msra.gmra.mrb[38].mxu0 %vm678_vm0, %v11849_v13  ;;  %11859 = vmatmul.mubr.msk.f32.vlgmr.msra.gmra.mrb[34].mxu1 %vm678_vm0, %v11858_v14 }
 0xab8   : > { %12378 = vmatpush1.bf16.msra.mxu0 %v12361_v47  ;;  %12394 = vmatpush1.bf16.msra.mxu1 %v12393_v6 }
 0xab9   : > { %11109 = vmatprep.mubr.f32.mxu0 %v15678_v60  ;;  %11443 = vmatprep.mubr.f32.mxu1 %v15678_v60 }
 0xabf   : > { %11852 = vmatmul.mubr.msk.f32.vlgmr.msra.gmra.mrb[38].mxu0 %vm678_vm0, %v11851_v36  ;;  %11861 = vmatmul.mubr.msk.f32.vlgmr.msra.gmra.mrb[34].mxu1 %vm678_vm0, %v11860_v54 }
 0xace   : > { %v6547_v27 = vpop.f32.mrb[24].mxu0  ;;  %v6889_v29 = vpop.f32.mrb[20].mxu1 }
 0xacf   : > { %v6559_v12 = vadd.f32 %v15542_v53, %v6547_v27  ;;  %v6896_v60 = vadd.f32 %v6889_v29, %v15542_v53  ;;  %v6549_v35 = vpop.f32.mrb[25].mxu0  ;;  %v6891_v4 = vpop.f32.mrb[21].mxu1 }
 0xad0   : > { %v6560_v50 = vadd.f32 %v15542_v53, %v6549_v35  ;;  %v6897_v39 = vadd.f32 %v6891_v4, %v15542_v53 }
 0xad2   : > { %v6563_v22 = vcombine.low %v6559_v12, %v6560_v50  ;;  %v6900_v32 = vcombine.low %v6896_v60, %v6897_v39 }
 0xad4   : > { %6565 = vst [vmem:[%s15552_s23] sm:$0x77] %v6563_v22  ;;  %11739 = vst [vmem:[%s15552_s23 + $0x8] sm:$0x77] %v6900_v32 }
 0xaea   : > { %v7201_v62 = vpop.f32.mrb[26].mxu0  ;;  %v7561_v10 = vpop.f32.mrb[22].mxu1 }
 0xaeb   : > { %v7208_v26 = vadd.f32 %v7201_v62, %v15542_v53  ;;  %v7568_v34 = vadd.f32 %v7561_v10, %v15542_v53  ;;  %v7203_v7 = vpop.f32.mrb[27].mxu0  ;;  %v7563_v21 = vpop.f32.mrb[23].mxu1 }
 0xaec   : > { %v7209_v43 = vadd.f32 %v7203_v7, %v15542_v53  ;;  %v7569_v57 = vadd.f32 %v7563_v21, %v15542_v53 }
 0xaee   : > { %v7212_v19 = vcombine.low %v7208_v26, %v7209_v43  ;;  %v7572_v44 = vcombine.low %v7568_v34, %v7569_v57 }
 0xaf0   : > { %11747 = vst [vmem:[%s15552_s23 + $0x10] sm:$0x77] %v7212_v19  ;;  %11756 = vst [vmem:[%s15552_s23 + $0x18] sm:$0x77] %v7572_v44 }
 0xb06   : > { %v7899_v63 = vpop.f32.mrb[28].mxu0  ;;  %v8215_v52 = vpop.f32.mrb[24].mxu1 }
 0xb07   : > { %v7906_v15 = vadd.f32 %v7899_v63, %v15542_v53  ;;  %v8222_v25 = vadd.f32 %v8215_v52, %v15542_v53  ;;  %v7901_v17 = vpop.f32.mrb[29].mxu0  ;;  %v8217_v18 = vpop.f32.mrb[25].mxu1 }
 0xb08   : > { %v7907_v5 = vadd.f32 %v7901_v17, %v15542_v53  ;;  %v8223_v49 = vadd.f32 %v8217_v18, %v15542_v53 }
 0xb0a   : > { %v7910_v11 = vcombine.low %v7906_v15, %v7907_v5  ;;  %v8226_v41 = vcombine.low %v8222_v25, %v8223_v49 }
 0xb0c   : > { %11765 = vst [vmem:[%s15552_s23 + $0x20] sm:$0x77] %v7910_v11  ;;  %11774 = vst [vmem:[%s15552_s23 + $0x28] sm:$0x77] %v8226_v41 }
 0xb22   : > { %v8527_v24 = vpop.f32.mrb[30].mxu0  ;;  %v8861_v38 = vpop.f32.mrb[26].mxu1 }
 0xb23   : > { %v8534_v31 = vadd.f32 %v8527_v24, %v15542_v53  ;;  %v8868_v2 = vadd.f32 %v8861_v38, %v15542_v53  ;;  %v8529_v28 = vpop.f32.mrb[31].mxu0  ;;  %v8863_v33 = vpop.f32.mrb[27].mxu1 }
 0xb24   : > { %v8535_v58 = vadd.f32 %v8529_v28, %v15542_v53  ;;  %v8869_v9 = vadd.f32 %v8863_v33, %v15542_v53 }
 0xb26   : > { %v8538_v47 = vcombine.low %v8534_v31, %v8535_v58  ;;  %v8872_v45 = vcombine.low %v8868_v2, %v8869_v9 }
 0xb28   : > { %11783 = vst [vmem:[%s15552_s23 + $0x30] sm:$0x77] %v8538_v47  ;;  %11792 = vst [vmem:[%s15552_s23 + $0x38] sm:$0x77] %v8872_v45 }
 0xb3e   : > { %v9173_v8 = vpop.f32.mrb[32].mxu0  ;;  %v9485_v61 = vpop.f32.mrb[28].mxu1 }
 0xb3f   : > { %v9180_v3 = vadd.f32 %v9173_v8, %v15542_v53  ;;  %v9492_v23 = vadd.f32 %v9485_v61, %v15542_v53  ;;  %v9175_v20 = vpop.f32.mrb[33].mxu0  ;;  %v9487_v30 = vpop.f32.mrb[29].mxu1 }
 0xb40   : > { %v9181_v16 = vadd.f32 %v9175_v20, %v15542_v53  ;;  %v9493_v1 = vadd.f32 %v9487_v30, %v15542_v53 }
 0xb42   : > { %v9184_v46 = vcombine.low %v9180_v3, %v9181_v16  ;;  %v9496_v59 = vcombine.low %v9492_v23, %v9493_v1 }
 0xb44   : > { %11800 = vst [vmem:[%s15552_s23 + $0x40] sm:$0x77] %v9184_v46  ;;  %11809 = vst [vmem:[%s15552_s23 + $0x48] sm:$0x77] %v9496_v59 }
 0xb5a   : > { %v9797_v55 = vpop.f32.mrb[34].mxu0  ;;  %v10109_v51 = vpop.f32.mrb[30].mxu1 }
 0xb5b   : > { %v9804_v37 = vadd.f32 %v9797_v55, %v15542_v53  ;;  %v10116_v56 = vadd.f32 %v10109_v51, %v15542_v53  ;;  %v9799_v0 = vpop.f32.mrb[35].mxu0  ;;  %v10111_v42 = vpop.f32.mrb[31].mxu1 }
 0xb5c   : > { %v9805_v40 = vadd.f32 %v9799_v0, %v15542_v53  ;;  %v10117_v48 = vadd.f32 %v10111_v42, %v15542_v53 }
 0xb5e   : > { %v9808_v13 = vcombine.low %v9804_v37, %v9805_v40  ;;  %v10120_v14 = vcombine.low %v10116_v56, %v10117_v48 }
 0xb60   : > { %11817 = vst [vmem:[%s15552_s23 + $0x50] sm:$0x77] %v9808_v13  ;;  %11826 = vst [vmem:[%s15552_s23 + $0x58] sm:$0x77] %v10120_v14 }
 0xb76   : > { %v10465_v6 = vpop.f32.mrb[36].mxu0  ;;  %v10799_v36 = vpop.f32.mrb[32].mxu1 }
 0xb77   : > { %v10472_v54 = vadd.f32 %v10465_v6, %v15542_v53  ;;  %v10806_v27 = vadd.f32 %v10799_v36, %v15542_v53  ;;  %v10467_v29 = vpop.f32.mrb[37].mxu0  ;;  %v10801_v12 = vpop.f32.mrb[33].mxu1 }
 0xb78   : > { %v10473_v60 = vadd.f32 %v10467_v29, %v15542_v53  ;;  %v10807_v35 = vadd.f32 %v10801_v12, %v15542_v53 }
 0xb7a   : > { %v10476_v4 = vcombine.low %v10472_v54, %v10473_v60  ;;  %v10810_v50 = vcombine.low %v10806_v27, %v10807_v35 }
 0xb7c   : > { %11835 = vst [vmem:[%s15552_s23 + $0x60] sm:$0x77] %v10476_v4  ;;  %11844 = vst [vmem:[%s15552_s23 + $0x68] sm:$0x77] %v10810_v50 }
 0xb92   : > { %v11111_v39 = vpop.f32.mrb[38].mxu0  ;;  %v11445_v22 = vpop.f32.mrb[34].mxu1 }
 0xb93   : > { %v11118_v32 = vadd.f32 %v11111_v39, %v15542_v53  ;;  %v11452_v62 = vadd.f32 %v11445_v22, %v15542_v53  ;;  %v11113_v10 = vpop.f32.mrb[39].mxu0  ;;  %v11447_v26 = vpop.f32.mrb[35].mxu1 }
 0xb94   : > { %v11119_v34 = vadd.f32 %v11113_v10, %v15542_v53  ;;  %v11453_v7 = vadd.f32 %v11447_v26, %v15542_v53 }
 0xb96   : > { %v11122_v21 = vcombine.low %v11118_v32, %v11119_v34  ;;  %v11456_v43 = vcombine.low %v11452_v62, %v11453_v7 }
 0xb98   : > { %11853 = vst [vmem:[%s15552_s23 + $0x70] sm:$0x77] %v11122_v21  ;;  %11862 = vst [vmem:[%s15552_s23 + $0x78] sm:$0x77] %v11456_v43 }
 0xb99 PF: > { %s15708_s30 = sld [smem:[#allocation8_spill]] }
 0xb9f   : > { %s31_s0 = sadd.s32 1, %s15708_s30  }
 0xba0   : > { %p28_p5 = scmp.ge.s32.totalorder %s31_s0, 4  }
 0xba2   :  { %30 = sbr.rel (!%p28_p5) target bundleno = 8 (0x8), region = 204 }
 0xba9   :  { %11481 = vsyncpa [#allocation3], 1 }
 0xbaa   :  { %11483 = vsyncpa [#allocation3 + $0x1], 1 }
 0xbab   :  { %11484 = vsyncpa [#allocation5], 1 }

</bundles_post_ra>
